<compile_context>
chip_gen: v5e
topology: v5e:2x2
jax: 0.10.0
libtpu: 0.0.40
codegen_flags: <defaults>
</compile_context>

<pallas_src>
import functools
import math

import jax
import jax.numpy as jnp
from jax.experimental import pallas as pl
from jax.experimental.pallas import tpu as pltpu


# ----------------------------------------------------------------------------
# Generation-dependent tuning knobs.
# ----------------------------------------------------------------------------
def _tpu_generation():
    try:
        kind = jax.devices()[0].device_kind.lower()
    except Exception:
        return 6
    for gen in (7, 6, 5, 4):
        if str(gen) in kind:
            return gen
    return 6


_GEN = _tpu_generation()
if _GEN >= 7:
    # v7x: 64 MiB VMEM per TC, 2 TCs/chip -> direction axis maps onto the cores.
    _VMEM_LIMIT = 48 * 1024 * 1024
    _GX_CHUNK_BUDGET = 8 * 1024 * 1024
    _W_BUDGET = 12 * 1024 * 1024
    _SPLIT_DIRECTIONS_DEFAULT = True
else:
    # v5e / v6e: single TC, 128 MiB VMEM -> fuse directions, larger chunks.
    _VMEM_LIMIT = 96 * 1024 * 1024
    _GX_CHUNK_BUDGET = 24 * 1024 * 1024
    _W_BUDGET = 40 * 1024 * 1024
    _SPLIT_DIRECTIONS_DEFAULT = False


def _round_up(x, m):
    return ((x + m - 1) // m) * m


def _padded_hidden(h):
    # Lane-dense gates / h stores: pad small H up to one full 128-lane vreg;
    # otherwise just keep 4*Hp a multiple of 128.
    if h < 128:
        return 128
    return _round_up(h, 32)


def _sigmoid(x):
    return 1.0 / (1.0 + jnp.exp(-x))


# ----------------------------------------------------------------------------
# Kernel 1: hoisted input projection  gates_x = sum_p X_p @ W_p + bias (bf16 out)
# ----------------------------------------------------------------------------
def _proj_kernel(*refs, n_parts):
    out_ref = refs[-1]
    bias_ref = refs[-2]
    acc = None
    for p in range(n_parts):
        x = refs[p][...].astype(jnp.bfloat16)            # bf16 MXU operands
        w = refs[n_parts + p][...]                       # already bf16
        contrib = jnp.dot(x, w, preferred_element_type=jnp.float32)
        acc = contrib if acc is None else acc + contrib
    out_ref[...] = (acc + bias_ref[...]).astype(out_ref.dtype)


def project_inputs(x_list, w_list, bias2d):
    """gates_x (M, N) bf16 = sum_p X_p @ W_p + bias.

    x_list: list of (M, K_p) activations (f32 for layer 0, bf16 afterwards).
    w_list: list of (K_p, N) bf16 weights (fwd|bwd gates concatenated along N).
    bias2d: (1, N) f32, already b_ih + b_hh per direction, gate order [i,f,o,g].
    """
    M = x_list[0].shape[0]
    N = bias2d.shape[-1]
    TM = M if M <= 512 else 512

    # Tile the output columns if the resident weights would blow the VMEM budget
    # (relevant on v7x at large hidden sizes).
    k_total = sum(w.shape[0] for w in w_list)
    TN = N
    while (TN > 128 and k_total * TN * 2 > _W_BUDGET
           and TN % 2 == 0 and (TN // 2) % 128 == 0):
        TN //= 2
    grid = (pl.cdiv(M, TM), N // TN)

    in_specs = []
    for x in x_list:
        K = x.shape[1]
        in_specs.append(pl.BlockSpec((TM, K), lambda i, j: (i, 0)))
    for w in w_list:
        in_specs.append(pl.BlockSpec((w.shape[0], TN), lambda i, j: (0, j)))
    in_specs.append(pl.BlockSpec((1, TN), lambda i, j: (0, j)))

    kernel = functools.partial(_proj_kernel, n_parts=len(x_list))
    return pl.pallas_call(
        kernel,
        grid=grid,
        in_specs=in_specs,
        out_specs=pl.BlockSpec((TM, TN), lambda i, j: (i, j)),
        out_shape=jax.ShapeDtypeStruct((M, N), jnp.bfloat16),
        compiler_params=pltpu.CompilerParams(
            dimension_semantics=("parallel", "parallel"),
            vmem_limit_bytes=_VMEM_LIMIT),
    )(*(list(x_list) + list(w_list) + [bias2d]))


# ----------------------------------------------------------------------------
# LSTM cell (gate order [i, f, o, g]; bf16 MXU operands, f32 state).
# ----------------------------------------------------------------------------
def _lstm_cell(gx_row, h, c, whh, hp):
    gates = gx_row.astype(jnp.float32) + jnp.dot(
        h.astype(jnp.bfloat16), whh, preferred_element_type=jnp.float32)
    ifo = _sigmoid(gates[:, :3 * hp])                    # one wide sigmoid
    g = jnp.tanh(gates[:, 3 * hp:])                      # one tanh
    c_new = ifo[:, hp:2 * hp] * c + ifo[:, :hp] * g
    h_new = ifo[:, 2 * hp:] * jnp.tanh(c_new)
    return h_new, c_new


# ----------------------------------------------------------------------------
# Kernel 2a: fused recurrence (single TC parts) — both directions in one loop.
# ----------------------------------------------------------------------------
def _fused_rec_kernel(gxf_ref, gxb_ref, whh_ref, *refs,
                      hp, emit_seq, seq_len, ts, unroll, mask_tail):
    if emit_seq:
        hsf_ref, hsb_ref, hn_ref, h_scr, c_scr = refs
    else:
        hn_ref, h_scr, c_scr = refs
        hsf_ref = hsb_ref = None

    tc = pl.program_id(0)
    nt = pl.num_programs(0)

    @pl.when(tc == 0)
    def _():
        h_scr[...] = jnp.zeros_like(h_scr)
        c_scr[...] = jnp.zeros_like(c_scr)

    t0_f = tc * ts                 # global time of forward-chunk row 0
    t0_b = (nt - 1 - tc) * ts      # global time of backward-chunk row 0

    def step(i, carry):
        hf, cf, hb, cb = carry
        rf = i
        rb = ts - 1 - i
        hf_n, cf_n = _lstm_cell(gxf_ref[rf], hf, cf, whh_ref[0], hp)
        hb_n, cb_n = _lstm_cell(gxb_ref[rb], hb, cb, whh_ref[1], hp)
        if mask_tail:
            vf = (t0_f + rf) < seq_len
            vb = (t0_b + rb) < seq_len
            hf_n = jnp.where(vf, hf_n, hf)
            cf_n = jnp.where(vf, cf_n, cf)
            hb_n = jnp.where(vb, hb_n, hb)
            cb_n = jnp.where(vb, cb_n, cb)
        if emit_seq:
            hsf_ref[rf] = hf_n.astype(hsf_ref.dtype)
            hsb_ref[rb] = hb_n.astype(hsb_ref.dtype)
        return hf_n, cf_n, hb_n, cb_n

    init = (h_scr[0], c_scr[0], h_scr[1], c_scr[1])      # one scratch read/chunk
    hf, cf, hb, cb = jax.lax.fori_loop(0, ts, step, init, unroll=unroll)
    h_scr[0] = hf
    c_scr[0] = cf
    h_scr[1] = hb
    c_scr[1] = cb
    hn_ref[0] = hf
    hn_ref[1] = hb


# ----------------------------------------------------------------------------
# Kernel 2b: direction-parallel recurrence (v7x: one direction per TensorCore).
# ----------------------------------------------------------------------------
def _split_rec_kernel(gx_ref, whh_ref, *refs,
                      hp, emit_seq, seq_len, ts, unroll, mask_tail):
    if emit_seq:
        hseq_ref, hn_ref, h_scr, c_scr = refs
    else:
        hn_ref, h_scr, c_scr = refs
        hseq_ref = None

    d = pl.program_id(0)           # 0 = forward, 1 = backward (reversed time)
    tc = pl.program_id(1)
    nt = pl.num_programs(1)

    @pl.when(tc == 0)
    def _():
        h_scr[...] = jnp.zeros_like(h_scr)
        c_scr[...] = jnp.zeros_like(c_scr)

    tblk = tc + d * (nt - 1 - 2 * tc)
    t0 = tblk * ts

    def step(i, carry):
        h, c = carry
        r = i + d * (ts - 1 - 2 * i)          # fwd: 0..ts-1, bwd: ts-1..0
        h_n, c_n = _lstm_cell(gx_ref[r], h, c, whh_ref[...], hp)
        if mask_tail:
            v = (t0 + r) < seq_len
            h_n = jnp.where(v, h_n, h)
            c_n = jnp.where(v, c_n, c)
        if emit_seq:
            hseq_ref[r] = h_n.astype(hseq_ref.dtype)
        return h_n, c_n

    h, c = jax.lax.fori_loop(0, ts, step, (h_scr[...], c_scr[...]),
                             unroll=unroll)
    h_scr[...] = h
    c_scr[...] = c
    hn_ref[...] = h


def bilstm_recurrence(gates_x, whh_stacked, *, emit_seq, split_directions):
    """gates_x: (S, B, 8*Hp) bf16 (fwd|bwd pre-activations, bias folded in).
    whh_stacked: (2, Hp, 4*Hp) bf16.
    Returns ([hseq_fwd, hseq_bwd] each (S,B,Hp) bf16 | None, h_n (2,B,Hp) f32)."""
    S, B, G8 = gates_x.shape
    Hp = whh_stacked.shape[1]
    assert G8 == 8 * Hp

    # cdiv-based time chunking with masked tail (never degenerates to TS=1).
    TS = min(S, max(1, _GX_CHUNK_BUDGET // (B * 8 * Hp * 2)))
    NT = pl.cdiv(S, TS)
    S_pad = NT * TS
    mask_tail = S_pad != S
    if mask_tail:
        gates_x = jnp.pad(gates_x, ((0, S_pad - S), (0, 0), (0, 0)))

    hn_shape = jax.ShapeDtypeStruct((2, B, Hp), jnp.float32)
    common = dict(hp=Hp, emit_seq=emit_seq, seq_len=S, ts=TS,
                  unroll=min(8, TS), mask_tail=mask_tail)

    if split_directions:
        def tmap(d, tc):
            return (tc + d * (NT - 1 - 2 * tc), 0, d)

        gx_spec = pl.BlockSpec((TS, B, 4 * Hp), tmap)
        whh_spec = pl.BlockSpec((None, Hp, 4 * Hp), lambda d, tc: (d, 0, 0))
        hn_spec = pl.BlockSpec((None, B, Hp), lambda d, tc: (d, 0, 0))
        if emit_seq:
            hseq_spec = pl.BlockSpec(
                (None, TS, B, Hp),
                lambda d, tc: (d, tc + d * (NT - 1 - 2 * tc), 0, 0))
            out_specs = (hseq_spec, hn_spec)
            out_shape = (jax.ShapeDtypeStruct((2, S_pad, B, Hp), jnp.bfloat16),
                         hn_shape)
        else:
            out_specs = hn_spec
            out_shape = hn_shape
        outs = pl.pallas_call(
            functools.partial(_split_rec_kernel, **common),
            grid=(2, NT),
            in_specs=[gx_spec, whh_spec],
            out_specs=out_specs,
            out_shape=out_shape,
            scratch_shapes=[pltpu.VMEM((B, Hp), jnp.float32),
                            pltpu.VMEM((B, Hp), jnp.float32)],
            compiler_params=pltpu.CompilerParams(
                dimension_semantics=("parallel", "arbitrary"),
                vmem_limit_bytes=_VMEM_LIMIT),
        )(gates_x, whh_stacked)
        if emit_seq:
            hseq, hn = outs
            if mask_tail:
                hseq = hseq[:, :S]
            return [hseq[0], hseq[1]], hn
        return None, outs

    # Fused variant: one time loop interleaving the independent fwd/bwd chains.
    gxf_spec = pl.BlockSpec((TS, B, 4 * Hp), lambda tc: (tc, 0, 0))
    gxb_spec = pl.BlockSpec((TS, B, 4 * Hp), lambda tc: (NT - 1 - tc, 0, 1))
    whh_spec = pl.BlockSpec((2, Hp, 4 * Hp), lambda tc: (0, 0, 0))
    hn_spec = pl.BlockSpec((2, B, Hp), lambda tc: (0, 0, 0))
    if emit_seq:
        hsf_spec = pl.BlockSpec((TS, B, Hp), lambda tc: (tc, 0, 0))
        hsb_spec = pl.BlockSpec((TS, B, Hp), lambda tc: (NT - 1 - tc, 0, 0))
        out_specs = (hsf_spec, hsb_spec, hn_spec)
        out_shape = (jax.ShapeDtypeStruct((S_pad, B, Hp), jnp.bfloat16),
                     jax.ShapeDtypeStruct((S_pad, B, Hp), jnp.bfloat16),
                     hn_shape)
    else:
        out_specs = hn_spec
        out_shape = hn_shape
    outs = pl.pallas_call(
        functools.partial(_fused_rec_kernel, **common),
        grid=(NT,),
        in_specs=[gxf_spec, gxb_spec, whh_spec],
        out_specs=out_specs,
        out_shape=out_shape,
        scratch_shapes=[pltpu.VMEM((2, B, Hp), jnp.float32),
                        pltpu.VMEM((2, B, Hp), jnp.float32)],
        compiler_params=pltpu.CompilerParams(
            dimension_semantics=("arbitrary",),
            vmem_limit_bytes=_VMEM_LIMIT),
    )(gates_x, gates_x, whh_stacked)
    if emit_seq:
        hsf, hsb, hn = outs
        if mask_tail:
            hsf = hsf[:S]
            hsb = hsb[:S]
        return [hsf, hsb], hn
    return None, outs


# ----------------------------------------------------------------------------
# Full forward pass (jitted so wrapper reshapes / fc fuse in XLA).
# ----------------------------------------------------------------------------
@functools.partial(jax.jit, static_argnames=("hidden_dim", "split_directions"))
def _lstm_forward(params, text, *, hidden_dim, split_directions):
    x = jnp.transpose(text.astype(jnp.float32), (1, 0, 2))   # (S, B, E) time-major
    S, B, E = x.shape
    x_list = [x.reshape(S * B, E)]
    n_layers = len(params["layers"])
    hn = None
    for li, layer in enumerate(params["layers"]):
        Hp = layer["whh"].shape[1]
        gates2d = project_inputs(x_list, layer["w_parts"], layer["bias"])
        gates_x = gates2d.reshape(S, B, 8 * Hp)               # contiguous reshape
        last = li == n_layers - 1
        hseq, hn = bilstm_recurrence(gates_x, layer["whh"],
                                     emit_seq=not last,
                                     split_directions=split_directions)
        if not last:
            x_list = [h.reshape(S * B, Hp) for h in hseq]     # bf16 activations
        # TODO(synk): nn.LSTM inter-layer dropout is train-mode only; this
        # forward uses eval semantics, so dropout is a no-op here.
    H = hidden_dim
    # h_n[-2] = last-layer forward final state, h_n[-1] = last-layer backward.
    last_hidden = jnp.concatenate([hn[0, :, :H], hn[1, :, :H]], axis=-1)  # (B,2H)
    # fc + sigmoid left to XLA: lane-width-1 output is a poor Pallas kernel.
    return jax.nn.sigmoid(last_hidden @ params["fc_w"].T + params["fc_b"])


# ----------------------------------------------------------------------------
# Module: parameters + forward (mirrors the PyTorch LSTM module).
# ----------------------------------------------------------------------------
class LSTMPallas:
    def __init__(self, embedding_dim, hidden_dim, n_layers, dropout, key):
        self.embedding_dim = embedding_dim
        self.hidden_dim = hidden_dim
        self.n_layers = n_layers
        self.dropout = dropout
        H = hidden_dim
        Hp = _padded_hidden(H)
        self.hidden_dim_padded = Hp
        bound = 1.0 / math.sqrt(H)

        def uni(k, shape):
            return jax.random.uniform(k, shape, jnp.float32, -bound, bound)

        def pack_gates(mat):
            """(4H, ...) PyTorch [i,f,g,o] row blocks -> [i,f,o,g], each padded to Hp."""
            i, f, g, o = (mat[k * H:(k + 1) * H] for k in range(4))
            blocks = [i, f, o, g]
            if Hp > H:
                z = jnp.zeros((Hp - H,) + mat.shape[1:], mat.dtype)
                blocks = [jnp.concatenate([b, z], axis=0) for b in blocks]
            return jnp.concatenate(blocks, axis=0)

        def pad_cols(mat):
            """(4Hp, H) -> (4Hp, Hp): zero-pad the h/feature input axis."""
            if Hp == H:
                return mat
            return jnp.concatenate(
                [mat, jnp.zeros((mat.shape[0], Hp - H), mat.dtype)], axis=1)

        layers = []
        raw_layers = []
        kc = 0
        for layer in range(n_layers):
            in_dim = embedding_dim if layer == 0 else 2 * H
            raw_dir = []
            for _ in range(2):                       # 0 = fwd, 1 = bwd
                w_ih = uni(jax.random.fold_in(key, kc + 0), (4 * H, in_dim))
                w_hh = uni(jax.random.fold_in(key, kc + 1), (4 * H, H))
                b_ih = uni(jax.random.fold_in(key, kc + 2), (4 * H,))
                b_hh = uni(jax.random.fold_in(key, kc + 3), (4 * H,))
                raw_dir.append((w_ih, w_hh, b_ih, b_hh))
                kc += 4
            raw_layers.append(raw_dir)

            # Pack: per input part, concat fwd|bwd gate weights along N (8Hp).
            if layer == 0:
                parts = [[pack_gates(raw_dir[d][0]).T for d in range(2)]]
            else:
                parts = []
                for lo in (0, H):        # fwd-feature half, bwd-feature half
                    parts.append(
                        [pad_cols(pack_gates(raw_dir[d][0][:, lo:lo + H])).T
                         for d in range(2)])
            w_parts = [jnp.concatenate(p, axis=1).astype(jnp.bfloat16)
                       for p in parts]                              # (K, 8Hp)
            bias = jnp.concatenate(
                [pack_gates(raw_dir[d][2] + raw_dir[d][3]) for d in range(2)]
            ).reshape(1, 8 * Hp).astype(jnp.float32)
            whh = jnp.stack(
                [pad_cols(pack_gates(raw_dir[d][1])).T for d in range(2)],
                axis=0).astype(jnp.bfloat16)                        # (2, Hp, 4Hp)
            layers.append({"w_parts": w_parts, "bias": bias, "whh": whh})

        fbound = 1.0 / math.sqrt(2 * H)
        fc_w = jax.random.uniform(jax.random.fold_in(key, 1000),
                                  (1, 2 * H), jnp.float32, -fbound, fbound)
        fc_b = jax.random.uniform(jax.random.fold_in(key, 1001),
                                  (1,), jnp.float32, -fbound, fbound)
        self.params = {"layers": layers, "fc_w": fc_w, "fc_b": fc_b}
        self.raw_layers = raw_layers     # PyTorch-layout weights (for reference)

    def forward(self, text, split_directions=None):
        """text: (batch, seq_len, embedding_dim) -> (batch, 1) probabilities."""
        if split_directions is None:
            split_directions = _SPLIT_DIRECTIONS_DEFAULT
        return _lstm_forward(self.params, text,
                             hidden_dim=self.hidden_dim,
                             split_directions=split_directions)

    def predict(self, text):
        return self.forward(text)


# ----------------------------------------------------------------------------
# Pure-JAX f32 reference (PyTorch nn.LSTM bidirectional semantics).
# ----------------------------------------------------------------------------
def _reference_forward(raw_layers, fc_w, fc_b, text, hidden_dim):
    H = hidden_dim
    x = jnp.transpose(text.astype(jnp.float32), (1, 0, 2))    # (S, B, E)
    S, B, _ = x.shape
    inp = x
    finals = None
    for raw_dir in raw_layers:
        outs, finals = [], []
        for dix in range(2):
            w_ih, w_hh, b_ih, b_hh = raw_dir[dix]
            h = jnp.zeros((B, H), jnp.float32)
            c = jnp.zeros((B, H), jnp.float32)
            hs = [None] * S
            order = range(S) if dix == 0 else range(S - 1, -1, -1)
            for t in order:
                gates = inp[t] @ w_ih.T + h @ w_hh.T + b_ih + b_hh
                i_g = jax.nn.sigmoid(gates[:, 0 * H:1 * H])
                f_g = jax.nn.sigmoid(gates[:, 1 * H:2 * H])
                g_g = jnp.tanh(gates[:, 2 * H:3 * H])
                o_g = jax.nn.sigmoid(gates[:, 3 * H:4 * H])
                c = f_g * c + i_g * g_g
                h = o_g * jnp.tanh(c)
                hs[t] = h
            outs.append(jnp.stack(hs))
            finals.append(h)
        inp = jnp.concatenate(outs, axis=-1)
    last_hidden = jnp.concatenate([finals[0], finals[1]], axis=-1)
    return jax.nn.sigmoid(last_hidden @ fc_w.T + fc_b)


if __name__ == "__main__":
    embedding_dim, hidden_dim, n_layers, dropout = 16, 32, 2, 0.5
    batch, seq_len = 2, 8

    key = jax.random.PRNGKey(0)
    model = LSTMPallas(embedding_dim, hidden_dim, n_layers, dropout, key)

    text = jax.random.normal(jax.random.fold_in(key, 7777),
                             (batch, seq_len, embedding_dim), jnp.float32)

    ref = _reference_forward(model.raw_layers, model.params["fc_w"],
                             model.params["fc_b"], text, hidden_dim)

    # Validate both recurrence variants (fused single-TC and direction-parallel)
    # against the pure-JAX f32 reference; bf16 operands -> loose tolerance.
    for split in (False, True):
        out = jax.block_until_ready(model.forward(text, split_directions=split))
        assert out.shape == (batch, 1)
        assert bool(jnp.all((out >= 0.0) & (out <= 1.0)))
        err = float(jnp.max(jnp.abs(out - ref)))
        assert err < 5e-2, f"split_directions={split}: max abs err {err}"

    print("KERNEL_OK")
</pallas_src>

<mosaic_0001>
module attributes {stable_mosaic.version = 11 : i64} {
  func.func @_proj_kernel(%arg0: i32, %arg1: i32, %arg2: memref<16x16xf32, #tpu.memory_space<vmem>>, %arg3: memref<16x1024xbf16, #tpu.memory_space<vmem>>, %arg4: memref<1x1024xf32, #tpu.memory_space<vmem>>, %arg5: memref<16x1024xbf16, #tpu.memory_space<vmem>>) attributes {dimension_semantics = [#tpu.dimension_semantics<parallel>, #tpu.dimension_semantics<parallel>], iteration_bounds = array<i64: 1, 1>, scalar_prefetch = 0 : i64, scratch_operands = 0 : i64, tpu.core_type = #tpu.core_type<tc>, window_params = [{transform_indices = @transform_0, window_bounds = array<i64: 16, 16>}, {transform_indices = @transform_1, window_bounds = array<i64: 16, 1024>}, {transform_indices = @transform_2, window_bounds = array<i64: 1, 1024>}, {transform_indices = @transform_3, window_bounds = array<i64: 16, 1024>}]} {
    %c0 = arith.constant 0 : index
    %c0_0 = arith.constant 0 : index
    %0 = vector.load %arg2[%c0, %c0_0] : memref<16x16xf32, #tpu.memory_space<vmem>>, vector<16x16xf32>
    %1 = arith.truncf %0 : vector<16x16xf32> to vector<16x16xbf16>
    %c0_1 = arith.constant 0 : index
    %c0_2 = arith.constant 0 : index
    %2 = vector.load %arg3[%c0_1, %c0_2] : memref<16x1024xbf16, #tpu.memory_space<vmem>>, vector<16x1024xbf16>
    %cst = arith.constant dense<0.000000e+00> : vector<16x1024xf32>
    %3 = tpu.matmul %1, %2, %cst {dimension_numbers = #tpu.dot_dimension_numbers<[1], [0], [0], [1], [0, 0, 1, 1], [], []>} : vector<16x16xbf16>, vector<16x1024xbf16>, vector<16x1024xf32> -> vector<16x1024xf32>
    %c0_3 = arith.constant 0 : index
    %c0_4 = arith.constant 0 : index
    %4 = vector.load %arg4[%c0_3, %c0_4] : memref<1x1024xf32, #tpu.memory_space<vmem>>, vector<1x1024xf32>
    %5 = vector.broadcast %4 : vector<1x1024xf32> to vector<16x1024xf32>
    %6 = arith.addf %3, %5 : vector<16x1024xf32>
    %7 = arith.truncf %6 : vector<16x1024xf32> to vector<16x1024xbf16>
    %c0_5 = arith.constant 0 : index
    %c0_6 = arith.constant 0 : index
    %8 = vector.load %arg5[%c0_5, %c0_6] : memref<16x1024xbf16, #tpu.memory_space<vmem>>, vector<16x1024xbf16>
    tpu.vector_store %arg5[%c0_5, %c0_6], %7 {strides = array<i32>} : memref<16x1024xbf16, #tpu.memory_space<vmem>>, vector<16x1024xbf16>,
    return
  }
  func.func @transform_0(%arg0: i32, %arg1: i32) -> (i32, i32) {
    %c0_i32 = arith.constant 0 : i32
    %c0_i32_0 = arith.constant 0 : i32
    return %arg0, %c0_i32 : i32, i32
  }
  func.func @transform_1(%arg0: i32, %arg1: i32) -> (i32, i32) {
    %c0_i32 = arith.constant 0 : i32
    %c0_i32_0 = arith.constant 0 : i32
    return %c0_i32, %arg1 : i32, i32
  }
  func.func @transform_2(%arg0: i32, %arg1: i32) -> (i32, i32) {
    %c0_i32 = arith.constant 0 : i32
    %c0_i32_0 = arith.constant 0 : i32
    return %c0_i32, %arg1 : i32, i32
  }
  func.func @transform_3(%arg0: i32, %arg1: i32) -> (i32, i32) {
    %c0_i32 = arith.constant 0 : i32
    return %arg0, %arg1 : i32, i32
  }
}

module attributes {stable_mosaic.version = 11 : i64} {
  func.func @_fused_rec_kernel(%arg0: i32, %arg1: memref<8x2x512xbf16, #tpu.memory_space<vmem>>, %arg2: memref<8x2x512xbf16, #tpu.memory_space<vmem>>, %arg3: memref<2x128x512xbf16, #tpu.memory_space<vmem>>, %arg4: memref<8x2x128xbf16, #tpu.memory_space<vmem>>, %arg5: memref<8x2x128xbf16, #tpu.memory_space<vmem>>, %arg6: memref<2x2x128xf32, #tpu.memory_space<vmem>>, %arg7: memref<2x2x128xf32, #tpu.memory_space<vmem>>, %arg8: memref<2x2x128xf32, #tpu.memory_space<vmem>>) attributes {dimension_semantics = [#tpu.dimension_semantics<arbitrary>], iteration_bounds = array<i64: 1>, scalar_prefetch = 0 : i64, scratch_operands = 2 : i64, tpu.core_type = #tpu.core_type<tc>, window_params = [{transform_indices = @transform_0, window_bounds = array<i64: 8, 2, 512>}, {transform_indices = @transform_1, window_bounds = array<i64: 8, 2, 512>}, {pipeline_mode = #tpu.pipeline_mode<synchronous>, transform_indices = @transform_2, window_bounds = array<i64: 2, 128, 512>}, {transform_indices = @transform_3, window_bounds = array<i64: 8, 2, 128>}, {transform_indices = @transform_4, window_bounds = array<i64: 8, 2, 128>}, {pipeline_mode = #tpu.pipeline_mode<synchronous>, transform_indices = @transform_5, window_bounds = array<i64: 2, 2, 128>}]} {
    %c0_i32 = arith.constant 0 : i32
    %0 = arith.cmpi eq, %arg0, %c0_i32 : i32
    %1 = arith.extui %0 : i1 to i32
    %c0_i32_0 = arith.constant 0 : i32
    %2 = arith.cmpi ne, %1, %c0_i32_0 : i32
    scf.if %2 {
      %cst_213 = arith.constant 0.000000e+00 : f32
      %549 = vector.broadcast %cst_213 : f32 to vector<2x2x128xf32>
      %c0_214 = arith.constant 0 : index
      %c0_215 = arith.constant 0 : index
      %c0_216 = arith.constant 0 : index
      %550 = vector.load %arg7[%c0_214, %c0_215, %c0_216] : memref<2x2x128xf32, #tpu.memory_space<vmem>>, vector<2x2x128xf32>
      tpu.vector_store %arg7[%c0_214, %c0_215, %c0_216], %549 {strides = array<i32>} : memref<2x2x128xf32, #tpu.memory_space<vmem>>, vector<2x2x128xf32>,
      %cst_217 = arith.constant 0.000000e+00 : f32
      %551 = vector.broadcast %cst_217 : f32 to vector<2x2x128xf32>
      %c0_218 = arith.constant 0 : index
      %c0_219 = arith.constant 0 : index
      %c0_220 = arith.constant 0 : index
      %552 = vector.load %arg8[%c0_218, %c0_219, %c0_220] : memref<2x2x128xf32, #tpu.memory_space<vmem>>, vector<2x2x128xf32>
      tpu.vector_store %arg8[%c0_218, %c0_219, %c0_220], %551 {strides = array<i32>} : memref<2x2x128xf32, #tpu.memory_space<vmem>>, vector<2x2x128xf32>,
    } else {
    }
    %c0 = arith.constant 0 : index
    %c0_1 = arith.constant 0 : index
    %c0_2 = arith.constant 0 : index
    %3 = vector.load %arg7[%c0, %c0_1, %c0_2] : memref<2x2x128xf32, #tpu.memory_space<vmem>>, vector<1x2x128xf32>
    %4 = vector.shape_cast %3 : vector<1x2x128xf32> to vector<2x128xf32>
    %c0_3 = arith.constant 0 : index
    %c0_4 = arith.constant 0 : index
    %c0_5 = arith.constant 0 : index
    %5 = vector.load %arg8[%c0_3, %c0_4, %c0_5] : memref<2x2x128xf32, #tpu.memory_space<vmem>>, vector<1x2x128xf32>
    %6 = vector.shape_cast %5 : vector<1x2x128xf32> to vector<2x128xf32>
    %c1 = arith.constant 1 : index
    %c0_6 = arith.constant 0 : index
    %c0_7 = arith.constant 0 : index
    %7 = vector.load %arg7[%c1, %c0_6, %c0_7] : memref<2x2x128xf32, #tpu.memory_space<vmem>>, vector<1x2x128xf32>
    %8 = vector.shape_cast %7 : vector<1x2x128xf32> to vector<2x128xf32>
    %c1_8 = arith.constant 1 : index
    %c0_9 = arith.constant 0 : index
    %c0_10 = arith.constant 0 : index
    %9 = vector.load %arg8[%c1_8, %c0_9, %c0_10] : memref<2x2x128xf32, #tpu.memory_space<vmem>>, vector<1x2x128xf32>
    %10 = vector.shape_cast %9 : vector<1x2x128xf32> to vector<2x128xf32>
    %c0_i32_11 = arith.constant 0 : i32
    %c7_i32 = arith.constant 7 : i32
    %11 = arith.subi %c7_i32, %c0_i32_11 : i32
    %12 = arith.index_cast %c0_i32_11 : i32 to index
    %c0_12 = arith.constant 0 : index
    %c0_13 = arith.constant 0 : index
    %13 = vector.load %arg1[%12, %c0_12, %c0_13] : memref<8x2x512xbf16, #tpu.memory_space<vmem>>, vector<1x2x512xbf16>
    %14 = vector.shape_cast %13 : vector<1x2x512xbf16> to vector<2x512xbf16>
    %c0_14 = arith.constant 0 : index
    %c0_15 = arith.constant 0 : index
    %c0_16 = arith.constant 0 : index
    %15 = vector.load %arg3[%c0_14, %c0_15, %c0_16] : memref<2x128x512xbf16, #tpu.memory_space<vmem>>, vector<1x128x512xbf16>
    %16 = vector.shape_cast %15 : vector<1x128x512xbf16> to vector<128x512xbf16>
    %17 = arith.extf %14 : vector<2x512xbf16> to vector<2x512xf32>
    %18 = arith.truncf %4 : vector<2x128xf32> to vector<2x128xbf16>
    %cst = arith.constant dense<0.000000e+00> : vector<2x512xf32>
    %19 = tpu.matmul %18, %16, %cst {dimension_numbers = #tpu.dot_dimension_numbers<[1], [0], [0], [1], [0, 0, 1, 1], [], []>} : vector<2x128xbf16>, vector<128x512xbf16>, vector<2x512xf32> -> vector<2x512xf32>
    %20 = arith.addf %17, %19 : vector<2x512xf32>
    %21 = vector.extract_strided_slice %20 {offsets = [0, 0], sizes = [2, 384], strides = [1, 1]} : vector<2x512xf32> to vector<2x384xf32>
    %cst_17 = arith.constant 0.000000e+00 : f32
    %22 = vector.broadcast %cst_17 : f32 to vector<2x384xf32>
    %23 = arith.subf %22, %21 : vector<2x384xf32>
    %24 = math.exp %23 : vector<2x384xf32>
    %cst_18 = arith.constant 1.000000e+00 : f32
    %25 = vector.broadcast %cst_18 : f32 to vector<2x384xf32>
    %26 = arith.addf %25, %24 : vector<2x384xf32>
    %cst_19 = arith.constant 1.000000e+00 : f32
    %27 = vector.broadcast %cst_19 : f32 to vector<2x384xf32>
    %28 = arith.divf %27, %26 : vector<2x384xf32>
    %29 = vector.extract_strided_slice %20 {offsets = [0, 384], sizes = [2, 128], strides = [1, 1]} : vector<2x512xf32> to vector<2x128xf32>
    %30 = math.tanh %29 : vector<2x128xf32>
    %31 = vector.extract_strided_slice %28 {offsets = [0, 128], sizes = [2, 128], strides = [1, 1]} : vector<2x384xf32> to vector<2x128xf32>
    %32 = arith.mulf %31, %6 : vector<2x128xf32>
    %33 = vector.extract_strided_slice %28 {offsets = [0, 0], sizes = [2, 128], strides = [1, 1]} : vector<2x384xf32> to vector<2x128xf32>
    %34 = arith.mulf %33, %30 : vector<2x128xf32>
    %35 = arith.addf %32, %34 : vector<2x128xf32>
    %36 = vector.extract_strided_slice %28 {offsets = [0, 256], sizes = [2, 128], strides = [1, 1]} : vector<2x384xf32> to vector<2x128xf32>
    %37 = math.tanh %35 : vector<2x128xf32>
    %38 = arith.mulf %36, %37 : vector<2x128xf32>
    %39 = arith.index_cast %11 : i32 to index
    %c0_20 = arith.constant 0 : index
    %c0_21 = arith.constant 0 : index
    %40 = vector.load %arg2[%39, %c0_20, %c0_21] : memref<8x2x512xbf16, #tpu.memory_space<vmem>>, vector<1x2x512xbf16>
    %41 = vector.shape_cast %40 : vector<1x2x512xbf16> to vector<2x512xbf16>
    %c1_22 = arith.constant 1 : index
    %c0_23 = arith.constant 0 : index
    %c0_24 = arith.constant 0 : index
    %42 = vector.load %arg3[%c1_22, %c0_23, %c0_24] : memref<2x128x512xbf16, #tpu.memory_space<vmem>>, vector<1x128x512xbf16>
    %43 = vector.shape_cast %42 : vector<1x128x512xbf16> to vector<128x512xbf16>
    %44 = arith.extf %41 : vector<2x512xbf16> to vector<2x512xf32>
    %45 = arith.truncf %8 : vector<2x128xf32> to vector<2x128xbf16>
    %cst_25 = arith.constant dense<0.000000e+00> : vector<2x512xf32>
    %46 = tpu.matmul %45, %43, %cst_25 {dimension_numbers = #tpu.dot_dimension_numbers<[1], [0], [0], [1], [0, 0, 1, 1], [], []>} : vector<2x128xbf16>, vector<128x512xbf16>, vector<2x512xf32> -> vector<2x512xf32>
    %47 = arith.addf %44, %46 : vector<2x512xf32>
    %48 = vector.extract_strided_slice %47 {offsets = [0, 0], sizes = [2, 384], strides = [1, 1]} : vector<2x512xf32> to vector<2x384xf32>
    %cst_26 = arith.constant 0.000000e+00 : f32
    %49 = vector.broadcast %cst_26 : f32 to vector<2x384xf32>
    %50 = arith.subf %49, %48 : vector<2x384xf32>
    %51 = math.exp %50 : vector<2x384xf32>
    %cst_27 = arith.constant 1.000000e+00 : f32
    %52 = vector.broadcast %cst_27 : f32 to vector<2x384xf32>
    %53 = arith.addf %52, %51 : vector<2x384xf32>
    %cst_28 = arith.constant 1.000000e+00 : f32
    %54 = vector.broadcast %cst_28 : f32 to vector<2x384xf32>
    %55 = arith.divf %54, %53 : vector<2x384xf32>
    %56 = vector.extract_strided_slice %47 {offsets = [0, 384], sizes = [2, 128], strides = [1, 1]} : vector<2x512xf32> to vector<2x128xf32>
    %57 = math.tanh %56 : vector<2x128xf32>
    %58 = vector.extract_strided_slice %55 {offsets = [0, 128], sizes = [2, 128], strides = [1, 1]} : vector<2x384xf32> to vector<2x128xf32>
    %59 = arith.mulf %58, %10 : vector<2x128xf32>
    %60 = vector.extract_strided_slice %55 {offsets = [0, 0], sizes = [2, 128], strides = [1, 1]} : vector<2x384xf32> to vector<2x128xf32>
    %61 = arith.mulf %60, %57 : vector<2x128xf32>
    %62 = arith.addf %59, %61 : vector<2x128xf32>
    %63 = vector.extract_strided_slice %55 {offsets = [0, 256], sizes = [2, 128], strides = [1, 1]} : vector<2x384xf32> to vector<2x128xf32>
    %64 = math.tanh %62 : vector<2x128xf32>
    %65 = arith.mulf %63, %64 : vector<2x128xf32>
    %66 = arith.truncf %38 : vector<2x128xf32> to vector<2x128xbf16>
    %67 = arith.index_cast %c0_i32_11 : i32 to index
    %c0_29 = arith.constant 0 : index
    %c0_30 = arith.constant 0 : index
    %68 = vector.load %arg4[%67, %c0_29, %c0_30] : memref<8x2x128xbf16, #tpu.memory_space<vmem>>, vector<1x2x128xbf16>
    %69 = vector.shape_cast %68 : vector<1x2x128xbf16> to vector<2x128xbf16>
    %70 = vector.shape_cast %66 : vector<2x128xbf16> to vector<1x2x128xbf16>
    tpu.vector_store %arg4[%67, %c0_29, %c0_30], %70 {strides = array<i32>} : memref<8x2x128xbf16, #tpu.memory_space<vmem>>, vector<1x2x128xbf16>,
    %71 = arith.truncf %65 : vector<2x128xf32> to vector<2x128xbf16>
    %72 = arith.index_cast %11 : i32 to index
    %c0_31 = arith.constant 0 : index
    %c0_32 = arith.constant 0 : index
    %73 = vector.load %arg5[%72, %c0_31, %c0_32] : memref<8x2x128xbf16, #tpu.memory_space<vmem>>, vector<1x2x128xbf16>
    %74 = vector.shape_cast %73 : vector<1x2x128xbf16> to vector<2x128xbf16>
    %75 = vector.shape_cast %71 : vector<2x128xbf16> to vector<1x2x128xbf16>
    tpu.vector_store %arg5[%72, %c0_31, %c0_32], %75 {strides = array<i32>} : memref<8x2x128xbf16, #tpu.memory_space<vmem>>, vector<1x2x128xbf16>,
    %c1_i32 = arith.constant 1 : i32
    %c7_i32_33 = arith.constant 7 : i32
    %76 = arith.subi %c7_i32_33, %c1_i32 : i32
    %77 = arith.index_cast %c1_i32 : i32 to index
    %c0_34 = arith.constant 0 : index
    %c0_35 = arith.constant 0 : index
    %78 = vector.load %arg1[%77, %c0_34, %c0_35] : memref<8x2x512xbf16, #tpu.memory_space<vmem>>, vector<1x2x512xbf16>
    %79 = vector.shape_cast %78 : vector<1x2x512xbf16> to vector<2x512xbf16>
    %c0_36 = arith.constant 0 : index
    %c0_37 = arith.constant 0 : index
    %c0_38 = arith.constant 0 : index
    %80 = vector.load %arg3[%c0_36, %c0_37, %c0_38] : memref<2x128x512xbf16, #tpu.memory_space<vmem>>, vector<1x128x512xbf16>
    %81 = vector.shape_cast %80 : vector<1x128x512xbf16> to vector<128x512xbf16>
    %82 = arith.extf %79 : vector<2x512xbf16> to vector<2x512xf32>
    %83 = arith.truncf %38 : vector<2x128xf32> to vector<2x128xbf16>
    %cst_39 = arith.constant dense<0.000000e+00> : vector<2x512xf32>
    %84 = tpu.matmul %83, %81, %cst_39 {dimension_numbers = #tpu.dot_dimension_numbers<[1], [0], [0], [1], [0, 0, 1, 1], [], []>} : vector<2x128xbf16>, vector<128x512xbf16>, vector<2x512xf32> -> vector<2x512xf32>
    %85 = arith.addf %82, %84 : vector<2x512xf32>
    %86 = vector.extract_strided_slice %85 {offsets = [0, 0], sizes = [2, 384], strides = [1, 1]} : vector<2x512xf32> to vector<2x384xf32>
    %cst_40 = arith.constant 0.000000e+00 : f32
    %87 = vector.broadcast %cst_40 : f32 to vector<2x384xf32>
    %88 = arith.subf %87, %86 : vector<2x384xf32>
    %89 = math.exp %88 : vector<2x384xf32>
    %cst_41 = arith.constant 1.000000e+00 : f32
    %90 = vector.broadcast %cst_41 : f32 to vector<2x384xf32>
    %91 = arith.addf %90, %89 : vector<2x384xf32>
    %cst_42 = arith.constant 1.000000e+00 : f32
    %92 = vector.broadcast %cst_42 : f32 to vector<2x384xf32>
    %93 = arith.divf %92, %91 : vector<2x384xf32>
    %94 = vector.extract_strided_slice %85 {offsets = [0, 384], sizes = [2, 128], strides = [1, 1]} : vector<2x512xf32> to vector<2x128xf32>
    %95 = math.tanh %94 : vector<2x128xf32>
    %96 = vector.extract_strided_slice %93 {offsets = [0, 128], sizes = [2, 128], strides = [1, 1]} : vector<2x384xf32> to vector<2x128xf32>
    %97 = arith.mulf %96, %35 : vector<2x128xf32>
    %98 = vector.extract_strided_slice %93 {offsets = [0, 0], sizes = [2, 128], strides = [1, 1]} : vector<2x384xf32> to vector<2x128xf32>
    %99 = arith.mulf %98, %95 : vector<2x128xf32>
    %100 = arith.addf %97, %99 : vector<2x128xf32>
    %101 = vector.extract_strided_slice %93 {offsets = [0, 256], sizes = [2, 128], strides = [1, 1]} : vector<2x384xf32> to vector<2x128xf32>
    %102 = math.tanh %100 : vector<2x128xf32>
    %103 = arith.mulf %101, %102 : vector<2x128xf32>
    %104 = arith.index_cast %76 : i32 to index
    %c0_43 = arith.constant 0 : index
    %c0_44 = arith.constant 0 : index
    %105 = vector.load %arg2[%104, %c0_43, %c0_44] : memref<8x2x512xbf16, #tpu.memory_space<vmem>>, vector<1x2x512xbf16>
    %106 = vector.shape_cast %105 : vector<1x2x512xbf16> to vector<2x512xbf16>
    %c1_45 = arith.constant 1 : index
    %c0_46 = arith.constant 0 : index
    %c0_47 = arith.constant 0 : index
    %107 = vector.load %arg3[%c1_45, %c0_46, %c0_47] : memref<2x128x512xbf16, #tpu.memory_space<vmem>>, vector<1x128x512xbf16>
    %108 = vector.shape_cast %107 : vector<1x128x512xbf16> to vector<128x512xbf16>
    %109 = arith.extf %106 : vector<2x512xbf16> to vector<2x512xf32>
    %110 = arith.truncf %65 : vector<2x128xf32> to vector<2x128xbf16>
    %cst_48 = arith.constant dense<0.000000e+00> : vector<2x512xf32>
    %111 = tpu.matmul %110, %108, %cst_48 {dimension_numbers = #tpu.dot_dimension_numbers<[1], [0], [0], [1], [0, 0, 1, 1], [], []>} : vector<2x128xbf16>, vector<128x512xbf16>, vector<2x512xf32> -> vector<2x512xf32>
    %112 = arith.addf %109, %111 : vector<2x512xf32>
    %113 = vector.extract_strided_slice %112 {offsets = [0, 0], sizes = [2, 384], strides = [1, 1]} : vector<2x512xf32> to vector<2x384xf32>
    %cst_49 = arith.constant 0.000000e+00 : f32
    %114 = vector.broadcast %cst_49 : f32 to vector<2x384xf32>
    %115 = arith.subf %114, %113 : vector<2x384xf32>
    %116 = math.exp %115 : vector<2x384xf32>
    %cst_50 = arith.constant 1.000000e+00 : f32
    %117 = vector.broadcast %cst_50 : f32 to vector<2x384xf32>
    %118 = arith.addf %117, %116 : vector<2x384xf32>
    %cst_51 = arith.constant 1.000000e+00 : f32
    %119 = vector.broadcast %cst_51 : f32 to vector<2x384xf32>
    %120 = arith.divf %119, %118 : vector<2x384xf32>
    %121 = vector.extract_strided_slice %112 {offsets = [0, 384], sizes = [2, 128], strides = [1, 1]} : vector<2x512xf32> to vector<2x128xf32>
    %122 = math.tanh %121 : vector<2x128xf32>
    %123 = vector.extract_strided_slice %120 {offsets = [0, 128], sizes = [2, 128], strides = [1, 1]} : vector<2x384xf32> to vector<2x128xf32>
    %124 = arith.mulf %123, %62 : vector<2x128xf32>
    %125 = vector.extract_strided_slice %120 {offsets = [0, 0], sizes = [2, 128], strides = [1, 1]} : vector<2x384xf32> to vector<2x128xf32>
    %126 = arith.mulf %125, %122 : vector<2x128xf32>
    %127 = arith.addf %124, %126 : vector<2x128xf32>
    %128 = vector.extract_strided_slice %120 {offsets = [0, 256], sizes = [2, 128], strides = [1, 1]} : vector<2x384xf32> to vector<2x128xf32>
    %129 = math.tanh %127 : vector<2x128xf32>
    %130 = arith.mulf %128, %129 : vector<2x128xf32>
    %131 = arith.truncf %103 : vector<2x128xf32> to vector<2x128xbf16>
    %132 = arith.index_cast %c1_i32 : i32 to index
    %c0_52 = arith.constant 0 : index
    %c0_53 = arith.constant 0 : index
    %133 = vector.load %arg4[%132, %c0_52, %c0_53] : memref<8x2x128xbf16, #tpu.memory_space<vmem>>, vector<1x2x128xbf16>
    %134 = vector.shape_cast %133 : vector<1x2x128xbf16> to vector<2x128xbf16>
    %135 = vector.shape_cast %131 : vector<2x128xbf16> to vector<1x2x128xbf16>
    tpu.vector_store %arg4[%132, %c0_52, %c0_53], %135 {strides = array<i32>} : memref<8x2x128xbf16, #tpu.memory_space<vmem>>, vector<1x2x128xbf16>,
    %136 = arith.truncf %130 : vector<2x128xf32> to vector<2x128xbf16>
    %137 = arith.index_cast %76 : i32 to index
    %c0_54 = arith.constant 0 : index
    %c0_55 = arith.constant 0 : index
    %138 = vector.load %arg5[%137, %c0_54, %c0_55] : memref<8x2x128xbf16, #tpu.memory_space<vmem>>, vector<1x2x128xbf16>
    %139 = vector.shape_cast %138 : vector<1x2x128xbf16> to vector<2x128xbf16>
    %140 = vector.shape_cast %136 : vector<2x128xbf16> to vector<1x2x128xbf16>
    tpu.vector_store %arg5[%137, %c0_54, %c0_55], %140 {strides = array<i32>} : memref<8x2x128xbf16, #tpu.memory_space<vmem>>, vector<1x2x128xbf16>,
    %c2_i32 = arith.constant 2 : i32
    %c7_i32_56 = arith.constant 7 : i32
    %141 = arith.subi %c7_i32_56, %c2_i32 : i32
    %142 = arith.index_cast %c2_i32 : i32 to index
    %c0_57 = arith.constant 0 : index
    %c0_58 = arith.constant 0 : index
    %143 = vector.load %arg1[%142, %c0_57, %c0_58] : memref<8x2x512xbf16, #tpu.memory_space<vmem>>, vector<1x2x512xbf16>
    %144 = vector.shape_cast %143 : vector<1x2x512xbf16> to vector<2x512xbf16>
    %c0_59 = arith.constant 0 : index
    %c0_60 = arith.constant 0 : index
    %c0_61 = arith.constant 0 : index
    %145 = vector.load %arg3[%c0_59, %c0_60, %c0_61] : memref<2x128x512xbf16, #tpu.memory_space<vmem>>, vector<1x128x512xbf16>
    %146 = vector.shape_cast %145 : vector<1x128x512xbf16> to vector<128x512xbf16>
    %147 = arith.extf %144 : vector<2x512xbf16> to vector<2x512xf32>
    %148 = arith.truncf %103 : vector<2x128xf32> to vector<2x128xbf16>
    %cst_62 = arith.constant dense<0.000000e+00> : vector<2x512xf32>
    %149 = tpu.matmul %148, %146, %cst_62 {dimension_numbers = #tpu.dot_dimension_numbers<[1], [0], [0], [1], [0, 0, 1, 1], [], []>} : vector<2x128xbf16>, vector<128x512xbf16>, vector<2x512xf32> -> vector<2x512xf32>
    %150 = arith.addf %147, %149 : vector<2x512xf32>
    %151 = vector.extract_strided_slice %150 {offsets = [0, 0], sizes = [2, 384], strides = [1, 1]} : vector<2x512xf32> to vector<2x384xf32>
    %cst_63 = arith.constant 0.000000e+00 : f32
    %152 = vector.broadcast %cst_63 : f32 to vector<2x384xf32>
    %153 = arith.subf %152, %151 : vector<2x384xf32>
    %154 = math.exp %153 : vector<2x384xf32>
    %cst_64 = arith.constant 1.000000e+00 : f32
    %155 = vector.broadcast %cst_64 : f32 to vector<2x384xf32>
    %156 = arith.addf %155, %154 : vector<2x384xf32>
    %cst_65 = arith.constant 1.000000e+00 : f32
    %157 = vector.broadcast %cst_65 : f32 to vector<2x384xf32>
    %158 = arith.divf %157, %156 : vector<2x384xf32>
    %159 = vector.extract_strided_slice %150 {offsets = [0, 384], sizes = [2, 128], strides = [1, 1]} : vector<2x512xf32> to vector<2x128xf32>
    %160 = math.tanh %159 : vector<2x128xf32>
    %161 = vector.extract_strided_slice %158 {offsets = [0, 128], sizes = [2, 128], strides = [1, 1]} : vector<2x384xf32> to vector<2x128xf32>
    %162 = arith.mulf %161, %100 : vector<2x128xf32>
    %163 = vector.extract_strided_slice %158 {offsets = [0, 0], sizes = [2, 128], strides = [1, 1]} : vector<2x384xf32> to vector<2x128xf32>
    %164 = arith.mulf %163, %160 : vector<2x128xf32>
    %165 = arith.addf %162, %164 : vector<2x128xf32>
    %166 = vector.extract_strided_slice %158 {offsets = [0, 256], sizes = [2, 128], strides = [1, 1]} : vector<2x384xf32> to vector<2x128xf32>
    %167 = math.tanh %165 : vector<2x128xf32>
    %168 = arith.mulf %166, %167 : vector<2x128xf32>
    %169 = arith.index_cast %141 : i32 to index
    %c0_66 = arith.constant 0 : index
    %c0_67 = arith.constant 0 : index
    %170 = vector.load %arg2[%169, %c0_66, %c0_67] : memref<8x2x512xbf16, #tpu.memory_space<vmem>>, vector<1x2x512xbf16>
    %171 = vector.shape_cast %170 : vector<1x2x512xbf16> to vector<2x512xbf16>
    %c1_68 = arith.constant 1 : index
    %c0_69 = arith.constant 0 : index
    %c0_70 = arith.constant 0 : index
    %172 = vector.load %arg3[%c1_68, %c0_69, %c0_70] : memref<2x128x512xbf16, #tpu.memory_space<vmem>>, vector<1x128x512xbf16>
    %173 = vector.shape_cast %172 : vector<1x128x512xbf16> to vector<128x512xbf16>
    %174 = arith.extf %171 : vector<2x512xbf16> to vector<2x512xf32>
    %175 = arith.truncf %130 : vector<2x128xf32> to vector<2x128xbf16>
    %cst_71 = arith.constant dense<0.000000e+00> : vector<2x512xf32>
    %176 = tpu.matmul %175, %173, %cst_71 {dimension_numbers = #tpu.dot_dimension_numbers<[1], [0], [0], [1], [0, 0, 1, 1], [], []>} : vector<2x128xbf16>, vector<128x512xbf16>, vector<2x512xf32> -> vector<2x512xf32>
    %177 = arith.addf %174, %176 : vector<2x512xf32>
    %178 = vector.extract_strided_slice %177 {offsets = [0, 0], sizes = [2, 384], strides = [1, 1]} : vector<2x512xf32> to vector<2x384xf32>
    %cst_72 = arith.constant 0.000000e+00 : f32
    %179 = vector.broadcast %cst_72 : f32 to vector<2x384xf32>
    %180 = arith.subf %179, %178 : vector<2x384xf32>
    %181 = math.exp %180 : vector<2x384xf32>
    %cst_73 = arith.constant 1.000000e+00 : f32
    %182 = vector.broadcast %cst_73 : f32 to vector<2x384xf32>
    %183 = arith.addf %182, %181 : vector<2x384xf32>
    %cst_74 = arith.constant 1.000000e+00 : f32
    %184 = vector.broadcast %cst_74 : f32 to vector<2x384xf32>
    %185 = arith.divf %184, %183 : vector<2x384xf32>
    %186 = vector.extract_strided_slice %177 {offsets = [0, 384], sizes = [2, 128], strides = [1, 1]} : vector<2x512xf32> to vector<2x128xf32>
    %187 = math.tanh %186 : vector<2x128xf32>
    %188 = vector.extract_strided_slice %185 {offsets = [0, 128], sizes = [2, 128], strides = [1, 1]} : vector<2x384xf32> to vector<2x128xf32>
    %189 = arith.mulf %188, %127 : vector<2x128xf32>
    %190 = vector.extract_strided_slice %185 {offsets = [0, 0], sizes = [2, 128], strides = [1, 1]} : vector<2x384xf32> to vector<2x128xf32>
    %191 = arith.mulf %190, %187 : vector<2x128xf32>
    %192 = arith.addf %189, %191 : vector<2x128xf32>
    %193 = vector.extract_strided_slice %185 {offsets = [0, 256], sizes = [2, 128], strides = [1, 1]} : vector<2x384xf32> to vector<2x128xf32>
    %194 = math.tanh %192 : vector<2x128xf32>
    %195 = arith.mulf %193, %194 : vector<2x128xf32>
    %196 = arith.truncf %168 : vector<2x128xf32> to vector<2x128xbf16>
    %197 = arith.index_cast %c2_i32 : i32 to index
    %c0_75 = arith.constant 0 : index
    %c0_76 = arith.constant 0 : index
    %198 = vector.load %arg4[%197, %c0_75, %c0_76] : memref<8x2x128xbf16, #tpu.memory_space<vmem>>, vector<1x2x128xbf16>
    %199 = vector.shape_cast %198 : vector<1x2x128xbf16> to vector<2x128xbf16>
    %200 = vector.shape_cast %196 : vector<2x128xbf16> to vector<1x2x128xbf16>
    tpu.vector_store %arg4[%197, %c0_75, %c0_76], %200 {strides = array<i32>} : memref<8x2x128xbf16, #tpu.memory_space<vmem>>, vector<1x2x128xbf16>,
    %201 = arith.truncf %195 : vector<2x128xf32> to vector<2x128xbf16>
    %202 = arith.index_cast %141 : i32 to index
    %c0_77 = arith.constant 0 : index
    %c0_78 = arith.constant 0 : index
    %203 = vector.load %arg5[%202, %c0_77, %c0_78] : memref<8x2x128xbf16, #tpu.memory_space<vmem>>, vector<1x2x128xbf16>
    %204 = vector.shape_cast %203 : vector<1x2x128xbf16> to vector<2x128xbf16>
    %205 = vector.shape_cast %201 : vector<2x128xbf16> to vector<1x2x128xbf16>
    tpu.vector_store %arg5[%202, %c0_77, %c0_78], %205 {strides = array<i32>} : memref<8x2x128xbf16, #tpu.memory_space<vmem>>, vector<1x2x128xbf16>,
    %c3_i32 = arith.constant 3 : i32
    %c7_i32_79 = arith.constant 7 : i32
    %206 = arith.subi %c7_i32_79, %c3_i32 : i32
    %207 = arith.index_cast %c3_i32 : i32 to index
    %c0_80 = arith.constant 0 : index
    %c0_81 = arith.constant 0 : index
    %208 = vector.load %arg1[%207, %c0_80, %c0_81] : memref<8x2x512xbf16, #tpu.memory_space<vmem>>, vector<1x2x512xbf16>
    %209 = vector.shape_cast %208 : vector<1x2x512xbf16> to vector<2x512xbf16>
    %c0_82 = arith.constant 0 : index
    %c0_83 = arith.constant 0 : index
    %c0_84 = arith.constant 0 : index
    %210 = vector.load %arg3[%c0_82, %c0_83, %c0_84] : memref<2x128x512xbf16, #tpu.memory_space<vmem>>, vector<1x128x512xbf16>
    %211 = vector.shape_cast %210 : vector<1x128x512xbf16> to vector<128x512xbf16>
    %212 = arith.extf %209 : vector<2x512xbf16> to vector<2x512xf32>
    %213 = arith.truncf %168 : vector<2x128xf32> to vector<2x128xbf16>
    %cst_85 = arith.constant dense<0.000000e+00> : vector<2x512xf32>
    %214 = tpu.matmul %213, %211, %cst_85 {dimension_numbers = #tpu.dot_dimension_numbers<[1], [0], [0], [1], [0, 0, 1, 1], [], []>} : vector<2x128xbf16>, vector<128x512xbf16>, vector<2x512xf32> -> vector<2x512xf32>
    %215 = arith.addf %212, %214 : vector<2x512xf32>
    %216 = vector.extract_strided_slice %215 {offsets = [0, 0], sizes = [2, 384], strides = [1, 1]} : vector<2x512xf32> to vector<2x384xf32>
    %cst_86 = arith.constant 0.000000e+00 : f32
    %217 = vector.broadcast %cst_86 : f32 to vector<2x384xf32>
    %218 = arith.subf %217, %216 : vector<2x384xf32>
    %219 = math.exp %218 : vector<2x384xf32>
    %cst_87 = arith.constant 1.000000e+00 : f32
    %220 = vector.broadcast %cst_87 : f32 to vector<2x384xf32>
    %221 = arith.addf %220, %219 : vector<2x384xf32>
    %cst_88 = arith.constant 1.000000e+00 : f32
    %222 = vector.broadcast %cst_88 : f32 to vector<2x384xf32>
    %223 = arith.divf %222, %221 : vector<2x384xf32>
    %224 = vector.extract_strided_slice %215 {offsets = [0, 384], sizes = [2, 128], strides = [1, 1]} : vector<2x512xf32> to vector<2x128xf32>
    %225 = math.tanh %224 : vector<2x128xf32>
    %226 = vector.extract_strided_slice %223 {offsets = [0, 128], sizes = [2, 128], strides = [1, 1]} : vector<2x384xf32> to vector<2x128xf32>
    %227 = arith.mulf %226, %165 : vector<2x128xf32>
    %228 = vector.extract_strided_slice %223 {offsets = [0, 0], sizes = [2, 128], strides = [1, 1]} : vector<2x384xf32> to vector<2x128xf32>
    %229 = arith.mulf %228, %225 : vector<2x128xf32>
    %230 = arith.addf %227, %229 : vector<2x128xf32>
    %231 = vector.extract_strided_slice %223 {offsets = [0, 256], sizes = [2, 128], strides = [1, 1]} : vector<2x384xf32> to vector<2x128xf32>
    %232 = math.tanh %230 : vector<2x128xf32>
    %233 = arith.mulf %231, %232 : vector<2x128xf32>
    %234 = arith.index_cast %206 : i32 to index
    %c0_89 = arith.constant 0 : index
    %c0_90 = arith.constant 0 : index
    %235 = vector.load %arg2[%234, %c0_89, %c0_90] : memref<8x2x512xbf16, #tpu.memory_space<vmem>>, vector<1x2x512xbf16>
    %236 = vector.shape_cast %235 : vector<1x2x512xbf16> to vector<2x512xbf16>
    %c1_91 = arith.constant 1 : index
    %c0_92 = arith.constant 0 : index
    %c0_93 = arith.constant 0 : index
    %237 = vector.load %arg3[%c1_91, %c0_92, %c0_93] : memref<2x128x512xbf16, #tpu.memory_space<vmem>>, vector<1x128x512xbf16>
    %238 = vector.shape_cast %237 : vector<1x128x512xbf16> to vector<128x512xbf16>
    %239 = arith.extf %236 : vector<2x512xbf16> to vector<2x512xf32>
    %240 = arith.truncf %195 : vector<2x128xf32> to vector<2x128xbf16>
    %cst_94 = arith.constant dense<0.000000e+00> : vector<2x512xf32>
    %241 = tpu.matmul %240, %238, %cst_94 {dimension_numbers = #tpu.dot_dimension_numbers<[1], [0], [0], [1], [0, 0, 1, 1], [], []>} : vector<2x128xbf16>, vector<128x512xbf16>, vector<2x512xf32> -> vector<2x512xf32>
    %242 = arith.addf %239, %241 : vector<2x512xf32>
    %243 = vector.extract_strided_slice %242 {offsets = [0, 0], sizes = [2, 384], strides = [1, 1]} : vector<2x512xf32> to vector<2x384xf32>
    %cst_95 = arith.constant 0.000000e+00 : f32
    %244 = vector.broadcast %cst_95 : f32 to vector<2x384xf32>
    %245 = arith.subf %244, %243 : vector<2x384xf32>
    %246 = math.exp %245 : vector<2x384xf32>
    %cst_96 = arith.constant 1.000000e+00 : f32
    %247 = vector.broadcast %cst_96 : f32 to vector<2x384xf32>
    %248 = arith.addf %247, %246 : vector<2x384xf32>
    %cst_97 = arith.constant 1.000000e+00 : f32
    %249 = vector.broadcast %cst_97 : f32 to vector<2x384xf32>
    %250 = arith.divf %249, %248 : vector<2x384xf32>
    %251 = vector.extract_strided_slice %242 {offsets = [0, 384], sizes = [2, 128], strides = [1, 1]} : vector<2x512xf32> to vector<2x128xf32>
    %252 = math.tanh %251 : vector<2x128xf32>
    %253 = vector.extract_strided_slice %250 {offsets = [0, 128], sizes = [2, 128], strides = [1, 1]} : vector<2x384xf32> to vector<2x128xf32>
    %254 = arith.mulf %253, %192 : vector<2x128xf32>
    %255 = vector.extract_strided_slice %250 {offsets = [0, 0], sizes = [2, 128], strides = [1, 1]} : vector<2x384xf32> to vector<2x128xf32>
    %256 = arith.mulf %255, %252 : vector<2x128xf32>
    %257 = arith.addf %254, %256 : vector<2x128xf32>
    %258 = vector.extract_strided_slice %250 {offsets = [0, 256], sizes = [2, 128], strides = [1, 1]} : vector<2x384xf32> to vector<2x128xf32>
    %259 = math.tanh %257 : vector<2x128xf32>
    %260 = arith.mulf %258, %259 : vector<2x128xf32>
    %261 = arith.truncf %233 : vector<2x128xf32> to vector<2x128xbf16>
    %262 = arith.index_cast %c3_i32 : i32 to index
    %c0_98 = arith.constant 0 : index
    %c0_99 = arith.constant 0 : index
    %263 = vector.load %arg4[%262, %c0_98, %c0_99] : memref<8x2x128xbf16, #tpu.memory_space<vmem>>, vector<1x2x128xbf16>
    %264 = vector.shape_cast %263 : vector<1x2x128xbf16> to vector<2x128xbf16>
    %265 = vector.shape_cast %261 : vector<2x128xbf16> to vector<1x2x128xbf16>
    tpu.vector_store %arg4[%262, %c0_98, %c0_99], %265 {strides = array<i32>} : memref<8x2x128xbf16, #tpu.memory_space<vmem>>, vector<1x2x128xbf16>,
    %266 = arith.truncf %260 : vector<2x128xf32> to vector<2x128xbf16>
    %267 = arith.index_cast %206 : i32 to index
    %c0_100 = arith.constant 0 : index
    %c0_101 = arith.constant 0 : index
    %268 = vector.load %arg5[%267, %c0_100, %c0_101] : memref<8x2x128xbf16, #tpu.memory_space<vmem>>, vector<1x2x128xbf16>
    %269 = vector.shape_cast %268 : vector<1x2x128xbf16> to vector<2x128xbf16>
    %270 = vector.shape_cast %266 : vector<2x128xbf16> to vector<1x2x128xbf16>
    tpu.vector_store %arg5[%267, %c0_100, %c0_101], %270 {strides = array<i32>} : memref<8x2x128xbf16, #tpu.memory_space<vmem>>, vector<1x2x128xbf16>,
    %c4_i32 = arith.constant 4 : i32
    %c7_i32_102 = arith.constant 7 : i32
    %271 = arith.subi %c7_i32_102, %c4_i32 : i32
    %272 = arith.index_cast %c4_i32 : i32 to index
    %c0_103 = arith.constant 0 : index
    %c0_104 = arith.constant 0 : index
    %273 = vector.load %arg1[%272, %c0_103, %c0_104] : memref<8x2x512xbf16, #tpu.memory_space<vmem>>, vector<1x2x512xbf16>
    %274 = vector.shape_cast %273 : vector<1x2x512xbf16> to vector<2x512xbf16>
    %c0_105 = arith.constant 0 : index
    %c0_106 = arith.constant 0 : index
    %c0_107 = arith.constant 0 : index
    %275 = vector.load %arg3[%c0_105, %c0_106, %c0_107] : memref<2x128x512xbf16, #tpu.memory_space<vmem>>, vector<1x128x512xbf16>
    %276 = vector.shape_cast %275 : vector<1x128x512xbf16> to vector<128x512xbf16>
    %277 = arith.extf %274 : vector<2x512xbf16> to vector<2x512xf32>
    %278 = arith.truncf %233 : vector<2x128xf32> to vector<2x128xbf16>
    %cst_108 = arith.constant dense<0.000000e+00> : vector<2x512xf32>
    %279 = tpu.matmul %278, %276, %cst_108 {dimension_numbers = #tpu.dot_dimension_numbers<[1], [0], [0], [1], [0, 0, 1, 1], [], []>} : vector<2x128xbf16>, vector<128x512xbf16>, vector<2x512xf32> -> vector<2x512xf32>
    %280 = arith.addf %277, %279 : vector<2x512xf32>
    %281 = vector.extract_strided_slice %280 {offsets = [0, 0], sizes = [2, 384], strides = [1, 1]} : vector<2x512xf32> to vector<2x384xf32>
    %cst_109 = arith.constant 0.000000e+00 : f32
    %282 = vector.broadcast %cst_109 : f32 to vector<2x384xf32>
    %283 = arith.subf %282, %281 : vector<2x384xf32>
    %284 = math.exp %283 : vector<2x384xf32>
    %cst_110 = arith.constant 1.000000e+00 : f32
    %285 = vector.broadcast %cst_110 : f32 to vector<2x384xf32>
    %286 = arith.addf %285, %284 : vector<2x384xf32>
    %cst_111 = arith.constant 1.000000e+00 : f32
    %287 = vector.broadcast %cst_111 : f32 to vector<2x384xf32>
    %288 = arith.divf %287, %286 : vector<2x384xf32>
    %289 = vector.extract_strided_slice %280 {offsets = [0, 384], sizes = [2, 128], strides = [1, 1]} : vector<2x512xf32> to vector<2x128xf32>
    %290 = math.tanh %289 : vector<2x128xf32>
    %291 = vector.extract_strided_slice %288 {offsets = [0, 128], sizes = [2, 128], strides = [1, 1]} : vector<2x384xf32> to vector<2x128xf32>
    %292 = arith.mulf %291, %230 : vector<2x128xf32>
    %293 = vector.extract_strided_slice %288 {offsets = [0, 0], sizes = [2, 128], strides = [1, 1]} : vector<2x384xf32> to vector<2x128xf32>
    %294 = arith.mulf %293, %290 : vector<2x128xf32>
    %295 = arith.addf %292, %294 : vector<2x128xf32>
    %296 = vector.extract_strided_slice %288 {offsets = [0, 256], sizes = [2, 128], strides = [1, 1]} : vector<2x384xf32> to vector<2x128xf32>
    %297 = math.tanh %295 : vector<2x128xf32>
    %298 = arith.mulf %296, %297 : vector<2x128xf32>
    %299 = arith.index_cast %271 : i32 to index
    %c0_112 = arith.constant 0 : index
    %c0_113 = arith.constant 0 : index
    %300 = vector.load %arg2[%299, %c0_112, %c0_113] : memref<8x2x512xbf16, #tpu.memory_space<vmem>>, vector<1x2x512xbf16>
    %301 = vector.shape_cast %300 : vector<1x2x512xbf16> to vector<2x512xbf16>
    %c1_114 = arith.constant 1 : index
    %c0_115 = arith.constant 0 : index
    %c0_116 = arith.constant 0 : index
    %302 = vector.load %arg3[%c1_114, %c0_115, %c0_116] : memref<2x128x512xbf16, #tpu.memory_space<vmem>>, vector<1x128x512xbf16>
    %303 = vector.shape_cast %302 : vector<1x128x512xbf16> to vector<128x512xbf16>
    %304 = arith.extf %301 : vector<2x512xbf16> to vector<2x512xf32>
    %305 = arith.truncf %260 : vector<2x128xf32> to vector<2x128xbf16>
    %cst_117 = arith.constant dense<0.000000e+00> : vector<2x512xf32>
    %306 = tpu.matmul %305, %303, %cst_117 {dimension_numbers = #tpu.dot_dimension_numbers<[1], [0], [0], [1], [0, 0, 1, 1], [], []>} : vector<2x128xbf16>, vector<128x512xbf16>, vector<2x512xf32> -> vector<2x512xf32>
    %307 = arith.addf %304, %306 : vector<2x512xf32>
    %308 = vector.extract_strided_slice %307 {offsets = [0, 0], sizes = [2, 384], strides = [1, 1]} : vector<2x512xf32> to vector<2x384xf32>
    %cst_118 = arith.constant 0.000000e+00 : f32
    %309 = vector.broadcast %cst_118 : f32 to vector<2x384xf32>
    %310 = arith.subf %309, %308 : vector<2x384xf32>
    %311 = math.exp %310 : vector<2x384xf32>
    %cst_119 = arith.constant 1.000000e+00 : f32
    %312 = vector.broadcast %cst_119 : f32 to vector<2x384xf32>
    %313 = arith.addf %312, %311 : vector<2x384xf32>
    %cst_120 = arith.constant 1.000000e+00 : f32
    %314 = vector.broadcast %cst_120 : f32 to vector<2x384xf32>
    %315 = arith.divf %314, %313 : vector<2x384xf32>
    %316 = vector.extract_strided_slice %307 {offsets = [0, 384], sizes = [2, 128], strides = [1, 1]} : vector<2x512xf32> to vector<2x128xf32>
    %317 = math.tanh %316 : vector<2x128xf32>
    %318 = vector.extract_strided_slice %315 {offsets = [0, 128], sizes = [2, 128], strides = [1, 1]} : vector<2x384xf32> to vector<2x128xf32>
    %319 = arith.mulf %318, %257 : vector<2x128xf32>
    %320 = vector.extract_strided_slice %315 {offsets = [0, 0], sizes = [2, 128], strides = [1, 1]} : vector<2x384xf32> to vector<2x128xf32>
    %321 = arith.mulf %320, %317 : vector<2x128xf32>
    %322 = arith.addf %319, %321 : vector<2x128xf32>
    %323 = vector.extract_strided_slice %315 {offsets = [0, 256], sizes = [2, 128], strides = [1, 1]} : vector<2x384xf32> to vector<2x128xf32>
    %324 = math.tanh %322 : vector<2x128xf32>
    %325 = arith.mulf %323, %324 : vector<2x128xf32>
    %326 = arith.truncf %298 : vector<2x128xf32> to vector<2x128xbf16>
    %327 = arith.index_cast %c4_i32 : i32 to index
    %c0_121 = arith.constant 0 : index
    %c0_122 = arith.constant 0 : index
    %328 = vector.load %arg4[%327, %c0_121, %c0_122] : memref<8x2x128xbf16, #tpu.memory_space<vmem>>, vector<1x2x128xbf16>
    %329 = vector.shape_cast %328 : vector<1x2x128xbf16> to vector<2x128xbf16>
    %330 = vector.shape_cast %326 : vector<2x128xbf16> to vector<1x2x128xbf16>
    tpu.vector_store %arg4[%327, %c0_121, %c0_122], %330 {strides = array<i32>} : memref<8x2x128xbf16, #tpu.memory_space<vmem>>, vector<1x2x128xbf16>,
    %331 = arith.truncf %325 : vector<2x128xf32> to vector<2x128xbf16>
    %332 = arith.index_cast %271 : i32 to index
    %c0_123 = arith.constant 0 : index
    %c0_124 = arith.constant 0 : index
    %333 = vector.load %arg5[%332, %c0_123, %c0_124] : memref<8x2x128xbf16, #tpu.memory_space<vmem>>, vector<1x2x128xbf16>
    %334 = vector.shape_cast %333 : vector<1x2x128xbf16> to vector<2x128xbf16>
    %335 = vector.shape_cast %331 : vector<2x128xbf16> to vector<1x2x128xbf16>
    tpu.vector_store %arg5[%332, %c0_123, %c0_124], %335 {strides = array<i32>} : memref<8x2x128xbf16, #tpu.memory_space<vmem>>, vector<1x2x128xbf16>,
    %c5_i32 = arith.constant 5 : i32
    %c7_i32_125 = arith.constant 7 : i32
    %336 = arith.subi %c7_i32_125, %c5_i32 : i32
    %337 = arith.index_cast %c5_i32 : i32 to index
    %c0_126 = arith.constant 0 : index
    %c0_127 = arith.constant 0 : index
    %338 = vector.load %arg1[%337, %c0_126, %c0_127] : memref<8x2x512xbf16, #tpu.memory_space<vmem>>, vector<1x2x512xbf16>
    %339 = vector.shape_cast %338 : vector<1x2x512xbf16> to vector<2x512xbf16>
    %c0_128 = arith.constant 0 : index
    %c0_129 = arith.constant 0 : index
    %c0_130 = arith.constant 0 : index
    %340 = vector.load %arg3[%c0_128, %c0_129, %c0_130] : memref<2x128x512xbf16, #tpu.memory_space<vmem>>, vector<1x128x512xbf16>
    %341 = vector.shape_cast %340 : vector<1x128x512xbf16> to vector<128x512xbf16>
    %342 = arith.extf %339 : vector<2x512xbf16> to vector<2x512xf32>
    %343 = arith.truncf %298 : vector<2x128xf32> to vector<2x128xbf16>
    %cst_131 = arith.constant dense<0.000000e+00> : vector<2x512xf32>
    %344 = tpu.matmul %343, %341, %cst_131 {dimension_numbers = #tpu.dot_dimension_numbers<[1], [0], [0], [1], [0, 0, 1, 1], [], []>} : vector<2x128xbf16>, vector<128x512xbf16>, vector<2x512xf32> -> vector<2x512xf32>
    %345 = arith.addf %342, %344 : vector<2x512xf32>
    %346 = vector.extract_strided_slice %345 {offsets = [0, 0], sizes = [2, 384], strides = [1, 1]} : vector<2x512xf32> to vector<2x384xf32>
    %cst_132 = arith.constant 0.000000e+00 : f32
    %347 = vector.broadcast %cst_132 : f32 to vector<2x384xf32>
    %348 = arith.subf %347, %346 : vector<2x384xf32>
    %349 = math.exp %348 : vector<2x384xf32>
    %cst_133 = arith.constant 1.000000e+00 : f32
    %350 = vector.broadcast %cst_133 : f32 to vector<2x384xf32>
    %351 = arith.addf %350, %349 : vector<2x384xf32>
    %cst_134 = arith.constant 1.000000e+00 : f32
    %352 = vector.broadcast %cst_134 : f32 to vector<2x384xf32>
    %353 = arith.divf %352, %351 : vector<2x384xf32>
    %354 = vector.extract_strided_slice %345 {offsets = [0, 384], sizes = [2, 128], strides = [1, 1]} : vector<2x512xf32> to vector<2x128xf32>
    %355 = math.tanh %354 : vector<2x128xf32>
    %356 = vector.extract_strided_slice %353 {offsets = [0, 128], sizes = [2, 128], strides = [1, 1]} : vector<2x384xf32> to vector<2x128xf32>
    %357 = arith.mulf %356, %295 : vector<2x128xf32>
    %358 = vector.extract_strided_slice %353 {offsets = [0, 0], sizes = [2, 128], strides = [1, 1]} : vector<2x384xf32> to vector<2x128xf32>
    %359 = arith.mulf %358, %355 : vector<2x128xf32>
    %360 = arith.addf %357, %359 : vector<2x128xf32>
    %361 = vector.extract_strided_slice %353 {offsets = [0, 256], sizes = [2, 128], strides = [1, 1]} : vector<2x384xf32> to vector<2x128xf32>
    %362 = math.tanh %360 : vector<2x128xf32>
    %363 = arith.mulf %361, %362 : vector<2x128xf32>
    %364 = arith.index_cast %336 : i32 to index
    %c0_135 = arith.constant 0 : index
    %c0_136 = arith.constant 0 : index
    %365 = vector.load %arg2[%364, %c0_135, %c0_136] : memref<8x2x512xbf16, #tpu.memory_space<vmem>>, vector<1x2x512xbf16>
    %366 = vector.shape_cast %365 : vector<1x2x512xbf16> to vector<2x512xbf16>
    %c1_137 = arith.constant 1 : index
    %c0_138 = arith.constant 0 : index
    %c0_139 = arith.constant 0 : index
    %367 = vector.load %arg3[%c1_137, %c0_138, %c0_139] : memref<2x128x512xbf16, #tpu.memory_space<vmem>>, vector<1x128x512xbf16>
    %368 = vector.shape_cast %367 : vector<1x128x512xbf16> to vector<128x512xbf16>
    %369 = arith.extf %366 : vector<2x512xbf16> to vector<2x512xf32>
    %370 = arith.truncf %325 : vector<2x128xf32> to vector<2x128xbf16>
    %cst_140 = arith.constant dense<0.000000e+00> : vector<2x512xf32>
    %371 = tpu.matmul %370, %368, %cst_140 {dimension_numbers = #tpu.dot_dimension_numbers<[1], [0], [0], [1], [0, 0, 1, 1], [], []>} : vector<2x128xbf16>, vector<128x512xbf16>, vector<2x512xf32> -> vector<2x512xf32>
    %372 = arith.addf %369, %371 : vector<2x512xf32>
    %373 = vector.extract_strided_slice %372 {offsets = [0, 0], sizes = [2, 384], strides = [1, 1]} : vector<2x512xf32> to vector<2x384xf32>
    %cst_141 = arith.constant 0.000000e+00 : f32
    %374 = vector.broadcast %cst_141 : f32 to vector<2x384xf32>
    %375 = arith.subf %374, %373 : vector<2x384xf32>
    %376 = math.exp %375 : vector<2x384xf32>
    %cst_142 = arith.constant 1.000000e+00 : f32
    %377 = vector.broadcast %cst_142 : f32 to vector<2x384xf32>
    %378 = arith.addf %377, %376 : vector<2x384xf32>
    %cst_143 = arith.constant 1.000000e+00 : f32
    %379 = vector.broadcast %cst_143 : f32 to vector<2x384xf32>
    %380 = arith.divf %379, %378 : vector<2x384xf32>
    %381 = vector.extract_strided_slice %372 {offsets = [0, 384], sizes = [2, 128], strides = [1, 1]} : vector<2x512xf32> to vector<2x128xf32>
    %382 = math.tanh %381 : vector<2x128xf32>
    %383 = vector.extract_strided_slice %380 {offsets = [0, 128], sizes = [2, 128], strides = [1, 1]} : vector<2x384xf32> to vector<2x128xf32>
    %384 = arith.mulf %383, %322 : vector<2x128xf32>
    %385 = vector.extract_strided_slice %380 {offsets = [0, 0], sizes = [2, 128], strides = [1, 1]} : vector<2x384xf32> to vector<2x128xf32>
    %386 = arith.mulf %385, %382 : vector<2x128xf32>
    %387 = arith.addf %384, %386 : vector<2x128xf32>
    %388 = vector.extract_strided_slice %380 {offsets = [0, 256], sizes = [2, 128], strides = [1, 1]} : vector<2x384xf32> to vector<2x128xf32>
    %389 = math.tanh %387 : vector<2x128xf32>
    %390 = arith.mulf %388, %389 : vector<2x128xf32>
    %391 = arith.truncf %363 : vector<2x128xf32> to vector<2x128xbf16>
    %392 = arith.index_cast %c5_i32 : i32 to index
    %c0_144 = arith.constant 0 : index
    %c0_145 = arith.constant 0 : index
    %393 = vector.load %arg4[%392, %c0_144, %c0_145] : memref<8x2x128xbf16, #tpu.memory_space<vmem>>, vector<1x2x128xbf16>
    %394 = vector.shape_cast %393 : vector<1x2x128xbf16> to vector<2x128xbf16>
    %395 = vector.shape_cast %391 : vector<2x128xbf16> to vector<1x2x128xbf16>
    tpu.vector_store %arg4[%392, %c0_144, %c0_145], %395 {strides = array<i32>} : memref<8x2x128xbf16, #tpu.memory_space<vmem>>, vector<1x2x128xbf16>,
    %396 = arith.truncf %390 : vector<2x128xf32> to vector<2x128xbf16>
    %397 = arith.index_cast %336 : i32 to index
    %c0_146 = arith.constant 0 : index
    %c0_147 = arith.constant 0 : index
    %398 = vector.load %arg5[%397, %c0_146, %c0_147] : memref<8x2x128xbf16, #tpu.memory_space<vmem>>, vector<1x2x128xbf16>
    %399 = vector.shape_cast %398 : vector<1x2x128xbf16> to vector<2x128xbf16>
    %400 = vector.shape_cast %396 : vector<2x128xbf16> to vector<1x2x128xbf16>
    tpu.vector_store %arg5[%397, %c0_146, %c0_147], %400 {strides = array<i32>} : memref<8x2x128xbf16, #tpu.memory_space<vmem>>, vector<1x2x128xbf16>,
    %c6_i32 = arith.constant 6 : i32
    %c7_i32_148 = arith.constant 7 : i32
    %401 = arith.subi %c7_i32_148, %c6_i32 : i32
    %402 = arith.index_cast %c6_i32 : i32 to index
    %c0_149 = arith.constant 0 : index
    %c0_150 = arith.constant 0 : index
    %403 = vector.load %arg1[%402, %c0_149, %c0_150] : memref<8x2x512xbf16, #tpu.memory_space<vmem>>, vector<1x2x512xbf16>
    %404 = vector.shape_cast %403 : vector<1x2x512xbf16> to vector<2x512xbf16>
    %c0_151 = arith.constant 0 : index
    %c0_152 = arith.constant 0 : index
    %c0_153 = arith.constant 0 : index
    %405 = vector.load %arg3[%c0_151, %c0_152, %c0_153] : memref<2x128x512xbf16, #tpu.memory_space<vmem>>, vector<1x128x512xbf16>
    %406 = vector.shape_cast %405 : vector<1x128x512xbf16> to vector<128x512xbf16>
    %407 = arith.extf %404 : vector<2x512xbf16> to vector<2x512xf32>
    %408 = arith.truncf %363 : vector<2x128xf32> to vector<2x128xbf16>
    %cst_154 = arith.constant dense<0.000000e+00> : vector<2x512xf32>
    %409 = tpu.matmul %408, %406, %cst_154 {dimension_numbers = #tpu.dot_dimension_numbers<[1], [0], [0], [1], [0, 0, 1, 1], [], []>} : vector<2x128xbf16>, vector<128x512xbf16>, vector<2x512xf32> -> vector<2x512xf32>
    %410 = arith.addf %407, %409 : vector<2x512xf32>
    %411 = vector.extract_strided_slice %410 {offsets = [0, 0], sizes = [2, 384], strides = [1, 1]} : vector<2x512xf32> to vector<2x384xf32>
    %cst_155 = arith.constant 0.000000e+00 : f32
    %412 = vector.broadcast %cst_155 : f32 to vector<2x384xf32>
    %413 = arith.subf %412, %411 : vector<2x384xf32>
    %414 = math.exp %413 : vector<2x384xf32>
    %cst_156 = arith.constant 1.000000e+00 : f32
    %415 = vector.broadcast %cst_156 : f32 to vector<2x384xf32>
    %416 = arith.addf %415, %414 : vector<2x384xf32>
    %cst_157 = arith.constant 1.000000e+00 : f32
    %417 = vector.broadcast %cst_157 : f32 to vector<2x384xf32>
    %418 = arith.divf %417, %416 : vector<2x384xf32>
    %419 = vector.extract_strided_slice %410 {offsets = [0, 384], sizes = [2, 128], strides = [1, 1]} : vector<2x512xf32> to vector<2x128xf32>
    %420 = math.tanh %419 : vector<2x128xf32>
    %421 = vector.extract_strided_slice %418 {offsets = [0, 128], sizes = [2, 128], strides = [1, 1]} : vector<2x384xf32> to vector<2x128xf32>
    %422 = arith.mulf %421, %360 : vector<2x128xf32>
    %423 = vector.extract_strided_slice %418 {offsets = [0, 0], sizes = [2, 128], strides = [1, 1]} : vector<2x384xf32> to vector<2x128xf32>
    %424 = arith.mulf %423, %420 : vector<2x128xf32>
    %425 = arith.addf %422, %424 : vector<2x128xf32>
    %426 = vector.extract_strided_slice %418 {offsets = [0, 256], sizes = [2, 128], strides = [1, 1]} : vector<2x384xf32> to vector<2x128xf32>
    %427 = math.tanh %425 : vector<2x128xf32>
    %428 = arith.mulf %426, %427 : vector<2x128xf32>
    %429 = arith.index_cast %401 : i32 to index
    %c0_158 = arith.constant 0 : index
    %c0_159 = arith.constant 0 : index
    %430 = vector.load %arg2[%429, %c0_158, %c0_159] : memref<8x2x512xbf16, #tpu.memory_space<vmem>>, vector<1x2x512xbf16>
    %431 = vector.shape_cast %430 : vector<1x2x512xbf16> to vector<2x512xbf16>
    %c1_160 = arith.constant 1 : index
    %c0_161 = arith.constant 0 : index
    %c0_162 = arith.constant 0 : index
    %432 = vector.load %arg3[%c1_160, %c0_161, %c0_162] : memref<2x128x512xbf16, #tpu.memory_space<vmem>>, vector<1x128x512xbf16>
    %433 = vector.shape_cast %432 : vector<1x128x512xbf16> to vector<128x512xbf16>
    %434 = arith.extf %431 : vector<2x512xbf16> to vector<2x512xf32>
    %435 = arith.truncf %390 : vector<2x128xf32> to vector<2x128xbf16>
    %cst_163 = arith.constant dense<0.000000e+00> : vector<2x512xf32>
    %436 = tpu.matmul %435, %433, %cst_163 {dimension_numbers = #tpu.dot_dimension_numbers<[1], [0], [0], [1], [0, 0, 1, 1], [], []>} : vector<2x128xbf16>, vector<128x512xbf16>, vector<2x512xf32> -> vector<2x512xf32>
    %437 = arith.addf %434, %436 : vector<2x512xf32>
    %438 = vector.extract_strided_slice %437 {offsets = [0, 0], sizes = [2, 384], strides = [1, 1]} : vector<2x512xf32> to vector<2x384xf32>
    %cst_164 = arith.constant 0.000000e+00 : f32
    %439 = vector.broadcast %cst_164 : f32 to vector<2x384xf32>
    %440 = arith.subf %439, %438 : vector<2x384xf32>
    %441 = math.exp %440 : vector<2x384xf32>
    %cst_165 = arith.constant 1.000000e+00 : f32
    %442 = vector.broadcast %cst_165 : f32 to vector<2x384xf32>
    %443 = arith.addf %442, %441 : vector<2x384xf32>
    %cst_166 = arith.constant 1.000000e+00 : f32
    %444 = vector.broadcast %cst_166 : f32 to vector<2x384xf32>
    %445 = arith.divf %444, %443 : vector<2x384xf32>
    %446 = vector.extract_strided_slice %437 {offsets = [0, 384], sizes = [2, 128], strides = [1, 1]} : vector<2x512xf32> to vector<2x128xf32>
    %447 = math.tanh %446 : vector<2x128xf32>
    %448 = vector.extract_strided_slice %445 {offsets = [0, 128], sizes = [2, 128], strides = [1, 1]} : vector<2x384xf32> to vector<2x128xf32>
    %449 = arith.mulf %448, %387 : vector<2x128xf32>
    %450 = vector.extract_strided_slice %445 {offsets = [0, 0], sizes = [2, 128], strides = [1, 1]} : vector<2x384xf32> to vector<2x128xf32>
    %451 = arith.mulf %450, %447 : vector<2x128xf32>
    %452 = arith.addf %449, %451 : vector<2x128xf32>
    %453 = vector.extract_strided_slice %445 {offsets = [0, 256], sizes = [2, 128], strides = [1, 1]} : vector<2x384xf32> to vector<2x128xf32>
    %454 = math.tanh %452 : vector<2x128xf32>
    %455 = arith.mulf %453, %454 : vector<2x128xf32>
    %456 = arith.truncf %428 : vector<2x128xf32> to vector<2x128xbf16>
    %457 = arith.index_cast %c6_i32 : i32 to index
    %c0_167 = arith.constant 0 : index
    %c0_168 = arith.constant 0 : index
    %458 = vector.load %arg4[%457, %c0_167, %c0_168] : memref<8x2x128xbf16, #tpu.memory_space<vmem>>, vector<1x2x128xbf16>
    %459 = vector.shape_cast %458 : vector<1x2x128xbf16> to vector<2x128xbf16>
    %460 = vector.shape_cast %456 : vector<2x128xbf16> to vector<1x2x128xbf16>
    tpu.vector_store %arg4[%457, %c0_167, %c0_168], %460 {strides = array<i32>} : memref<8x2x128xbf16, #tpu.memory_space<vmem>>, vector<1x2x128xbf16>,
    %461 = arith.truncf %455 : vector<2x128xf32> to vector<2x128xbf16>
    %462 = arith.index_cast %401 : i32 to index
    %c0_169 = arith.constant 0 : index
    %c0_170 = arith.constant 0 : index
    %463 = vector.load %arg5[%462, %c0_169, %c0_170] : memref<8x2x128xbf16, #tpu.memory_space<vmem>>, vector<1x2x128xbf16>
    %464 = vector.shape_cast %463 : vector<1x2x128xbf16> to vector<2x128xbf16>
    %465 = vector.shape_cast %461 : vector<2x128xbf16> to vector<1x2x128xbf16>
    tpu.vector_store %arg5[%462, %c0_169, %c0_170], %465 {strides = array<i32>} : memref<8x2x128xbf16, #tpu.memory_space<vmem>>, vector<1x2x128xbf16>,
    %c7_i32_171 = arith.constant 7 : i32
    %c7_i32_172 = arith.constant 7 : i32
    %466 = arith.subi %c7_i32_172, %c7_i32_171 : i32
    %467 = arith.index_cast %c7_i32_171 : i32 to index
    %c0_173 = arith.constant 0 : index
    %c0_174 = arith.constant 0 : index
    %468 = vector.load %arg1[%467, %c0_173, %c0_174] : memref<8x2x512xbf16, #tpu.memory_space<vmem>>, vector<1x2x512xbf16>
    %469 = vector.shape_cast %468 : vector<1x2x512xbf16> to vector<2x512xbf16>
    %c0_175 = arith.constant 0 : index
    %c0_176 = arith.constant 0 : index
    %c0_177 = arith.constant 0 : index
    %470 = vector.load %arg3[%c0_175, %c0_176, %c0_177] : memref<2x128x512xbf16, #tpu.memory_space<vmem>>, vector<1x128x512xbf16>
    %471 = vector.shape_cast %470 : vector<1x128x512xbf16> to vector<128x512xbf16>
    %472 = arith.extf %469 : vector<2x512xbf16> to vector<2x512xf32>
    %473 = arith.truncf %428 : vector<2x128xf32> to vector<2x128xbf16>
    %cst_178 = arith.constant dense<0.000000e+00> : vector<2x512xf32>
    %474 = tpu.matmul %473, %471, %cst_178 {dimension_numbers = #tpu.dot_dimension_numbers<[1], [0], [0], [1], [0, 0, 1, 1], [], []>} : vector<2x128xbf16>, vector<128x512xbf16>, vector<2x512xf32> -> vector<2x512xf32>
    %475 = arith.addf %472, %474 : vector<2x512xf32>
    %476 = vector.extract_strided_slice %475 {offsets = [0, 0], sizes = [2, 384], strides = [1, 1]} : vector<2x512xf32> to vector<2x384xf32>
    %cst_179 = arith.constant 0.000000e+00 : f32
    %477 = vector.broadcast %cst_179 : f32 to vector<2x384xf32>
    %478 = arith.subf %477, %476 : vector<2x384xf32>
    %479 = math.exp %478 : vector<2x384xf32>
    %cst_180 = arith.constant 1.000000e+00 : f32
    %480 = vector.broadcast %cst_180 : f32 to vector<2x384xf32>
    %481 = arith.addf %480, %479 : vector<2x384xf32>
    %cst_181 = arith.constant 1.000000e+00 : f32
    %482 = vector.broadcast %cst_181 : f32 to vector<2x384xf32>
    %483 = arith.divf %482, %481 : vector<2x384xf32>
    %484 = vector.extract_strided_slice %475 {offsets = [0, 384], sizes = [2, 128], strides = [1, 1]} : vector<2x512xf32> to vector<2x128xf32>
    %485 = math.tanh %484 : vector<2x128xf32>
    %486 = vector.extract_strided_slice %483 {offsets = [0, 128], sizes = [2, 128], strides = [1, 1]} : vector<2x384xf32> to vector<2x128xf32>
    %487 = arith.mulf %486, %425 : vector<2x128xf32>
    %488 = vector.extract_strided_slice %483 {offsets = [0, 0], sizes = [2, 128], strides = [1, 1]} : vector<2x384xf32> to vector<2x128xf32>
    %489 = arith.mulf %488, %485 : vector<2x128xf32>
    %490 = arith.addf %487, %489 : vector<2x128xf32>
    %491 = vector.extract_strided_slice %483 {offsets = [0, 256], sizes = [2, 128], strides = [1, 1]} : vector<2x384xf32> to vector<2x128xf32>
    %492 = math.tanh %490 : vector<2x128xf32>
    %493 = arith.mulf %491, %492 : vector<2x128xf32>
    %494 = arith.index_cast %466 : i32 to index
    %c0_182 = arith.constant 0 : index
    %c0_183 = arith.constant 0 : index
    %495 = vector.load %arg2[%494, %c0_182, %c0_183] : memref<8x2x512xbf16, #tpu.memory_space<vmem>>, vector<1x2x512xbf16>
    %496 = vector.shape_cast %495 : vector<1x2x512xbf16> to vector<2x512xbf16>
    %c1_184 = arith.constant 1 : index
    %c0_185 = arith.constant 0 : index
    %c0_186 = arith.constant 0 : index
    %497 = vector.load %arg3[%c1_184, %c0_185, %c0_186] : memref<2x128x512xbf16, #tpu.memory_space<vmem>>, vector<1x128x512xbf16>
    %498 = vector.shape_cast %497 : vector<1x128x512xbf16> to vector<128x512xbf16>
    %499 = arith.extf %496 : vector<2x512xbf16> to vector<2x512xf32>
    %500 = arith.truncf %455 : vector<2x128xf32> to vector<2x128xbf16>
    %cst_187 = arith.constant dense<0.000000e+00> : vector<2x512xf32>
    %501 = tpu.matmul %500, %498, %cst_187 {dimension_numbers = #tpu.dot_dimension_numbers<[1], [0], [0], [1], [0, 0, 1, 1], [], []>} : vector<2x128xbf16>, vector<128x512xbf16>, vector<2x512xf32> -> vector<2x512xf32>
    %502 = arith.addf %499, %501 : vector<2x512xf32>
    %503 = vector.extract_strided_slice %502 {offsets = [0, 0], sizes = [2, 384], strides = [1, 1]} : vector<2x512xf32> to vector<2x384xf32>
    %cst_188 = arith.constant 0.000000e+00 : f32
    %504 = vector.broadcast %cst_188 : f32 to vector<2x384xf32>
    %505 = arith.subf %504, %503 : vector<2x384xf32>
    %506 = math.exp %505 : vector<2x384xf32>
    %cst_189 = arith.constant 1.000000e+00 : f32
    %507 = vector.broadcast %cst_189 : f32 to vector<2x384xf32>
    %508 = arith.addf %507, %506 : vector<2x384xf32>
    %cst_190 = arith.constant 1.000000e+00 : f32
    %509 = vector.broadcast %cst_190 : f32 to vector<2x384xf32>
    %510 = arith.divf %509, %508 : vector<2x384xf32>
    %511 = vector.extract_strided_slice %502 {offsets = [0, 384], sizes = [2, 128], strides = [1, 1]} : vector<2x512xf32> to vector<2x128xf32>
    %512 = math.tanh %511 : vector<2x128xf32>
    %513 = vector.extract_strided_slice %510 {offsets = [0, 128], sizes = [2, 128], strides = [1, 1]} : vector<2x384xf32> to vector<2x128xf32>
    %514 = arith.mulf %513, %452 : vector<2x128xf32>
    %515 = vector.extract_strided_slice %510 {offsets = [0, 0], sizes = [2, 128], strides = [1, 1]} : vector<2x384xf32> to vector<2x128xf32>
    %516 = arith.mulf %515, %512 : vector<2x128xf32>
    %517 = arith.addf %514, %516 : vector<2x128xf32>
    %518 = vector.extract_strided_slice %510 {offsets = [0, 256], sizes = [2, 128], strides = [1, 1]} : vector<2x384xf32> to vector<2x128xf32>
    %519 = math.tanh %517 : vector<2x128xf32>
    %520 = arith.mulf %518, %519 : vector<2x128xf32>
    %521 = arith.truncf %493 : vector<2x128xf32> to vector<2x128xbf16>
    %522 = arith.index_cast %c7_i32_171 : i32 to index
    %c0_191 = arith.constant 0 : index
    %c0_192 = arith.constant 0 : index
    %523 = vector.load %arg4[%522, %c0_191, %c0_192] : memref<8x2x128xbf16, #tpu.memory_space<vmem>>, vector<1x2x128xbf16>
    %524 = vector.shape_cast %523 : vector<1x2x128xbf16> to vector<2x128xbf16>
    %525 = vector.shape_cast %521 : vector<2x128xbf16> to vector<1x2x128xbf16>
    tpu.vector_store %arg4[%522, %c0_191, %c0_192], %525 {strides = array<i32>} : memref<8x2x128xbf16, #tpu.memory_space<vmem>>, vector<1x2x128xbf16>,
    %526 = arith.truncf %520 : vector<2x128xf32> to vector<2x128xbf16>
    %527 = arith.index_cast %466 : i32 to index
    %c0_193 = arith.constant 0 : index
    %c0_194 = arith.constant 0 : index
    %528 = vector.load %arg5[%527, %c0_193, %c0_194] : memref<8x2x128xbf16, #tpu.memory_space<vmem>>, vector<1x2x128xbf16>
    %529 = vector.shape_cast %528 : vector<1x2x128xbf16> to vector<2x128xbf16>
    %530 = vector.shape_cast %526 : vector<2x128xbf16> to vector<1x2x128xbf16>
    tpu.vector_store %arg5[%527, %c0_193, %c0_194], %530 {strides = array<i32>} : memref<8x2x128xbf16, #tpu.memory_space<vmem>>, vector<1x2x128xbf16>,
    %c8_i32 = arith.constant 8 : i32
    %c0_195 = arith.constant 0 : index
    %c0_196 = arith.constant 0 : index
    %c0_197 = arith.constant 0 : index
    %531 = vector.load %arg7[%c0_195, %c0_196, %c0_197] : memref<2x2x128xf32, #tpu.memory_space<vmem>>, vector<1x2x128xf32>
    %532 = vector.shape_cast %531 : vector<1x2x128xf32> to vector<2x128xf32>
    %533 = vector.shape_cast %493 : vector<2x128xf32> to vector<1x2x128xf32>
    tpu.vector_store %arg7[%c0_195, %c0_196, %c0_197], %533 {strides = array<i32>} : memref<2x2x128xf32, #tpu.memory_space<vmem>>, vector<1x2x128xf32>,
    %c0_198 = arith.constant 0 : index
    %c0_199 = arith.constant 0 : index
    %c0_200 = arith.constant 0 : index
    %534 = vector.load %arg8[%c0_198, %c0_199, %c0_200] : memref<2x2x128xf32, #tpu.memory_space<vmem>>, vector<1x2x128xf32>
    %535 = vector.shape_cast %534 : vector<1x2x128xf32> to vector<2x128xf32>
    %536 = vector.shape_cast %490 : vector<2x128xf32> to vector<1x2x128xf32>
    tpu.vector_store %arg8[%c0_198, %c0_199, %c0_200], %536 {strides = array<i32>} : memref<2x2x128xf32, #tpu.memory_space<vmem>>, vector<1x2x128xf32>,
    %c1_201 = arith.constant 1 : index
    %c0_202 = arith.constant 0 : index
    %c0_203 = arith.constant 0 : index
    %537 = vector.load %arg7[%c1_201, %c0_202, %c0_203] : memref<2x2x128xf32, #tpu.memory_space<vmem>>, vector<1x2x128xf32>
    %538 = vector.shape_cast %537 : vector<1x2x128xf32> to vector<2x128xf32>
    %539 = vector.shape_cast %520 : vector<2x128xf32> to vector<1x2x128xf32>
    tpu.vector_store %arg7[%c1_201, %c0_202, %c0_203], %539 {strides = array<i32>} : memref<2x2x128xf32, #tpu.memory_space<vmem>>, vector<1x2x128xf32>,
    %c1_204 = arith.constant 1 : index
    %c0_205 = arith.constant 0 : index
    %c0_206 = arith.constant 0 : index
    %540 = vector.load %arg8[%c1_204, %c0_205, %c0_206] : memref<2x2x128xf32, #tpu.memory_space<vmem>>, vector<1x2x128xf32>
    %541 = vector.shape_cast %540 : vector<1x2x128xf32> to vector<2x128xf32>
    %542 = vector.shape_cast %517 : vector<2x128xf32> to vector<1x2x128xf32>
    tpu.vector_store %arg8[%c1_204, %c0_205, %c0_206], %542 {strides = array<i32>} : memref<2x2x128xf32, #tpu.memory_space<vmem>>, vector<1x2x128xf32>,
    %c0_207 = arith.constant 0 : index
    %c0_208 = arith.constant 0 : index
    %c0_209 = arith.constant 0 : index
    %543 = vector.load %arg6[%c0_207, %c0_208, %c0_209] : memref<2x2x128xf32, #tpu.memory_space<vmem>>, vector<1x2x128xf32>
    %544 = vector.shape_cast %543 : vector<1x2x128xf32> to vector<2x128xf32>
    %545 = vector.shape_cast %493 : vector<2x128xf32> to vector<1x2x128xf32>
    tpu.vector_store %arg6[%c0_207, %c0_208, %c0_209], %545 {strides = array<i32>} : memref<2x2x128xf32, #tpu.memory_space<vmem>>, vector<1x2x128xf32>,
    %c1_210 = arith.constant 1 : index
    %c0_211 = arith.constant 0 : index
    %c0_212 = arith.constant 0 : index
    %546 = vector.load %arg6[%c1_210, %c0_211, %c0_212] : memref<2x2x128xf32, #tpu.memory_space<vmem>>, vector<1x2x128xf32>
    %547 = vector.shape_cast %546 : vector<1x2x128xf32> to vector<2x128xf32>
    %548 = vector.shape_cast %520 : vector<2x128xf32> to vector<1x2x128xf32>
    tpu.vector_store %arg6[%c1_210, %c0_211, %c0_212], %548 {strides = array<i32>} : memref<2x2x128xf32, #tpu.memory_space<vmem>>, vector<1x2x128xf32>,
    return
  }
  func.func @transform_0(%arg0: i32) -> (i32, i32, i32) {
    %c0_i32 = arith.constant 0 : i32
    %c0_i32_0 = arith.constant 0 : i32
    %c0_i32_1 = arith.constant 0 : i32
    return %arg0, %c0_i32, %c0_i32_0 : i32, i32, i32
  }
  func.func @transform_1(%arg0: i32) -> (i32, i32, i32) {
    %c0_i32 = arith.constant 0 : i32
    %0 = arith.subi %c0_i32, %arg0 : i32
    %c0_i32_0 = arith.constant 0 : i32
    %c1_i32 = arith.constant 1 : i32
    %c0_i32_1 = arith.constant 0 : i32
    return %0, %c0_i32_0, %c1_i32 : i32, i32, i32
  }
  func.func @transform_2(%arg0: i32) -> (i32, i32, i32) {
    %c0_i32 = arith.constant 0 : i32
    %c0_i32_0 = arith.constant 0 : i32
    %c0_i32_1 = arith.constant 0 : i32
    %c0_i32_2 = arith.constant 0 : i32
    return %c0_i32, %c0_i32_0, %c0_i32_1 : i32, i32, i32
  }
  func.func @transform_3(%arg0: i32) -> (i32, i32, i32) {
    %c0_i32 = arith.constant 0 : i32
    %c0_i32_0 = arith.constant 0 : i32
    %c0_i32_1 = arith.constant 0 : i32
    return %arg0, %c0_i32, %c0_i32_0 : i32, i32, i32
  }
  func.func @transform_4(%arg0: i32) -> (i32, i32, i32) {
    %c0_i32 = arith.constant 0 : i32
    %0 = arith.subi %c0_i32, %arg0 : i32
    %c0_i32_0 = arith.constant 0 : i32
    %c0_i32_1 = arith.constant 0 : i32
    %c0_i32_2 = arith.constant 0 : i32
    return %0, %c0_i32_0, %c0_i32_1 : i32, i32, i32
  }
  func.func @transform_5(%arg0: i32) -> (i32, i32, i32) {
    %c0_i32 = arith.constant 0 : i32
    %c0_i32_0 = arith.constant 0 : i32
    %c0_i32_1 = arith.constant 0 : i32
    %c0_i32_2 = arith.constant 0 : i32
    return %c0_i32, %c0_i32_0, %c0_i32_1 : i32, i32, i32
  }
}

module attributes {stable_mosaic.version = 11 : i64} {
  func.func @_proj_kernel(%arg0: i32, %arg1: i32, %arg2: memref<16x128xbf16, #tpu.memory_space<vmem>>, %arg3: memref<16x128xbf16, #tpu.memory_space<vmem>>, %arg4: memref<128x1024xbf16, #tpu.memory_space<vmem>>, %arg5: memref<128x1024xbf16, #tpu.memory_space<vmem>>, %arg6: memref<1x1024xf32, #tpu.memory_space<vmem>>, %arg7: memref<16x1024xbf16, #tpu.memory_space<vmem>>) attributes {dimension_semantics = [#tpu.dimension_semantics<parallel>, #tpu.dimension_semantics<parallel>], iteration_bounds = array<i64: 1, 1>, scalar_prefetch = 0 : i64, scratch_operands = 0 : i64, tpu.core_type = #tpu.core_type<tc>, window_params = [{transform_indices = @transform_0, window_bounds = array<i64: 16, 128>}, {transform_indices = @transform_1, window_bounds = array<i64: 16, 128>}, {transform_indices = @transform_2, window_bounds = array<i64: 128, 1024>}, {transform_indices = @transform_3, window_bounds = array<i64: 128, 1024>}, {transform_indices = @transform_4, window_bounds = array<i64: 1, 1024>}, {transform_indices = @transform_5, window_bounds = array<i64: 16, 1024>}]} {
    %c0 = arith.constant 0 : index
    %c0_0 = arith.constant 0 : index
    %0 = vector.load %arg2[%c0, %c0_0] : memref<16x128xbf16, #tpu.memory_space<vmem>>, vector<16x128xbf16>
    %c0_1 = arith.constant 0 : index
    %c0_2 = arith.constant 0 : index
    %1 = vector.load %arg4[%c0_1, %c0_2] : memref<128x1024xbf16, #tpu.memory_space<vmem>>, vector<128x1024xbf16>
    %cst = arith.constant dense<0.000000e+00> : vector<16x1024xf32>
    %2 = tpu.matmul %0, %1, %cst {dimension_numbers = #tpu.dot_dimension_numbers<[1], [0], [0], [1], [0, 0, 1, 1], [], []>} : vector<16x128xbf16>, vector<128x1024xbf16>, vector<16x1024xf32> -> vector<16x1024xf32>
    %c0_3 = arith.constant 0 : index
    %c0_4 = arith.constant 0 : index
    %3 = vector.load %arg3[%c0_3, %c0_4] : memref<16x128xbf16, #tpu.memory_space<vmem>>, vector<16x128xbf16>
    %c0_5 = arith.constant 0 : index
    %c0_6 = arith.constant 0 : index
    %4 = vector.load %arg5[%c0_5, %c0_6] : memref<128x1024xbf16, #tpu.memory_space<vmem>>, vector<128x1024xbf16>
    %cst_7 = arith.constant dense<0.000000e+00> : vector<16x1024xf32>
    %5 = tpu.matmul %3, %4, %cst_7 {dimension_numbers = #tpu.dot_dimension_numbers<[1], [0], [0], [1], [0, 0, 1, 1], [], []>} : vector<16x128xbf16>, vector<128x1024xbf16>, vector<16x1024xf32> -> vector<16x1024xf32>
    %6 = arith.addf %2, %5 : vector<16x1024xf32>
    %c0_8 = arith.constant 0 : index
    %c0_9 = arith.constant 0 : index
    %7 = vector.load %arg6[%c0_8, %c0_9] : memref<1x1024xf32, #tpu.memory_space<vmem>>, vector<1x1024xf32>
    %8 = vector.broadcast %7 : vector<1x1024xf32> to vector<16x1024xf32>
    %9 = arith.addf %6, %8 : vector<16x1024xf32>
    %10 = arith.truncf %9 : vector<16x1024xf32> to vector<16x1024xbf16>
    %c0_10 = arith.constant 0 : index
    %c0_11 = arith.constant 0 : index
    %11 = vector.load %arg7[%c0_10, %c0_11] : memref<16x1024xbf16, #tpu.memory_space<vmem>>, vector<16x1024xbf16>
    tpu.vector_store %arg7[%c0_10, %c0_11], %10 {strides = array<i32>} : memref<16x1024xbf16, #tpu.memory_space<vmem>>, vector<16x1024xbf16>,
    return
  }
  func.func @transform_0(%arg0: i32, %arg1: i32) -> (i32, i32) {
    %c0_i32 = arith.constant 0 : i32
    %c0_i32_0 = arith.constant 0 : i32
    return %arg0, %c0_i32 : i32, i32
  }
  func.func @transform_1(%arg0: i32, %arg1: i32) -> (i32, i32) {
    %c0_i32 = arith.constant 0 : i32
    %c0_i32_0 = arith.constant 0 : i32
    return %arg0, %c0_i32 : i32, i32
  }
  func.func @transform_2(%arg0: i32, %arg1: i32) -> (i32, i32) {
    %c0_i32 = arith.constant 0 : i32
    %c0_i32_0 = arith.constant 0 : i32
    return %c0_i32, %arg1 : i32, i32
  }
  func.func @transform_3(%arg0: i32, %arg1: i32) -> (i32, i32) {
    %c0_i32 = arith.constant 0 : i32
    %c0_i32_0 = arith.constant 0 : i32
    return %c0_i32, %arg1 : i32, i32
  }
  func.func @transform_4(%arg0: i32, %arg1: i32) -> (i32, i32) {
    %c0_i32 = arith.constant 0 : i32
    %c0_i32_0 = arith.constant 0 : i32
    return %c0_i32, %arg1 : i32, i32
  }
  func.func @transform_5(%arg0: i32, %arg1: i32) -> (i32, i32) {
    %c0_i32 = arith.constant 0 : i32
    return %arg0, %arg1 : i32, i32
  }
}

module attributes {stable_mosaic.version = 11 : i64} {
  func.func @_fused_rec_kernel(%arg0: i32, %arg1: memref<8x2x512xbf16, #tpu.memory_space<vmem>>, %arg2: memref<8x2x512xbf16, #tpu.memory_space<vmem>>, %arg3: memref<2x128x512xbf16, #tpu.memory_space<vmem>>, %arg4: memref<2x2x128xf32, #tpu.memory_space<vmem>>, %arg5: memref<2x2x128xf32, #tpu.memory_space<vmem>>, %arg6: memref<2x2x128xf32, #tpu.memory_space<vmem>>) attributes {dimension_semantics = [#tpu.dimension_semantics<arbitrary>], iteration_bounds = array<i64: 1>, scalar_prefetch = 0 : i64, scratch_operands = 2 : i64, tpu.core_type = #tpu.core_type<tc>, window_params = [{transform_indices = @transform_0, window_bounds = array<i64: 8, 2, 512>}, {transform_indices = @transform_1, window_bounds = array<i64: 8, 2, 512>}, {pipeline_mode = #tpu.pipeline_mode<synchronous>, transform_indices = @transform_2, window_bounds = array<i64: 2, 128, 512>}, {pipeline_mode = #tpu.pipeline_mode<synchronous>, transform_indices = @transform_3, window_bounds = array<i64: 2, 2, 128>}]} {
    %c0_i32 = arith.constant 0 : i32
    %0 = arith.cmpi eq, %arg0, %c0_i32 : i32
    %1 = arith.extui %0 : i1 to i32
    %c0_i32_0 = arith.constant 0 : i32
    %2 = arith.cmpi ne, %1, %c0_i32_0 : i32
    scf.if %2 {
      %cst_181 = arith.constant 0.000000e+00 : f32
      %469 = vector.broadcast %cst_181 : f32 to vector<2x2x128xf32>
      %c0_182 = arith.constant 0 : index
      %c0_183 = arith.constant 0 : index
      %c0_184 = arith.constant 0 : index
      %470 = vector.load %arg5[%c0_182, %c0_183, %c0_184] : memref<2x2x128xf32, #tpu.memory_space<vmem>>, vector<2x2x128xf32>
      tpu.vector_store %arg5[%c0_182, %c0_183, %c0_184], %469 {strides = array<i32>} : memref<2x2x128xf32, #tpu.memory_space<vmem>>, vector<2x2x128xf32>,
      %cst_185 = arith.constant 0.000000e+00 : f32
      %471 = vector.broadcast %cst_185 : f32 to vector<2x2x128xf32>
      %c0_186 = arith.constant 0 : index
      %c0_187 = arith.constant 0 : index
      %c0_188 = arith.constant 0 : index
      %472 = vector.load %arg6[%c0_186, %c0_187, %c0_188] : memref<2x2x128xf32, #tpu.memory_space<vmem>>, vector<2x2x128xf32>
      tpu.vector_store %arg6[%c0_186, %c0_187, %c0_188], %471 {strides = array<i32>} : memref<2x2x128xf32, #tpu.memory_space<vmem>>, vector<2x2x128xf32>,
    } else {
    }
    %c0 = arith.constant 0 : index
    %c0_1 = arith.constant 0 : index
    %c0_2 = arith.constant 0 : index
    %3 = vector.load %arg5[%c0, %c0_1, %c0_2] : memref<2x2x128xf32, #tpu.memory_space<vmem>>, vector<1x2x128xf32>
    %4 = vector.shape_cast %3 : vector<1x2x128xf32> to vector<2x128xf32>
    %c0_3 = arith.constant 0 : index
    %c0_4 = arith.constant 0 : index
    %c0_5 = arith.constant 0 : index
    %5 = vector.load %arg6[%c0_3, %c0_4, %c0_5] : memref<2x2x128xf32, #tpu.memory_space<vmem>>, vector<1x2x128xf32>
    %6 = vector.shape_cast %5 : vector<1x2x128xf32> to vector<2x128xf32>
    %c1 = arith.constant 1 : index
    %c0_6 = arith.constant 0 : index
    %c0_7 = arith.constant 0 : index
    %7 = vector.load %arg5[%c1, %c0_6, %c0_7] : memref<2x2x128xf32, #tpu.memory_space<vmem>>, vector<1x2x128xf32>
    %8 = vector.shape_cast %7 : vector<1x2x128xf32> to vector<2x128xf32>
    %c1_8 = arith.constant 1 : index
    %c0_9 = arith.constant 0 : index
    %c0_10 = arith.constant 0 : index
    %9 = vector.load %arg6[%c1_8, %c0_9, %c0_10] : memref<2x2x128xf32, #tpu.memory_space<vmem>>, vector<1x2x128xf32>
    %10 = vector.shape_cast %9 : vector<1x2x128xf32> to vector<2x128xf32>
    %c0_i32_11 = arith.constant 0 : i32
    %c7_i32 = arith.constant 7 : i32
    %11 = arith.subi %c7_i32, %c0_i32_11 : i32
    %12 = arith.index_cast %c0_i32_11 : i32 to index
    %c0_12 = arith.constant 0 : index
    %c0_13 = arith.constant 0 : index
    %13 = vector.load %arg1[%12, %c0_12, %c0_13] : memref<8x2x512xbf16, #tpu.memory_space<vmem>>, vector<1x2x512xbf16>
    %14 = vector.shape_cast %13 : vector<1x2x512xbf16> to vector<2x512xbf16>
    %c0_14 = arith.constant 0 : index
    %c0_15 = arith.constant 0 : index
    %c0_16 = arith.constant 0 : index
    %15 = vector.load %arg3[%c0_14, %c0_15, %c0_16] : memref<2x128x512xbf16, #tpu.memory_space<vmem>>, vector<1x128x512xbf16>
    %16 = vector.shape_cast %15 : vector<1x128x512xbf16> to vector<128x512xbf16>
    %17 = arith.extf %14 : vector<2x512xbf16> to vector<2x512xf32>
    %18 = arith.truncf %4 : vector<2x128xf32> to vector<2x128xbf16>
    %cst = arith.constant dense<0.000000e+00> : vector<2x512xf32>
    %19 = tpu.matmul %18, %16, %cst {dimension_numbers = #tpu.dot_dimension_numbers<[1], [0], [0], [1], [0, 0, 1, 1], [], []>} : vector<2x128xbf16>, vector<128x512xbf16>, vector<2x512xf32> -> vector<2x512xf32>
    %20 = arith.addf %17, %19 : vector<2x512xf32>
    %21 = vector.extract_strided_slice %20 {offsets = [0, 0], sizes = [2, 384], strides = [1, 1]} : vector<2x512xf32> to vector<2x384xf32>
    %cst_17 = arith.constant 0.000000e+00 : f32
    %22 = vector.broadcast %cst_17 : f32 to vector<2x384xf32>
    %23 = arith.subf %22, %21 : vector<2x384xf32>
    %24 = math.exp %23 : vector<2x384xf32>
    %cst_18 = arith.constant 1.000000e+00 : f32
    %25 = vector.broadcast %cst_18 : f32 to vector<2x384xf32>
    %26 = arith.addf %25, %24 : vector<2x384xf32>
    %cst_19 = arith.constant 1.000000e+00 : f32
    %27 = vector.broadcast %cst_19 : f32 to vector<2x384xf32>
    %28 = arith.divf %27, %26 : vector<2x384xf32>
    %29 = vector.extract_strided_slice %20 {offsets = [0, 384], sizes = [2, 128], strides = [1, 1]} : vector<2x512xf32> to vector<2x128xf32>
    %30 = math.tanh %29 : vector<2x128xf32>
    %31 = vector.extract_strided_slice %28 {offsets = [0, 128], sizes = [2, 128], strides = [1, 1]} : vector<2x384xf32> to vector<2x128xf32>
    %32 = arith.mulf %31, %6 : vector<2x128xf32>
    %33 = vector.extract_strided_slice %28 {offsets = [0, 0], sizes = [2, 128], strides = [1, 1]} : vector<2x384xf32> to vector<2x128xf32>
    %34 = arith.mulf %33, %30 : vector<2x128xf32>
    %35 = arith.addf %32, %34 : vector<2x128xf32>
    %36 = vector.extract_strided_slice %28 {offsets = [0, 256], sizes = [2, 128], strides = [1, 1]} : vector<2x384xf32> to vector<2x128xf32>
    %37 = math.tanh %35 : vector<2x128xf32>
    %38 = arith.mulf %36, %37 : vector<2x128xf32>
    %39 = arith.index_cast %11 : i32 to index
    %c0_20 = arith.constant 0 : index
    %c0_21 = arith.constant 0 : index
    %40 = vector.load %arg2[%39, %c0_20, %c0_21] : memref<8x2x512xbf16, #tpu.memory_space<vmem>>, vector<1x2x512xbf16>
    %41 = vector.shape_cast %40 : vector<1x2x512xbf16> to vector<2x512xbf16>
    %c1_22 = arith.constant 1 : index
    %c0_23 = arith.constant 0 : index
    %c0_24 = arith.constant 0 : index
    %42 = vector.load %arg3[%c1_22, %c0_23, %c0_24] : memref<2x128x512xbf16, #tpu.memory_space<vmem>>, vector<1x128x512xbf16>
    %43 = vector.shape_cast %42 : vector<1x128x512xbf16> to vector<128x512xbf16>
    %44 = arith.extf %41 : vector<2x512xbf16> to vector<2x512xf32>
    %45 = arith.truncf %8 : vector<2x128xf32> to vector<2x128xbf16>
    %cst_25 = arith.constant dense<0.000000e+00> : vector<2x512xf32>
    %46 = tpu.matmul %45, %43, %cst_25 {dimension_numbers = #tpu.dot_dimension_numbers<[1], [0], [0], [1], [0, 0, 1, 1], [], []>} : vector<2x128xbf16>, vector<128x512xbf16>, vector<2x512xf32> -> vector<2x512xf32>
    %47 = arith.addf %44, %46 : vector<2x512xf32>
    %48 = vector.extract_strided_slice %47 {offsets = [0, 0], sizes = [2, 384], strides = [1, 1]} : vector<2x512xf32> to vector<2x384xf32>
    %cst_26 = arith.constant 0.000000e+00 : f32
    %49 = vector.broadcast %cst_26 : f32 to vector<2x384xf32>
    %50 = arith.subf %49, %48 : vector<2x384xf32>
    %51 = math.exp %50 : vector<2x384xf32>
    %cst_27 = arith.constant 1.000000e+00 : f32
    %52 = vector.broadcast %cst_27 : f32 to vector<2x384xf32>
    %53 = arith.addf %52, %51 : vector<2x384xf32>
    %cst_28 = arith.constant 1.000000e+00 : f32
    %54 = vector.broadcast %cst_28 : f32 to vector<2x384xf32>
    %55 = arith.divf %54, %53 : vector<2x384xf32>
    %56 = vector.extract_strided_slice %47 {offsets = [0, 384], sizes = [2, 128], strides = [1, 1]} : vector<2x512xf32> to vector<2x128xf32>
    %57 = math.tanh %56 : vector<2x128xf32>
    %58 = vector.extract_strided_slice %55 {offsets = [0, 128], sizes = [2, 128], strides = [1, 1]} : vector<2x384xf32> to vector<2x128xf32>
    %59 = arith.mulf %58, %10 : vector<2x128xf32>
    %60 = vector.extract_strided_slice %55 {offsets = [0, 0], sizes = [2, 128], strides = [1, 1]} : vector<2x384xf32> to vector<2x128xf32>
    %61 = arith.mulf %60, %57 : vector<2x128xf32>
    %62 = arith.addf %59, %61 : vector<2x128xf32>
    %63 = vector.extract_strided_slice %55 {offsets = [0, 256], sizes = [2, 128], strides = [1, 1]} : vector<2x384xf32> to vector<2x128xf32>
    %64 = math.tanh %62 : vector<2x128xf32>
    %65 = arith.mulf %63, %64 : vector<2x128xf32>
    %c1_i32 = arith.constant 1 : i32
    %c7_i32_29 = arith.constant 7 : i32
    %66 = arith.subi %c7_i32_29, %c1_i32 : i32
    %67 = arith.index_cast %c1_i32 : i32 to index
    %c0_30 = arith.constant 0 : index
    %c0_31 = arith.constant 0 : index
    %68 = vector.load %arg1[%67, %c0_30, %c0_31] : memref<8x2x512xbf16, #tpu.memory_space<vmem>>, vector<1x2x512xbf16>
    %69 = vector.shape_cast %68 : vector<1x2x512xbf16> to vector<2x512xbf16>
    %c0_32 = arith.constant 0 : index
    %c0_33 = arith.constant 0 : index
    %c0_34 = arith.constant 0 : index
    %70 = vector.load %arg3[%c0_32, %c0_33, %c0_34] : memref<2x128x512xbf16, #tpu.memory_space<vmem>>, vector<1x128x512xbf16>
    %71 = vector.shape_cast %70 : vector<1x128x512xbf16> to vector<128x512xbf16>
    %72 = arith.extf %69 : vector<2x512xbf16> to vector<2x512xf32>
    %73 = arith.truncf %38 : vector<2x128xf32> to vector<2x128xbf16>
    %cst_35 = arith.constant dense<0.000000e+00> : vector<2x512xf32>
    %74 = tpu.matmul %73, %71, %cst_35 {dimension_numbers = #tpu.dot_dimension_numbers<[1], [0], [0], [1], [0, 0, 1, 1], [], []>} : vector<2x128xbf16>, vector<128x512xbf16>, vector<2x512xf32> -> vector<2x512xf32>
    %75 = arith.addf %72, %74 : vector<2x512xf32>
    %76 = vector.extract_strided_slice %75 {offsets = [0, 0], sizes = [2, 384], strides = [1, 1]} : vector<2x512xf32> to vector<2x384xf32>
    %cst_36 = arith.constant 0.000000e+00 : f32
    %77 = vector.broadcast %cst_36 : f32 to vector<2x384xf32>
    %78 = arith.subf %77, %76 : vector<2x384xf32>
    %79 = math.exp %78 : vector<2x384xf32>
    %cst_37 = arith.constant 1.000000e+00 : f32
    %80 = vector.broadcast %cst_37 : f32 to vector<2x384xf32>
    %81 = arith.addf %80, %79 : vector<2x384xf32>
    %cst_38 = arith.constant 1.000000e+00 : f32
    %82 = vector.broadcast %cst_38 : f32 to vector<2x384xf32>
    %83 = arith.divf %82, %81 : vector<2x384xf32>
    %84 = vector.extract_strided_slice %75 {offsets = [0, 384], sizes = [2, 128], strides = [1, 1]} : vector<2x512xf32> to vector<2x128xf32>
    %85 = math.tanh %84 : vector<2x128xf32>
    %86 = vector.extract_strided_slice %83 {offsets = [0, 128], sizes = [2, 128], strides = [1, 1]} : vector<2x384xf32> to vector<2x128xf32>
    %87 = arith.mulf %86, %35 : vector<2x128xf32>
    %88 = vector.extract_strided_slice %83 {offsets = [0, 0], sizes = [2, 128], strides = [1, 1]} : vector<2x384xf32> to vector<2x128xf32>
    %89 = arith.mulf %88, %85 : vector<2x128xf32>
    %90 = arith.addf %87, %89 : vector<2x128xf32>
    %91 = vector.extract_strided_slice %83 {offsets = [0, 256], sizes = [2, 128], strides = [1, 1]} : vector<2x384xf32> to vector<2x128xf32>
    %92 = math.tanh %90 : vector<2x128xf32>
    %93 = arith.mulf %91, %92 : vector<2x128xf32>
    %94 = arith.index_cast %66 : i32 to index
    %c0_39 = arith.constant 0 : index
    %c0_40 = arith.constant 0 : index
    %95 = vector.load %arg2[%94, %c0_39, %c0_40] : memref<8x2x512xbf16, #tpu.memory_space<vmem>>, vector<1x2x512xbf16>
    %96 = vector.shape_cast %95 : vector<1x2x512xbf16> to vector<2x512xbf16>
    %c1_41 = arith.constant 1 : index
    %c0_42 = arith.constant 0 : index
    %c0_43 = arith.constant 0 : index
    %97 = vector.load %arg3[%c1_41, %c0_42, %c0_43] : memref<2x128x512xbf16, #tpu.memory_space<vmem>>, vector<1x128x512xbf16>
    %98 = vector.shape_cast %97 : vector<1x128x512xbf16> to vector<128x512xbf16>
    %99 = arith.extf %96 : vector<2x512xbf16> to vector<2x512xf32>
    %100 = arith.truncf %65 : vector<2x128xf32> to vector<2x128xbf16>
    %cst_44 = arith.constant dense<0.000000e+00> : vector<2x512xf32>
    %101 = tpu.matmul %100, %98, %cst_44 {dimension_numbers = #tpu.dot_dimension_numbers<[1], [0], [0], [1], [0, 0, 1, 1], [], []>} : vector<2x128xbf16>, vector<128x512xbf16>, vector<2x512xf32> -> vector<2x512xf32>
    %102 = arith.addf %99, %101 : vector<2x512xf32>
    %103 = vector.extract_strided_slice %102 {offsets = [0, 0], sizes = [2, 384], strides = [1, 1]} : vector<2x512xf32> to vector<2x384xf32>
    %cst_45 = arith.constant 0.000000e+00 : f32
    %104 = vector.broadcast %cst_45 : f32 to vector<2x384xf32>
    %105 = arith.subf %104, %103 : vector<2x384xf32>
    %106 = math.exp %105 : vector<2x384xf32>
    %cst_46 = arith.constant 1.000000e+00 : f32
    %107 = vector.broadcast %cst_46 : f32 to vector<2x384xf32>
    %108 = arith.addf %107, %106 : vector<2x384xf32>
    %cst_47 = arith.constant 1.000000e+00 : f32
    %109 = vector.broadcast %cst_47 : f32 to vector<2x384xf32>
    %110 = arith.divf %109, %108 : vector<2x384xf32>
    %111 = vector.extract_strided_slice %102 {offsets = [0, 384], sizes = [2, 128], strides = [1, 1]} : vector<2x512xf32> to vector<2x128xf32>
    %112 = math.tanh %111 : vector<2x128xf32>
    %113 = vector.extract_strided_slice %110 {offsets = [0, 128], sizes = [2, 128], strides = [1, 1]} : vector<2x384xf32> to vector<2x128xf32>
    %114 = arith.mulf %113, %62 : vector<2x128xf32>
    %115 = vector.extract_strided_slice %110 {offsets = [0, 0], sizes = [2, 128], strides = [1, 1]} : vector<2x384xf32> to vector<2x128xf32>
    %116 = arith.mulf %115, %112 : vector<2x128xf32>
    %117 = arith.addf %114, %116 : vector<2x128xf32>
    %118 = vector.extract_strided_slice %110 {offsets = [0, 256], sizes = [2, 128], strides = [1, 1]} : vector<2x384xf32> to vector<2x128xf32>
    %119 = math.tanh %117 : vector<2x128xf32>
    %120 = arith.mulf %118, %119 : vector<2x128xf32>
    %c2_i32 = arith.constant 2 : i32
    %c7_i32_48 = arith.constant 7 : i32
    %121 = arith.subi %c7_i32_48, %c2_i32 : i32
    %122 = arith.index_cast %c2_i32 : i32 to index
    %c0_49 = arith.constant 0 : index
    %c0_50 = arith.constant 0 : index
    %123 = vector.load %arg1[%122, %c0_49, %c0_50] : memref<8x2x512xbf16, #tpu.memory_space<vmem>>, vector<1x2x512xbf16>
    %124 = vector.shape_cast %123 : vector<1x2x512xbf16> to vector<2x512xbf16>
    %c0_51 = arith.constant 0 : index
    %c0_52 = arith.constant 0 : index
    %c0_53 = arith.constant 0 : index
    %125 = vector.load %arg3[%c0_51, %c0_52, %c0_53] : memref<2x128x512xbf16, #tpu.memory_space<vmem>>, vector<1x128x512xbf16>
    %126 = vector.shape_cast %125 : vector<1x128x512xbf16> to vector<128x512xbf16>
    %127 = arith.extf %124 : vector<2x512xbf16> to vector<2x512xf32>
    %128 = arith.truncf %93 : vector<2x128xf32> to vector<2x128xbf16>
    %cst_54 = arith.constant dense<0.000000e+00> : vector<2x512xf32>
    %129 = tpu.matmul %128, %126, %cst_54 {dimension_numbers = #tpu.dot_dimension_numbers<[1], [0], [0], [1], [0, 0, 1, 1], [], []>} : vector<2x128xbf16>, vector<128x512xbf16>, vector<2x512xf32> -> vector<2x512xf32>
    %130 = arith.addf %127, %129 : vector<2x512xf32>
    %131 = vector.extract_strided_slice %130 {offsets = [0, 0], sizes = [2, 384], strides = [1, 1]} : vector<2x512xf32> to vector<2x384xf32>
    %cst_55 = arith.constant 0.000000e+00 : f32
    %132 = vector.broadcast %cst_55 : f32 to vector<2x384xf32>
    %133 = arith.subf %132, %131 : vector<2x384xf32>
    %134 = math.exp %133 : vector<2x384xf32>
    %cst_56 = arith.constant 1.000000e+00 : f32
    %135 = vector.broadcast %cst_56 : f32 to vector<2x384xf32>
    %136 = arith.addf %135, %134 : vector<2x384xf32>
    %cst_57 = arith.constant 1.000000e+00 : f32
    %137 = vector.broadcast %cst_57 : f32 to vector<2x384xf32>
    %138 = arith.divf %137, %136 : vector<2x384xf32>
    %139 = vector.extract_strided_slice %130 {offsets = [0, 384], sizes = [2, 128], strides = [1, 1]} : vector<2x512xf32> to vector<2x128xf32>
    %140 = math.tanh %139 : vector<2x128xf32>
    %141 = vector.extract_strided_slice %138 {offsets = [0, 128], sizes = [2, 128], strides = [1, 1]} : vector<2x384xf32> to vector<2x128xf32>
    %142 = arith.mulf %141, %90 : vector<2x128xf32>
    %143 = vector.extract_strided_slice %138 {offsets = [0, 0], sizes = [2, 128], strides = [1, 1]} : vector<2x384xf32> to vector<2x128xf32>
    %144 = arith.mulf %143, %140 : vector<2x128xf32>
    %145 = arith.addf %142, %144 : vector<2x128xf32>
    %146 = vector.extract_strided_slice %138 {offsets = [0, 256], sizes = [2, 128], strides = [1, 1]} : vector<2x384xf32> to vector<2x128xf32>
    %147 = math.tanh %145 : vector<2x128xf32>
    %148 = arith.mulf %146, %147 : vector<2x128xf32>
    %149 = arith.index_cast %121 : i32 to index
    %c0_58 = arith.constant 0 : index
    %c0_59 = arith.constant 0 : index
    %150 = vector.load %arg2[%149, %c0_58, %c0_59] : memref<8x2x512xbf16, #tpu.memory_space<vmem>>, vector<1x2x512xbf16>
    %151 = vector.shape_cast %150 : vector<1x2x512xbf16> to vector<2x512xbf16>
    %c1_60 = arith.constant 1 : index
    %c0_61 = arith.constant 0 : index
    %c0_62 = arith.constant 0 : index
    %152 = vector.load %arg3[%c1_60, %c0_61, %c0_62] : memref<2x128x512xbf16, #tpu.memory_space<vmem>>, vector<1x128x512xbf16>
    %153 = vector.shape_cast %152 : vector<1x128x512xbf16> to vector<128x512xbf16>
    %154 = arith.extf %151 : vector<2x512xbf16> to vector<2x512xf32>
    %155 = arith.truncf %120 : vector<2x128xf32> to vector<2x128xbf16>
    %cst_63 = arith.constant dense<0.000000e+00> : vector<2x512xf32>
    %156 = tpu.matmul %155, %153, %cst_63 {dimension_numbers = #tpu.dot_dimension_numbers<[1], [0], [0], [1], [0, 0, 1, 1], [], []>} : vector<2x128xbf16>, vector<128x512xbf16>, vector<2x512xf32> -> vector<2x512xf32>
    %157 = arith.addf %154, %156 : vector<2x512xf32>
    %158 = vector.extract_strided_slice %157 {offsets = [0, 0], sizes = [2, 384], strides = [1, 1]} : vector<2x512xf32> to vector<2x384xf32>
    %cst_64 = arith.constant 0.000000e+00 : f32
    %159 = vector.broadcast %cst_64 : f32 to vector<2x384xf32>
    %160 = arith.subf %159, %158 : vector<2x384xf32>
    %161 = math.exp %160 : vector<2x384xf32>
    %cst_65 = arith.constant 1.000000e+00 : f32
    %162 = vector.broadcast %cst_65 : f32 to vector<2x384xf32>
    %163 = arith.addf %162, %161 : vector<2x384xf32>
    %cst_66 = arith.constant 1.000000e+00 : f32
    %164 = vector.broadcast %cst_66 : f32 to vector<2x384xf32>
    %165 = arith.divf %164, %163 : vector<2x384xf32>
    %166 = vector.extract_strided_slice %157 {offsets = [0, 384], sizes = [2, 128], strides = [1, 1]} : vector<2x512xf32> to vector<2x128xf32>
    %167 = math.tanh %166 : vector<2x128xf32>
    %168 = vector.extract_strided_slice %165 {offsets = [0, 128], sizes = [2, 128], strides = [1, 1]} : vector<2x384xf32> to vector<2x128xf32>
    %169 = arith.mulf %168, %117 : vector<2x128xf32>
    %170 = vector.extract_strided_slice %165 {offsets = [0, 0], sizes = [2, 128], strides = [1, 1]} : vector<2x384xf32> to vector<2x128xf32>
    %171 = arith.mulf %170, %167 : vector<2x128xf32>
    %172 = arith.addf %169, %171 : vector<2x128xf32>
    %173 = vector.extract_strided_slice %165 {offsets = [0, 256], sizes = [2, 128], strides = [1, 1]} : vector<2x384xf32> to vector<2x128xf32>
    %174 = math.tanh %172 : vector<2x128xf32>
    %175 = arith.mulf %173, %174 : vector<2x128xf32>
    %c3_i32 = arith.constant 3 : i32
    %c7_i32_67 = arith.constant 7 : i32
    %176 = arith.subi %c7_i32_67, %c3_i32 : i32
    %177 = arith.index_cast %c3_i32 : i32 to index
    %c0_68 = arith.constant 0 : index
    %c0_69 = arith.constant 0 : index
    %178 = vector.load %arg1[%177, %c0_68, %c0_69] : memref<8x2x512xbf16, #tpu.memory_space<vmem>>, vector<1x2x512xbf16>
    %179 = vector.shape_cast %178 : vector<1x2x512xbf16> to vector<2x512xbf16>
    %c0_70 = arith.constant 0 : index
    %c0_71 = arith.constant 0 : index
    %c0_72 = arith.constant 0 : index
    %180 = vector.load %arg3[%c0_70, %c0_71, %c0_72] : memref<2x128x512xbf16, #tpu.memory_space<vmem>>, vector<1x128x512xbf16>
    %181 = vector.shape_cast %180 : vector<1x128x512xbf16> to vector<128x512xbf16>
    %182 = arith.extf %179 : vector<2x512xbf16> to vector<2x512xf32>
    %183 = arith.truncf %148 : vector<2x128xf32> to vector<2x128xbf16>
    %cst_73 = arith.constant dense<0.000000e+00> : vector<2x512xf32>
    %184 = tpu.matmul %183, %181, %cst_73 {dimension_numbers = #tpu.dot_dimension_numbers<[1], [0], [0], [1], [0, 0, 1, 1], [], []>} : vector<2x128xbf16>, vector<128x512xbf16>, vector<2x512xf32> -> vector<2x512xf32>
    %185 = arith.addf %182, %184 : vector<2x512xf32>
    %186 = vector.extract_strided_slice %185 {offsets = [0, 0], sizes = [2, 384], strides = [1, 1]} : vector<2x512xf32> to vector<2x384xf32>
    %cst_74 = arith.constant 0.000000e+00 : f32
    %187 = vector.broadcast %cst_74 : f32 to vector<2x384xf32>
    %188 = arith.subf %187, %186 : vector<2x384xf32>
    %189 = math.exp %188 : vector<2x384xf32>
    %cst_75 = arith.constant 1.000000e+00 : f32
    %190 = vector.broadcast %cst_75 : f32 to vector<2x384xf32>
    %191 = arith.addf %190, %189 : vector<2x384xf32>
    %cst_76 = arith.constant 1.000000e+00 : f32
    %192 = vector.broadcast %cst_76 : f32 to vector<2x384xf32>
    %193 = arith.divf %192, %191 : vector<2x384xf32>
    %194 = vector.extract_strided_slice %185 {offsets = [0, 384], sizes = [2, 128], strides = [1, 1]} : vector<2x512xf32> to vector<2x128xf32>
    %195 = math.tanh %194 : vector<2x128xf32>
    %196 = vector.extract_strided_slice %193 {offsets = [0, 128], sizes = [2, 128], strides = [1, 1]} : vector<2x384xf32> to vector<2x128xf32>
    %197 = arith.mulf %196, %145 : vector<2x128xf32>
    %198 = vector.extract_strided_slice %193 {offsets = [0, 0], sizes = [2, 128], strides = [1, 1]} : vector<2x384xf32> to vector<2x128xf32>
    %199 = arith.mulf %198, %195 : vector<2x128xf32>
    %200 = arith.addf %197, %199 : vector<2x128xf32>
    %201 = vector.extract_strided_slice %193 {offsets = [0, 256], sizes = [2, 128], strides = [1, 1]} : vector<2x384xf32> to vector<2x128xf32>
    %202 = math.tanh %200 : vector<2x128xf32>
    %203 = arith.mulf %201, %202 : vector<2x128xf32>
    %204 = arith.index_cast %176 : i32 to index
    %c0_77 = arith.constant 0 : index
    %c0_78 = arith.constant 0 : index
    %205 = vector.load %arg2[%204, %c0_77, %c0_78] : memref<8x2x512xbf16, #tpu.memory_space<vmem>>, vector<1x2x512xbf16>
    %206 = vector.shape_cast %205 : vector<1x2x512xbf16> to vector<2x512xbf16>
    %c1_79 = arith.constant 1 : index
    %c0_80 = arith.constant 0 : index
    %c0_81 = arith.constant 0 : index
    %207 = vector.load %arg3[%c1_79, %c0_80, %c0_81] : memref<2x128x512xbf16, #tpu.memory_space<vmem>>, vector<1x128x512xbf16>
    %208 = vector.shape_cast %207 : vector<1x128x512xbf16> to vector<128x512xbf16>
    %209 = arith.extf %206 : vector<2x512xbf16> to vector<2x512xf32>
    %210 = arith.truncf %175 : vector<2x128xf32> to vector<2x128xbf16>
    %cst_82 = arith.constant dense<0.000000e+00> : vector<2x512xf32>
    %211 = tpu.matmul %210, %208, %cst_82 {dimension_numbers = #tpu.dot_dimension_numbers<[1], [0], [0], [1], [0, 0, 1, 1], [], []>} : vector<2x128xbf16>, vector<128x512xbf16>, vector<2x512xf32> -> vector<2x512xf32>
    %212 = arith.addf %209, %211 : vector<2x512xf32>
    %213 = vector.extract_strided_slice %212 {offsets = [0, 0], sizes = [2, 384], strides = [1, 1]} : vector<2x512xf32> to vector<2x384xf32>
    %cst_83 = arith.constant 0.000000e+00 : f32
    %214 = vector.broadcast %cst_83 : f32 to vector<2x384xf32>
    %215 = arith.subf %214, %213 : vector<2x384xf32>
    %216 = math.exp %215 : vector<2x384xf32>
    %cst_84 = arith.constant 1.000000e+00 : f32
    %217 = vector.broadcast %cst_84 : f32 to vector<2x384xf32>
    %218 = arith.addf %217, %216 : vector<2x384xf32>
    %cst_85 = arith.constant 1.000000e+00 : f32
    %219 = vector.broadcast %cst_85 : f32 to vector<2x384xf32>
    %220 = arith.divf %219, %218 : vector<2x384xf32>
    %221 = vector.extract_strided_slice %212 {offsets = [0, 384], sizes = [2, 128], strides = [1, 1]} : vector<2x512xf32> to vector<2x128xf32>
    %222 = math.tanh %221 : vector<2x128xf32>
    %223 = vector.extract_strided_slice %220 {offsets = [0, 128], sizes = [2, 128], strides = [1, 1]} : vector<2x384xf32> to vector<2x128xf32>
    %224 = arith.mulf %223, %172 : vector<2x128xf32>
    %225 = vector.extract_strided_slice %220 {offsets = [0, 0], sizes = [2, 128], strides = [1, 1]} : vector<2x384xf32> to vector<2x128xf32>
    %226 = arith.mulf %225, %222 : vector<2x128xf32>
    %227 = arith.addf %224, %226 : vector<2x128xf32>
    %228 = vector.extract_strided_slice %220 {offsets = [0, 256], sizes = [2, 128], strides = [1, 1]} : vector<2x384xf32> to vector<2x128xf32>
    %229 = math.tanh %227 : vector<2x128xf32>
    %230 = arith.mulf %228, %229 : vector<2x128xf32>
    %c4_i32 = arith.constant 4 : i32
    %c7_i32_86 = arith.constant 7 : i32
    %231 = arith.subi %c7_i32_86, %c4_i32 : i32
    %232 = arith.index_cast %c4_i32 : i32 to index
    %c0_87 = arith.constant 0 : index
    %c0_88 = arith.constant 0 : index
    %233 = vector.load %arg1[%232, %c0_87, %c0_88] : memref<8x2x512xbf16, #tpu.memory_space<vmem>>, vector<1x2x512xbf16>
    %234 = vector.shape_cast %233 : vector<1x2x512xbf16> to vector<2x512xbf16>
    %c0_89 = arith.constant 0 : index
    %c0_90 = arith.constant 0 : index
    %c0_91 = arith.constant 0 : index
    %235 = vector.load %arg3[%c0_89, %c0_90, %c0_91] : memref<2x128x512xbf16, #tpu.memory_space<vmem>>, vector<1x128x512xbf16>
    %236 = vector.shape_cast %235 : vector<1x128x512xbf16> to vector<128x512xbf16>
    %237 = arith.extf %234 : vector<2x512xbf16> to vector<2x512xf32>
    %238 = arith.truncf %203 : vector<2x128xf32> to vector<2x128xbf16>
    %cst_92 = arith.constant dense<0.000000e+00> : vector<2x512xf32>
    %239 = tpu.matmul %238, %236, %cst_92 {dimension_numbers = #tpu.dot_dimension_numbers<[1], [0], [0], [1], [0, 0, 1, 1], [], []>} : vector<2x128xbf16>, vector<128x512xbf16>, vector<2x512xf32> -> vector<2x512xf32>
    %240 = arith.addf %237, %239 : vector<2x512xf32>
    %241 = vector.extract_strided_slice %240 {offsets = [0, 0], sizes = [2, 384], strides = [1, 1]} : vector<2x512xf32> to vector<2x384xf32>
    %cst_93 = arith.constant 0.000000e+00 : f32
    %242 = vector.broadcast %cst_93 : f32 to vector<2x384xf32>
    %243 = arith.subf %242, %241 : vector<2x384xf32>
    %244 = math.exp %243 : vector<2x384xf32>
    %cst_94 = arith.constant 1.000000e+00 : f32
    %245 = vector.broadcast %cst_94 : f32 to vector<2x384xf32>
    %246 = arith.addf %245, %244 : vector<2x384xf32>
    %cst_95 = arith.constant 1.000000e+00 : f32
    %247 = vector.broadcast %cst_95 : f32 to vector<2x384xf32>
    %248 = arith.divf %247, %246 : vector<2x384xf32>
    %249 = vector.extract_strided_slice %240 {offsets = [0, 384], sizes = [2, 128], strides = [1, 1]} : vector<2x512xf32> to vector<2x128xf32>
    %250 = math.tanh %249 : vector<2x128xf32>
    %251 = vector.extract_strided_slice %248 {offsets = [0, 128], sizes = [2, 128], strides = [1, 1]} : vector<2x384xf32> to vector<2x128xf32>
    %252 = arith.mulf %251, %200 : vector<2x128xf32>
    %253 = vector.extract_strided_slice %248 {offsets = [0, 0], sizes = [2, 128], strides = [1, 1]} : vector<2x384xf32> to vector<2x128xf32>
    %254 = arith.mulf %253, %250 : vector<2x128xf32>
    %255 = arith.addf %252, %254 : vector<2x128xf32>
    %256 = vector.extract_strided_slice %248 {offsets = [0, 256], sizes = [2, 128], strides = [1, 1]} : vector<2x384xf32> to vector<2x128xf32>
    %257 = math.tanh %255 : vector<2x128xf32>
    %258 = arith.mulf %256, %257 : vector<2x128xf32>
    %259 = arith.index_cast %231 : i32 to index
    %c0_96 = arith.constant 0 : index
    %c0_97 = arith.constant 0 : index
    %260 = vector.load %arg2[%259, %c0_96, %c0_97] : memref<8x2x512xbf16, #tpu.memory_space<vmem>>, vector<1x2x512xbf16>
    %261 = vector.shape_cast %260 : vector<1x2x512xbf16> to vector<2x512xbf16>
    %c1_98 = arith.constant 1 : index
    %c0_99 = arith.constant 0 : index
    %c0_100 = arith.constant 0 : index
    %262 = vector.load %arg3[%c1_98, %c0_99, %c0_100] : memref<2x128x512xbf16, #tpu.memory_space<vmem>>, vector<1x128x512xbf16>
    %263 = vector.shape_cast %262 : vector<1x128x512xbf16> to vector<128x512xbf16>
    %264 = arith.extf %261 : vector<2x512xbf16> to vector<2x512xf32>
    %265 = arith.truncf %230 : vector<2x128xf32> to vector<2x128xbf16>
    %cst_101 = arith.constant dense<0.000000e+00> : vector<2x512xf32>
    %266 = tpu.matmul %265, %263, %cst_101 {dimension_numbers = #tpu.dot_dimension_numbers<[1], [0], [0], [1], [0, 0, 1, 1], [], []>} : vector<2x128xbf16>, vector<128x512xbf16>, vector<2x512xf32> -> vector<2x512xf32>
    %267 = arith.addf %264, %266 : vector<2x512xf32>
    %268 = vector.extract_strided_slice %267 {offsets = [0, 0], sizes = [2, 384], strides = [1, 1]} : vector<2x512xf32> to vector<2x384xf32>
    %cst_102 = arith.constant 0.000000e+00 : f32
    %269 = vector.broadcast %cst_102 : f32 to vector<2x384xf32>
    %270 = arith.subf %269, %268 : vector<2x384xf32>
    %271 = math.exp %270 : vector<2x384xf32>
    %cst_103 = arith.constant 1.000000e+00 : f32
    %272 = vector.broadcast %cst_103 : f32 to vector<2x384xf32>
    %273 = arith.addf %272, %271 : vector<2x384xf32>
    %cst_104 = arith.constant 1.000000e+00 : f32
    %274 = vector.broadcast %cst_104 : f32 to vector<2x384xf32>
    %275 = arith.divf %274, %273 : vector<2x384xf32>
    %276 = vector.extract_strided_slice %267 {offsets = [0, 384], sizes = [2, 128], strides = [1, 1]} : vector<2x512xf32> to vector<2x128xf32>
    %277 = math.tanh %276 : vector<2x128xf32>
    %278 = vector.extract_strided_slice %275 {offsets = [0, 128], sizes = [2, 128], strides = [1, 1]} : vector<2x384xf32> to vector<2x128xf32>
    %279 = arith.mulf %278, %227 : vector<2x128xf32>
    %280 = vector.extract_strided_slice %275 {offsets = [0, 0], sizes = [2, 128], strides = [1, 1]} : vector<2x384xf32> to vector<2x128xf32>
    %281 = arith.mulf %280, %277 : vector<2x128xf32>
    %282 = arith.addf %279, %281 : vector<2x128xf32>
    %283 = vector.extract_strided_slice %275 {offsets = [0, 256], sizes = [2, 128], strides = [1, 1]} : vector<2x384xf32> to vector<2x128xf32>
    %284 = math.tanh %282 : vector<2x128xf32>
    %285 = arith.mulf %283, %284 : vector<2x128xf32>
    %c5_i32 = arith.constant 5 : i32
    %c7_i32_105 = arith.constant 7 : i32
    %286 = arith.subi %c7_i32_105, %c5_i32 : i32
    %287 = arith.index_cast %c5_i32 : i32 to index
    %c0_106 = arith.constant 0 : index
    %c0_107 = arith.constant 0 : index
    %288 = vector.load %arg1[%287, %c0_106, %c0_107] : memref<8x2x512xbf16, #tpu.memory_space<vmem>>, vector<1x2x512xbf16>
    %289 = vector.shape_cast %288 : vector<1x2x512xbf16> to vector<2x512xbf16>
    %c0_108 = arith.constant 0 : index
    %c0_109 = arith.constant 0 : index
    %c0_110 = arith.constant 0 : index
    %290 = vector.load %arg3[%c0_108, %c0_109, %c0_110] : memref<2x128x512xbf16, #tpu.memory_space<vmem>>, vector<1x128x512xbf16>
    %291 = vector.shape_cast %290 : vector<1x128x512xbf16> to vector<128x512xbf16>
    %292 = arith.extf %289 : vector<2x512xbf16> to vector<2x512xf32>
    %293 = arith.truncf %258 : vector<2x128xf32> to vector<2x128xbf16>
    %cst_111 = arith.constant dense<0.000000e+00> : vector<2x512xf32>
    %294 = tpu.matmul %293, %291, %cst_111 {dimension_numbers = #tpu.dot_dimension_numbers<[1], [0], [0], [1], [0, 0, 1, 1], [], []>} : vector<2x128xbf16>, vector<128x512xbf16>, vector<2x512xf32> -> vector<2x512xf32>
    %295 = arith.addf %292, %294 : vector<2x512xf32>
    %296 = vector.extract_strided_slice %295 {offsets = [0, 0], sizes = [2, 384], strides = [1, 1]} : vector<2x512xf32> to vector<2x384xf32>
    %cst_112 = arith.constant 0.000000e+00 : f32
    %297 = vector.broadcast %cst_112 : f32 to vector<2x384xf32>
    %298 = arith.subf %297, %296 : vector<2x384xf32>
    %299 = math.exp %298 : vector<2x384xf32>
    %cst_113 = arith.constant 1.000000e+00 : f32
    %300 = vector.broadcast %cst_113 : f32 to vector<2x384xf32>
    %301 = arith.addf %300, %299 : vector<2x384xf32>
    %cst_114 = arith.constant 1.000000e+00 : f32
    %302 = vector.broadcast %cst_114 : f32 to vector<2x384xf32>
    %303 = arith.divf %302, %301 : vector<2x384xf32>
    %304 = vector.extract_strided_slice %295 {offsets = [0, 384], sizes = [2, 128], strides = [1, 1]} : vector<2x512xf32> to vector<2x128xf32>
    %305 = math.tanh %304 : vector<2x128xf32>
    %306 = vector.extract_strided_slice %303 {offsets = [0, 128], sizes = [2, 128], strides = [1, 1]} : vector<2x384xf32> to vector<2x128xf32>
    %307 = arith.mulf %306, %255 : vector<2x128xf32>
    %308 = vector.extract_strided_slice %303 {offsets = [0, 0], sizes = [2, 128], strides = [1, 1]} : vector<2x384xf32> to vector<2x128xf32>
    %309 = arith.mulf %308, %305 : vector<2x128xf32>
    %310 = arith.addf %307, %309 : vector<2x128xf32>
    %311 = vector.extract_strided_slice %303 {offsets = [0, 256], sizes = [2, 128], strides = [1, 1]} : vector<2x384xf32> to vector<2x128xf32>
    %312 = math.tanh %310 : vector<2x128xf32>
    %313 = arith.mulf %311, %312 : vector<2x128xf32>
    %314 = arith.index_cast %286 : i32 to index
    %c0_115 = arith.constant 0 : index
    %c0_116 = arith.constant 0 : index
    %315 = vector.load %arg2[%314, %c0_115, %c0_116] : memref<8x2x512xbf16, #tpu.memory_space<vmem>>, vector<1x2x512xbf16>
    %316 = vector.shape_cast %315 : vector<1x2x512xbf16> to vector<2x512xbf16>
    %c1_117 = arith.constant 1 : index
    %c0_118 = arith.constant 0 : index
    %c0_119 = arith.constant 0 : index
    %317 = vector.load %arg3[%c1_117, %c0_118, %c0_119] : memref<2x128x512xbf16, #tpu.memory_space<vmem>>, vector<1x128x512xbf16>
    %318 = vector.shape_cast %317 : vector<1x128x512xbf16> to vector<128x512xbf16>
    %319 = arith.extf %316 : vector<2x512xbf16> to vector<2x512xf32>
    %320 = arith.truncf %285 : vector<2x128xf32> to vector<2x128xbf16>
    %cst_120 = arith.constant dense<0.000000e+00> : vector<2x512xf32>
    %321 = tpu.matmul %320, %318, %cst_120 {dimension_numbers = #tpu.dot_dimension_numbers<[1], [0], [0], [1], [0, 0, 1, 1], [], []>} : vector<2x128xbf16>, vector<128x512xbf16>, vector<2x512xf32> -> vector<2x512xf32>
    %322 = arith.addf %319, %321 : vector<2x512xf32>
    %323 = vector.extract_strided_slice %322 {offsets = [0, 0], sizes = [2, 384], strides = [1, 1]} : vector<2x512xf32> to vector<2x384xf32>
    %cst_121 = arith.constant 0.000000e+00 : f32
    %324 = vector.broadcast %cst_121 : f32 to vector<2x384xf32>
    %325 = arith.subf %324, %323 : vector<2x384xf32>
    %326 = math.exp %325 : vector<2x384xf32>
    %cst_122 = arith.constant 1.000000e+00 : f32
    %327 = vector.broadcast %cst_122 : f32 to vector<2x384xf32>
    %328 = arith.addf %327, %326 : vector<2x384xf32>
    %cst_123 = arith.constant 1.000000e+00 : f32
    %329 = vector.broadcast %cst_123 : f32 to vector<2x384xf32>
    %330 = arith.divf %329, %328 : vector<2x384xf32>
    %331 = vector.extract_strided_slice %322 {offsets = [0, 384], sizes = [2, 128], strides = [1, 1]} : vector<2x512xf32> to vector<2x128xf32>
    %332 = math.tanh %331 : vector<2x128xf32>
    %333 = vector.extract_strided_slice %330 {offsets = [0, 128], sizes = [2, 128], strides = [1, 1]} : vector<2x384xf32> to vector<2x128xf32>
    %334 = arith.mulf %333, %282 : vector<2x128xf32>
    %335 = vector.extract_strided_slice %330 {offsets = [0, 0], sizes = [2, 128], strides = [1, 1]} : vector<2x384xf32> to vector<2x128xf32>
    %336 = arith.mulf %335, %332 : vector<2x128xf32>
    %337 = arith.addf %334, %336 : vector<2x128xf32>
    %338 = vector.extract_strided_slice %330 {offsets = [0, 256], sizes = [2, 128], strides = [1, 1]} : vector<2x384xf32> to vector<2x128xf32>
    %339 = math.tanh %337 : vector<2x128xf32>
    %340 = arith.mulf %338, %339 : vector<2x128xf32>
    %c6_i32 = arith.constant 6 : i32
    %c7_i32_124 = arith.constant 7 : i32
    %341 = arith.subi %c7_i32_124, %c6_i32 : i32
    %342 = arith.index_cast %c6_i32 : i32 to index
    %c0_125 = arith.constant 0 : index
    %c0_126 = arith.constant 0 : index
    %343 = vector.load %arg1[%342, %c0_125, %c0_126] : memref<8x2x512xbf16, #tpu.memory_space<vmem>>, vector<1x2x512xbf16>
    %344 = vector.shape_cast %343 : vector<1x2x512xbf16> to vector<2x512xbf16>
    %c0_127 = arith.constant 0 : index
    %c0_128 = arith.constant 0 : index
    %c0_129 = arith.constant 0 : index
    %345 = vector.load %arg3[%c0_127, %c0_128, %c0_129] : memref<2x128x512xbf16, #tpu.memory_space<vmem>>, vector<1x128x512xbf16>
    %346 = vector.shape_cast %345 : vector<1x128x512xbf16> to vector<128x512xbf16>
    %347 = arith.extf %344 : vector<2x512xbf16> to vector<2x512xf32>
    %348 = arith.truncf %313 : vector<2x128xf32> to vector<2x128xbf16>
    %cst_130 = arith.constant dense<0.000000e+00> : vector<2x512xf32>
    %349 = tpu.matmul %348, %346, %cst_130 {dimension_numbers = #tpu.dot_dimension_numbers<[1], [0], [0], [1], [0, 0, 1, 1], [], []>} : vector<2x128xbf16>, vector<128x512xbf16>, vector<2x512xf32> -> vector<2x512xf32>
    %350 = arith.addf %347, %349 : vector<2x512xf32>
    %351 = vector.extract_strided_slice %350 {offsets = [0, 0], sizes = [2, 384], strides = [1, 1]} : vector<2x512xf32> to vector<2x384xf32>
    %cst_131 = arith.constant 0.000000e+00 : f32
    %352 = vector.broadcast %cst_131 : f32 to vector<2x384xf32>
    %353 = arith.subf %352, %351 : vector<2x384xf32>
    %354 = math.exp %353 : vector<2x384xf32>
    %cst_132 = arith.constant 1.000000e+00 : f32
    %355 = vector.broadcast %cst_132 : f32 to vector<2x384xf32>
    %356 = arith.addf %355, %354 : vector<2x384xf32>
    %cst_133 = arith.constant 1.000000e+00 : f32
    %357 = vector.broadcast %cst_133 : f32 to vector<2x384xf32>
    %358 = arith.divf %357, %356 : vector<2x384xf32>
    %359 = vector.extract_strided_slice %350 {offsets = [0, 384], sizes = [2, 128], strides = [1, 1]} : vector<2x512xf32> to vector<2x128xf32>
    %360 = math.tanh %359 : vector<2x128xf32>
    %361 = vector.extract_strided_slice %358 {offsets = [0, 128], sizes = [2, 128], strides = [1, 1]} : vector<2x384xf32> to vector<2x128xf32>
    %362 = arith.mulf %361, %310 : vector<2x128xf32>
    %363 = vector.extract_strided_slice %358 {offsets = [0, 0], sizes = [2, 128], strides = [1, 1]} : vector<2x384xf32> to vector<2x128xf32>
    %364 = arith.mulf %363, %360 : vector<2x128xf32>
    %365 = arith.addf %362, %364 : vector<2x128xf32>
    %366 = vector.extract_strided_slice %358 {offsets = [0, 256], sizes = [2, 128], strides = [1, 1]} : vector<2x384xf32> to vector<2x128xf32>
    %367 = math.tanh %365 : vector<2x128xf32>
    %368 = arith.mulf %366, %367 : vector<2x128xf32>
    %369 = arith.index_cast %341 : i32 to index
    %c0_134 = arith.constant 0 : index
    %c0_135 = arith.constant 0 : index
    %370 = vector.load %arg2[%369, %c0_134, %c0_135] : memref<8x2x512xbf16, #tpu.memory_space<vmem>>, vector<1x2x512xbf16>
    %371 = vector.shape_cast %370 : vector<1x2x512xbf16> to vector<2x512xbf16>
    %c1_136 = arith.constant 1 : index
    %c0_137 = arith.constant 0 : index
    %c0_138 = arith.constant 0 : index
    %372 = vector.load %arg3[%c1_136, %c0_137, %c0_138] : memref<2x128x512xbf16, #tpu.memory_space<vmem>>, vector<1x128x512xbf16>
    %373 = vector.shape_cast %372 : vector<1x128x512xbf16> to vector<128x512xbf16>
    %374 = arith.extf %371 : vector<2x512xbf16> to vector<2x512xf32>
    %375 = arith.truncf %340 : vector<2x128xf32> to vector<2x128xbf16>
    %cst_139 = arith.constant dense<0.000000e+00> : vector<2x512xf32>
    %376 = tpu.matmul %375, %373, %cst_139 {dimension_numbers = #tpu.dot_dimension_numbers<[1], [0], [0], [1], [0, 0, 1, 1], [], []>} : vector<2x128xbf16>, vector<128x512xbf16>, vector<2x512xf32> -> vector<2x512xf32>
    %377 = arith.addf %374, %376 : vector<2x512xf32>
    %378 = vector.extract_strided_slice %377 {offsets = [0, 0], sizes = [2, 384], strides = [1, 1]} : vector<2x512xf32> to vector<2x384xf32>
    %cst_140 = arith.constant 0.000000e+00 : f32
    %379 = vector.broadcast %cst_140 : f32 to vector<2x384xf32>
    %380 = arith.subf %379, %378 : vector<2x384xf32>
    %381 = math.exp %380 : vector<2x384xf32>
    %cst_141 = arith.constant 1.000000e+00 : f32
    %382 = vector.broadcast %cst_141 : f32 to vector<2x384xf32>
    %383 = arith.addf %382, %381 : vector<2x384xf32>
    %cst_142 = arith.constant 1.000000e+00 : f32
    %384 = vector.broadcast %cst_142 : f32 to vector<2x384xf32>
    %385 = arith.divf %384, %383 : vector<2x384xf32>
    %386 = vector.extract_strided_slice %377 {offsets = [0, 384], sizes = [2, 128], strides = [1, 1]} : vector<2x512xf32> to vector<2x128xf32>
    %387 = math.tanh %386 : vector<2x128xf32>
    %388 = vector.extract_strided_slice %385 {offsets = [0, 128], sizes = [2, 128], strides = [1, 1]} : vector<2x384xf32> to vector<2x128xf32>
    %389 = arith.mulf %388, %337 : vector<2x128xf32>
    %390 = vector.extract_strided_slice %385 {offsets = [0, 0], sizes = [2, 128], strides = [1, 1]} : vector<2x384xf32> to vector<2x128xf32>
    %391 = arith.mulf %390, %387 : vector<2x128xf32>
    %392 = arith.addf %389, %391 : vector<2x128xf32>
    %393 = vector.extract_strided_slice %385 {offsets = [0, 256], sizes = [2, 128], strides = [1, 1]} : vector<2x384xf32> to vector<2x128xf32>
    %394 = math.tanh %392 : vector<2x128xf32>
    %395 = arith.mulf %393, %394 : vector<2x128xf32>
    %c7_i32_143 = arith.constant 7 : i32
    %c7_i32_144 = arith.constant 7 : i32
    %396 = arith.subi %c7_i32_144, %c7_i32_143 : i32
    %397 = arith.index_cast %c7_i32_143 : i32 to index
    %c0_145 = arith.constant 0 : index
    %c0_146 = arith.constant 0 : index
    %398 = vector.load %arg1[%397, %c0_145, %c0_146] : memref<8x2x512xbf16, #tpu.memory_space<vmem>>, vector<1x2x512xbf16>
    %399 = vector.shape_cast %398 : vector<1x2x512xbf16> to vector<2x512xbf16>
    %c0_147 = arith.constant 0 : index
    %c0_148 = arith.constant 0 : index
    %c0_149 = arith.constant 0 : index
    %400 = vector.load %arg3[%c0_147, %c0_148, %c0_149] : memref<2x128x512xbf16, #tpu.memory_space<vmem>>, vector<1x128x512xbf16>
    %401 = vector.shape_cast %400 : vector<1x128x512xbf16> to vector<128x512xbf16>
    %402 = arith.extf %399 : vector<2x512xbf16> to vector<2x512xf32>
    %403 = arith.truncf %368 : vector<2x128xf32> to vector<2x128xbf16>
    %cst_150 = arith.constant dense<0.000000e+00> : vector<2x512xf32>
    %404 = tpu.matmul %403, %401, %cst_150 {dimension_numbers = #tpu.dot_dimension_numbers<[1], [0], [0], [1], [0, 0, 1, 1], [], []>} : vector<2x128xbf16>, vector<128x512xbf16>, vector<2x512xf32> -> vector<2x512xf32>
    %405 = arith.addf %402, %404 : vector<2x512xf32>
    %406 = vector.extract_strided_slice %405 {offsets = [0, 0], sizes = [2, 384], strides = [1, 1]} : vector<2x512xf32> to vector<2x384xf32>
    %cst_151 = arith.constant 0.000000e+00 : f32
    %407 = vector.broadcast %cst_151 : f32 to vector<2x384xf32>
    %408 = arith.subf %407, %406 : vector<2x384xf32>
    %409 = math.exp %408 : vector<2x384xf32>
    %cst_152 = arith.constant 1.000000e+00 : f32
    %410 = vector.broadcast %cst_152 : f32 to vector<2x384xf32>
    %411 = arith.addf %410, %409 : vector<2x384xf32>
    %cst_153 = arith.constant 1.000000e+00 : f32
    %412 = vector.broadcast %cst_153 : f32 to vector<2x384xf32>
    %413 = arith.divf %412, %411 : vector<2x384xf32>
    %414 = vector.extract_strided_slice %405 {offsets = [0, 384], sizes = [2, 128], strides = [1, 1]} : vector<2x512xf32> to vector<2x128xf32>
    %415 = math.tanh %414 : vector<2x128xf32>
    %416 = vector.extract_strided_slice %413 {offsets = [0, 128], sizes = [2, 128], strides = [1, 1]} : vector<2x384xf32> to vector<2x128xf32>
    %417 = arith.mulf %416, %365 : vector<2x128xf32>
    %418 = vector.extract_strided_slice %413 {offsets = [0, 0], sizes = [2, 128], strides = [1, 1]} : vector<2x384xf32> to vector<2x128xf32>
    %419 = arith.mulf %418, %415 : vector<2x128xf32>
    %420 = arith.addf %417, %419 : vector<2x128xf32>
    %421 = vector.extract_strided_slice %413 {offsets = [0, 256], sizes = [2, 128], strides = [1, 1]} : vector<2x384xf32> to vector<2x128xf32>
    %422 = math.tanh %420 : vector<2x128xf32>
    %423 = arith.mulf %421, %422 : vector<2x128xf32>
    %424 = arith.index_cast %396 : i32 to index
    %c0_154 = arith.constant 0 : index
    %c0_155 = arith.constant 0 : index
    %425 = vector.load %arg2[%424, %c0_154, %c0_155] : memref<8x2x512xbf16, #tpu.memory_space<vmem>>, vector<1x2x512xbf16>
    %426 = vector.shape_cast %425 : vector<1x2x512xbf16> to vector<2x512xbf16>
    %c1_156 = arith.constant 1 : index
    %c0_157 = arith.constant 0 : index
    %c0_158 = arith.constant 0 : index
    %427 = vector.load %arg3[%c1_156, %c0_157, %c0_158] : memref<2x128x512xbf16, #tpu.memory_space<vmem>>, vector<1x128x512xbf16>
    %428 = vector.shape_cast %427 : vector<1x128x512xbf16> to vector<128x512xbf16>
    %429 = arith.extf %426 : vector<2x512xbf16> to vector<2x512xf32>
    %430 = arith.truncf %395 : vector<2x128xf32> to vector<2x128xbf16>
    %cst_159 = arith.constant dense<0.000000e+00> : vector<2x512xf32>
    %431 = tpu.matmul %430, %428, %cst_159 {dimension_numbers = #tpu.dot_dimension_numbers<[1], [0], [0], [1], [0, 0, 1, 1], [], []>} : vector<2x128xbf16>, vector<128x512xbf16>, vector<2x512xf32> -> vector<2x512xf32>
    %432 = arith.addf %429, %431 : vector<2x512xf32>
    %433 = vector.extract_strided_slice %432 {offsets = [0, 0], sizes = [2, 384], strides = [1, 1]} : vector<2x512xf32> to vector<2x384xf32>
    %cst_160 = arith.constant 0.000000e+00 : f32
    %434 = vector.broadcast %cst_160 : f32 to vector<2x384xf32>
    %435 = arith.subf %434, %433 : vector<2x384xf32>
    %436 = math.exp %435 : vector<2x384xf32>
    %cst_161 = arith.constant 1.000000e+00 : f32
    %437 = vector.broadcast %cst_161 : f32 to vector<2x384xf32>
    %438 = arith.addf %437, %436 : vector<2x384xf32>
    %cst_162 = arith.constant 1.000000e+00 : f32
    %439 = vector.broadcast %cst_162 : f32 to vector<2x384xf32>
    %440 = arith.divf %439, %438 : vector<2x384xf32>
    %441 = vector.extract_strided_slice %432 {offsets = [0, 384], sizes = [2, 128], strides = [1, 1]} : vector<2x512xf32> to vector<2x128xf32>
    %442 = math.tanh %441 : vector<2x128xf32>
    %443 = vector.extract_strided_slice %440 {offsets = [0, 128], sizes = [2, 128], strides = [1, 1]} : vector<2x384xf32> to vector<2x128xf32>
    %444 = arith.mulf %443, %392 : vector<2x128xf32>
    %445 = vector.extract_strided_slice %440 {offsets = [0, 0], sizes = [2, 128], strides = [1, 1]} : vector<2x384xf32> to vector<2x128xf32>
    %446 = arith.mulf %445, %442 : vector<2x128xf32>
    %447 = arith.addf %444, %446 : vector<2x128xf32>
    %448 = vector.extract_strided_slice %440 {offsets = [0, 256], sizes = [2, 128], strides = [1, 1]} : vector<2x384xf32> to vector<2x128xf32>
    %449 = math.tanh %447 : vector<2x128xf32>
    %450 = arith.mulf %448, %449 : vector<2x128xf32>
    %c8_i32 = arith.constant 8 : i32
    %c0_163 = arith.constant 0 : index
    %c0_164 = arith.constant 0 : index
    %c0_165 = arith.constant 0 : index
    %451 = vector.load %arg5[%c0_163, %c0_164, %c0_165] : memref<2x2x128xf32, #tpu.memory_space<vmem>>, vector<1x2x128xf32>
    %452 = vector.shape_cast %451 : vector<1x2x128xf32> to vector<2x128xf32>
    %453 = vector.shape_cast %423 : vector<2x128xf32> to vector<1x2x128xf32>
    tpu.vector_store %arg5[%c0_163, %c0_164, %c0_165], %453 {strides = array<i32>} : memref<2x2x128xf32, #tpu.memory_space<vmem>>, vector<1x2x128xf32>,
    %c0_166 = arith.constant 0 : index
    %c0_167 = arith.constant 0 : index
    %c0_168 = arith.constant 0 : index
    %454 = vector.load %arg6[%c0_166, %c0_167, %c0_168] : memref<2x2x128xf32, #tpu.memory_space<vmem>>, vector<1x2x128xf32>
    %455 = vector.shape_cast %454 : vector<1x2x128xf32> to vector<2x128xf32>
    %456 = vector.shape_cast %420 : vector<2x128xf32> to vector<1x2x128xf32>
    tpu.vector_store %arg6[%c0_166, %c0_167, %c0_168], %456 {strides = array<i32>} : memref<2x2x128xf32, #tpu.memory_space<vmem>>, vector<1x2x128xf32>,
    %c1_169 = arith.constant 1 : index
    %c0_170 = arith.constant 0 : index
    %c0_171 = arith.constant 0 : index
    %457 = vector.load %arg5[%c1_169, %c0_170, %c0_171] : memref<2x2x128xf32, #tpu.memory_space<vmem>>, vector<1x2x128xf32>
    %458 = vector.shape_cast %457 : vector<1x2x128xf32> to vector<2x128xf32>
    %459 = vector.shape_cast %450 : vector<2x128xf32> to vector<1x2x128xf32>
    tpu.vector_store %arg5[%c1_169, %c0_170, %c0_171], %459 {strides = array<i32>} : memref<2x2x128xf32, #tpu.memory_space<vmem>>, vector<1x2x128xf32>,
    %c1_172 = arith.constant 1 : index
    %c0_173 = arith.constant 0 : index
    %c0_174 = arith.constant 0 : index
    %460 = vector.load %arg6[%c1_172, %c0_173, %c0_174] : memref<2x2x128xf32, #tpu.memory_space<vmem>>, vector<1x2x128xf32>
    %461 = vector.shape_cast %460 : vector<1x2x128xf32> to vector<2x128xf32>
    %462 = vector.shape_cast %447 : vector<2x128xf32> to vector<1x2x128xf32>
    tpu.vector_store %arg6[%c1_172, %c0_173, %c0_174], %462 {strides = array<i32>} : memref<2x2x128xf32, #tpu.memory_space<vmem>>, vector<1x2x128xf32>,
    %c0_175 = arith.constant 0 : index
    %c0_176 = arith.constant 0 : index
    %c0_177 = arith.constant 0 : index
    %463 = vector.load %arg4[%c0_175, %c0_176, %c0_177] : memref<2x2x128xf32, #tpu.memory_space<vmem>>, vector<1x2x128xf32>
    %464 = vector.shape_cast %463 : vector<1x2x128xf32> to vector<2x128xf32>
    %465 = vector.shape_cast %423 : vector<2x128xf32> to vector<1x2x128xf32>
    tpu.vector_store %arg4[%c0_175, %c0_176, %c0_177], %465 {strides = array<i32>} : memref<2x2x128xf32, #tpu.memory_space<vmem>>, vector<1x2x128xf32>,
    %c1_178 = arith.constant 1 : index
    %c0_179 = arith.constant 0 : index
    %c0_180 = arith.constant 0 : index
    %466 = vector.load %arg4[%c1_178, %c0_179, %c0_180] : memref<2x2x128xf32, #tpu.memory_space<vmem>>, vector<1x2x128xf32>
    %467 = vector.shape_cast %466 : vector<1x2x128xf32> to vector<2x128xf32>
    %468 = vector.shape_cast %450 : vector<2x128xf32> to vector<1x2x128xf32>
    tpu.vector_store %arg4[%c1_178, %c0_179, %c0_180], %468 {strides = array<i32>} : memref<2x2x128xf32, #tpu.memory_space<vmem>>, vector<1x2x128xf32>,
    return
  }
  func.func @transform_0(%arg0: i32) -> (i32, i32, i32) {
    %c0_i32 = arith.constant 0 : i32
    %c0_i32_0 = arith.constant 0 : i32
    %c0_i32_1 = arith.constant 0 : i32
    return %arg0, %c0_i32, %c0_i32_0 : i32, i32, i32
  }
  func.func @transform_1(%arg0: i32) -> (i32, i32, i32) {
    %c0_i32 = arith.constant 0 : i32
    %0 = arith.subi %c0_i32, %arg0 : i32
    %c0_i32_0 = arith.constant 0 : i32
    %c1_i32 = arith.constant 1 : i32
    %c0_i32_1 = arith.constant 0 : i32
    return %0, %c0_i32_0, %c1_i32 : i32, i32, i32
  }
  func.func @transform_2(%arg0: i32) -> (i32, i32, i32) {
    %c0_i32 = arith.constant 0 : i32
    %c0_i32_0 = arith.constant 0 : i32
    %c0_i32_1 = arith.constant 0 : i32
    %c0_i32_2 = arith.constant 0 : i32
    return %c0_i32, %c0_i32_0, %c0_i32_1 : i32, i32, i32
  }
  func.func @transform_3(%arg0: i32) -> (i32, i32, i32) {
    %c0_i32 = arith.constant 0 : i32
    %c0_i32_0 = arith.constant 0 : i32
    %c0_i32_1 = arith.constant 0 : i32
    %c0_i32_2 = arith.constant 0 : i32
    return %c0_i32, %c0_i32_0, %c0_i32_1 : i32, i32, i32
  }
}

</mosaic_0001>

<bundles_post_ra>
// kernel: _lstm_forward.4
= control target key start
LH: loop header
LB: loop body
LE: loop exit
PB: predicated region body
PF: predicated region fallthrough
CT: control target
= control target key end

     0   :  { %8 = vsyncpa [#allocation3], 0  ;;  %s314_s15 = smov [#allocation2]   ;;  %s315_s17 = smov 512   ;;  %s381_s0 = inlined_call_operand.vmem [shape: f32[16,16], index: 0, kind: input, shape index: {}]   ;;  %s382_s1 = inlined_call_operand.hbm [shape: bf16[16,1024], index: 1, kind: input, shape index: {}]   ;;  %s383_s2 = inlined_call_operand.vmem [shape: f32[1,1024], index: 2, kind: input, shape index: {}]   ;;  %s384_s3 = inlined_call_operand.vmem [shape: bf16[16,1024], index: 3, kind: output, shape index: {}]  }
   0x1   :  { %s15_s14 = sshll.u32 %s382_s1, 4  ;;  %s17_s16 = sshll.u32 %s314_s15, 4  ;;  %s16_s14 = int_to_ptr.hbm [resolvable:$true] %s15_s14  ;;  %s18_s16 = int_to_ptr.vmem [resolvable:$true] %s17_s16 }
   0x2   :  { %s316_s18 = smov 32  }
   0x3   :  { %23 = dma.hbm_to_vmem [thread:$0]  %s16_s14, 1024, %s18_s16, [#allocation3], %s315_s17, %s315_s17, %s316_s18  }
   0x4   :  { %312 = dma.done.wait [#allocation3], 1024  }
   0x5   :  { %313 = vsyncadd [#allocation3], 4294966272  ;;  %v239_v0 = vld [vmem:[#allocation2] sm:$0xf]  ;;  %v277_v2 = vld [vmem:[#allocation2 + $0x4] sm:$0xf] }
   0x6   :  { %v281_v1 = vld [vmem:[#allocation2 + $0x1c] sm:$0xf0]  ;;  %v241_v4 = vld [vmem:[#allocation2 + $0x20] sm:$0xf0]  ;;  %v247_v5 = vld [vmem:[#allocation2 + $0x8] sm:$0xf] }
   0x7   :  { %v240_v3 = vor.u32 %v281_v1, %v239_v0  ;;  %v282_v6 = vld [vmem:[#allocation2 + $0x24] sm:$0xf0]  ;;  %v244_v7 = vor.u32 %v277_v2, %v241_v4  ;;  %v278_v9 = vld [vmem:[#allocation2 + $0xc] sm:$0xf]  ;;  %v31_v11 = vld [vmem:[%s381_s0] sm:$0xff]  ;;  %vm100_vm0 = vcmask 130048  }
   0x8   :  { %v248_v8 = vor.u32 %v282_v6, %v247_v5  ;;  %v249_v10 = vld [vmem:[#allocation2 + $0x28] sm:$0xf0]  ;;  %v263_v14 = vld [vmem:[#allocation2 + $0x18] sm:$0xf]  ;;  %v280_v18 = vld [vmem:[#allocation2 + $0x1c] sm:$0xf] }
   0x9   :  { %111 = vmatpush.bf16.msra.mxu0 %v240_v3  ;;  %v252_v12 = vor.u32 %v278_v9, %v249_v10  ;;  %v32_v13 = vld [vmem:[%s381_s0 + $0x8] sm:$0xff]  ;;  %v284_v15 = vld [vmem:[#allocation2 + $0x34] sm:$0xf0]  ;;  %125 = vmatpush.bf16.msra.mxu1 %v244_v7  ;;  %v265_v19 = vld [vmem:[#allocation2 + $0x38] sm:$0xf0] }
   0xa   :  { %139 = vmatpush.bf16.msra.mxu2 %v248_v8  ;;  %v33_v16 = vpack.c.bf16 %v32_v13, %v31_v11  ;;  %v264_v17 = vor.u32 %v284_v15, %v263_v14  ;;  %v255_v20 = vld [vmem:[#allocation2 + $0x10] sm:$0xf]  ;;  %v268_v21 = vor.u32 %v280_v18, %v265_v19  ;;  %v279_v23 = vld [vmem:[#allocation2 + $0x14] sm:$0xf]  ;;  %v42_v27 = vld [vmem:[%s383_s2] sm:$0xff] }
   0xb   :  { %153 = vmatpush.bf16.msra.mxu3 %v252_v12  ;;  %v283_v22 = vld [vmem:[#allocation2 + $0x2c] sm:$0xf0]  ;;  %v257_v24 = vld [vmem:[#allocation2 + $0x30] sm:$0xf0]  ;;  %v44_v28 = vperm.slane %v42_v27, 0  ;;  %v45_v29 = vperm.slane %v42_v27, 1 }
   0xc   :  { %269 = vmatmul.msk.bf16.vlgmr.msra.gmra.mxu0 %vm100_vm0, %v33_v16  ;;  %v256_v25 = vor.u32 %v283_v22, %v255_v20  ;;  %v260_v26 = vor.u32 %v279_v23, %v257_v24  ;;  %270 = vmatmul.msk.bf16.vlgmr.msra.gmra.mxu1 %vm100_vm0, %v33_v16  ;;  %v46_v35 = vperm.slane %v42_v27, 2  ;;  %v47_v36 = vperm.slane %v42_v27, 3 }
   0xd   :  { %271 = vmatmul.msk.bf16.vlgmr.msra.gmra.mxu2 %vm100_vm0, %v33_v16  ;;  %v48_v47 = vperm.slane %v42_v27, 4  ;;  %v49_v48 = vperm.slane %v42_v27, 5  ;;  %v50_v59 = vperm.slane %v42_v27, 6  ;;  %v51_v60 = vperm.slane %v42_v27, 7 }
   0xe   :  { %195 = vmatpush.bf16.msrb.mxu2 %v264_v17  ;;  %272 = vmatmul.msk.bf16.vlgmr.msra.gmra.mxu3 %vm100_vm0, %v33_v16 }
   0xf   :  { %167 = vmatpush.bf16.msrb.mxu0 %v256_v25  ;;  %209 = vmatpush.bf16.msrb.mxu3 %v268_v21 }
  0x10   :  { %181 = vmatpush.bf16.msrb.mxu1 %v260_v26 }
  0x1c   :  { %273 = vmatmul.msk.bf16.vlgmr.msrb.gmra.mxu0 %vm100_vm0, %v33_v16  ;;  %274 = vmatmul.msk.bf16.vlgmr.msrb.gmra.mxu1 %vm100_vm0, %v33_v16 }
  0x1d   :  { %275 = vmatmul.msk.bf16.vlgmr.msrb.gmra.mxu2 %vm100_vm0, %v33_v16 }
  0x1e   :  { %276 = vmatmul.msk.bf16.vlgmr.msrb.gmra.mxu3 %vm100_vm0, %v33_v16 }
  0x89   :  { %v113_v30 = vpop.f32.mrf.mxu0  ;;  %v127_v32 = vpop.f32.mrf.mxu1 }
  0x8a   :  { %v114_v31 = vadd.f32 %v113_v30, %v44_v28  ;;  %v128_v33 = vadd.f32 %v127_v32, %v45_v29 }
  0x8c   :  { %v216_v34 = vpack.c.bf16 %v128_v33, %v114_v31 }
  0x8e   :  { %224 = vst [vmem:[%s384_s3] sm:$0xff] %v216_v34 }
  0x90   :  { %v141_v37 = vpop.f32.mrf.mxu2 }
  0x91   :  { %v142_v38 = vadd.f32 %v141_v37, %v46_v35  ;;  %v155_v39 = vpop.f32.mrf.mxu3  ;;  %v115_v40 = vpop.f32.mrf.mxu0 }
  0x92   :  { %v156_v41 = vadd.f32 %v155_v39, %v47_v36  ;;  %v116_v42 = vadd.f32 %v115_v40, %v44_v28  ;;  %v129_v43 = vpop.f32.mrf.mxu1 }
  0x93   :  { %v130_v44 = vadd.f32 %v129_v43, %v45_v29 }
  0x94   :  { %v217_v45 = vpack.c.bf16 %v156_v41, %v142_v38 }
  0x95   :  { %v220_v46 = vpack.c.bf16 %v130_v44, %v116_v42 }
  0x96   :  { %225 = vst [vmem:[%s384_s3 + $0x8] sm:$0xff] %v217_v45 }
  0x97   :  { %228 = vst [vmem:[%s384_s3 + $0x20] sm:$0xff] %v220_v46 }
  0x98   :  { %v143_v49 = vpop.f32.mrf.mxu2 }
  0x99   :  { %v144_v50 = vadd.f32 %v143_v49, %v46_v35  ;;  %v157_v51 = vpop.f32.mrf.mxu3  ;;  %v169_v52 = vpop.f32.mrf.mxu0 }
  0x9a   :  { %v158_v53 = vadd.f32 %v157_v51, %v47_v36  ;;  %v170_v54 = vadd.f32 %v169_v52, %v48_v47  ;;  %v183_v55 = vpop.f32.mrf.mxu1 }
  0x9b   :  { %v184_v56 = vadd.f32 %v183_v55, %v49_v48 }
  0x9c   :  { %v221_v57 = vpack.c.bf16 %v158_v53, %v144_v50 }
  0x9d   :  { %v218_v58 = vpack.c.bf16 %v184_v56, %v170_v54 }
  0x9e   :  { %229 = vst [vmem:[%s384_s3 + $0x28] sm:$0xff] %v221_v57 }
  0x9f   :  { %226 = vst [vmem:[%s384_s3 + $0x10] sm:$0xff] %v218_v58 }
  0xa0   :  { %v197_v61 = vpop.f32.mrf.mxu2 }
  0xa1   :  { %v198_v62 = vadd.f32 %v197_v61, %v50_v59  ;;  %v211_v63 = vpop.f32.mrf.mxu3  ;;  %v171_v0 = vpop.f32.mrf.mxu0 }
  0xa2   :  { %v212_v1 = vadd.f32 %v211_v63, %v51_v60  ;;  %v172_v2 = vadd.f32 %v171_v0, %v48_v47  ;;  %v185_v3 = vpop.f32.mrf.mxu1 }
  0xa3   :  { %v186_v4 = vadd.f32 %v185_v3, %v49_v48 }
  0xa4   :  { %v219_v5 = vpack.c.bf16 %v212_v1, %v198_v62 }
  0xa5   :  { %v222_v6 = vpack.c.bf16 %v186_v4, %v172_v2 }
  0xa6   :  { %227 = vst [vmem:[%s384_s3 + $0x18] sm:$0xff] %v219_v5 }
  0xa7   :  { %230 = vst [vmem:[%s384_s3 + $0x30] sm:$0xff] %v222_v6 }
  0xa8   :  { %v199_v7 = vpop.f32.mrf.mxu2 }
  0xa9   :  { %v200_v8 = vadd.f32 %v199_v7, %v50_v59  ;;  %v213_v9 = vpop.f32.mrf.mxu3 }
  0xaa   :  { %v214_v10 = vadd.f32 %v213_v9, %v51_v60 }
  0xac   :  { %v223_v11 = vpack.c.bf16 %v214_v10, %v200_v8 }
  0xae   :  { %231 = vst [vmem:[%s384_s3 + $0x38] sm:$0xff] %v223_v11 }
  0xaf   :  { %236 = vsyncpa [#allocation3], 1 }

// kernel: _lstm_forward.6
= control target key start
LH: loop header
LB: loop body
LE: loop exit
PB: predicated region body
PF: predicated region fallthrough
CT: control target
= control target key end

     0   :  { %10 = vsyncpa [#allocation3], 0  ;;  %s1931_s0 = inlined_call_operand.vmem [shape: bf16[16,128], index: 0, kind: input, shape index: {}]   ;;  %s1932_s1 = inlined_call_operand.vmem [shape: bf16[16,128], index: 1, kind: input, shape index: {}]   ;;  %s1933_s2 = inlined_call_operand.hbm [shape: bf16[128,1024], index: 2, kind: input, shape index: {}]   ;;  %s1934_s3 = inlined_call_operand.hbm [shape: bf16[128,1024], index: 3, kind: input, shape index: {}]   ;;  %s1935_s4 = inlined_call_operand.vmem [shape: f32[1,1024], index: 4, kind: input, shape index: {}]   ;;  %s1936_s5 = inlined_call_operand.vmem [shape: bf16[16,1024], index: 5, kind: output, shape index: {}]  }
   0x1   :  { %s20_s20 = sshll.u32 %s1933_s2, 4  ;;  %s21_s20 = int_to_ptr.hbm [resolvable:$true] %s20_s20 }
   0x2   :  { %11 = vsyncpa [#allocation5], 0  ;;  %s1822_s21 = smov [#allocation2]   ;;  %s33_s25 = sshll.u32 %s1934_s3, 4  ;;  %s34_s25 = int_to_ptr.hbm [resolvable:$true] %s33_s25 }
   0x3   :  { %s22_s22 = sshll.u32 %s1822_s21, 4  ;;  %s1823_s26 = smov 512   ;;  %s23_s22 = int_to_ptr.vmem [resolvable:$true] %s22_s22 }
   0x4   :  { %s1824_s27 = smov 32   ;;  %s1825_s28 = smov [#allocation4]  }
   0x5   :  { %28 = dma.hbm_to_vmem [thread:$0]  %s21_s20, 8192, %s23_s22, [#allocation3], %s1823_s26, %s1823_s26, %s1824_s27  }
   0x6   :  { %s35_s29 = sshll.u32 %s1825_s28, 4  ;;  %s36_s29 = int_to_ptr.vmem [resolvable:$true] %s35_s29 }
   0x7   :  { %41 = dma.hbm_to_vmem [thread:$0]  %s34_s25, 8192, %s36_s29, [#allocation5], %s1823_s26, %s1823_s26, %s1824_s27  }
   0x8   :  { %1818 = dma.done.wait [#allocation3], 8192  }
   0x9   :  { %1819 = vsyncadd [#allocation3], 4294959104 }
   0xa   :  { %1820 = dma.done.wait [#allocation5], 8192  }
   0xb   :  { %1821 = vsyncadd [#allocation5], 4294959104  ;;  %v1346_v0 = vld [vmem:[#allocation4 + $0x1c0] sm:$0xf]  ;;  %v1758_v2 = vld [vmem:[#allocation4 + $0x1c4] sm:$0xf] }
   0xc   :  { %v1762_v1 = vld [vmem:[#allocation4 + $0x1dc] sm:$0xf0]  ;;  %v1348_v4 = vld [vmem:[#allocation4 + $0x1e0] sm:$0xf0]  ;;  %v1354_v5 = vld [vmem:[#allocation4 + $0x1c8] sm:$0xf] }
   0xd   :  { %v1347_v3 = vor.u32 %v1762_v1, %v1346_v0  ;;  %v1763_v6 = vld [vmem:[#allocation4 + $0x1e4] sm:$0xf0]  ;;  %v1351_v7 = vor.u32 %v1758_v2, %v1348_v4  ;;  %v1759_v9 = vld [vmem:[#allocation4 + $0x1cc] sm:$0xf]  ;;  %v1314_v11 = vld [vmem:[#allocation4 + $0x180] sm:$0xf] }
   0xe   :  { %v1355_v8 = vor.u32 %v1763_v6, %v1354_v5  ;;  %v1356_v10 = vld [vmem:[#allocation4 + $0x1e8] sm:$0xf0]  ;;  %v1754_v13 = vld [vmem:[#allocation4 + $0x19c] sm:$0xf0]  ;;  %v1750_v14 = vld [vmem:[#allocation4 + $0x184] sm:$0xf] }
   0xf   :  { %510 = vmatpush.bf16.msra.mxu0 %v1347_v3  ;;  %v1359_v12 = vor.u32 %v1759_v9, %v1356_v10  ;;  %v1316_v15 = vld [vmem:[#allocation4 + $0x1a0] sm:$0xf0]  ;;  %524 = vmatpush.bf16.msra.mxu1 %v1351_v7  ;;  %v1315_v16 = vor.u32 %v1754_v13, %v1314_v11  ;;  %v1322_v18 = vld [vmem:[#allocation4 + $0x188] sm:$0xf]  ;;  %v1751_v20 = vld [vmem:[#allocation4 + $0x18c] sm:$0xf] }
  0x10   :  { %538 = vmatpush.bf16.msra.mxu2 %v1355_v8  ;;  %v1319_v17 = vor.u32 %v1750_v14, %v1316_v15  ;;  %v1755_v19 = vld [vmem:[#allocation4 + $0x1a4] sm:$0xf0]  ;;  %v1324_v22 = vld [vmem:[#allocation4 + $0x1a8] sm:$0xf0]  ;;  %v1282_v23 = vld [vmem:[#allocation4 + $0x140] sm:$0xf] }
  0x11   :  { %552 = vmatpush.bf16.msra.mxu3 %v1359_v12  ;;  %v1323_v21 = vor.u32 %v1755_v19, %v1322_v18  ;;  %v1746_v24 = vld [vmem:[#allocation4 + $0x15c] sm:$0xf0]  ;;  %v1327_v25 = vor.u32 %v1751_v20, %v1324_v22  ;;  %v1742_v26 = vld [vmem:[#allocation4 + $0x144] sm:$0xf]  ;;  %v1290_v28 = vld [vmem:[#allocation4 + $0x148] sm:$0xf] }
  0x12   :  { %v1284_v27 = vld [vmem:[#allocation4 + $0x160] sm:$0xf0]  ;;  %v1283_v29 = vor.u32 %v1746_v24, %v1282_v23  ;;  %v1747_v30 = vld [vmem:[#allocation4 + $0x164] sm:$0xf0]  ;;  %v1743_v31 = vld [vmem:[#allocation4 + $0x14c] sm:$0xf] }
  0x13   :  { %511 = vmatpush.bf16.msra.mxu0 %v1315_v16  ;;  %v1292_v32 = vld [vmem:[#allocation4 + $0x168] sm:$0xf0]  ;;  %525 = vmatpush.bf16.msra.mxu1 %v1319_v17  ;;  %v1287_v33 = vor.u32 %v1742_v26, %v1284_v27  ;;  %v1291_v34 = vor.u32 %v1747_v30, %v1290_v28  ;;  %v1250_v35 = vld [vmem:[#allocation4 + $0x100] sm:$0xf]  ;;  %v1734_v37 = vld [vmem:[#allocation4 + $0x104] sm:$0xf] }
  0x14   :  { %539 = vmatpush.bf16.msra.mxu2 %v1323_v21  ;;  %v1738_v36 = vld [vmem:[#allocation4 + $0x11c] sm:$0xf0]  ;;  %v1295_v38 = vor.u32 %v1743_v31, %v1292_v32  ;;  %v1252_v39 = vld [vmem:[#allocation4 + $0x120] sm:$0xf0]  ;;  %v1258_v40 = vld [vmem:[#allocation4 + $0x108] sm:$0xf] }
  0x15   :  { %553 = vmatpush.bf16.msra.mxu3 %v1327_v25  ;;  %v1739_v41 = vld [vmem:[#allocation4 + $0x124] sm:$0xf0]  ;;  %v1735_v42 = vld [vmem:[#allocation4 + $0x10c] sm:$0xf]  ;;  %v1251_v44 = vor.u32 %v1738_v36, %v1250_v35  ;;  %v1255_v45 = vor.u32 %v1734_v37, %v1252_v39  ;;  %v1218_v47 = vld [vmem:[#allocation4 + $0xc0] sm:$0xf] }
  0x16   :  { %v1260_v43 = vld [vmem:[#allocation4 + $0x128] sm:$0xf0]  ;;  %v1259_v46 = vor.u32 %v1739_v41, %v1258_v40  ;;  %v1730_v48 = vld [vmem:[#allocation4 + $0xdc] sm:$0xf0]  ;;  %v1726_v49 = vld [vmem:[#allocation4 + $0xc4] sm:$0xf] }
  0x17   :  { %512 = vmatpush.bf16.msra.mxu0 %v1283_v29  ;;  %526 = vmatpush.bf16.msra.mxu1 %v1287_v33  ;;  %v1263_v50 = vor.u32 %v1735_v42, %v1260_v43  ;;  %v1220_v51 = vld [vmem:[#allocation4 + $0xe0] sm:$0xf0]  ;;  %v1226_v52 = vld [vmem:[#allocation4 + $0xc8] sm:$0xf]  ;;  %v1727_v54 = vld [vmem:[#allocation4 + $0xcc] sm:$0xf]  ;;  %v1219_v56 = vor.u32 %v1730_v48, %v1218_v47 }
  0x18   :  { %540 = vmatpush.bf16.msra.mxu2 %v1291_v34  ;;  %v1731_v53 = vld [vmem:[#allocation4 + $0xe4] sm:$0xf0]  ;;  %v1228_v55 = vld [vmem:[#allocation4 + $0xe8] sm:$0xf0]  ;;  %v1223_v57 = vor.u32 %v1726_v49, %v1220_v51  ;;  %v1186_v59 = vld [vmem:[#allocation4 + $0x80] sm:$0xf] }
  0x19   :  { %554 = vmatpush.bf16.msra.mxu3 %v1295_v38  ;;  %v1227_v58 = vor.u32 %v1731_v53, %v1226_v52  ;;  %v1722_v60 = vld [vmem:[#allocation4 + $0x9c] sm:$0xf0]  ;;  %v1718_v61 = vld [vmem:[#allocation4 + $0x84] sm:$0xf]  ;;  %v1231_v62 = vor.u32 %v1727_v54, %v1228_v55  ;;  %v1194_v0 = vld [vmem:[#allocation4 + $0x88] sm:$0xf] }
  0x1a   :  { %v1188_v63 = vld [vmem:[#allocation4 + $0xa0] sm:$0xf0]  ;;  %v1723_v1 = vld [vmem:[#allocation4 + $0xa4] sm:$0xf0]  ;;  %v1719_v2 = vld [vmem:[#allocation4 + $0x8c] sm:$0xf]  ;;  %v1187_v4 = vor.u32 %v1722_v60, %v1186_v59 }
  0x1b   :  { %513 = vmatpush.bf16.msra.mxu0 %v1251_v44  ;;  %527 = vmatpush.bf16.msra.mxu1 %v1255_v45  ;;  %v1196_v3 = vld [vmem:[#allocation4 + $0xa8] sm:$0xf0]  ;;  %v1191_v5 = vor.u32 %v1718_v61, %v1188_v63  ;;  %v1195_v6 = vor.u32 %v1723_v1, %v1194_v0  ;;  %v1154_v7 = vld [vmem:[#allocation4 + $0x40] sm:$0xf]  ;;  %v1710_v9 = vld [vmem:[#allocation4 + $0x44] sm:$0xf] }
  0x1c   :  { %541 = vmatpush.bf16.msra.mxu2 %v1259_v46  ;;  %v1714_v8 = vld [vmem:[#allocation4 + $0x5c] sm:$0xf0]  ;;  %v1199_v10 = vor.u32 %v1719_v2, %v1196_v3  ;;  %v1156_v11 = vld [vmem:[#allocation4 + $0x60] sm:$0xf0]  ;;  %v1162_v12 = vld [vmem:[#allocation4 + $0x48] sm:$0xf] }
  0x1d   :  { %555 = vmatpush.bf16.msra.mxu3 %v1263_v50  ;;  %v1715_v13 = vld [vmem:[#allocation4 + $0x64] sm:$0xf0]  ;;  %v1711_v14 = vld [vmem:[#allocation4 + $0x4c] sm:$0xf]  ;;  %v1155_v16 = vor.u32 %v1714_v8, %v1154_v7  ;;  %v1122_v17 = vld [vmem:[#allocation4] sm:$0xf]  ;;  %v1159_v19 = vor.u32 %v1710_v9, %v1156_v11 }
  0x1e   :  { %v1164_v15 = vld [vmem:[#allocation4 + $0x68] sm:$0xf0]  ;;  %v1706_v18 = vld [vmem:[#allocation4 + $0x1c] sm:$0xf0]  ;;  %v1163_v20 = vor.u32 %v1715_v13, %v1162_v12  ;;  %v1702_v21 = vld [vmem:[#allocation4 + $0x4] sm:$0xf] }
  0x1f   :  { %514 = vmatpush.bf16.msra.mxu0 %v1219_v56  ;;  %528 = vmatpush.bf16.msra.mxu1 %v1223_v57  ;;  %v1124_v22 = vld [vmem:[#allocation4 + $0x20] sm:$0xf0]  ;;  %v1130_v23 = vld [vmem:[#allocation4 + $0x8] sm:$0xf]  ;;  %v1167_v24 = vor.u32 %v1711_v14, %v1164_v15  ;;  %v1703_v26 = vld [vmem:[#allocation4 + $0xc] sm:$0xf]  ;;  %v1123_v31 = vor.u32 %v1706_v18, %v1122_v17 }
  0x20   :  { %542 = vmatpush.bf16.msra.mxu2 %v1227_v58  ;;  %v1707_v25 = vld [vmem:[#allocation4 + $0x24] sm:$0xf0]  ;;  %v1132_v27 = vld [vmem:[#allocation4 + $0x28] sm:$0xf0]  ;;  %v1362_v28 = vld [vmem:[#allocation4 + $0x1d0] sm:$0xf]  ;;  %v1127_v35 = vor.u32 %v1702_v21, %v1124_v22 }
  0x21   :  { %556 = vmatpush.bf16.msra.mxu3 %v1231_v62  ;;  %v1764_v29 = vld [vmem:[#allocation4 + $0x1ec] sm:$0xf0]  ;;  %v1760_v30 = vld [vmem:[#allocation4 + $0x1d4] sm:$0xf]  ;;  %v1370_v33 = vld [vmem:[#allocation4 + $0x1d8] sm:$0xf]  ;;  %v1131_v36 = vor.u32 %v1707_v25, %v1130_v23  ;;  %v1135_v39 = vor.u32 %v1703_v26, %v1132_v27 }
  0x22   :  { %v1364_v32 = vld [vmem:[#allocation4 + $0x1f0] sm:$0xf0]  ;;  %v1765_v34 = vld [vmem:[#allocation4 + $0x1f4] sm:$0xf0]  ;;  %v1761_v37 = vld [vmem:[#allocation4 + $0x1dc] sm:$0xf]  ;;  %v1363_v40 = vor.u32 %v1764_v29, %v1362_v28 }
  0x23   :  { %515 = vmatpush.bf16.msra.mxu0 %v1187_v4  ;;  %529 = vmatpush.bf16.msra.mxu1 %v1191_v5  ;;  %v1372_v38 = vld [vmem:[#allocation4 + $0x1f8] sm:$0xf0]  ;;  %v1367_v41 = vor.u32 %v1760_v30, %v1364_v32  ;;  %v1371_v42 = vor.u32 %v1765_v34, %v1370_v33  ;;  %v1330_v43 = vld [vmem:[#allocation4 + $0x190] sm:$0xf]  ;;  %v1752_v45 = vld [vmem:[#allocation4 + $0x194] sm:$0xf] }
  0x24   :  { %543 = vmatpush.bf16.msra.mxu2 %v1195_v6  ;;  %v1756_v44 = vld [vmem:[#allocation4 + $0x1ac] sm:$0xf0]  ;;  %v1375_v46 = vor.u32 %v1761_v37, %v1372_v38  ;;  %v1332_v47 = vld [vmem:[#allocation4 + $0x1b0] sm:$0xf0]  ;;  %v1338_v48 = vld [vmem:[#allocation4 + $0x198] sm:$0xf] }
  0x25   :  { %557 = vmatpush.bf16.msra.mxu3 %v1199_v10  ;;  %v1757_v49 = vld [vmem:[#allocation4 + $0x1b4] sm:$0xf0]  ;;  %v1753_v50 = vld [vmem:[#allocation4 + $0x19c] sm:$0xf]  ;;  %v1331_v52 = vor.u32 %v1756_v44, %v1330_v43  ;;  %v1335_v53 = vor.u32 %v1752_v45, %v1332_v47  ;;  %v1298_v55 = vld [vmem:[#allocation4 + $0x150] sm:$0xf] }
  0x26   :  { %v1340_v51 = vld [vmem:[#allocation4 + $0x1b8] sm:$0xf0]  ;;  %v1339_v54 = vor.u32 %v1757_v49, %v1338_v48  ;;  %v1748_v56 = vld [vmem:[#allocation4 + $0x16c] sm:$0xf0]  ;;  %v1744_v57 = vld [vmem:[#allocation4 + $0x154] sm:$0xf] }
  0x27   :  { %516 = vmatpush.bf16.msra.mxu0 %v1155_v16  ;;  %530 = vmatpush.bf16.msra.mxu1 %v1159_v19  ;;  %v1343_v58 = vor.u32 %v1753_v50, %v1340_v51  ;;  %v1300_v59 = vld [vmem:[#allocation4 + $0x170] sm:$0xf0]  ;;  %v1306_v60 = vld [vmem:[#allocation4 + $0x158] sm:$0xf]  ;;  %v1745_v62 = vld [vmem:[#allocation4 + $0x15c] sm:$0xf]  ;;  %v1299_v0 = vor.u32 %v1748_v56, %v1298_v55 }
  0x28   :  { %544 = vmatpush.bf16.msra.mxu2 %v1163_v20  ;;  %v1749_v61 = vld [vmem:[#allocation4 + $0x174] sm:$0xf0]  ;;  %v1308_v63 = vld [vmem:[#allocation4 + $0x178] sm:$0xf0]  ;;  %v1865_v1 = vld [vmem:[%s1932_s1] sm:$0xff]  ;;  %v1303_v2 = vor.u32 %v1744_v57, %v1300_v59 }
  0x29   :  { %558 = vmatpush.bf16.msra.mxu3 %v1167_v24  ;;  %v1307_v3 = vor.u32 %v1749_v61, %v1306_v60  ;;  %v1266_v4 = vld [vmem:[#allocation4 + $0x110] sm:$0xf]  ;;  %v1736_v6 = vld [vmem:[#allocation4 + $0x114] sm:$0xf]  ;;  %v1311_v7 = vor.u32 %v1745_v62, %v1308_v63  ;;  %v1274_v9 = vld [vmem:[#allocation4 + $0x118] sm:$0xf] }
  0x2a   :  { %v1740_v5 = vld [vmem:[#allocation4 + $0x12c] sm:$0xf0]  ;;  %v1268_v8 = vld [vmem:[#allocation4 + $0x130] sm:$0xf0]  ;;  %v1741_v10 = vld [vmem:[#allocation4 + $0x134] sm:$0xf0] }
  0x2b   :  { %517 = vmatpush.bf16.msra.mxu0 %v1123_v31  ;;  %531 = vmatpush.bf16.msra.mxu1 %v1127_v35  ;;  %v1737_v11 = vld [vmem:[#allocation4 + $0x11c] sm:$0xf]  ;;  %v1267_v13 = vor.u32 %v1740_v5, %v1266_v4  ;;  %v1271_v14 = vor.u32 %v1736_v6, %v1268_v8  ;;  %v1275_v15 = vor.u32 %v1741_v10, %v1274_v9  ;;  %v1234_v16 = vld [vmem:[#allocation4 + $0xd0] sm:$0xf]  ;;  %v1728_v18 = vld [vmem:[#allocation4 + $0xd4] sm:$0xf] }
  0x2c   :  { %545 = vmatpush.bf16.msra.mxu2 %v1131_v36  ;;  %v1276_v12 = vld [vmem:[#allocation4 + $0x138] sm:$0xf0]  ;;  %v1732_v17 = vld [vmem:[#allocation4 + $0xec] sm:$0xf0]  ;;  %v1236_v20 = vld [vmem:[#allocation4 + $0xf0] sm:$0xf0] }
  0x2d   :  { %559 = vmatpush.bf16.msra.mxu3 %v1135_v39  ;;  %v1279_v19 = vor.u32 %v1737_v11, %v1276_v12  ;;  %v1242_v21 = vld [vmem:[#allocation4 + $0xd8] sm:$0xf]  ;;  %v1729_v23 = vld [vmem:[#allocation4 + $0xdc] sm:$0xf]  ;;  %v1235_v25 = vor.u32 %v1732_v17, %v1234_v16  ;;  %v1239_v26 = vor.u32 %v1728_v18, %v1236_v20  ;;  %v1202_v28 = vld [vmem:[#allocation4 + $0x90] sm:$0xf] }
  0x2e   :  { %518 = vmatmul.bf16.vlgmr.msra.gmra.mxu0 %v1865_v1  ;;  %532 = vmatmul.bf16.vlgmr.msra.gmra.mxu1 %v1865_v1  ;;  %v1733_v22 = vld [vmem:[#allocation4 + $0xf4] sm:$0xf0]  ;;  %v1244_v24 = vld [vmem:[#allocation4 + $0xf8] sm:$0xf0]  ;;  %v1724_v29 = vld [vmem:[#allocation4 + $0xac] sm:$0xf0] }
  0x2f   :  { %566 = vmatpush.bf16.msrb.mxu0 %v1363_v40  ;;  %580 = vmatpush.bf16.msrb.mxu1 %v1367_v41  ;;  %v1243_v27 = vor.u32 %v1733_v22, %v1242_v21  ;;  %v1720_v30 = vld [vmem:[#allocation4 + $0x94] sm:$0xf]  ;;  %v1247_v31 = vor.u32 %v1729_v23, %v1244_v24  ;;  %v1210_v33 = vld [vmem:[#allocation4 + $0x98] sm:$0xf]  ;;  %v1721_v35 = vld [vmem:[#allocation4 + $0x9c] sm:$0xf]  ;;  %v1203_v37 = vor.u32 %v1724_v29, %v1202_v28 }
  0x30   :  { %594 = vmatpush.bf16.msrb.mxu2 %v1371_v42  ;;  %560 = vmatmul.bf16.vlgmr.msra.gmra.mxu3 %v1865_v1  ;;  %v1204_v32 = vld [vmem:[#allocation4 + $0xb0] sm:$0xf0]  ;;  %v1725_v34 = vld [vmem:[#allocation4 + $0xb4] sm:$0xf0]  ;;  %v1212_v36 = vld [vmem:[#allocation4 + $0xb8] sm:$0xf0] }
  0x31   :  { %608 = vmatpush.bf16.msrb.mxu3 %v1375_v46  ;;  %546 = vmatmul.bf16.vlgmr.msra.gmra.mxu2 %v1865_v1  ;;  %v1207_v38 = vor.u32 %v1720_v30, %v1204_v32  ;;  %v1211_v39 = vor.u32 %v1725_v34, %v1210_v33  ;;  %v1170_v40 = vld [vmem:[#allocation4 + $0x50] sm:$0xf]  ;;  %v1712_v42 = vld [vmem:[#allocation4 + $0x54] sm:$0xf]  ;;  %v1215_v43 = vor.u32 %v1721_v35, %v1212_v36  ;;  %v1178_v45 = vld [vmem:[#allocation4 + $0x58] sm:$0xf] }
  0x32   :  { %v1716_v41 = vld [vmem:[#allocation4 + $0x6c] sm:$0xf0]  ;;  %v1172_v44 = vld [vmem:[#allocation4 + $0x70] sm:$0xf0]  ;;  %v1717_v46 = vld [vmem:[#allocation4 + $0x74] sm:$0xf0] }
  0x33   :  { %567 = vmatpush.bf16.msrb.mxu0 %v1331_v52  ;;  %581 = vmatpush.bf16.msrb.mxu1 %v1335_v53  ;;  %v1713_v47 = vld [vmem:[#allocation4 + $0x5c] sm:$0xf]  ;;  %v1171_v49 = vor.u32 %v1716_v41, %v1170_v40  ;;  %v1138_v50 = vld [vmem:[#allocation4 + $0x10] sm:$0xf]  ;;  %v1175_v52 = vor.u32 %v1712_v42, %v1172_v44  ;;  %v1179_v53 = vor.u32 %v1717_v46, %v1178_v45  ;;  %v1140_v55 = vld [vmem:[#allocation4 + $0x30] sm:$0xf0] }
  0x34   :  { %595 = vmatpush.bf16.msrb.mxu2 %v1339_v54  ;;  %v1180_v48 = vld [vmem:[#allocation4 + $0x78] sm:$0xf0]  ;;  %v1708_v51 = vld [vmem:[#allocation4 + $0x2c] sm:$0xf0]  ;;  %v1704_v54 = vld [vmem:[#allocation4 + $0x14] sm:$0xf] }
  0x35   :  { %609 = vmatpush.bf16.msrb.mxu3 %v1343_v58  ;;  %v1146_v56 = vld [vmem:[#allocation4 + $0x18] sm:$0xf]  ;;  %v1183_v57 = vor.u32 %v1713_v47, %v1180_v48  ;;  %v1705_v59 = vld [vmem:[#allocation4 + $0x1c] sm:$0xf]  ;;  %v1606_v61 = vld [vmem:[#allocation2 + $0x1c0] sm:$0xf]  ;;  %v1143_v5 = vor.u32 %v1704_v54, %v1140_v55 }
  0x36   :  { %v1709_v58 = vld [vmem:[#allocation4 + $0x34] sm:$0xf0]  ;;  %v1148_v60 = vld [vmem:[#allocation4 + $0x38] sm:$0xf0]  ;;  %v1697_v62 = vld [vmem:[#allocation2 + $0x1dc] sm:$0xf0] }
  0x37   :  { %568 = vmatpush.bf16.msrb.mxu0 %v1299_v0  ;;  %582 = vmatpush.bf16.msrb.mxu1 %v1303_v2  ;;  %v1693_v63 = vld [vmem:[#allocation2 + $0x1c4] sm:$0xf]  ;;  %v1139_v0 = vor.u32 %v1708_v51, %v1138_v50  ;;  %v1698_v4 = vld [vmem:[#allocation2 + $0x1e4] sm:$0xf0]  ;;  %v1147_v6 = vor.u32 %v1709_v58, %v1146_v56  ;;  %v1616_v8 = vld [vmem:[#allocation2 + $0x1e8] sm:$0xf0]  ;;  %v1151_v9 = vor.u32 %v1705_v59, %v1148_v60 }
  0x38   :  { %596 = vmatpush.bf16.msrb.mxu2 %v1307_v3  ;;  %v1608_v2 = vld [vmem:[#allocation2 + $0x1e0] sm:$0xf0]  ;;  %v1614_v3 = vld [vmem:[#allocation2 + $0x1c8] sm:$0xf]  ;;  %v1607_v10 = vor.u32 %v1697_v62, %v1606_v61  ;;  %v1686_v20 = vld [vmem:[#allocation2 + $0x18c] sm:$0xf] }
  0x39   :  { %610 = vmatpush.bf16.msrb.mxu3 %v1311_v7  ;;  %v1694_v7 = vld [vmem:[#allocation2 + $0x1cc] sm:$0xf]  ;;  %v1611_v11 = vor.u32 %v1693_v63, %v1608_v2  ;;  %v1615_v12 = vor.u32 %v1698_v4, %v1614_v3  ;;  %v1576_v17 = vld [vmem:[#allocation2 + $0x1a0] sm:$0xf0]  ;;  %v1582_v18 = vld [vmem:[#allocation2 + $0x188] sm:$0xf] }
  0x3a   :  { %v1619_v16 = vor.u32 %v1694_v7, %v1616_v8  ;;  %v1584_v21 = vld [vmem:[#allocation2 + $0x1a8] sm:$0xf0]  ;;  %v1544_v29 = vld [vmem:[#allocation2 + $0x160] sm:$0xf0]  ;;  %v1550_v30 = vld [vmem:[#allocation2 + $0x148] sm:$0xf] }
  0x3b   :  { %569 = vmatpush.bf16.msrb.mxu0 %v1267_v13  ;;  %583 = vmatpush.bf16.msrb.mxu1 %v1271_v14  ;;  %v1574_v13 = vld [vmem:[#allocation2 + $0x180] sm:$0xf]  ;;  %v1587_v28 = vor.u32 %v1686_v20, %v1584_v21  ;;  %v1678_v32 = vld [vmem:[#allocation2 + $0x14c] sm:$0xf]  ;;  %v1512_v41 = vld [vmem:[#allocation2 + $0x120] sm:$0xf0] }
  0x3c   :  { %597 = vmatpush.bf16.msrb.mxu2 %v1275_v15  ;;  %v1689_v14 = vld [vmem:[#allocation2 + $0x19c] sm:$0xf0]  ;;  %v1685_v15 = vld [vmem:[#allocation2 + $0x184] sm:$0xf]  ;;  %v1552_v33 = vld [vmem:[#allocation2 + $0x168] sm:$0xf0] }
  0x3d   :  { %611 = vmatpush.bf16.msrb.mxu3 %v1279_v19  ;;  %v1690_v19 = vld [vmem:[#allocation2 + $0x1a4] sm:$0xf0]  ;;  %v1575_v22 = vor.u32 %v1689_v14, %v1574_v13  ;;  %v1579_v23 = vor.u32 %v1685_v15, %v1576_v17  ;;  %v1555_v40 = vor.u32 %v1678_v32, %v1552_v33  ;;  %v1670_v44 = vld [vmem:[#allocation2 + $0x10c] sm:$0xf]  ;;  %v1478_v48 = vld [vmem:[#allocation2 + $0xc0] sm:$0xf] }
  0x3e   :  { %v1583_v24 = vor.u32 %v1690_v19, %v1582_v18  ;;  %v1518_v42 = vld [vmem:[#allocation2 + $0x108] sm:$0xf]  ;;  %v1520_v45 = vld [vmem:[#allocation2 + $0x128] sm:$0xf0]  ;;  %v1661_v50 = vld [vmem:[#allocation2 + $0xc4] sm:$0xf] }
  0x3f   :  { %570 = vmatpush.bf16.msrb.mxu0 %v1235_v25  ;;  %584 = vmatpush.bf16.msrb.mxu1 %v1239_v26  ;;  %v1542_v25 = vld [vmem:[#allocation2 + $0x140] sm:$0xf]  ;;  %v1523_v51 = vor.u32 %v1670_v44, %v1520_v45  ;;  %v1666_v54 = vld [vmem:[#allocation2 + $0xe4] sm:$0xf0]  ;;  %v1662_v55 = vld [vmem:[#allocation2 + $0xcc] sm:$0xf] }
  0x40   :  { %598 = vmatpush.bf16.msrb.mxu2 %v1243_v27  ;;  %v1681_v26 = vld [vmem:[#allocation2 + $0x15c] sm:$0xf0]  ;;  %v1677_v27 = vld [vmem:[#allocation2 + $0x144] sm:$0xf]  ;;  %v1488_v56 = vld [vmem:[#allocation2 + $0xe8] sm:$0xf0] }
  0x41   :  { %612 = vmatpush.bf16.msrb.mxu3 %v1247_v31  ;;  %v1682_v31 = vld [vmem:[#allocation2 + $0x164] sm:$0xf0]  ;;  %v1543_v34 = vor.u32 %v1681_v26, %v1542_v25  ;;  %v1547_v35 = vor.u32 %v1677_v27, %v1544_v29  ;;  %v1446_v60 = vld [vmem:[#allocation2 + $0x80] sm:$0xf]  ;;  %v1653_v62 = vld [vmem:[#allocation2 + $0x84] sm:$0xf]  ;;  %v1491_v63 = vor.u32 %v1662_v55, %v1488_v56 }
  0x42   :  { %v1551_v36 = vor.u32 %v1682_v31, %v1550_v30  ;;  %v1657_v61 = vld [vmem:[#allocation2 + $0x9c] sm:$0xf0]  ;;  %v1454_v2 = vld [vmem:[#allocation2 + $0x88] sm:$0xf]  ;;  %v1654_v4 = vld [vmem:[#allocation2 + $0x8c] sm:$0xf] }
  0x43   :  { %571 = vmatpush.bf16.msrb.mxu0 %v1203_v37  ;;  %585 = vmatpush.bf16.msrb.mxu1 %v1207_v38  ;;  %v1510_v37 = vld [vmem:[#allocation2 + $0x100] sm:$0xf]  ;;  %v1658_v3 = vld [vmem:[#allocation2 + $0xa4] sm:$0xf0]  ;;  %v1416_v13 = vld [vmem:[#allocation2 + $0x60] sm:$0xf0] }
  0x44   :  { %599 = vmatpush.bf16.msrb.mxu2 %v1211_v39  ;;  %v1673_v38 = vld [vmem:[#allocation2 + $0x11c] sm:$0xf0]  ;;  %v1669_v39 = vld [vmem:[#allocation2 + $0x104] sm:$0xf]  ;;  %v1455_v8 = vor.u32 %v1658_v3, %v1454_v2  ;;  %v1422_v14 = vld [vmem:[#allocation2 + $0x48] sm:$0xf] }
  0x45   :  { %613 = vmatpush.bf16.msrb.mxu3 %v1215_v43  ;;  %v1674_v43 = vld [vmem:[#allocation2 + $0x124] sm:$0xf0]  ;;  %v1511_v46 = vor.u32 %v1673_v38, %v1510_v37  ;;  %v1515_v47 = vor.u32 %v1669_v39, %v1512_v41  ;;  %v1424_v17 = vld [vmem:[#allocation2 + $0x68] sm:$0xf0]  ;;  %v1382_v19 = vld [vmem:[#allocation2] sm:$0xf] }
  0x46   :  { %v1650_v15 = vld [vmem:[#allocation2 + $0x64] sm:$0xf0]  ;;  %v1641_v20 = vld [vmem:[#allocation2 + $0x1c] sm:$0xf0]  ;;  %v1392_v29 = vld [vmem:[#allocation2 + $0x28] sm:$0xf0] }
  0x47   :  { %572 = vmatpush.bf16.msrb.mxu0 %v1171_v49  ;;  %586 = vmatpush.bf16.msrb.mxu1 %v1175_v52  ;;  %v1665_v49 = vld [vmem:[#allocation2 + $0xdc] sm:$0xf0]  ;;  %v1480_v52 = vld [vmem:[#allocation2 + $0xe0] sm:$0xf0]  ;;  %v1390_v25 = vld [vmem:[#allocation2 + $0x8] sm:$0xf]  ;;  %v1383_v33 = vor.u32 %v1641_v20, %v1382_v19 }
  0x48   :  { %600 = vmatpush.bf16.msrb.mxu2 %v1179_v53  ;;  %v1486_v53 = vld [vmem:[#allocation2 + $0xc8] sm:$0xf]  ;;  %v1483_v58 = vor.u32 %v1661_v50, %v1480_v52  ;;  %v1622_v30 = vld [vmem:[#allocation2 + $0x1d0] sm:$0xf]  ;;  %v1695_v32 = vld [vmem:[#allocation2 + $0x1d4] sm:$0xf] }
  0x49   :  { %614 = vmatpush.bf16.msrb.mxu3 %v1183_v57  ;;  %v1479_v57 = vor.u32 %v1665_v49, %v1478_v48  ;;  %v1487_v59 = vor.u32 %v1666_v54, %v1486_v53  ;;  %v1642_v27 = vld [vmem:[#allocation2 + $0x24] sm:$0xf0]  ;;  %v1699_v31 = vld [vmem:[#allocation2 + $0x1ec] sm:$0xf0]  ;;  %v1696_v39 = vld [vmem:[#allocation2 + $0x1dc] sm:$0xf] }
  0x4a   :  { %v1391_v38 = vor.u32 %v1642_v27, %v1390_v25  ;;  %v1592_v49 = vld [vmem:[#allocation2 + $0x1b0] sm:$0xf0]  ;;  %v1598_v50 = vld [vmem:[#allocation2 + $0x198] sm:$0xf]  ;;  %v1688_v52 = vld [vmem:[#allocation2 + $0x19c] sm:$0xf] }
  0x4b   :  { %573 = vmatpush.bf16.msrb.mxu0 %v1139_v0  ;;  %587 = vmatpush.bf16.msrb.mxu1 %v1143_v5  ;;  %v1448_v0 = vld [vmem:[#allocation2 + $0xa0] sm:$0xf0]  ;;  %v1456_v5 = vld [vmem:[#allocation2 + $0xa8] sm:$0xf0]  ;;  %v1600_v53 = vld [vmem:[#allocation2 + $0x1b8] sm:$0xf0] }
  0x4c   :  { %601 = vmatpush.bf16.msrb.mxu2 %v1147_v6  ;;  %v1447_v6 = vor.u32 %v1657_v61, %v1446_v60  ;;  %v1451_v7 = vor.u32 %v1653_v62, %v1448_v0  ;;  %v1603_v60 = vor.u32 %v1688_v52, %v1600_v53  ;;  %v1560_v61 = vld [vmem:[#allocation2 + $0x170] sm:$0xf0]  ;;  %v1566_v62 = vld [vmem:[#allocation2 + $0x158] sm:$0xf]  ;;  %v1680_v0 = vld [vmem:[#allocation2 + $0x15c] sm:$0xf] }
  0x4d   :  { %615 = vmatpush.bf16.msrb.mxu3 %v1151_v9  ;;  %v1414_v9 = vld [vmem:[#allocation2 + $0x40] sm:$0xf]  ;;  %v1568_v2 = vld [vmem:[#allocation2 + $0x178] sm:$0xf0]  ;;  %v1667_v19 = vld [vmem:[#allocation2 + $0xec] sm:$0xf0] }
  0x4e   :  { %574 = vmatmul.bf16.vlgmr.msrb.gmra.mxu0 %v1865_v1  ;;  %588 = vmatmul.bf16.vlgmr.msrb.gmra.mxu1 %v1865_v1  ;;  %v1663_v20 = vld [vmem:[#allocation2 + $0xd4] sm:$0xf]  ;;  %v1664_v25 = vld [vmem:[#allocation2 + $0xdc] sm:$0xf] }
  0x4f   :  { %948 = vmatpush.bf16.msra.mxu0 %v1607_v10  ;;  %962 = vmatpush.bf16.msra.mxu1 %v1611_v11  ;;  %v1649_v10 = vld [vmem:[#allocation2 + $0x5c] sm:$0xf0]  ;;  %v1645_v11 = vld [vmem:[#allocation2 + $0x44] sm:$0xf] }
  0x50   :  { %976 = vmatpush.bf16.msra.mxu2 %v1615_v12  ;;  %616 = vmatmul.bf16.vlgmr.msrb.gmra.mxu3 %v1865_v1  ;;  %v1459_v12 = vor.u32 %v1654_v4, %v1456_v5  ;;  %v1415_v18 = vor.u32 %v1649_v10, %v1414_v9  ;;  %v1419_v21 = vor.u32 %v1645_v11, %v1416_v13  ;;  %v1528_v10 = vld [vmem:[#allocation2 + $0x130] sm:$0xf0]  ;;  %v1534_v11 = vld [vmem:[#allocation2 + $0x118] sm:$0xf]  ;;  %v1672_v13 = vld [vmem:[#allocation2 + $0x11c] sm:$0xf] }
  0x51   :  { %990 = vmatpush.bf16.msra.mxu3 %v1619_v16  ;;  %602 = vmatmul.bf16.vlgmr.msrb.gmra.mxu2 %v1865_v1  ;;  %v1519_v1 = vor.u32 %v1674_v43, %v1518_v42  ;;  %v1646_v16 = vld [vmem:[#allocation2 + $0x4c] sm:$0xf]  ;;  %v1623_v42 = vor.u32 %v1699_v31, %v1622_v30  ;;  %v1878_v43 = vld [vmem:[%s1931_s0] sm:$0xff]  ;;  %v1571_v9 = vor.u32 %v1680_v0, %v1568_v2  ;;  %v1462_v30 = vld [vmem:[#allocation2 + $0x90] sm:$0xf] }
  0x52   :  { %v1427_v26 = vor.u32 %v1646_v16, %v1424_v17  ;;  %v1659_v31 = vld [vmem:[#allocation2 + $0xac] sm:$0xf0] }
  0x53   :  { %949 = vmatpush.bf16.msra.mxu0 %v1575_v22  ;;  %963 = vmatpush.bf16.msra.mxu1 %v1579_v23  ;;  %v1423_v22 = vor.u32 %v1650_v15, %v1422_v14  ;;  %v1637_v23 = vld [vmem:[#allocation2 + $0x4] sm:$0xf]  ;;  %v1536_v14 = vld [vmem:[#allocation2 + $0x138] sm:$0xf0] }
  0x54   :  { %977 = vmatpush.bf16.msra.mxu2 %v1583_v24  ;;  %v1384_v24 = vld [vmem:[#allocation2 + $0x20] sm:$0xf0] }
  0x55   :  { %991 = vmatpush.bf16.msra.mxu3 %v1587_v28  ;;  %v1638_v28 = vld [vmem:[#allocation2 + $0xc] sm:$0xf]  ;;  %v1387_v37 = vor.u32 %v1637_v23, %v1384_v24  ;;  %v1502_v23 = vld [vmem:[#allocation2 + $0xd8] sm:$0xf] }
  0x56   :  { %v1395_v41 = vor.u32 %v1638_v28, %v1392_v29  ;;  %v1668_v24 = vld [vmem:[#allocation2 + $0xf4] sm:$0xf0] }
  0x57   :  { %950 = vmatpush.bf16.msra.mxu0 %v1543_v34  ;;  %964 = vmatpush.bf16.msra.mxu1 %v1547_v35  ;;  %v1624_v34 = vld [vmem:[#allocation2 + $0x1f0] sm:$0xf0]  ;;  %v1630_v35 = vld [vmem:[#allocation2 + $0x1d8] sm:$0xf]  ;;  %v1503_v29 = vor.u32 %v1668_v24, %v1502_v23 }
  0x58   :  { %978 = vmatpush.bf16.msra.mxu2 %v1551_v36  ;;  %v1700_v36 = vld [vmem:[#allocation2 + $0x1f4] sm:$0xf0]  ;;  %v1627_v44 = vor.u32 %v1695_v32, %v1624_v34  ;;  %v1655_v32 = vld [vmem:[#allocation2 + $0x94] sm:$0xf] }
  0x59   :  { %992 = vmatpush.bf16.msra.mxu3 %v1555_v40  ;;  %v1632_v40 = vld [vmem:[#allocation2 + $0x1f8] sm:$0xf0]  ;;  %v1631_v45 = vor.u32 %v1700_v36, %v1630_v35  ;;  %v1464_v34 = vld [vmem:[#allocation2 + $0xb0] sm:$0xf0]  ;;  %v1470_v35 = vld [vmem:[#allocation2 + $0x98] sm:$0xf] }
  0x5a   :  { %v1635_v48 = vor.u32 %v1696_v39, %v1632_v40  ;;  %v1660_v36 = vld [vmem:[#allocation2 + $0xb4] sm:$0xf0]  ;;  %v1463_v39 = vor.u32 %v1659_v31, %v1462_v30  ;;  %v1467_v40 = vor.u32 %v1655_v32, %v1464_v34 }
  0x5b   :  { %951 = vmatpush.bf16.msra.mxu0 %v1511_v46  ;;  %965 = vmatpush.bf16.msra.mxu1 %v1515_v47  ;;  %v1590_v46 = vld [vmem:[#allocation2 + $0x190] sm:$0xf] }
  0x5c   :  { %979 = vmatpush.bf16.msra.mxu2 %v1519_v1  ;;  %v1691_v47 = vld [vmem:[#allocation2 + $0x1ac] sm:$0xf0]  ;;  %v1687_v1 = vld [vmem:[#allocation2 + $0x194] sm:$0xf] }
  0x5d   :  { %993 = vmatpush.bf16.msra.mxu3 %v1523_v51  ;;  %v1692_v51 = vld [vmem:[#allocation2 + $0x1b4] sm:$0xf0]  ;;  %v1591_v54 = vor.u32 %v1691_v47, %v1590_v46  ;;  %v1595_v55 = vor.u32 %v1687_v1, %v1592_v49  ;;  %v1432_v47 = vld [vmem:[#allocation2 + $0x70] sm:$0xf0]  ;;  %v1648_v49 = vld [vmem:[#allocation2 + $0x5c] sm:$0xf] }
  0x5e   :  { %v1599_v56 = vor.u32 %v1692_v51, %v1598_v50  ;;  %v1438_v1 = vld [vmem:[#allocation2 + $0x58] sm:$0xf]  ;;  %v1440_v50 = vld [vmem:[#allocation2 + $0x78] sm:$0xf0] }
  0x5f   :  { %952 = vmatpush.bf16.msra.mxu0 %v1479_v57  ;;  %966 = vmatpush.bf16.msra.mxu1 %v1483_v58  ;;  %v1558_v57 = vld [vmem:[#allocation2 + $0x150] sm:$0xf] }
  0x60   :  { %980 = vmatpush.bf16.msra.mxu2 %v1487_v59  ;;  %v1683_v58 = vld [vmem:[#allocation2 + $0x16c] sm:$0xf0]  ;;  %v1679_v59 = vld [vmem:[#allocation2 + $0x154] sm:$0xf] }
  0x61   :  { %994 = vmatpush.bf16.msra.mxu3 %v1491_v63  ;;  %v1684_v63 = vld [vmem:[#allocation2 + $0x174] sm:$0xf0]  ;;  %v1559_v3 = vor.u32 %v1683_v58, %v1558_v57  ;;  %v1563_v4 = vor.u32 %v1679_v59, %v1560_v61  ;;  %v1443_v57 = vor.u32 %v1648_v49, %v1440_v50  ;;  %v1400_v58 = vld [vmem:[#allocation2 + $0x30] sm:$0xf0]  ;;  %v1640_v61 = vld [vmem:[#allocation2 + $0x1c] sm:$0xf] }
  0x62   :  { %v1567_v5 = vor.u32 %v1684_v63, %v1566_v62  ;;  %v1406_v59 = vld [vmem:[#allocation2 + $0x18] sm:$0xf]  ;;  %v1408_v62 = vld [vmem:[#allocation2 + $0x38] sm:$0xf0] }
  0x63   :  { %953 = vmatpush.bf16.msra.mxu0 %v1447_v6  ;;  %967 = vmatpush.bf16.msra.mxu1 %v1451_v7  ;;  %v1526_v6 = vld [vmem:[#allocation2 + $0x110] sm:$0xf] }
  0x64   :  { %981 = vmatpush.bf16.msra.mxu2 %v1455_v8  ;;  %v1675_v7 = vld [vmem:[#allocation2 + $0x12c] sm:$0xf0]  ;;  %v1671_v8 = vld [vmem:[#allocation2 + $0x114] sm:$0xf] }
  0x65   :  { %995 = vmatpush.bf16.msra.mxu3 %v1459_v12  ;;  %v1676_v12 = vld [vmem:[#allocation2 + $0x134] sm:$0xf0]  ;;  %v1527_v15 = vor.u32 %v1675_v7, %v1526_v6  ;;  %v1531_v16 = vor.u32 %v1671_v8, %v1528_v10 }
  0x66   :  { %v1535_v17 = vor.u32 %v1676_v12, %v1534_v11 }
  0x67   :  { %954 = vmatpush.bf16.msra.mxu0 %v1415_v18  ;;  %968 = vmatpush.bf16.msra.mxu1 %v1419_v21  ;;  %v1494_v18 = vld [vmem:[#allocation2 + $0xd0] sm:$0xf]  ;;  %v1539_v21 = vor.u32 %v1672_v13, %v1536_v14 }
  0x68   :  { %982 = vmatpush.bf16.msra.mxu2 %v1423_v22  ;;  %v1496_v22 = vld [vmem:[#allocation2 + $0xf0] sm:$0xf0]  ;;  %v1495_v27 = vor.u32 %v1667_v19, %v1494_v18  ;;  %v1891_v18 = vld [vmem:[%s1935_s4] sm:$0xff] }
  0x69   :  { %996 = vmatpush.bf16.msra.mxu3 %v1427_v26  ;;  %v1504_v26 = vld [vmem:[#allocation2 + $0xf8] sm:$0xf0]  ;;  %v1499_v28 = vor.u32 %v1663_v20, %v1496_v22  ;;  %v1062_v20 = vperm.slane %v1891_v18, 0  ;;  %v1063_v22 = vperm.slane %v1891_v18, 1  ;;  %v1065_v31 = vperm.slane %v1891_v18, 3 }
  0x6b   :  { %955 = vmatpush.bf16.msra.mxu0 %v1383_v33  ;;  %969 = vmatpush.bf16.msra.mxu1 %v1387_v37  ;;  %v1507_v33 = vor.u32 %v1664_v25, %v1504_v26  ;;  %v1656_v37 = vld [vmem:[#allocation2 + $0x9c] sm:$0xf] }
  0x6c   :  { %983 = vmatpush.bf16.msra.mxu2 %v1391_v38  ;;  %v1472_v38 = vld [vmem:[#allocation2 + $0xb8] sm:$0xf0] }
  0x6d   :  { %997 = vmatpush.bf16.msra.mxu3 %v1395_v41  ;;  %v1471_v41 = vor.u32 %v1660_v36, %v1470_v35  ;;  %v1475_v46 = vor.u32 %v1656_v37, %v1472_v38 }
  0x6e   :  { %956 = vmatmul.bf16.vlgmr.msra.gmra.mxu0 %v1878_v43  ;;  %970 = vmatmul.bf16.vlgmr.msra.gmra.mxu1 %v1878_v43 }
  0x6f   :  { %1004 = vmatpush.bf16.msrb.mxu0 %v1623_v42  ;;  %1018 = vmatpush.bf16.msrb.mxu1 %v1627_v44  ;;  %v1430_v42 = vld [vmem:[#allocation2 + $0x50] sm:$0xf] }
  0x70   :  { %1032 = vmatpush.bf16.msrb.mxu2 %v1631_v45  ;;  %998 = vmatmul.bf16.vlgmr.msra.gmra.mxu3 %v1878_v43  ;;  %v1651_v44 = vld [vmem:[#allocation2 + $0x6c] sm:$0xf0]  ;;  %v1647_v45 = vld [vmem:[#allocation2 + $0x54] sm:$0xf] }
  0x71   :  { %1046 = vmatpush.bf16.msrb.mxu3 %v1635_v48  ;;  %984 = vmatmul.bf16.vlgmr.msra.gmra.mxu2 %v1878_v43  ;;  %v1652_v48 = vld [vmem:[#allocation2 + $0x74] sm:$0xf0]  ;;  %v1431_v51 = vor.u32 %v1651_v44, %v1430_v42  ;;  %v1435_v52 = vor.u32 %v1647_v45, %v1432_v47 }
  0x72   :  { %v1439_v53 = vor.u32 %v1652_v48, %v1438_v1 }
  0x73   :  { %1005 = vmatpush.bf16.msrb.mxu0 %v1591_v54  ;;  %1019 = vmatpush.bf16.msrb.mxu1 %v1595_v55  ;;  %v1398_v54 = vld [vmem:[#allocation2 + $0x10] sm:$0xf] }
  0x74   :  { %1033 = vmatpush.bf16.msrb.mxu2 %v1599_v56  ;;  %v1643_v55 = vld [vmem:[#allocation2 + $0x2c] sm:$0xf0]  ;;  %v1639_v56 = vld [vmem:[#allocation2 + $0x14] sm:$0xf] }
  0x75   :  { %1047 = vmatpush.bf16.msrb.mxu3 %v1603_v60  ;;  %v1644_v60 = vld [vmem:[#allocation2 + $0x34] sm:$0xf0]  ;;  %v1399_v63 = vor.u32 %v1643_v55, %v1398_v54  ;;  %v1403_v0 = vor.u32 %v1639_v56, %v1400_v58  ;;  %v1067_v54 = vperm.slane %v1891_v18, 5 }
  0x76   :  { %v1407_v2 = vor.u32 %v1644_v60, %v1406_v59 }
  0x77   :  { %1006 = vmatpush.bf16.msrb.mxu0 %v1559_v3  ;;  %1020 = vmatpush.bf16.msrb.mxu1 %v1563_v4  ;;  %v1411_v3 = vor.u32 %v1640_v61, %v1408_v62  ;;  %v1068_v61 = vperm.slane %v1891_v18, 6 }
  0x78   :  { %1034 = vmatpush.bf16.msrb.mxu2 %v1567_v5 }
  0x79   :  { %1048 = vmatpush.bf16.msrb.mxu3 %v1571_v9 }
  0x7b   :  { %1007 = vmatpush.bf16.msrb.mxu0 %v1527_v15  ;;  %1021 = vmatpush.bf16.msrb.mxu1 %v1531_v16 }
  0x7c   :  { %1035 = vmatpush.bf16.msrb.mxu2 %v1535_v17 }
  0x7d   :  { %1049 = vmatpush.bf16.msrb.mxu3 %v1539_v21 }
  0x7f   :  { %1008 = vmatpush.bf16.msrb.mxu0 %v1495_v27  ;;  %1022 = vmatpush.bf16.msrb.mxu1 %v1499_v28 }
  0x80   :  { %1036 = vmatpush.bf16.msrb.mxu2 %v1503_v29  ;;  %v1064_v29 = vperm.slane %v1891_v18, 2 }
  0x81   :  { %1050 = vmatpush.bf16.msrb.mxu3 %v1507_v33 }
  0x83   :  { %1009 = vmatpush.bf16.msrb.mxu0 %v1463_v39  ;;  %1023 = vmatpush.bf16.msrb.mxu1 %v1467_v40 }
  0x84   :  { %1037 = vmatpush.bf16.msrb.mxu2 %v1471_v41 }
  0x85   :  { %1051 = vmatpush.bf16.msrb.mxu3 %v1475_v46 }
  0x87   :  { %1010 = vmatpush.bf16.msrb.mxu0 %v1431_v51  ;;  %1024 = vmatpush.bf16.msrb.mxu1 %v1435_v52  ;;  %v1066_v52 = vperm.slane %v1891_v18, 4 }
  0x88   :  { %1038 = vmatpush.bf16.msrb.mxu2 %v1439_v53 }
  0x89   :  { %1052 = vmatpush.bf16.msrb.mxu3 %v1443_v57 }
  0x8b   :  { %1011 = vmatpush.bf16.msrb.mxu0 %v1399_v63  ;;  %1025 = vmatpush.bf16.msrb.mxu1 %v1403_v0  ;;  %v1069_v63 = vperm.slane %v1891_v18, 7 }
  0x8c   :  { %1039 = vmatpush.bf16.msrb.mxu2 %v1407_v2 }
  0x8d   :  { %1053 = vmatpush.bf16.msrb.mxu3 %v1411_v3 }
  0x8e   :  { %1012 = vmatmul.bf16.vlgmr.msrb.gmra.mxu0 %v1878_v43  ;;  %1026 = vmatmul.bf16.vlgmr.msrb.gmra.mxu1 %v1878_v43 }
  0x8f   :  { %1040 = vmatmul.bf16.vlgmr.msrb.gmra.mxu2 %v1878_v43 }
  0x90   :  { %1054 = vmatmul.bf16.vlgmr.msrb.gmra.mxu3 %v1878_v43 }
  0xab   :  { %v519_v4 = vpop.f32.mrf.mxu0  ;;  %v533_v5 = vpop.f32.mrf.mxu1 }
  0xb3   :  { %v561_v7 = vpop.f32.mrf.mxu3  ;;  %v521_v8 = vpop.f32.mrf.mxu0 }
  0xb4   :  { %v547_v6 = vpop.f32.mrf.mxu2  ;;  %v535_v9 = vpop.f32.mrf.mxu1 }
  0xbb   :  { %v563_v11 = vpop.f32.mrf.mxu3 }
  0xbc   :  { %v549_v10 = vpop.f32.mrf.mxu2 }
  0xcb   :  { %v575_v12 = vpop.f32.mrf.mxu0  ;;  %v589_v13 = vpop.f32.mrf.mxu1 }
  0xd3   :  { %v617_v15 = vpop.f32.mrf.mxu3  ;;  %v577_v16 = vpop.f32.mrf.mxu0 }
  0xd4   :  { %v603_v14 = vpop.f32.mrf.mxu2  ;;  %v591_v17 = vpop.f32.mrf.mxu1 }
  0xdb   :  { %v1895_v19 = vpop.f32.mrf.mxu3 }
  0xdc   :  { %v1893_v43 = vpop.f32.mrf.mxu2 }
  0xeb   :  { %v957_v21 = vpop.f32.mrf.mxu0  ;;  %v971_v24 = vpop.f32.mrf.mxu1 }
  0xec   :  { %v958_v23 = vadd.f32 %v957_v21, %v519_v4  ;;  %v972_v25 = vadd.f32 %v971_v24, %v533_v5 }
  0xee   :  { %v1078_v26 = vadd.f32 %v1062_v20, %v958_v23  ;;  %v1079_v27 = vadd.f32 %v1063_v22, %v972_v25 }
  0xf0   :  { %v1094_v28 = vpack.c.bf16 %v1079_v27, %v1078_v26 }
  0xf2   :  { %1102 = vst [vmem:[%s1936_s5] sm:$0xff] %v1094_v28 }
  0xf3   :  { %v999_v33 = vpop.f32.mrf.mxu3  ;;  %v959_v34 = vpop.f32.mrf.mxu0 }
  0xf4   :  { %v985_v30 = vpop.f32.mrf.mxu2  ;;  %v1000_v35 = vadd.f32 %v999_v33, %v561_v7  ;;  %v960_v36 = vadd.f32 %v959_v34, %v521_v8  ;;  %v973_v37 = vpop.f32.mrf.mxu1 }
  0xf5   :  { %v986_v32 = vadd.f32 %v985_v30, %v547_v6  ;;  %v974_v39 = vadd.f32 %v973_v37, %v535_v9 }
  0xf6   :  { %v1081_v40 = vadd.f32 %v1065_v31, %v1000_v35  ;;  %v1086_v41 = vadd.f32 %v1062_v20, %v960_v36 }
  0xf7   :  { %v1080_v38 = vadd.f32 %v1064_v29, %v986_v32  ;;  %v1087_v42 = vadd.f32 %v1063_v22, %v974_v39 }
  0xf9   :  { %v1095_v44 = vpack.c.bf16 %v1081_v40, %v1080_v38  ;;  %v1098_v45 = vpack.c.bf16 %v1087_v42, %v1086_v41 }
  0xfb   :  { %1103 = vst [vmem:[%s1936_s5 + $0x8] sm:$0xff] %v1095_v44  ;;  %v1001_v1 = vpop.f32.mrf.mxu3 }
  0xfc   :  { %v987_v46 = vpop.f32.mrf.mxu2  ;;  %1106 = vst [vmem:[%s1936_s5 + $0x20] sm:$0xff] %v1098_v45  ;;  %v1002_v48 = vadd.f32 %v1001_v1, %v563_v11 }
  0xfd   :  { %v988_v47 = vadd.f32 %v987_v46, %v549_v10 }
  0xfe   :  { %v1089_v50 = vadd.f32 %v1065_v31, %v1002_v48 }
  0xff   :  { %v1088_v49 = vadd.f32 %v1064_v29, %v988_v47 }
 0x101   :  { %v1099_v51 = vpack.c.bf16 %v1089_v50, %v1088_v49 }
 0x103   :  { %1107 = vst [vmem:[%s1936_s5 + $0x28] sm:$0xff] %v1099_v51 }
 0x10b   :  { %v1013_v53 = vpop.f32.mrf.mxu0  ;;  %v1027_v56 = vpop.f32.mrf.mxu1 }
 0x10c   :  { %v1014_v55 = vadd.f32 %v1013_v53, %v575_v12  ;;  %v1028_v57 = vadd.f32 %v1027_v56, %v589_v13 }
 0x10e   :  { %v1082_v58 = vadd.f32 %v1066_v52, %v1014_v55  ;;  %v1083_v59 = vadd.f32 %v1067_v54, %v1028_v57 }
 0x110   :  { %v1096_v60 = vpack.c.bf16 %v1083_v59, %v1082_v58 }
 0x112   :  { %v1041_v62 = vpop.f32.mrf.mxu2  ;;  %1104 = vst [vmem:[%s1936_s5 + $0x10] sm:$0xff] %v1096_v60 }
 0x113   :  { %v1042_v0 = vadd.f32 %v1041_v62, %v603_v14  ;;  %v1055_v2 = vpop.f32.mrf.mxu3  ;;  %v1015_v3 = vpop.f32.mrf.mxu0 }
 0x114   :  { %v1056_v4 = vadd.f32 %v1055_v2, %v617_v15  ;;  %v1016_v5 = vadd.f32 %v1015_v3, %v577_v16  ;;  %v1029_v6 = vpop.f32.mrf.mxu1 }
 0x115   :  { %v1084_v7 = vadd.f32 %v1068_v61, %v1042_v0  ;;  %v1030_v8 = vadd.f32 %v1029_v6, %v591_v17 }
 0x116   :  { %v1085_v9 = vadd.f32 %v1069_v63, %v1056_v4  ;;  %v1090_v10 = vadd.f32 %v1066_v52, %v1016_v5 }
 0x117   :  { %v1091_v11 = vadd.f32 %v1067_v54, %v1030_v8 }
 0x118   :  { %v1097_v12 = vpack.c.bf16 %v1085_v9, %v1084_v7 }
 0x119   :  { %v1100_v13 = vpack.c.bf16 %v1091_v11, %v1090_v10 }
 0x11a   :  { %1105 = vst [vmem:[%s1936_s5 + $0x18] sm:$0xff] %v1097_v12  ;;  %v1043_v18 = vpop.f32.mrf.mxu2 }
 0x11b   :  { %1108 = vst [vmem:[%s1936_s5 + $0x30] sm:$0xff] %v1100_v13  ;;  %v1044_v14 = vadd.f32 %v1043_v18, %v1893_v43  ;;  %v1057_v15 = vpop.f32.mrf.mxu3 }
 0x11c   :  { %v1058_v16 = vadd.f32 %v1057_v15, %v1895_v19 }
 0x11d   :  { %v1092_v17 = vadd.f32 %v1068_v61, %v1044_v14 }
 0x11e   :  { %v1093_v20 = vadd.f32 %v1069_v63, %v1058_v16 }
 0x120   :  { %v1101_v21 = vpack.c.bf16 %v1093_v20, %v1092_v17 }
 0x122   :  { %1109 = vst [vmem:[%s1936_s5 + $0x38] sm:$0xff] %v1101_v21 }
 0x123   :  { %1114 = vsyncpa [#allocation3], 1 }
 0x124   :  { %1115 = vsyncpa [#allocation5], 1 }

// kernel: _lstm_forward.7
= control target key start
LH: loop header
LB: loop body
LE: loop exit
PB: predicated region body
PF: predicated region fallthrough
CT: control target
= control target key end

     0   :  { %s3562_s0 = inlined_call_operand.vmem [shape: bf16[8,2,1024], index: 0, kind: input, shape index: {}, may-alias: {0,1}]   ;;  %s3563_s1 = inlined_call_operand.vmem [shape: bf16[8,2,1024], index: 1, kind: input, shape index: {}, may-alias: {0,1}]   ;;  %s3564_s2 = inlined_call_operand.hbm [shape: bf16[2,128,512], index: 2, kind: input, shape index: {}]   ;;  %s3565_s3 = inlined_call_operand.vmem [shape: f32[2,2,128], index: 3, kind: output, shape index: {}]  }
   0x1   :  { %v27_v0 = vld [vmem:[%s3562_s0] sm:$0xf]  ;;  %v29_v1 = vld [vmem:[%s3562_s0 + $0x8] sm:$0xf]  ;;  %v31_v2 = vld [vmem:[%s3562_s0 + $0x10] sm:$0xf] }
   0x2   :  { %28 = vst [vmem:[#allocation4] sm:$0xf] %v27_v0  ;;  %v33_v3 = vld [vmem:[%s3562_s0 + $0x18] sm:$0xf]  ;;  %v35_v4 = vld [vmem:[%s3562_s0 + $0x20] sm:$0xf] }
   0x3   :  { %30 = vst [vmem:[#allocation4 + $0x4] sm:$0xf] %v29_v1  ;;  %v37_v5 = vld [vmem:[%s3562_s0 + $0x28] sm:$0xf]  ;;  %v39_v6 = vld [vmem:[%s3562_s0 + $0x30] sm:$0xf] }
   0x4   :  { %32 = vst [vmem:[#allocation4 + $0x8] sm:$0xf] %v31_v2  ;;  %v41_v7 = vld [vmem:[%s3562_s0 + $0x38] sm:$0xf]  ;;  %v2218_v8 = vld [vmem:[%s3563_s1 + $0x4] sm:$0xf] }
   0x5   :  { %34 = vst [vmem:[#allocation4 + $0xc] sm:$0xf] %v33_v3  ;;  %v2219_v9 = vld [vmem:[%s3563_s1 + $0xc] sm:$0xf]  ;;  %v2220_v10 = vld [vmem:[%s3563_s1 + $0x14] sm:$0xf] }
   0x6   :  { %36 = vst [vmem:[#allocation4 + $0x10] sm:$0xf] %v35_v4 }
   0x7   :  { %38 = vst [vmem:[#allocation4 + $0x14] sm:$0xf] %v37_v5 }
   0x8   :  { %40 = vst [vmem:[#allocation4 + $0x18] sm:$0xf] %v39_v6 }
   0x9   :  { %8 = vsyncpa [#allocation7], 0  ;;  %42 = vst [vmem:[#allocation4 + $0x1c] sm:$0xf] %v41_v7  ;;  %v2221_v11 = vld [vmem:[%s3563_s1 + $0x1c] sm:$0xf] }
   0xa   :  { %s160_s10 = sshll.u32 %s3564_s2, 4  ;;  %104 = vst [vmem:[#allocation5] sm:$0xf] %v2218_v8  ;;  %v2222_v12 = vld [vmem:[%s3563_s1 + $0x24] sm:$0xf]  ;;  %s2705_s13 = smov [#allocation6]   ;;  %s161_s10 = int_to_ptr.hbm [resolvable:$true] %s160_s10 }
   0xb   :  { %s162_s14 = sshll.u32 %s2705_s13, 4  ;;  %106 = vst [vmem:[#allocation5 + $0x4] sm:$0xf] %v2219_v9  ;;  %v2223_v13 = vld [vmem:[%s3563_s1 + $0x2c] sm:$0xf]  ;;  %s2706_s2 = smov 256   ;;  %s163_s14 = int_to_ptr.vmem [resolvable:$true] %s162_s14 }
   0xc   :  { %108 = vst [vmem:[#allocation5 + $0x8] sm:$0xf] %v2220_v10  ;;  %v2224_v14 = vld [vmem:[%s3563_s1 + $0x34] sm:$0xf]  ;;  %s2707_s19 = smov 16  }
   0xd   :  { %110 = vst [vmem:[#allocation5 + $0xc] sm:$0xf] %v2221_v11  ;;  %168 = dma.hbm_to_vmem [thread:$0]  %s161_s10, 8192, %s163_s14, [#allocation7], %s2706_s2, %s2706_s2, %s2707_s19  }
   0xe   :  { %112 = vst [vmem:[#allocation5 + $0x10] sm:$0xf] %v2222_v12  ;;  %v2225_v15 = vld [vmem:[%s3563_s1 + $0x3c] sm:$0xf] }
   0xf   :  { %114 = vst [vmem:[#allocation5 + $0x14] sm:$0xf] %v2223_v13 }
  0x10   :  { %116 = vst [vmem:[#allocation5 + $0x18] sm:$0xf] %v2224_v14 }
  0x11   :  { %118 = vst [vmem:[#allocation5 + $0x1c] sm:$0xf] %v2225_v15 }
  0x12   :  { %2703 = dma.done.wait [#allocation7], 8192  }
  0x13   :  { %2704 = vsyncadd [#allocation7], 4294959104  ;;  %v2708_v16 = vmov 0.0   ;;  %v2340_v17 = vld [vmem:[#allocation6 + $0xe0] sm:$0xf]  ;;  %vm447_vm0 = vcmask 1041408  }
  0x14   :  { %183 = vst [vmem:[#allocation2] sm:$0x3] %v2708_v16  ;;  %v2513_v18 = vld [vmem:[#allocation6 + $0xec] sm:$0xf0]  ;;  %v2511_v19 = vld [vmem:[#allocation6 + $0xe4] sm:$0xf] }
  0x15   :  { %185 = vst [vmem:[#allocation3] sm:$0x3] %v2708_v16  ;;  %v2780_v20 = vor.u32 %v2513_v18, %v2340_v17  ;;  %v2342_v21 = vld [vmem:[#allocation6 + $0xf0] sm:$0xf0]  ;;  %v2348_v22 = vld [vmem:[#allocation6 + $0xe8] sm:$0xf] }
  0x16   :  { %186 = vst [vmem:[#allocation3 + $0x2] sm:$0x3] %v2708_v16  ;;  %v2514_v23 = vld [vmem:[#allocation6 + $0xf4] sm:$0xf0]  ;;  %v2782_v24 = vor.u32 %v2511_v19, %v2342_v21  ;;  %v2512_v26 = vld [vmem:[#allocation6 + $0xec] sm:$0xf] }
  0x17   :  { %184 = vst [vmem:[#allocation2 + $0x2] sm:$0x3] %v2708_v16  ;;  %v2784_v25 = vor.u32 %v2514_v23, %v2348_v22  ;;  %v2350_v27 = vld [vmem:[#allocation6 + $0xf8] sm:$0xf0]  ;;  %v2324_v28 = vld [vmem:[#allocation6 + $0xc0] sm:$0xf]  ;;  %388 = vmatpush.bf16.msra.mxu0 %v2780_v20 }
  0x18   :  { %v2787_v29 = vor.u32 %v2512_v26, %v2350_v27  ;;  %v2509_v30 = vld [vmem:[#allocation6 + $0xcc] sm:$0xf0]  ;;  %v2507_v31 = vld [vmem:[#allocation6 + $0xc4] sm:$0xf]  ;;  %v2326_v32 = vld [vmem:[#allocation6 + $0xd0] sm:$0xf0]  ;;  %401 = vmatpush.bf16.msra.mxu1 %v2782_v24 }
  0x19   :  { %414 = vmatpush.bf16.msra.mxu2 %v2784_v25  ;;  %v2791_v33 = vor.u32 %v2509_v30, %v2324_v28  ;;  %v2793_v34 = vor.u32 %v2507_v31, %v2326_v32  ;;  %v2332_v35 = vld [vmem:[#allocation6 + $0xc8] sm:$0xf]  ;;  %v2510_v36 = vld [vmem:[#allocation6 + $0xd4] sm:$0xf0]  ;;  %v2508_v37 = vld [vmem:[#allocation6 + $0xcc] sm:$0xf] }
  0x1a   :  { %427 = vmatpush.bf16.msra.mxu3 %v2787_v29  ;;  %v2796_v38 = vor.u32 %v2510_v36, %v2332_v35  ;;  %v2334_v39 = vld [vmem:[#allocation6 + $0xd8] sm:$0xf0]  ;;  %v2308_v40 = vld [vmem:[#allocation6 + $0xa0] sm:$0xf]  ;;  %v2505_v41 = vld [vmem:[#allocation6 + $0xac] sm:$0xf0] }
  0x1b   :  { %v2798_v42 = vor.u32 %v2508_v37, %v2334_v39  ;;  %v2503_v43 = vld [vmem:[#allocation6 + $0xa4] sm:$0xf]  ;;  %v2310_v44 = vld [vmem:[#allocation6 + $0xb0] sm:$0xf0]  ;;  %v2316_v45 = vld [vmem:[#allocation6 + $0xa8] sm:$0xf]  ;;  %389 = vmatpush.bf16.msra.mxu0 %v2791_v33  ;;  %v2801_v46 = vor.u32 %v2505_v41, %v2308_v40 }
  0x1c   :  { %v2506_v47 = vld [vmem:[#allocation6 + $0xb4] sm:$0xf0]  ;;  %v2504_v48 = vld [vmem:[#allocation6 + $0xac] sm:$0xf]  ;;  %v2318_v49 = vld [vmem:[#allocation6 + $0xb8] sm:$0xf0]  ;;  %402 = vmatpush.bf16.msra.mxu1 %v2793_v34  ;;  %v2805_v50 = vor.u32 %v2503_v43, %v2310_v44 }
  0x1d   :  { %415 = vmatpush.bf16.msra.mxu2 %v2796_v38  ;;  %v2807_v51 = vor.u32 %v2506_v47, %v2316_v45  ;;  %v2292_v52 = vld [vmem:[#allocation6 + $0x80] sm:$0xf]  ;;  %v2501_v53 = vld [vmem:[#allocation6 + $0x8c] sm:$0xf0]  ;;  %v2499_v54 = vld [vmem:[#allocation6 + $0x84] sm:$0xf]  ;;  %v2810_v55 = vor.u32 %v2504_v48, %v2318_v49 }
  0x1e   :  { %428 = vmatpush.bf16.msra.mxu3 %v2798_v42  ;;  %v2294_v56 = vld [vmem:[#allocation6 + $0x90] sm:$0xf0]  ;;  %v2300_v57 = vld [vmem:[#allocation6 + $0x88] sm:$0xf]  ;;  %v2502_v58 = vld [vmem:[#allocation6 + $0x94] sm:$0xf0]  ;;  %v2813_v61 = vor.u32 %v2501_v53, %v2292_v52 }
  0x1f   :  { %v2500_v59 = vld [vmem:[#allocation6 + $0x8c] sm:$0xf]  ;;  %v2302_v60 = vld [vmem:[#allocation6 + $0x98] sm:$0xf0]  ;;  %390 = vmatpush.bf16.msra.mxu0 %v2801_v46  ;;  %v2817_v62 = vor.u32 %v2499_v54, %v2294_v56  ;;  %v2819_v63 = vor.u32 %v2502_v58, %v2300_v57  ;;  %v2276_v0 = vld [vmem:[#allocation6 + $0x60] sm:$0xf] }
  0x20   :  { %403 = vmatpush.bf16.msra.mxu1 %v2805_v50  ;;  %v2497_v1 = vld [vmem:[#allocation6 + $0x6c] sm:$0xf0]  ;;  %v2495_v2 = vld [vmem:[#allocation6 + $0x64] sm:$0xf]  ;;  %v2822_v3 = vor.u32 %v2500_v59, %v2302_v60  ;;  %v2278_v4 = vld [vmem:[#allocation6 + $0x70] sm:$0xf0] }
  0x21   :  { %416 = vmatpush.bf16.msra.mxu2 %v2807_v51  ;;  %v2284_v5 = vld [vmem:[#allocation6 + $0x68] sm:$0xf]  ;;  %v2498_v6 = vld [vmem:[#allocation6 + $0x74] sm:$0xf0]  ;;  %v2496_v7 = vld [vmem:[#allocation6 + $0x6c] sm:$0xf]  ;;  %v2825_v9 = vor.u32 %v2497_v1, %v2276_v0  ;;  %v2829_v10 = vor.u32 %v2495_v2, %v2278_v4 }
  0x22   :  { %429 = vmatpush.bf16.msra.mxu3 %v2810_v55  ;;  %v2286_v8 = vld [vmem:[#allocation6 + $0x78] sm:$0xf0]  ;;  %v2831_v11 = vor.u32 %v2498_v6, %v2284_v5  ;;  %v2260_v12 = vld [vmem:[#allocation6 + $0x40] sm:$0xf]  ;;  %v2493_v13 = vld [vmem:[#allocation6 + $0x4c] sm:$0xf0] }
  0x23   :  { %391 = vmatpush.bf16.msra.mxu0 %v2813_v61  ;;  %v2491_v14 = vld [vmem:[#allocation6 + $0x44] sm:$0xf]  ;;  %v2834_v15 = vor.u32 %v2496_v7, %v2286_v8  ;;  %v2262_v16 = vld [vmem:[#allocation6 + $0x50] sm:$0xf0]  ;;  %v2268_v17 = vld [vmem:[#allocation6 + $0x48] sm:$0xf]  ;;  %v2837_v22 = vor.u32 %v2493_v13, %v2260_v12 }
  0x24   :  { %404 = vmatpush.bf16.msra.mxu1 %v2817_v62  ;;  %v2494_v18 = vld [vmem:[#allocation6 + $0x54] sm:$0xf0]  ;;  %v2492_v19 = vld [vmem:[#allocation6 + $0x4c] sm:$0xf]  ;;  %v2270_v21 = vld [vmem:[#allocation6 + $0x58] sm:$0xf0]  ;;  %v2841_v23 = vor.u32 %v2491_v14, %v2262_v16 }
  0x25   :  { %417 = vmatpush.bf16.msra.mxu2 %v2819_v63  ;;  %v2843_v26 = vor.u32 %v2494_v18, %v2268_v17  ;;  %v2244_v27 = vld [vmem:[#allocation6 + $0x20] sm:$0xf]  ;;  %v2489_v28 = vld [vmem:[#allocation6 + $0x2c] sm:$0xf0]  ;;  %v2487_v30 = vld [vmem:[#allocation6 + $0x24] sm:$0xf]  ;;  %v2846_v31 = vor.u32 %v2492_v19, %v2270_v21 }
  0x26   :  { %430 = vmatpush.bf16.msra.mxu3 %v2822_v3  ;;  %v2246_v32 = vld [vmem:[#allocation6 + $0x30] sm:$0xf0]  ;;  %v2252_v35 = vld [vmem:[#allocation6 + $0x28] sm:$0xf]  ;;  %v2490_v36 = vld [vmem:[#allocation6 + $0x34] sm:$0xf0]  ;;  %v2849_v40 = vor.u32 %v2489_v28, %v2244_v27 }
  0x27   :  { %392 = vmatpush.bf16.msra.mxu0 %v2825_v9  ;;  %v2488_v37 = vld [vmem:[#allocation6 + $0x2c] sm:$0xf]  ;;  %v2254_v39 = vld [vmem:[#allocation6 + $0x38] sm:$0xf0]  ;;  %v2228_v41 = vld [vmem:[#allocation6] sm:$0xf]  ;;  %v2853_v44 = vor.u32 %v2487_v30, %v2246_v32  ;;  %v2855_v45 = vor.u32 %v2490_v36, %v2252_v35 }
  0x28   :  { %405 = vmatpush.bf16.msra.mxu1 %v2829_v10  ;;  %v2485_v43 = vld [vmem:[#allocation6 + $0xc] sm:$0xf0]  ;;  %v2483_v47 = vld [vmem:[#allocation6 + $0x4] sm:$0xf]  ;;  %v2230_v48 = vld [vmem:[#allocation6 + $0x10] sm:$0xf0]  ;;  %v2858_v52 = vor.u32 %v2488_v37, %v2254_v39 }
  0x29   :  { %418 = vmatpush.bf16.msra.mxu2 %v2831_v11  ;;  %v2236_v49 = vld [vmem:[#allocation6 + $0x8] sm:$0xf]  ;;  %v2486_v53 = vld [vmem:[#allocation6 + $0x14] sm:$0xf0]  ;;  %v2484_v54 = vld [vmem:[#allocation6 + $0xc] sm:$0xf]  ;;  %v2861_v60 = vor.u32 %v2485_v43, %v2228_v41  ;;  %v2865_v4 = vor.u32 %v2483_v47, %v2230_v48 }
  0x2a   :  { %431 = vmatpush.bf16.msra.mxu3 %v2834_v15  ;;  %v2238_v56 = vld [vmem:[#allocation6 + $0x18] sm:$0xf0]  ;;  %v2468_v57 = vld [vmem:[#allocation6 + $0x1e0] sm:$0xf]  ;;  %v2545_v58 = vld [vmem:[#allocation6 + $0x1ec] sm:$0xf0]  ;;  %v2867_v5 = vor.u32 %v2486_v53, %v2236_v49 }
  0x2b   :  { %393 = vmatpush.bf16.msra.mxu0 %v2837_v22  ;;  %v2543_v59 = vld [vmem:[#allocation6 + $0x1e4] sm:$0xf]  ;;  %v2470_v0 = vld [vmem:[#allocation6 + $0x1f0] sm:$0xf0]  ;;  %v2476_v1 = vld [vmem:[#allocation6 + $0x1e8] sm:$0xf]  ;;  %v2870_v12 = vor.u32 %v2484_v54, %v2238_v56  ;;  %v2872_v13 = vor.u32 %v2545_v58, %v2468_v57 }
  0x2c   :  { %406 = vmatpush.bf16.msra.mxu1 %v2841_v23  ;;  %v2546_v2 = vld [vmem:[#allocation6 + $0x1f4] sm:$0xf0]  ;;  %v2544_v6 = vld [vmem:[#allocation6 + $0x1ec] sm:$0xf]  ;;  %v2478_v7 = vld [vmem:[#allocation6 + $0x1f8] sm:$0xf0]  ;;  %v2874_v14 = vor.u32 %v2543_v59, %v2470_v0 }
  0x2d   :  { %419 = vmatpush.bf16.msra.mxu2 %v2843_v26  ;;  %v187_v8 = vld [vmem:[#allocation2] sm:$0x3]  ;;  %v2876_v16 = vor.u32 %v2546_v2, %v2476_v1  ;;  %v2452_v17 = vld [vmem:[#allocation6 + $0x1c0] sm:$0xf]  ;;  %v2541_v18 = vld [vmem:[#allocation6 + $0x1cc] sm:$0xf0]  ;;  %v2879_v21 = vor.u32 %v2544_v6, %v2478_v7 }
  0x2e   :  { %432 = vmatpush.bf16.msra.mxu3 %v2846_v31  ;;  %v2539_v19 = vld [vmem:[#allocation6 + $0x1c4] sm:$0xf]  ;;  %v227_v27 = vpack.c.bf16 %v187_v8, %v187_v8  ;;  %v2454_v28 = vld [vmem:[#allocation6 + $0x1d0] sm:$0xf0]  ;;  %v2460_v30 = vld [vmem:[#allocation6 + $0x1c8] sm:$0xf]  ;;  %v2885_v37 = vor.u32 %v2541_v18, %v2452_v17 }
  0x2f   :  { %394 = vmatpush.bf16.msra.mxu0 %v2849_v40  ;;  %v2542_v32 = vld [vmem:[#allocation6 + $0x1d4] sm:$0xf0]  ;;  %v2540_v35 = vld [vmem:[#allocation6 + $0x1cc] sm:$0xf]  ;;  %v2462_v36 = vld [vmem:[#allocation6 + $0x1d8] sm:$0xf0]  ;;  %v2889_v39 = vor.u32 %v2539_v19, %v2454_v28 }
  0x30   :  { %407 = vmatpush.bf16.msra.mxu1 %v2853_v44  ;;  %v2891_v41 = vor.u32 %v2542_v32, %v2460_v30  ;;  %v2436_v43 = vld [vmem:[#allocation6 + $0x1a0] sm:$0xf]  ;;  %v2537_v47 = vld [vmem:[#allocation6 + $0x1ac] sm:$0xf0]  ;;  %v2535_v48 = vld [vmem:[#allocation6 + $0x1a4] sm:$0xf]  ;;  %v2894_v49 = vor.u32 %v2540_v35, %v2462_v36 }
  0x31   :  { %420 = vmatpush.bf16.msra.mxu2 %v2855_v45  ;;  %v2438_v53 = vld [vmem:[#allocation6 + $0x1b0] sm:$0xf0]  ;;  %v2444_v54 = vld [vmem:[#allocation6 + $0x1a8] sm:$0xf]  ;;  %v2538_v56 = vld [vmem:[#allocation6 + $0x1b4] sm:$0xf0]  ;;  %v2897_v59 = vor.u32 %v2537_v47, %v2436_v43 }
  0x32   :  { %433 = vmatpush.bf16.msra.mxu3 %v2858_v52  ;;  %3624 = vst [vmem:[#allocation9_spill] sm:$0xff] %v2891_v41  ;;  %v2536_v57 = vld [vmem:[#allocation6 + $0x1ac] sm:$0xf]  ;;  %v2446_v58 = vld [vmem:[#allocation6 + $0x1b8] sm:$0xf0]  ;;  %v2901_v0 = vor.u32 %v2535_v48, %v2438_v53  ;;  %v2903_v1 = vor.u32 %v2538_v56, %v2444_v54  ;;  %vm449_vm1 = vcmask 1045508  }
  0x33   :  { %395 = vmatpush.bf16.msra.mxu0 %v2861_v60  ;;  %3625 = vst [vmem:[#allocation10_spill] sm:$0xff] %v2894_v49  ;;  %v2420_v2 = vld [vmem:[#allocation6 + $0x180] sm:$0xf]  ;;  %v2533_v6 = vld [vmem:[#allocation6 + $0x18c] sm:$0xf0]  ;;  %v2906_v8 = vor.u32 %v2536_v57, %v2446_v58  ;;  %vm451_vm2 = vcmask 1043456  }
  0x34   :  { %408 = vmatpush.bf16.msra.mxu1 %v2865_v4  ;;  %3626 = vst [vmem:[#allocation11_spill] sm:$0xff] %v2897_v59  ;;  %v2531_v7 = vld [vmem:[#allocation6 + $0x184] sm:$0xf]  ;;  %v2422_v17 = vld [vmem:[#allocation6 + $0x190] sm:$0xf0]  ;;  %v2909_v32 = vor.u32 %v2533_v6, %v2420_v2 }
  0x35   :  { %421 = vmatpush.bf16.msra.mxu2 %v2867_v5  ;;  %3627 = vst [vmem:[#allocation12_spill] sm:$0xff] %v2901_v0  ;;  %v2428_v18 = vld [vmem:[#allocation6 + $0x188] sm:$0xf]  ;;  %v2534_v19 = vld [vmem:[#allocation6 + $0x194] sm:$0xf0]  ;;  %v2913_v35 = vor.u32 %v2531_v7, %v2422_v17 }
  0x36   :  { %434 = vmatpush.bf16.msra.mxu3 %v2870_v12  ;;  %3628 = vst [vmem:[#allocation13_spill] sm:$0xff] %v2903_v1  ;;  %396 = vmatmul.bf16.vlgmr.msra.gmra.mxu0 %v227_v27  ;;  %v2532_v28 = vld [vmem:[#allocation6 + $0x18c] sm:$0xf]  ;;  %v2430_v30 = vld [vmem:[#allocation6 + $0x198] sm:$0xf0]  ;;  %v2915_v36 = vor.u32 %v2534_v19, %v2428_v18 }
  0x37   :  { %685 = vmatpush.bf16.msrb.mxu0 %v2872_v13  ;;  %409 = vmatmul.bf16.vlgmr.msra.gmra.mxu1 %v227_v27  ;;  %3629 = vst [vmem:[#allocation14_spill] sm:$0xff] %v2906_v8  ;;  %v2404_v43 = vld [vmem:[#allocation6 + $0x160] sm:$0xf]  ;;  %v2529_v47 = vld [vmem:[#allocation6 + $0x16c] sm:$0xf0]  ;;  %v2918_v48 = vor.u32 %v2532_v28, %v2430_v30 }
  0x38   :  { %698 = vmatpush.bf16.msrb.mxu1 %v2874_v14  ;;  %422 = vmatmul.bf16.vlgmr.msra.gmra.mxu2 %v227_v27  ;;  %3630 = vst [vmem:[#allocation15_spill] sm:$0xff] %v2909_v32  ;;  %v2406_v53 = vld [vmem:[#allocation6 + $0x170] sm:$0xf0]  ;;  %v2412_v54 = vld [vmem:[#allocation6 + $0x168] sm:$0xf]  ;;  %v2921_v2 = vor.u32 %v2529_v47, %v2404_v43 }
  0x39   :  { %711 = vmatpush.bf16.msrb.mxu2 %v2876_v16  ;;  %435 = vmatmul.bf16.vlgmr.msra.gmra.mxu3 %v227_v27  ;;  %3631 = vst [vmem:[#allocation16_spill] sm:$0xff] %v2913_v35  ;;  %v2527_v27 = vld [vmem:[#allocation6 + $0x164] sm:$0xf]  ;;  %v2530_v56 = vld [vmem:[#allocation6 + $0x174] sm:$0xf0] }
  0x3a   :  { %724 = vmatpush.bf16.msrb.mxu3 %v2879_v21  ;;  %3632 = vst [vmem:[#allocation17_spill] sm:$0xff] %v2915_v36  ;;  %v2528_v57 = vld [vmem:[#allocation6 + $0x16c] sm:$0xf]  ;;  %v2414_v58 = vld [vmem:[#allocation6 + $0x178] sm:$0xf0]  ;;  %v2925_v6 = vor.u32 %v2527_v27, %v2406_v53  ;;  %v2927_v7 = vor.u32 %v2530_v56, %v2412_v54 }
  0x3b   :  { %686 = vmatpush.bf16.msrb.mxu0 %v2885_v37  ;;  %3633 = vst [vmem:[#allocation18_spill] sm:$0xff] %v2918_v48  ;;  %v2388_v17 = vld [vmem:[#allocation6 + $0x140] sm:$0xf]  ;;  %v2525_v18 = vld [vmem:[#allocation6 + $0x14c] sm:$0xf0]  ;;  %v2930_v28 = vor.u32 %v2528_v57, %v2414_v58 }
  0x3c   :  { %699 = vmatpush.bf16.msrb.mxu1 %v2889_v39  ;;  %3634 = vst [vmem:[#allocation19_spill] sm:$0xff] %v2921_v2  ;;  %v2523_v19 = vld [vmem:[#allocation6 + $0x144] sm:$0xf]  ;;  %v2390_v30 = vld [vmem:[#allocation6 + $0x150] sm:$0xf0] }
  0x3d   :  { %712 = vmatpush.bf16.msrb.mxu2 %v2891_v41  ;;  %3635 = vst [vmem:[#allocation20_spill] sm:$0xff] %v2925_v6  ;;  %v2524_v43 = vld [vmem:[#allocation6 + $0x14c] sm:$0xf]  ;;  %v2398_v47 = vld [vmem:[#allocation6 + $0x158] sm:$0xf0]  ;;  %v2937_v27 = vor.u32 %v2523_v19, %v2390_v30 }
  0x3e   :  { %725 = vmatpush.bf16.msrb.mxu3 %v2894_v49  ;;  %3636 = vst [vmem:[#allocation21_spill] sm:$0xff] %v2927_v7  ;;  %v2372_v54 = vld [vmem:[#allocation6 + $0x120] sm:$0xf]  ;;  %v2521_v56 = vld [vmem:[#allocation6 + $0x12c] sm:$0xf0]  ;;  %v2942_v58 = vor.u32 %v2524_v43, %v2398_v47 }
  0x3f   :  { %687 = vmatpush.bf16.msrb.mxu0 %v2897_v59  ;;  %3637 = vst [vmem:[#allocation22_spill] sm:$0xff] %v2930_v28  ;;  %v2519_v57 = vld [vmem:[#allocation6 + $0x124] sm:$0xf]  ;;  %v2356_v19 = vld [vmem:[#allocation6 + $0x100] sm:$0xf] }
  0x40   :  { %700 = vmatpush.bf16.msrb.mxu1 %v2901_v0  ;;  %3639 = vst [vmem:[#allocation24_spill] sm:$0xff] %v2937_v27  ;;  %v2517_v30 = vld [vmem:[#allocation6 + $0x10c] sm:$0xf0]  ;;  %v2515_v43 = vld [vmem:[#allocation6 + $0x104] sm:$0xf] }
  0x41   :  { %713 = vmatpush.bf16.msrb.mxu2 %v2903_v1  ;;  %3641 = vst [vmem:[#allocation26_spill] sm:$0xff] %v2942_v58 }
  0x42   :  { %726 = vmatpush.bf16.msrb.mxu3 %v2906_v8  ;;  %v2396_v8 = vld [vmem:[#allocation6 + $0x148] sm:$0xf] }
  0x43   :  { %688 = vmatpush.bf16.msrb.mxu0 %v2909_v32  ;;  %v2526_v32 = vld [vmem:[#allocation6 + $0x154] sm:$0xf0] }
  0x44   :  { %701 = vmatpush.bf16.msrb.mxu1 %v2913_v35  ;;  %v2933_v35 = vor.u32 %v2525_v18, %v2388_v17  ;;  %v2939_v53 = vor.u32 %v2526_v32, %v2396_v8  ;;  %v2520_v17 = vld [vmem:[#allocation6 + $0x12c] sm:$0xf]  ;;  %v2382_v18 = vld [vmem:[#allocation6 + $0x138] sm:$0xf0] }
  0x45   :  { %714 = vmatpush.bf16.msrb.mxu2 %v2915_v36  ;;  %v2380_v36 = vld [vmem:[#allocation6 + $0x128] sm:$0xf]  ;;  %v2954_v47 = vor.u32 %v2520_v17, %v2382_v18  ;;  %v3653_v18 = vld [vmem:[#allocation17_spill] sm:$0xff] }
  0x46   :  { %727 = vmatpush.bf16.msrb.mxu3 %v2918_v48  ;;  %3638 = vst [vmem:[#allocation23_spill] sm:$0xff] %v2933_v35  ;;  %v2374_v48 = vld [vmem:[#allocation6 + $0x130] sm:$0xf0] }
  0x47   :  { %689 = vmatpush.bf16.msrb.mxu0 %v2921_v2  ;;  %3640 = vst [vmem:[#allocation25_spill] sm:$0xff] %v2939_v53  ;;  %v2522_v2 = vld [vmem:[#allocation6 + $0x134] sm:$0xf0]  ;;  %v2949_v8 = vor.u32 %v2519_v57, %v2374_v48 }
  0x48   :  { %702 = vmatpush.bf16.msrb.mxu1 %v2925_v6  ;;  %v2945_v6 = vor.u32 %v2521_v56, %v2372_v54  ;;  %v2951_v32 = vor.u32 %v2522_v2, %v2380_v36  ;;  %3645 = vst [vmem:[#allocation30_spill] sm:$0xff] %v2954_v47  ;;  %v2516_v54 = vld [vmem:[#allocation6 + $0x10c] sm:$0xf]  ;;  %v2366_v56 = vld [vmem:[#allocation6 + $0x118] sm:$0xf0] }
  0x49   :  { %715 = vmatpush.bf16.msrb.mxu2 %v2927_v7  ;;  %3643 = vst [vmem:[#allocation28_spill] sm:$0xff] %v2949_v8  ;;  %v2364_v7 = vld [vmem:[#allocation6 + $0x108] sm:$0xf]  ;;  %v190_v48 = vld [vmem:[#allocation2 + $0x2] sm:$0x3]  ;;  %v2966_v57 = vor.u32 %v2516_v54, %v2366_v56  ;;  %v3657_v54 = vld [vmem:[#allocation21_spill] sm:$0xff] }
  0x4a   :  { %728 = vmatpush.bf16.msrb.mxu3 %v2930_v28  ;;  %3642 = vst [vmem:[#allocation27_spill] sm:$0xff] %v2945_v6  ;;  %v2358_v28 = vld [vmem:[#allocation6 + $0x110] sm:$0xf0]  ;;  %v524_v17 = vpack.c.bf16 %v190_v48, %v190_v48  ;;  %v3658_v56 = vld [vmem:[#allocation22_spill] sm:$0xff] }
  0x4b   :  { %690 = vmatpush.bf16.msrb.mxu0 %v2933_v35  ;;  %3644 = vst [vmem:[#allocation29_spill] sm:$0xff] %v2951_v32  ;;  %v2518_v35 = vld [vmem:[#allocation6 + $0x114] sm:$0xf0]  ;;  %v2961_v36 = vor.u32 %v2515_v43, %v2358_v28 }
  0x4c   :  { %703 = vmatpush.bf16.msrb.mxu1 %v2937_v27  ;;  %v2957_v27 = vor.u32 %v2517_v30, %v2356_v19  ;;  %v2963_v2 = vor.u32 %v2518_v35, %v2364_v7  ;;  %3649 = vst [vmem:[#allocation34_spill] sm:$0xff] %v2966_v57  ;;  %v3650_v35 = vld [vmem:[#allocation14_spill] sm:$0xff]  ;;  %v3651_v7 = vld [vmem:[#allocation15_spill] sm:$0xff]  ;;  %v3652_v28 = vld [vmem:[#allocation16_spill] sm:$0xff] }
  0x4d   :  { %716 = vmatpush.bf16.msrb.mxu2 %v2939_v53  ;;  %3647 = vst [vmem:[#allocation32_spill] sm:$0xff] %v2961_v36  ;;  %v3654_v19 = vld [vmem:[#allocation18_spill] sm:$0xff]  ;;  %v3655_v30 = vld [vmem:[#allocation19_spill] sm:$0xff]  ;;  %v3656_v43 = vld [vmem:[#allocation20_spill] sm:$0xff] }
  0x4e   :  { %729 = vmatpush.bf16.msrb.mxu3 %v2942_v58  ;;  %3646 = vst [vmem:[#allocation31_spill] sm:$0xff] %v2957_v27  ;;  %v3659_v48 = vld [vmem:[#allocation23_spill] sm:$0xff] }
  0x4f   :  { %691 = vmatpush.bf16.msrb.mxu0 %v2945_v6  ;;  %3648 = vst [vmem:[#allocation33_spill] sm:$0xff] %v2963_v2 }
  0x50   :  { %704 = vmatpush.bf16.msrb.mxu1 %v2949_v8 }
  0x51   :  { %717 = vmatpush.bf16.msrb.mxu2 %v2951_v32 }
  0x52   :  { %730 = vmatpush.bf16.msrb.mxu3 %v2954_v47 }
  0x53   :  { %692 = vmatpush.bf16.msrb.mxu0 %v2957_v27 }
  0x54   :  { %705 = vmatpush.bf16.msrb.mxu1 %v2961_v36 }
  0x55   :  { %718 = vmatpush.bf16.msrb.mxu2 %v2963_v2 }
  0x56   :  { %731 = vmatpush.bf16.msrb.mxu3 %v2966_v57  ;;  %693 = vmatmul.bf16.vlgmr.msrb.gmra.mxu0 %v524_v17 }
  0x57   :  { %786 = vmatpush.bf16.msra.mxu0 %v2780_v20  ;;  %706 = vmatmul.bf16.vlgmr.msrb.gmra.mxu1 %v524_v17 }
  0x58   :  { %799 = vmatpush.bf16.msra.mxu1 %v2782_v24  ;;  %719 = vmatmul.bf16.vlgmr.msrb.gmra.mxu2 %v524_v17 }
  0x59   :  { %732 = vmatmul.bf16.vlgmr.msrb.gmra.mxu3 %v524_v17  ;;  %812 = vmatpush.bf16.msra.mxu2 %v2784_v25  ;;  %v3660_v17 = vld [vmem:[#allocation24_spill] sm:$0xff] }
  0x5a   :  { %825 = vmatpush.bf16.msra.mxu3 %v2787_v29 }
  0x5b   :  { %787 = vmatpush.bf16.msra.mxu0 %v2791_v33 }
  0x5c   :  { %800 = vmatpush.bf16.msra.mxu1 %v2793_v34 }
  0x5d   :  { %813 = vmatpush.bf16.msra.mxu2 %v2796_v38 }
  0x5e   :  { %826 = vmatpush.bf16.msra.mxu3 %v2798_v42 }
  0x5f   :  { %788 = vmatpush.bf16.msra.mxu0 %v2801_v46 }
  0x60   :  { %801 = vmatpush.bf16.msra.mxu1 %v2805_v50 }
  0x61   :  { %814 = vmatpush.bf16.msra.mxu2 %v2807_v51 }
  0x62   :  { %827 = vmatpush.bf16.msra.mxu3 %v2810_v55 }
  0x63   :  { %789 = vmatpush.bf16.msra.mxu0 %v2813_v61 }
  0x64   :  { %802 = vmatpush.bf16.msra.mxu1 %v2817_v62 }
  0x65   :  { %815 = vmatpush.bf16.msra.mxu2 %v2819_v63 }
  0x66   :  { %828 = vmatpush.bf16.msra.mxu3 %v2822_v3 }
  0x67   :  { %790 = vmatpush.bf16.msra.mxu0 %v2825_v9 }
  0x68   :  { %803 = vmatpush.bf16.msra.mxu1 %v2829_v10 }
  0x69   :  { %816 = vmatpush.bf16.msra.mxu2 %v2831_v11 }
  0x6a   :  { %829 = vmatpush.bf16.msra.mxu3 %v2834_v15 }
  0x6b   :  { %791 = vmatpush.bf16.msra.mxu0 %v2837_v22 }
  0x6c   :  { %804 = vmatpush.bf16.msra.mxu1 %v2841_v23 }
  0x6d   :  { %817 = vmatpush.bf16.msra.mxu2 %v2843_v26 }
  0x6e   :  { %830 = vmatpush.bf16.msra.mxu3 %v2846_v31 }
  0x6f   :  { %792 = vmatpush.bf16.msra.mxu0 %v2849_v40 }
  0x70   :  { %805 = vmatpush.bf16.msra.mxu1 %v2853_v44 }
  0x71   :  { %818 = vmatpush.bf16.msra.mxu2 %v2855_v45 }
  0x72   :  { %831 = vmatpush.bf16.msra.mxu3 %v2858_v52 }
  0x73   :  { %793 = vmatpush.bf16.msra.mxu0 %v2861_v60 }
  0x74   :  { %806 = vmatpush.bf16.msra.mxu1 %v2865_v4 }
  0x75   :  { %819 = vmatpush.bf16.msra.mxu2 %v2867_v5 }
  0x76   :  { %832 = vmatpush.bf16.msra.mxu3 %v2870_v12 }
  0x77   :  { %887 = vmatpush.bf16.msrb.mxu0 %v2872_v13 }
  0x78   :  { %900 = vmatpush.bf16.msrb.mxu1 %v2874_v14 }
  0x79   :  { %913 = vmatpush.bf16.msrb.mxu2 %v2876_v16 }
  0x7a   :  { %926 = vmatpush.bf16.msrb.mxu3 %v2879_v21 }
  0x7b   :  { %888 = vmatpush.bf16.msrb.mxu0 %v2885_v37 }
  0x7c   :  { %901 = vmatpush.bf16.msrb.mxu1 %v2889_v39 }
  0x7d   :  { %914 = vmatpush.bf16.msrb.mxu2 %v2891_v41 }
  0x7e   :  { %927 = vmatpush.bf16.msrb.mxu3 %v2894_v49 }
  0x7f   :  { %889 = vmatpush.bf16.msrb.mxu0 %v2897_v59 }
  0x80   :  { %902 = vmatpush.bf16.msrb.mxu1 %v2901_v0  ;;  %v188_v0 = vld [vmem:[#allocation3] sm:$0x3] }
  0x81   :  { %915 = vmatpush.bf16.msrb.mxu2 %v2903_v1 }
  0x82   :  { %928 = vmatpush.bf16.msrb.mxu3 %v3650_v35  ;;  %v3042_v35 = vld [vmem:[#allocation5 + $0x18] sm:$0xff]  }
  0x83   :  { %890 = vmatpush.bf16.msrb.mxu0 %v3651_v7  ;;  %3662 = vst [vmem:[#allocation36_spill] sm:$0xff] %v3042_v35 }
  0x84   :  { %903 = vmatpush.bf16.msrb.mxu1 %v3652_v28 }
  0x85   :  { %916 = vmatpush.bf16.msrb.mxu2 %v3653_v18 }
  0x86   :  { %929 = vmatpush.bf16.msrb.mxu3 %v3654_v19 }
  0x87   :  { %891 = vmatpush.bf16.msrb.mxu0 %v3655_v30 }
  0x88   :  { %904 = vmatpush.bf16.msrb.mxu1 %v3656_v43 }
  0x89   :  { %917 = vmatpush.bf16.msrb.mxu2 %v3657_v54 }
  0x8a   :  { %930 = vmatpush.bf16.msrb.mxu3 %v3658_v56 }
  0x8b   :  { %892 = vmatpush.bf16.msrb.mxu0 %v3659_v48 }
  0x8c   :  { %905 = vmatpush.bf16.msrb.mxu1 %v3660_v17 }
  0x8d   :  { %918 = vmatpush.bf16.msrb.mxu2 %v2939_v53 }
  0x8e   :  { %931 = vmatpush.bf16.msrb.mxu3 %v2942_v58  ;;  %v3036_v58 = vld [vmem:[#allocation4] sm:$0xff]  }
  0x8f   :  { %893 = vmatpush.bf16.msrb.mxu0 %v2945_v6  ;;  %3661 = vst [vmem:[#allocation35_spill] sm:$0xff] %v3036_v58 }
  0x90   :  { %906 = vmatpush.bf16.msrb.mxu1 %v2949_v8 }
  0x91   :  { %919 = vmatpush.bf16.msrb.mxu2 %v2951_v32 }
  0x92   :  { %932 = vmatpush.bf16.msrb.mxu3 %v2954_v47  ;;  %v226_v47 = vunpack.c.l.bf16 %v3036_v58 }
  0x93   :  { %894 = vmatpush.bf16.msrb.mxu0 %v2957_v27 }
  0x94   :  { %907 = vmatpush.bf16.msrb.mxu1 %v2961_v36 }
  0x95   :  { %920 = vmatpush.bf16.msrb.mxu2 %v2963_v2 }
  0x96   :  { %933 = vmatpush.bf16.msrb.mxu3 %v2966_v57 }
  0xb3   :  { %v397_v48 = vpop.f32.mrf.mxu0 }
  0xb4   :  { %v410_v17 = vpop.f32.mrf.mxu1 }
  0xb5   :  { %v444_v53 = vrot.slane %v410_v17, 6 }
  0xb7   :  { %v448_v27 = vsel %vm447_vm0, %v397_v48, %v444_v53 }
  0xbb   :  { %v423_v6 = vpop.f32.mrf.mxu2  ;;  %v399_v54 = vpop.f32.mrf.mxu0 }
  0xbc   :  { %v445_v8 = vrot.slane %v423_v6, 4  ;;  %v436_v56 = vpop.f32.mrf.mxu3  ;;  %v412_v36 = vpop.f32.mrf.mxu1 }
  0xbd   :  { %v446_v32 = vrot.slane %v436_v56, 2 }
  0xbf   :  { %v450_v2 = vsel %vm449_vm1, %v445_v8, %v446_v32 }
  0xc0   :  { %v452_v57 = vsel %vm451_vm2, %v448_v27, %v450_v2 }
  0xc1   :  { %v454_v17 = vadd.f32 %v452_v57, %v226_v47 }
  0xc3   :  { %v455_v43 = vsub.f32 0.0, %v454_v17  ;;  %v425_v30 = vpop.f32.mrf.mxu2  ;;  %v475_v36 = vrot.slane %v454_v17, 6 }
  0xc4   :  { %v438_v19 = vpop.f32.mrf.mxu3  ;;  %v523_v30 = vunpack.c.h.bf16 %v3042_v35 }
  0xc5   :  { %v456_v18 = vmul.f32 1.442695, %v455_v43 }
  0xc7   :  { %2551 = vpow2.f32 %v456_v18 }
  0xcd   :  { %v2552_v6 = vpop.eup %2551 }
  0xce   :  { %v458_v28 = vadd.f32 1.0, %v2552_v6 }
  0xd0   :  { %2553 = vrcp.f32 %v458_v28  ;;  %v470_v8 = vand.u32 2147483648, %v458_v28  ;;  %vm464_vm3 = vweird.f32 %v458_v28  ;;  %v468_v47 = vand.u32 2147483647, %v458_v28 }
  0xd1   :  { %2555 = vtanh.f32 %v475_v36 }
  0xd2   :  { %vm469_vm6 = vcmp.eq.f32.partialorder %v468_v47, 8.507059e+37 }
  0xd3   :  { %v694_v56 = vpop.f32.mrf.mxu0 }
  0xd4   :  { %v707_v58 = vpop.f32.mrf.mxu1 }
  0xd5   :  { %v741_v48 = vrot.slane %v707_v58, 6  ;;  %v471_v58 = vor.u32 1.1754944e-38, %v470_v8 }
  0xd6   :  { %v2554_v7 = vpop.eup %2553 }
  0xd7   :  { %v460_v53 = vmul.f32 %v2554_v7, %v458_v28  ;;  %vm465_vm4 = vweird.f32 %v2554_v7  ;;  %v744_v19 = vsel %vm447_vm0, %v694_v56, %v741_v48  ;;  %v2556_v35 = vpop.eup %2555 }
  0xd8   :  { %vm466_vm5 = vmor %vm464_vm3, %vm465_vm4 }
  0xd9   :  { %v461_v27 = vsub.f32 1.0, %v460_v53 }
  0xdb   :  { %v720_v32 = vpop.f32.mrf.mxu2  ;;  %v696_v18 = vpop.f32.mrf.mxu0  ;;  %v462_v6 = vmul.f32 %v2554_v7, %v461_v27 }
  0xdc   :  { %v742_v2 = vrot.slane %v720_v32, 4  ;;  %v733_v57 = vpop.f32.mrf.mxu3  ;;  %v709_v54 = vpop.f32.mrf.mxu1 }
  0xdd   :  { %v743_v43 = vrot.slane %v733_v57, 2  ;;  %v463_v53 = vadd.f32 %v2554_v7, %v462_v6 }
  0xdf   :  { %v745_v17 = vsel %vm449_vm1, %v742_v2, %v743_v43  ;;  %v467_v32 = vsel %vm466_vm5, %v2554_v7, %v463_v53 }
  0xe0   :  { %v746_v1 = vsel %vm451_vm2, %v744_v19, %v745_v17  ;;  %v472_v18 = vsel %vm469_vm6, %v471_v58, %v467_v32 }
  0xe1   :  { %v748_v28 = vadd.f32 %v746_v1, %v523_v30  ;;  %v479_v48 = vrot.slane %v472_v18, 2  ;;  %v482_v36 = vmul.f32 %v2556_v35, %v472_v18  ;;  %v485_v19 = vrot.slane %v472_v18, 4  ;;  %v192_v18 = vld [vmem:[#allocation3 + $0x2] sm:$0x3] }
  0xe3   :  { %v749_v59 = vsub.f32 0.0, %v748_v28  ;;  %v722_v56 = vpop.f32.mrf.mxu2  ;;  %v481_v27 = vmul.f32 %v479_v48, %v188_v0  ;;  %v769_v0 = vrot.slane %v748_v28, 6 }
  0xe4   :  { %v735_v57 = vpop.f32.mrf.mxu3 }
  0xe5   :  { %v750_v54 = vmul.f32 1.442695, %v749_v59  ;;  %v3048_v8 = vadd.f32 %v482_v36, %v481_v27 }
  0xe7   :  { %2557 = vpow2.f32 %v750_v54 }
  0xe8   :  { %2559 = vtanh.f32 %v3048_v8 }
  0xed   :  { %v2558_v47 = vpop.eup %2557 }
  0xee   :  { %v752_v2 = vadd.f32 1.0, %v2558_v47  ;;  %v2560_v1 = vpop.eup %2559 }
  0xef   :  { %v487_v7 = vmul.f32 %v2560_v1, %v485_v19 }
  0xf0   :  { %2561 = vrcp.f32 %v752_v2  ;;  %v764_v6 = vand.u32 2147483648, %v752_v2  ;;  %v762_v17 = vand.u32 2147483647, %v752_v2  ;;  %vm758_vm8 = vweird.f32 %v752_v2 }
  0xf1   :  { %v785_v30 = vpack.c.bf16 %v487_v7, %v487_v7  ;;  %2563 = vtanh.f32 %v769_v0  ;;  %v3663_v7 = vld [vmem:[#allocation11_spill] sm:$0xff] }
  0xf2   :  { %v765_v32 = vor.u32 1.1754944e-38, %v764_v6  ;;  %vm763_vm10 = vcmp.eq.f32.partialorder %v762_v17, 8.507059e+37  ;;  %v3667_v0 = vld [vmem:[#allocation15_spill] sm:$0xff]  ;;  %v3669_v6 = vld [vmem:[#allocation17_spill] sm:$0xff] }
  0xf3   :  { %794 = vmatmul.bf16.vlgmr.msra.gmra.mxu0 %v785_v30  ;;  %807 = vmatmul.bf16.vlgmr.msra.gmra.mxu1 %v785_v30  ;;  %v3671_v17 = vld [vmem:[#allocation19_spill] sm:$0xff] }
  0xf4   :  { %820 = vmatmul.bf16.vlgmr.msra.gmra.mxu2 %v785_v30  ;;  %833 = vmatmul.bf16.vlgmr.msra.gmra.mxu3 %v785_v30  ;;  %v3664_v30 = vld [vmem:[#allocation12_spill] sm:$0xff] }
  0xf5   :  { %988 = vmatpush.bf16.msra.mxu0 %v2780_v20  ;;  %1001 = vmatpush.bf16.msra.mxu1 %v2782_v24 }
  0xf6   :  { %v2562_v43 = vpop.eup %2561  ;;  %1014 = vmatpush.bf16.msra.mxu2 %v2784_v25  ;;  %1027 = vmatpush.bf16.msra.mxu3 %v2787_v29 }
  0xf7   :  { %v754_v59 = vmul.f32 %v2562_v43, %v752_v2  ;;  %vm759_vm7 = vweird.f32 %v2562_v43  ;;  %v2564_v57 = vpop.eup %2563 }
  0xf8   :  { %vm760_vm9 = vmor %vm758_vm8, %vm759_vm7 }
  0xf9   :  { %v755_v35 = vsub.f32 1.0, %v754_v59  ;;  %989 = vmatpush.bf16.msra.mxu0 %v2791_v33  ;;  %1002 = vmatpush.bf16.msra.mxu1 %v2793_v34  ;;  %v3666_v59 = vld [vmem:[#allocation14_spill] sm:$0xff] }
  0xfa   :  { %1015 = vmatpush.bf16.msra.mxu2 %v2796_v38  ;;  %1028 = vmatpush.bf16.msra.mxu3 %v2798_v42 }
  0xfb   :  { %v756_v58 = vmul.f32 %v2562_v43, %v755_v35  ;;  %v3668_v35 = vld [vmem:[#allocation16_spill] sm:$0xff] }
  0xfd   :  { %v757_v53 = vadd.f32 %v2562_v43, %v756_v58  ;;  %990 = vmatpush.bf16.msra.mxu0 %v2801_v46  ;;  %1003 = vmatpush.bf16.msra.mxu1 %v2805_v50  ;;  %v3670_v58 = vld [vmem:[#allocation18_spill] sm:$0xff] }
  0xfe   :  { %1016 = vmatpush.bf16.msra.mxu2 %v2807_v51  ;;  %1029 = vmatpush.bf16.msra.mxu3 %v2810_v55 }
  0xff   :  { %v761_v28 = vsel %vm760_vm9, %v2562_v43, %v757_v53  ;;  %v3665_v43 = vld [vmem:[#allocation13_spill] sm:$0xff]  ;;  %v3672_v53 = vld [vmem:[#allocation20_spill] sm:$0xff] }
 0x100   :  { %v766_v56 = vsel %vm763_vm10, %v765_v32, %v761_v28  ;;  %v3673_v32 = vld [vmem:[#allocation21_spill] sm:$0xff]  ;;  %v3674_v28 = vld [vmem:[#allocation22_spill] sm:$0xff] }
 0x101   :  { %v773_v48 = vrot.slane %v766_v56, 2  ;;  %991 = vmatpush.bf16.msra.mxu0 %v2813_v61  ;;  %1004 = vmatpush.bf16.msra.mxu1 %v2817_v62  ;;  %v776_v27 = vmul.f32 %v2564_v57, %v766_v56  ;;  %v779_v47 = vrot.slane %v766_v56, 4  ;;  %v3676_v56 = vld [vmem:[#allocation24_spill] sm:$0xff]  ;;  %v3678_v57 = vld [vmem:[#allocation26_spill] sm:$0xff] }
 0x102   :  { %1017 = vmatpush.bf16.msra.mxu2 %v2819_v63  ;;  %1030 = vmatpush.bf16.msra.mxu3 %v2822_v3 }
 0x103   :  { %v775_v54 = vmul.f32 %v773_v48, %v192_v18  ;;  %v3675_v18 = vld [vmem:[#allocation23_spill] sm:$0xff]  ;;  %v3677_v48 = vld [vmem:[#allocation25_spill] sm:$0xff] }
 0x105   :  { %v3067_v36 = vadd.f32 %v776_v27, %v775_v54  ;;  %992 = vmatpush.bf16.msra.mxu0 %v2825_v9  ;;  %1005 = vmatpush.bf16.msra.mxu1 %v2829_v10  ;;  %v3679_v54 = vld [vmem:[#allocation27_spill] sm:$0xff]  ;;  %v3680_v27 = vld [vmem:[#allocation28_spill] sm:$0xff] }
 0x106   :  { %1018 = vmatpush.bf16.msra.mxu2 %v2831_v11  ;;  %1031 = vmatpush.bf16.msra.mxu3 %v2834_v15 }
 0x107   :  { %2565 = vtanh.f32 %v3067_v36 }
 0x109   :  { %993 = vmatpush.bf16.msra.mxu0 %v2837_v22  ;;  %1006 = vmatpush.bf16.msra.mxu1 %v2841_v23 }
 0x10a   :  { %1019 = vmatpush.bf16.msra.mxu2 %v2843_v26  ;;  %1032 = vmatpush.bf16.msra.mxu3 %v2846_v31 }
 0x10d   :  { %v2566_v2 = vpop.eup %2565  ;;  %994 = vmatpush.bf16.msra.mxu0 %v2849_v40  ;;  %1007 = vmatpush.bf16.msra.mxu1 %v2853_v44 }
 0x10e   :  { %v781_v19 = vmul.f32 %v2566_v2, %v779_v47  ;;  %1020 = vmatpush.bf16.msra.mxu2 %v2855_v45  ;;  %1033 = vmatpush.bf16.msra.mxu3 %v2858_v52  ;;  %v3681_v47 = vld [vmem:[#allocation29_spill] sm:$0xff]  ;;  %v3682_v2 = vld [vmem:[#allocation30_spill] sm:$0xff] }
 0x110   :  { %v886_v1 = vpack.c.bf16 %v781_v19, %v781_v19  ;;  %v3683_v19 = vld [vmem:[#allocation31_spill] sm:$0xff] }
 0x111   :  { %995 = vmatpush.bf16.msra.mxu0 %v2861_v60  ;;  %1008 = vmatpush.bf16.msra.mxu1 %v2865_v4 }
 0x112   :  { %895 = vmatmul.bf16.vlgmr.msrb.gmra.mxu0 %v886_v1  ;;  %908 = vmatmul.bf16.vlgmr.msrb.gmra.mxu1 %v886_v1 }
 0x113   :  { %921 = vmatmul.bf16.vlgmr.msrb.gmra.mxu2 %v886_v1  ;;  %934 = vmatmul.bf16.vlgmr.msrb.gmra.mxu3 %v886_v1  ;;  %v3684_v1 = vld [vmem:[#allocation32_spill] sm:$0xff] }
 0x114   :  { %1021 = vmatpush.bf16.msra.mxu2 %v2867_v5  ;;  %1034 = vmatpush.bf16.msra.mxu3 %v2870_v12 }
 0x115   :  { %1089 = vmatpush.bf16.msrb.mxu0 %v2872_v13  ;;  %1102 = vmatpush.bf16.msrb.mxu1 %v2874_v14 }
 0x118   :  { %1115 = vmatpush.bf16.msrb.mxu2 %v2876_v16  ;;  %1128 = vmatpush.bf16.msrb.mxu3 %v2879_v21 }
 0x119   :  { %1090 = vmatpush.bf16.msrb.mxu0 %v2885_v37  ;;  %1103 = vmatpush.bf16.msrb.mxu1 %v2889_v39 }
 0x11c   :  { %1116 = vmatpush.bf16.msrb.mxu2 %v2891_v41  ;;  %1129 = vmatpush.bf16.msrb.mxu3 %v2894_v49 }
 0x11d   :  { %1091 = vmatpush.bf16.msrb.mxu0 %v3663_v7  ;;  %1104 = vmatpush.bf16.msrb.mxu1 %v3664_v30 }
 0x120   :  { %1117 = vmatpush.bf16.msrb.mxu2 %v3665_v43  ;;  %1130 = vmatpush.bf16.msrb.mxu3 %v3666_v59 }
 0x121   :  { %1092 = vmatpush.bf16.msrb.mxu0 %v3667_v0  ;;  %1105 = vmatpush.bf16.msrb.mxu1 %v3668_v35 }
 0x124   :  { %1118 = vmatpush.bf16.msrb.mxu2 %v3669_v6  ;;  %1131 = vmatpush.bf16.msrb.mxu3 %v3670_v58 }
 0x125   :  { %1093 = vmatpush.bf16.msrb.mxu0 %v3671_v17  ;;  %1106 = vmatpush.bf16.msrb.mxu1 %v3672_v53  ;;  %v3687_v17 = vld [vmem:[#allocation35_spill] sm:$0xff] }
 0x128   :  { %1119 = vmatpush.bf16.msrb.mxu2 %v3673_v32  ;;  %1132 = vmatpush.bf16.msrb.mxu3 %v3674_v28  ;;  %v3685_v28 = vld [vmem:[#allocation33_spill] sm:$0xff] }
 0x129   :  { %1094 = vmatpush.bf16.msrb.mxu0 %v3675_v18  ;;  %1107 = vmatpush.bf16.msrb.mxu1 %v3676_v56  ;;  %v3686_v18 = vld [vmem:[#allocation34_spill] sm:$0xff] }
 0x12c   :  { %1120 = vmatpush.bf16.msrb.mxu2 %v3677_v48  ;;  %1133 = vmatpush.bf16.msrb.mxu3 %v3678_v57 }
 0x12d   :  { %1095 = vmatpush.bf16.msrb.mxu0 %v3679_v54  ;;  %1108 = vmatpush.bf16.msrb.mxu1 %v3680_v27  ;;  %v784_v27 = vunpack.c.h.bf16 %v3687_v17 }
 0x130   :  { %1121 = vmatpush.bf16.msrb.mxu2 %v3681_v47  ;;  %1134 = vmatpush.bf16.msrb.mxu3 %v3682_v2 }
 0x131   :  { %1096 = vmatpush.bf16.msrb.mxu0 %v3683_v19  ;;  %1109 = vmatpush.bf16.msrb.mxu1 %v3684_v1 }
 0x134   :  { %1122 = vmatpush.bf16.msrb.mxu2 %v3685_v28  ;;  %1135 = vmatpush.bf16.msrb.mxu3 %v3686_v18 }
 0x170   :  { %v795_v56 = vpop.f32.mrf.mxu0  ;;  %v808_v48 = vpop.f32.mrf.mxu1 }
 0x171   :  { %v842_v32 = vrot.slane %v808_v48, 6 }
 0x173   :  { %v845_v2 = vsel %vm447_vm0, %v795_v56, %v842_v32 }
 0x177   :  { %v821_v57 = vpop.f32.mrf.mxu2  ;;  %v834_v53 = vpop.f32.mrf.mxu3 }
 0x178   :  { %v843_v54 = vrot.slane %v821_v57, 4  ;;  %v844_v58 = vrot.slane %v834_v53, 2  ;;  %v797_v47 = vpop.f32.mrf.mxu0  ;;  %v810_v6 = vpop.f32.mrf.mxu1 }
 0x17a   :  { %v846_v19 = vsel %vm449_vm1, %v843_v54, %v844_v58  ;;  %v3688_v58 = vld [vmem:[#allocation36_spill] sm:$0xff] }
 0x17b   :  { %v847_v1 = vsel %vm451_vm2, %v845_v2, %v846_v19  ;;  %v885_v54 = vunpack.c.l.bf16 %v3688_v58 }
 0x17c   :  { %v849_v28 = vadd.f32 %v847_v1, %v784_v27 }
 0x17e   :  { %v850_v35 = vsub.f32 0.0, %v849_v28  ;;  %v870_v6 = vrot.slane %v849_v28, 6 }
 0x17f   :  { %v823_v18 = vpop.f32.mrf.mxu2  ;;  %v836_v0 = vpop.f32.mrf.mxu3 }
 0x180   :  { %v851_v59 = vmul.f32 1.442695, %v850_v35 }
 0x182   :  { %2567 = vpow2.f32 %v851_v59 }
 0x188   :  { %v2568_v48 = vpop.eup %2567 }
 0x189   :  { %v853_v43 = vadd.f32 1.0, %v2568_v48 }
 0x18b   :  { %2569 = vrcp.f32 %v853_v43  ;;  %v863_v27 = vand.u32 2147483647, %v853_v43  ;;  %v865_v19 = vand.u32 2147483648, %v853_v43  ;;  %vm859_vm12 = vweird.f32 %v853_v43 }
 0x18c   :  { %2571 = vtanh.f32 %v870_v6 }
 0x18d   :  { %vm864_vm14 = vcmp.eq.f32.partialorder %v863_v27, 8.507059e+37 }
 0x18f   :  { %v896_v57 = vpop.f32.mrf.mxu0  ;;  %v909_v17 = vpop.f32.mrf.mxu1 }
 0x190   :  { %v943_v30 = vrot.slane %v909_v17, 6 }
 0x191   :  { %v2570_v53 = vpop.eup %2569 }
 0x192   :  { %v855_v47 = vmul.f32 %v2570_v53, %v853_v43  ;;  %vm860_vm11 = vweird.f32 %v2570_v53  ;;  %v946_v48 = vsel %vm447_vm0, %v896_v57, %v943_v30 }
 0x193   :  { %vm861_vm13 = vmor %vm859_vm12, %vm860_vm11 }
 0x194   :  { %v856_v32 = vsub.f32 1.0, %v855_v47  ;;  %v866_v47 = vor.u32 1.1754944e-38, %v865_v19 }
 0x196   :  { %v922_v56 = vpop.f32.mrf.mxu2  ;;  %v935_v2 = vpop.f32.mrf.mxu3  ;;  %v857_v1 = vmul.f32 %v2570_v53, %v856_v32 }
 0x197   :  { %v944_v18 = vrot.slane %v922_v56, 4  ;;  %v945_v0 = vrot.slane %v935_v2, 2  ;;  %v898_v35 = vpop.f32.mrf.mxu0  ;;  %v911_v59 = vpop.f32.mrf.mxu1 }
 0x198   :  { %v858_v28 = vadd.f32 %v2570_v53, %v857_v1  ;;  %v2572_v59 = vpop.eup %2571 }
 0x199   :  { %v947_v7 = vsel %vm449_vm1, %v944_v18, %v945_v0 }
 0x19a   :  { %v948_v17 = vsel %vm451_vm2, %v946_v48, %v947_v7  ;;  %v862_v49 = vsel %vm861_vm13, %v2570_v53, %v858_v28 }
 0x19b   :  { %v950_v58 = vadd.f32 %v948_v17, %v885_v54  ;;  %v867_v56 = vsel %vm864_vm14, %v866_v47, %v862_v49 }
 0x19c   :  { %v874_v35 = vrot.slane %v867_v56, 2  ;;  %v877_v57 = vmul.f32 %v2572_v59, %v867_v56  ;;  %v880_v54 = vrot.slane %v867_v56, 4 }
 0x19d   :  { %v951_v2 = vsub.f32 0.0, %v950_v58  ;;  %v971_v19 = vrot.slane %v950_v58, 6 }
 0x19e   :  { %v924_v32 = vpop.f32.mrf.mxu2  ;;  %v937_v41 = vpop.f32.mrf.mxu3  ;;  %v876_v30 = vmul.f32 %v874_v35, %v3048_v8 }
 0x19f   :  { %v952_v6 = vmul.f32 1.442695, %v951_v2 }
 0x1a0   :  { %v3127_v18 = vadd.f32 %v877_v57, %v876_v30 }
 0x1a1   :  { %2573 = vpow2.f32 %v952_v6 }
 0x1a2   :  { %2575 = vtanh.f32 %v3127_v18 }
 0x1a7   :  { %v2574_v7 = vpop.eup %2573 }
 0x1a8   :  { %v954_v43 = vadd.f32 1.0, %v2574_v7  ;;  %v2576_v53 = vpop.eup %2575 }
 0x1a9   :  { %v882_v49 = vmul.f32 %v2576_v53, %v880_v54  ;;  %v3690_v54 = vld [vmem:[#allocation10_spill] sm:$0xff]  ;;  %v3691_v53 = vld [vmem:[#allocation11_spill] sm:$0xff] }
 0x1aa   :  { %2577 = vrcp.f32 %v954_v43  ;;  %v966_v1 = vand.u32 2147483648, %v954_v43  ;;  %v964_v28 = vand.u32 2147483647, %v954_v43  ;;  %vm960_vm3 = vweird.f32 %v954_v43 }
 0x1ab   :  { %v987_v27 = vpack.c.bf16 %v882_v49, %v882_v49  ;;  %2579 = vtanh.f32 %v971_v19  ;;  %v3692_v49 = vld [vmem:[#allocation12_spill] sm:$0xff] }
 0x1ac   :  { %v967_v47 = vor.u32 1.1754944e-38, %v966_v1  ;;  %vm965_vm5 = vcmp.eq.f32.partialorder %v964_v28, 8.507059e+37  ;;  %v3696_v19 = vld [vmem:[#allocation16_spill] sm:$0xff]  ;;  %v3698_v1 = vld [vmem:[#allocation18_spill] sm:$0xff] }
 0x1ad   :  { %996 = vmatmul.bf16.vlgmr.msra.gmra.mxu0 %v987_v27  ;;  %1009 = vmatmul.bf16.vlgmr.msra.gmra.mxu1 %v987_v27  ;;  %v3700_v28 = vld [vmem:[#allocation20_spill] sm:$0xff] }
 0x1ae   :  { %1022 = vmatmul.bf16.vlgmr.msra.gmra.mxu2 %v987_v27  ;;  %1035 = vmatmul.bf16.vlgmr.msra.gmra.mxu3 %v987_v27  ;;  %v3693_v27 = vld [vmem:[#allocation13_spill] sm:$0xff] }
 0x1af   :  { %1190 = vmatpush.bf16.msra.mxu0 %v2780_v20  ;;  %1203 = vmatpush.bf16.msra.mxu1 %v2782_v24 }
 0x1b0   :  { %v2578_v41 = vpop.eup %2577  ;;  %1216 = vmatpush.bf16.msra.mxu2 %v2784_v25  ;;  %1229 = vmatpush.bf16.msra.mxu3 %v2787_v29 }
 0x1b1   :  { %v956_v8 = vmul.f32 %v2578_v41, %v954_v43  ;;  %vm961_vm15 = vweird.f32 %v2578_v41  ;;  %v2580_v35 = vpop.eup %2579  ;;  %v3689_v43 = vld [vmem:[#allocation9_spill] sm:$0xff] }
 0x1b2   :  { %vm962_vm4 = vmor %vm960_vm3, %vm961_vm15 }
 0x1b3   :  { %v957_v0 = vsub.f32 1.0, %v956_v8  ;;  %1191 = vmatpush.bf16.msra.mxu0 %v2791_v33  ;;  %1204 = vmatpush.bf16.msra.mxu1 %v2793_v34  ;;  %v3695_v8 = vld [vmem:[#allocation15_spill] sm:$0xff] }
 0x1b4   :  { %1217 = vmatpush.bf16.msra.mxu2 %v2796_v38  ;;  %1230 = vmatpush.bf16.msra.mxu3 %v2798_v42 }
 0x1b5   :  { %v958_v48 = vmul.f32 %v2578_v41, %v957_v0  ;;  %v3697_v0 = vld [vmem:[#allocation17_spill] sm:$0xff] }
 0x1b7   :  { %v959_v17 = vadd.f32 %v2578_v41, %v958_v48  ;;  %1192 = vmatpush.bf16.msra.mxu0 %v2801_v46  ;;  %1205 = vmatpush.bf16.msra.mxu1 %v2805_v50  ;;  %v3699_v48 = vld [vmem:[#allocation19_spill] sm:$0xff] }
 0x1b8   :  { %1218 = vmatpush.bf16.msra.mxu2 %v2807_v51  ;;  %1231 = vmatpush.bf16.msra.mxu3 %v2810_v55 }
 0x1b9   :  { %v963_v58 = vsel %vm962_vm4, %v2578_v41, %v959_v17  ;;  %v3694_v41 = vld [vmem:[#allocation14_spill] sm:$0xff]  ;;  %v3701_v17 = vld [vmem:[#allocation21_spill] sm:$0xff] }
 0x1ba   :  { %v968_v56 = vsel %vm965_vm5, %v967_v47, %v963_v58  ;;  %v3702_v47 = vld [vmem:[#allocation22_spill] sm:$0xff]  ;;  %v3703_v58 = vld [vmem:[#allocation23_spill] sm:$0xff] }
 0x1bb   :  { %v975_v2 = vrot.slane %v968_v56, 2  ;;  %1193 = vmatpush.bf16.msra.mxu0 %v2813_v61  ;;  %1206 = vmatpush.bf16.msra.mxu1 %v2817_v62  ;;  %v978_v32 = vmul.f32 %v2580_v35, %v968_v56  ;;  %v3706_v35 = vld [vmem:[#allocation26_spill] sm:$0xff] }
 0x1bc   :  { %1219 = vmatpush.bf16.msra.mxu2 %v2819_v63  ;;  %1232 = vmatpush.bf16.msra.mxu3 %v2822_v3 }
 0x1bd   :  { %v977_v59 = vmul.f32 %v975_v2, %v3067_v36  ;;  %v981_v36 = vrot.slane %v968_v56, 4  ;;  %v3704_v56 = vld [vmem:[#allocation24_spill] sm:$0xff]  ;;  %v3705_v2 = vld [vmem:[#allocation25_spill] sm:$0xff] }
 0x1bf   :  { %v3147_v6 = vadd.f32 %v978_v32, %v977_v59  ;;  %1194 = vmatpush.bf16.msra.mxu0 %v2825_v9  ;;  %1207 = vmatpush.bf16.msra.mxu1 %v2829_v10  ;;  %v3707_v59 = vld [vmem:[#allocation27_spill] sm:$0xff]  ;;  %v3708_v32 = vld [vmem:[#allocation28_spill] sm:$0xff] }
 0x1c0   :  { %1220 = vmatpush.bf16.msra.mxu2 %v2831_v11  ;;  %1233 = vmatpush.bf16.msra.mxu3 %v2834_v15 }
 0x1c1   :  { %2581 = vtanh.f32 %v3147_v6 }
 0x1c3   :  { %1195 = vmatpush.bf16.msra.mxu0 %v2837_v22  ;;  %1208 = vmatpush.bf16.msra.mxu1 %v2841_v23 }
 0x1c4   :  { %1221 = vmatpush.bf16.msra.mxu2 %v2843_v26  ;;  %1234 = vmatpush.bf16.msra.mxu3 %v2846_v31 }
 0x1c7   :  { %v2582_v30 = vpop.eup %2581  ;;  %1196 = vmatpush.bf16.msra.mxu0 %v2849_v40  ;;  %1209 = vmatpush.bf16.msra.mxu1 %v2853_v44 }
 0x1c8   :  { %v983_v57 = vmul.f32 %v2582_v30, %v981_v36  ;;  %1222 = vmatpush.bf16.msra.mxu2 %v2855_v45  ;;  %1235 = vmatpush.bf16.msra.mxu3 %v2858_v52  ;;  %v3709_v36 = vld [vmem:[#allocation29_spill] sm:$0xff]  ;;  %v3710_v30 = vld [vmem:[#allocation30_spill] sm:$0xff] }
 0x1ca   :  { %v1088_v7 = vpack.c.bf16 %v983_v57, %v983_v57  ;;  %v3711_v57 = vld [vmem:[#allocation31_spill] sm:$0xff] }
 0x1cb   :  { %1197 = vmatpush.bf16.msra.mxu0 %v2861_v60  ;;  %1210 = vmatpush.bf16.msra.mxu1 %v2865_v4 }
 0x1cc   :  { %1097 = vmatmul.bf16.vlgmr.msrb.gmra.mxu0 %v1088_v7  ;;  %1110 = vmatmul.bf16.vlgmr.msrb.gmra.mxu1 %v1088_v7 }
 0x1cd   :  { %1123 = vmatmul.bf16.vlgmr.msrb.gmra.mxu2 %v1088_v7  ;;  %1136 = vmatmul.bf16.vlgmr.msrb.gmra.mxu3 %v1088_v7  ;;  %v3712_v7 = vld [vmem:[#allocation32_spill] sm:$0xff] }
 0x1ce   :  { %1223 = vmatpush.bf16.msra.mxu2 %v2867_v5  ;;  %1236 = vmatpush.bf16.msra.mxu3 %v2870_v12 }
 0x1cf   :  { %1291 = vmatpush.bf16.msrb.mxu0 %v2872_v13  ;;  %1304 = vmatpush.bf16.msrb.mxu1 %v2874_v14 }
 0x1d2   :  { %1317 = vmatpush.bf16.msrb.mxu2 %v2876_v16  ;;  %1330 = vmatpush.bf16.msrb.mxu3 %v2879_v21 }
 0x1d3   :  { %1292 = vmatpush.bf16.msrb.mxu0 %v2885_v37  ;;  %1305 = vmatpush.bf16.msrb.mxu1 %v2889_v39 }
 0x1d6   :  { %1318 = vmatpush.bf16.msrb.mxu2 %v3689_v43  ;;  %1331 = vmatpush.bf16.msrb.mxu3 %v3690_v54 }
 0x1d7   :  { %1293 = vmatpush.bf16.msrb.mxu0 %v3691_v53  ;;  %1306 = vmatpush.bf16.msrb.mxu1 %v3692_v49 }
 0x1da   :  { %1319 = vmatpush.bf16.msrb.mxu2 %v3693_v27  ;;  %1332 = vmatpush.bf16.msrb.mxu3 %v3694_v41 }
 0x1db   :  { %1294 = vmatpush.bf16.msrb.mxu0 %v3695_v8  ;;  %1307 = vmatpush.bf16.msrb.mxu1 %v3696_v19 }
 0x1de   :  { %1320 = vmatpush.bf16.msrb.mxu2 %v3697_v0  ;;  %1333 = vmatpush.bf16.msrb.mxu3 %v3698_v1 }
 0x1df   :  { %1295 = vmatpush.bf16.msrb.mxu0 %v3699_v48  ;;  %1308 = vmatpush.bf16.msrb.mxu1 %v3700_v28 }
 0x1e2   :  { %1321 = vmatpush.bf16.msrb.mxu2 %v3701_v17  ;;  %1334 = vmatpush.bf16.msrb.mxu3 %v3702_v47  ;;  %v3713_v47 = vld [vmem:[#allocation33_spill] sm:$0xff]  ;;  %v3198_v17 = vld [vmem:[#allocation4 + $0x8] sm:$0xff]  }
 0x1e3   :  { %1296 = vmatpush.bf16.msrb.mxu0 %v3703_v58  ;;  %1309 = vmatpush.bf16.msrb.mxu1 %v3704_v56  ;;  %v3714_v58 = vld [vmem:[#allocation34_spill] sm:$0xff]  ;;  %3715 = vst [vmem:[#allocation35_spill] sm:$0xff] %v3198_v17 }
 0x1e6   :  { %1322 = vmatpush.bf16.msrb.mxu2 %v3705_v2  ;;  %1335 = vmatpush.bf16.msrb.mxu3 %v3706_v35 }
 0x1e7   :  { %1297 = vmatpush.bf16.msrb.mxu0 %v3707_v59  ;;  %1310 = vmatpush.bf16.msrb.mxu1 %v3708_v32 }
 0x1ea   :  { %1323 = vmatpush.bf16.msrb.mxu2 %v3709_v36  ;;  %1336 = vmatpush.bf16.msrb.mxu3 %v3710_v30  ;;  %v986_v36 = vunpack.c.l.bf16 %v3198_v17 }
 0x1eb   :  { %1298 = vmatpush.bf16.msrb.mxu0 %v3711_v57  ;;  %1311 = vmatpush.bf16.msrb.mxu1 %v3712_v7 }
 0x1ee   :  { %1324 = vmatpush.bf16.msrb.mxu2 %v3713_v47  ;;  %1337 = vmatpush.bf16.msrb.mxu3 %v3714_v58 }
 0x22a   :  { %v997_v56 = vpop.f32.mrf.mxu0  ;;  %v1010_v2 = vpop.f32.mrf.mxu1 }
 0x22b   :  { %v1044_v35 = vrot.slane %v1010_v2, 6 }
 0x22d   :  { %v1047_v57 = vsel %vm447_vm0, %v997_v56, %v1044_v35 }
 0x231   :  { %v1023_v59 = vpop.f32.mrf.mxu2  ;;  %v1036_v28 = vpop.f32.mrf.mxu3 }
 0x232   :  { %v1045_v32 = vrot.slane %v1023_v59, 4  ;;  %v1046_v48 = vrot.slane %v1036_v28, 2  ;;  %v999_v30 = vpop.f32.mrf.mxu0  ;;  %v1012_v1 = vpop.f32.mrf.mxu1 }
 0x233   :  { %v3204_v30 = vld [vmem:[#allocation5 + $0x10] sm:$0xff]  }
 0x234   :  { %v1048_v7 = vsel %vm449_vm1, %v1045_v32, %v1046_v48  ;;  %3716 = vst [vmem:[#allocation36_spill] sm:$0xff] %v3204_v30 }
 0x235   :  { %v1049_v47 = vsel %vm451_vm2, %v1047_v57, %v1048_v7 }
 0x236   :  { %v1051_v58 = vadd.f32 %v1049_v47, %v986_v36  ;;  %v1087_v47 = vunpack.c.h.bf16 %v3204_v30 }
 0x238   :  { %v1052_v0 = vsub.f32 0.0, %v1051_v58  ;;  %v1072_v56 = vrot.slane %v1051_v58, 6 }
 0x239   :  { %v1025_v19 = vpop.f32.mrf.mxu2  ;;  %v1038_v8 = vpop.f32.mrf.mxu3 }
 0x23a   :  { %v1053_v41 = vmul.f32 1.442695, %v1052_v0 }
 0x23c   :  { %2583 = vpow2.f32 %v1053_v41 }
 0x242   :  { %v2584_v2 = vpop.eup %2583 }
 0x243   :  { %v1055_v27 = vadd.f32 1.0, %v2584_v2 }
 0x245   :  { %2585 = vrcp.f32 %v1055_v27  ;;  %v1065_v19 = vand.u32 2147483647, %v1055_v27  ;;  %v1067_v8 = vand.u32 2147483648, %v1055_v27  ;;  %vm1061_vm7 = vweird.f32 %v1055_v27 }
 0x246   :  { %2587 = vtanh.f32 %v1072_v56 }
 0x247   :  { %vm1066_vm9 = vcmp.eq.f32.partialorder %v1065_v19, 8.507059e+37 }
 0x249   :  { %v1098_v59 = vpop.f32.mrf.mxu0  ;;  %v1111_v17 = vpop.f32.mrf.mxu1 }
 0x24a   :  { %v1145_v35 = vrot.slane %v1111_v17, 6 }
 0x24b   :  { %v2586_v28 = vpop.eup %2585 }
 0x24c   :  { %v1057_v1 = vmul.f32 %v2586_v28, %v1055_v27  ;;  %vm1062_vm6 = vweird.f32 %v2586_v28  ;;  %v1148_v49 = vsel %vm447_vm0, %v1098_v59, %v1145_v35 }
 0x24d   :  { %vm1063_vm8 = vmor %vm1061_vm7, %vm1062_vm6 }
 0x24e   :  { %v1058_v48 = vsub.f32 1.0, %v1057_v1  ;;  %v1068_v1 = vor.u32 1.1754944e-38, %v1067_v8 }
 0x250   :  { %v1124_v32 = vpop.f32.mrf.mxu2  ;;  %v1137_v36 = vpop.f32.mrf.mxu3  ;;  %v1059_v2 = vmul.f32 %v2586_v28, %v1058_v48 }
 0x251   :  { %v1146_v0 = vrot.slane %v1124_v32, 4  ;;  %v1147_v41 = vrot.slane %v1137_v36, 2  ;;  %v1100_v57 = vpop.f32.mrf.mxu0  ;;  %v1113_v7 = vpop.f32.mrf.mxu1 }
 0x252   :  { %v1060_v58 = vadd.f32 %v2586_v28, %v1059_v2  ;;  %v2588_v7 = vpop.eup %2587 }
 0x253   :  { %v1149_v53 = vsel %vm449_vm1, %v1146_v0, %v1147_v41 }
 0x254   :  { %v1150_v17 = vsel %vm451_vm2, %v1148_v49, %v1149_v53  ;;  %v1064_v54 = vsel %vm1063_vm8, %v2586_v28, %v1060_v58 }
 0x255   :  { %v1152_v30 = vadd.f32 %v1150_v17, %v1087_v47  ;;  %v1069_v32 = vsel %vm1066_vm9, %v1068_v1, %v1064_v54 }
 0x256   :  { %v1076_v57 = vrot.slane %v1069_v32, 2  ;;  %v1079_v35 = vmul.f32 %v2588_v7, %v1069_v32  ;;  %v1082_v27 = vrot.slane %v1069_v32, 4 }
 0x257   :  { %v1153_v36 = vsub.f32 0.0, %v1152_v30  ;;  %v1173_v19 = vrot.slane %v1152_v30, 6 }
 0x258   :  { %v1126_v48 = vpop.f32.mrf.mxu2  ;;  %v1139_v43 = vpop.f32.mrf.mxu3  ;;  %v1078_v59 = vmul.f32 %v1076_v57, %v3127_v18 }
 0x259   :  { %v1154_v56 = vmul.f32 1.442695, %v1153_v36 }
 0x25a   :  { %v3211_v0 = vadd.f32 %v1079_v35, %v1078_v59 }
 0x25b   :  { %2589 = vpow2.f32 %v1154_v56 }
 0x25c   :  { %2591 = vtanh.f32 %v3211_v0 }
 0x261   :  { %v2590_v53 = vpop.eup %2589 }
 0x262   :  { %v1156_v49 = vadd.f32 1.0, %v2590_v53  ;;  %v2592_v28 = vpop.eup %2591 }
 0x263   :  { %v1084_v54 = vmul.f32 %v2592_v28, %v1082_v27  ;;  %v3718_v27 = vld [vmem:[#allocation10_spill] sm:$0xff]  ;;  %v3719_v28 = vld [vmem:[#allocation11_spill] sm:$0xff] }
 0x264   :  { %2593 = vrcp.f32 %v1156_v49  ;;  %v1168_v41 = vand.u32 2147483648, %v1156_v49  ;;  %v1166_v58 = vand.u32 2147483647, %v1156_v49  ;;  %vm1162_vm11 = vweird.f32 %v1156_v49 }
 0x265   :  { %v1189_v47 = vpack.c.bf16 %v1084_v54, %v1084_v54  ;;  %2595 = vtanh.f32 %v1173_v19  ;;  %v3720_v54 = vld [vmem:[#allocation12_spill] sm:$0xff] }
 0x266   :  { %v1169_v1 = vor.u32 1.1754944e-38, %v1168_v41  ;;  %vm1167_vm13 = vcmp.eq.f32.partialorder %v1166_v58, 8.507059e+37  ;;  %v3724_v19 = vld [vmem:[#allocation16_spill] sm:$0xff]  ;;  %v3726_v41 = vld [vmem:[#allocation18_spill] sm:$0xff] }
 0x267   :  { %1198 = vmatmul.bf16.vlgmr.msra.gmra.mxu0 %v1189_v47  ;;  %1211 = vmatmul.bf16.vlgmr.msra.gmra.mxu1 %v1189_v47  ;;  %v3728_v58 = vld [vmem:[#allocation20_spill] sm:$0xff] }
 0x268   :  { %1224 = vmatmul.bf16.vlgmr.msra.gmra.mxu2 %v1189_v47  ;;  %1237 = vmatmul.bf16.vlgmr.msra.gmra.mxu3 %v1189_v47  ;;  %v3721_v47 = vld [vmem:[#allocation13_spill] sm:$0xff] }
 0x269   :  { %1392 = vmatpush.bf16.msra.mxu0 %v2780_v20  ;;  %1405 = vmatpush.bf16.msra.mxu1 %v2782_v24 }
 0x26a   :  { %v2594_v43 = vpop.eup %2593  ;;  %1418 = vmatpush.bf16.msra.mxu2 %v2784_v25  ;;  %1431 = vmatpush.bf16.msra.mxu3 %v2787_v29 }
 0x26b   :  { %v1158_v18 = vmul.f32 %v2594_v43, %v1156_v49  ;;  %vm1163_vm10 = vweird.f32 %v2594_v43  ;;  %v2596_v57 = vpop.eup %2595  ;;  %v3717_v49 = vld [vmem:[#allocation9_spill] sm:$0xff] }
 0x26c   :  { %vm1164_vm12 = vmor %vm1162_vm11, %vm1163_vm10 }
 0x26d   :  { %v1159_v8 = vsub.f32 1.0, %v1158_v18  ;;  %1393 = vmatpush.bf16.msra.mxu0 %v2791_v33  ;;  %1406 = vmatpush.bf16.msra.mxu1 %v2793_v34  ;;  %v3723_v18 = vld [vmem:[#allocation15_spill] sm:$0xff] }
 0x26e   :  { %1419 = vmatpush.bf16.msra.mxu2 %v2796_v38  ;;  %1432 = vmatpush.bf16.msra.mxu3 %v2798_v42 }
 0x26f   :  { %v1160_v2 = vmul.f32 %v2594_v43, %v1159_v8  ;;  %v3725_v8 = vld [vmem:[#allocation17_spill] sm:$0xff] }
 0x271   :  { %v1161_v17 = vadd.f32 %v2594_v43, %v1160_v2  ;;  %1394 = vmatpush.bf16.msra.mxu0 %v2801_v46  ;;  %1407 = vmatpush.bf16.msra.mxu1 %v2805_v50  ;;  %v3727_v2 = vld [vmem:[#allocation19_spill] sm:$0xff] }
 0x272   :  { %1420 = vmatpush.bf16.msra.mxu2 %v2807_v51  ;;  %1433 = vmatpush.bf16.msra.mxu3 %v2810_v55 }
 0x273   :  { %v1165_v30 = vsel %vm1164_vm12, %v2594_v43, %v1161_v17  ;;  %v3722_v43 = vld [vmem:[#allocation14_spill] sm:$0xff]  ;;  %v3729_v17 = vld [vmem:[#allocation21_spill] sm:$0xff] }
 0x274   :  { %v1170_v32 = vsel %vm1167_vm13, %v1169_v1, %v1165_v30  ;;  %v3730_v1 = vld [vmem:[#allocation22_spill] sm:$0xff]  ;;  %v3731_v30 = vld [vmem:[#allocation23_spill] sm:$0xff] }
 0x275   :  { %v1177_v36 = vrot.slane %v1170_v32, 2  ;;  %1395 = vmatpush.bf16.msra.mxu0 %v2813_v61  ;;  %1408 = vmatpush.bf16.msra.mxu1 %v2817_v62  ;;  %v1180_v48 = vmul.f32 %v2596_v57, %v1170_v32  ;;  %v3734_v57 = vld [vmem:[#allocation26_spill] sm:$0xff] }
 0x276   :  { %1421 = vmatpush.bf16.msra.mxu2 %v2819_v63  ;;  %1434 = vmatpush.bf16.msra.mxu3 %v2822_v3 }
 0x277   :  { %v1179_v7 = vmul.f32 %v1177_v36, %v3147_v6  ;;  %v1183_v6 = vrot.slane %v1170_v32, 4  ;;  %v3732_v32 = vld [vmem:[#allocation24_spill] sm:$0xff]  ;;  %v3733_v36 = vld [vmem:[#allocation25_spill] sm:$0xff] }
 0x279   :  { %v3231_v56 = vadd.f32 %v1180_v48, %v1179_v7  ;;  %1396 = vmatpush.bf16.msra.mxu0 %v2825_v9  ;;  %1409 = vmatpush.bf16.msra.mxu1 %v2829_v10  ;;  %v3735_v7 = vld [vmem:[#allocation27_spill] sm:$0xff]  ;;  %v3736_v48 = vld [vmem:[#allocation28_spill] sm:$0xff] }
 0x27a   :  { %1422 = vmatpush.bf16.msra.mxu2 %v2831_v11  ;;  %1435 = vmatpush.bf16.msra.mxu3 %v2834_v15 }
 0x27b   :  { %2597 = vtanh.f32 %v3231_v56 }
 0x27d   :  { %1397 = vmatpush.bf16.msra.mxu0 %v2837_v22  ;;  %1410 = vmatpush.bf16.msra.mxu1 %v2841_v23 }
 0x27e   :  { %1423 = vmatpush.bf16.msra.mxu2 %v2843_v26  ;;  %1436 = vmatpush.bf16.msra.mxu3 %v2846_v31 }
 0x281   :  { %v2598_v59 = vpop.eup %2597  ;;  %1398 = vmatpush.bf16.msra.mxu0 %v2849_v40  ;;  %1411 = vmatpush.bf16.msra.mxu1 %v2853_v44 }
 0x282   :  { %v1185_v35 = vmul.f32 %v2598_v59, %v1183_v6  ;;  %1424 = vmatpush.bf16.msra.mxu2 %v2855_v45  ;;  %1437 = vmatpush.bf16.msra.mxu3 %v2858_v52  ;;  %v3737_v6 = vld [vmem:[#allocation29_spill] sm:$0xff]  ;;  %v3738_v59 = vld [vmem:[#allocation30_spill] sm:$0xff] }
 0x284   :  { %v1290_v53 = vpack.c.bf16 %v1185_v35, %v1185_v35  ;;  %v3739_v35 = vld [vmem:[#allocation31_spill] sm:$0xff] }
 0x285   :  { %1399 = vmatpush.bf16.msra.mxu0 %v2861_v60  ;;  %1412 = vmatpush.bf16.msra.mxu1 %v2865_v4 }
 0x286   :  { %1299 = vmatmul.bf16.vlgmr.msrb.gmra.mxu0 %v1290_v53  ;;  %1312 = vmatmul.bf16.vlgmr.msrb.gmra.mxu1 %v1290_v53 }
 0x287   :  { %1325 = vmatmul.bf16.vlgmr.msrb.gmra.mxu2 %v1290_v53  ;;  %1338 = vmatmul.bf16.vlgmr.msrb.gmra.mxu3 %v1290_v53  ;;  %v3740_v53 = vld [vmem:[#allocation32_spill] sm:$0xff] }
 0x288   :  { %1425 = vmatpush.bf16.msra.mxu2 %v2867_v5  ;;  %1438 = vmatpush.bf16.msra.mxu3 %v2870_v12 }
 0x289   :  { %1493 = vmatpush.bf16.msrb.mxu0 %v2872_v13  ;;  %1506 = vmatpush.bf16.msrb.mxu1 %v2874_v14 }
 0x28c   :  { %1519 = vmatpush.bf16.msrb.mxu2 %v2876_v16  ;;  %1532 = vmatpush.bf16.msrb.mxu3 %v2879_v21 }
 0x28d   :  { %1494 = vmatpush.bf16.msrb.mxu0 %v2885_v37  ;;  %1507 = vmatpush.bf16.msrb.mxu1 %v2889_v39 }
 0x290   :  { %1520 = vmatpush.bf16.msrb.mxu2 %v3717_v49  ;;  %1533 = vmatpush.bf16.msrb.mxu3 %v3718_v27 }
 0x291   :  { %1495 = vmatpush.bf16.msrb.mxu0 %v3719_v28  ;;  %1508 = vmatpush.bf16.msrb.mxu1 %v3720_v54 }
 0x294   :  { %1521 = vmatpush.bf16.msrb.mxu2 %v3721_v47  ;;  %1534 = vmatpush.bf16.msrb.mxu3 %v3722_v43 }
 0x295   :  { %1496 = vmatpush.bf16.msrb.mxu0 %v3723_v18  ;;  %1509 = vmatpush.bf16.msrb.mxu1 %v3724_v19 }
 0x298   :  { %1522 = vmatpush.bf16.msrb.mxu2 %v3725_v8  ;;  %1535 = vmatpush.bf16.msrb.mxu3 %v3726_v41 }
 0x299   :  { %1497 = vmatpush.bf16.msrb.mxu0 %v3727_v2  ;;  %1510 = vmatpush.bf16.msrb.mxu1 %v3728_v58  ;;  %v3743_v2 = vld [vmem:[#allocation35_spill] sm:$0xff] }
 0x29c   :  { %1523 = vmatpush.bf16.msrb.mxu2 %v3729_v17  ;;  %1536 = vmatpush.bf16.msrb.mxu3 %v3730_v1  ;;  %v3741_v1 = vld [vmem:[#allocation33_spill] sm:$0xff] }
 0x29d   :  { %1498 = vmatpush.bf16.msrb.mxu0 %v3731_v30  ;;  %1511 = vmatpush.bf16.msrb.mxu1 %v3732_v32  ;;  %v3742_v30 = vld [vmem:[#allocation34_spill] sm:$0xff] }
 0x2a0   :  { %1524 = vmatpush.bf16.msrb.mxu2 %v3733_v36  ;;  %1537 = vmatpush.bf16.msrb.mxu3 %v3734_v57 }
 0x2a1   :  { %1499 = vmatpush.bf16.msrb.mxu0 %v3735_v7  ;;  %1512 = vmatpush.bf16.msrb.mxu1 %v3736_v48  ;;  %v1188_v48 = vunpack.c.h.bf16 %v3743_v2 }
 0x2a4   :  { %1525 = vmatpush.bf16.msrb.mxu2 %v3737_v6  ;;  %1538 = vmatpush.bf16.msrb.mxu3 %v3738_v59 }
 0x2a5   :  { %1500 = vmatpush.bf16.msrb.mxu0 %v3739_v35  ;;  %1513 = vmatpush.bf16.msrb.mxu1 %v3740_v53 }
 0x2a8   :  { %1526 = vmatpush.bf16.msrb.mxu2 %v3741_v1  ;;  %1539 = vmatpush.bf16.msrb.mxu3 %v3742_v30 }
 0x2e4   :  { %v1199_v32 = vpop.f32.mrf.mxu0  ;;  %v1212_v36 = vpop.f32.mrf.mxu1 }
 0x2e5   :  { %v1246_v17 = vrot.slane %v1212_v36, 6 }
 0x2e7   :  { %v1249_v59 = vsel %vm447_vm0, %v1199_v32, %v1246_v17 }
 0x2eb   :  { %v1225_v57 = vpop.f32.mrf.mxu2  ;;  %v1238_v58 = vpop.f32.mrf.mxu3 }
 0x2ec   :  { %v1247_v7 = vrot.slane %v1225_v57, 4  ;;  %v1248_v41 = vrot.slane %v1238_v58, 2  ;;  %v1201_v6 = vpop.f32.mrf.mxu0  ;;  %v1214_v8 = vpop.f32.mrf.mxu1 }
 0x2ee   :  { %v1250_v35 = vsel %vm449_vm1, %v1247_v7, %v1248_v41  ;;  %v3744_v41 = vld [vmem:[#allocation36_spill] sm:$0xff] }
 0x2ef   :  { %v1251_v53 = vsel %vm451_vm2, %v1249_v59, %v1250_v35  ;;  %v1289_v7 = vunpack.c.l.bf16 %v3744_v41 }
 0x2f0   :  { %v1253_v1 = vadd.f32 %v1251_v53, %v1188_v48 }
 0x2f2   :  { %v1254_v19 = vsub.f32 0.0, %v1253_v1  ;;  %v1274_v8 = vrot.slane %v1253_v1, 6 }
 0x2f3   :  { %v1227_v30 = vpop.f32.mrf.mxu2  ;;  %v1240_v18 = vpop.f32.mrf.mxu3 }
 0x2f4   :  { %v1255_v43 = vmul.f32 1.442695, %v1254_v19 }
 0x2f6   :  { %2599 = vpow2.f32 %v1255_v43 }
 0x2fc   :  { %v2600_v36 = vpop.eup %2599 }
 0x2fd   :  { %v1257_v47 = vadd.f32 1.0, %v2600_v36 }
 0x2ff   :  { %2601 = vrcp.f32 %v1257_v47  ;;  %v1267_v48 = vand.u32 2147483647, %v1257_v47  ;;  %v1269_v35 = vand.u32 2147483648, %v1257_v47  ;;  %vm1263_vm15 = vweird.f32 %v1257_v47 }
 0x300   :  { %2603 = vtanh.f32 %v1274_v8 }
 0x301   :  { %vm1268_vm4 = vcmp.eq.f32.partialorder %v1267_v48, 8.507059e+37 }
 0x303   :  { %v1300_v57 = vpop.f32.mrf.mxu0  ;;  %v1313_v2 = vpop.f32.mrf.mxu1 }
 0x304   :  { %v1347_v54 = vrot.slane %v1313_v2, 6 }
 0x305   :  { %v2602_v58 = vpop.eup %2601 }
 0x306   :  { %v1259_v6 = vmul.f32 %v2602_v58, %v1257_v47  ;;  %vm1264_vm14 = vweird.f32 %v2602_v58  ;;  %v1350_v36 = vsel %vm447_vm0, %v1300_v57, %v1347_v54 }
 0x307   :  { %vm1265_vm3 = vmor %vm1263_vm15, %vm1264_vm14 }
 0x308   :  { %v1260_v17 = vsub.f32 1.0, %v1259_v6  ;;  %v1270_v6 = vor.u32 1.1754944e-38, %v1269_v35 }
 0x30a   :  { %v1326_v32 = vpop.f32.mrf.mxu2  ;;  %v1339_v59 = vpop.f32.mrf.mxu3  ;;  %v1261_v53 = vmul.f32 %v2602_v58, %v1260_v17 }
 0x30b   :  { %v1348_v30 = vrot.slane %v1326_v32, 4  ;;  %v1349_v18 = vrot.slane %v1339_v59, 2  ;;  %v1302_v19 = vpop.f32.mrf.mxu0  ;;  %v1315_v43 = vpop.f32.mrf.mxu1 }
 0x30c   :  { %v1262_v1 = vadd.f32 %v2602_v58, %v1261_v53  ;;  %v2604_v43 = vpop.eup %2603 }
 0x30d   :  { %v1351_v28 = vsel %vm449_vm1, %v1348_v30, %v1349_v18 }
 0x30e   :  { %v1352_v2 = vsel %vm451_vm2, %v1350_v36, %v1351_v28  ;;  %v1266_v27 = vsel %vm1265_vm3, %v2602_v58, %v1262_v1 }
 0x30f   :  { %v1354_v41 = vadd.f32 %v1352_v2, %v1289_v7  ;;  %v1271_v32 = vsel %vm1268_vm4, %v1270_v6, %v1266_v27 }
 0x310   :  { %v1278_v19 = vrot.slane %v1271_v32, 2  ;;  %v1281_v57 = vmul.f32 %v2604_v43, %v1271_v32  ;;  %v1284_v7 = vrot.slane %v1271_v32, 4 }
 0x311   :  { %v1355_v59 = vsub.f32 0.0, %v1354_v41  ;;  %v1375_v35 = vrot.slane %v1354_v41, 6 }
 0x312   :  { %v1328_v17 = vpop.f32.mrf.mxu2  ;;  %v1341_v49 = vpop.f32.mrf.mxu3  ;;  %v1280_v54 = vmul.f32 %v1278_v19, %v3211_v0 }
 0x313   :  { %v1356_v8 = vmul.f32 1.442695, %v1355_v59 }
 0x314   :  { %v3291_v30 = vadd.f32 %v1281_v57, %v1280_v54 }
 0x315   :  { %2605 = vpow2.f32 %v1356_v8 }
 0x316   :  { %2607 = vtanh.f32 %v3291_v30 }
 0x31b   :  { %v2606_v28 = vpop.eup %2605 }
 0x31c   :  { %v1358_v47 = vadd.f32 1.0, %v2606_v28  ;;  %v2608_v58 = vpop.eup %2607 }
 0x31d   :  { %v1286_v27 = vmul.f32 %v2608_v58, %v1284_v7  ;;  %v3746_v7 = vld [vmem:[#allocation10_spill] sm:$0xff]  ;;  %v3747_v58 = vld [vmem:[#allocation11_spill] sm:$0xff] }
 0x31e   :  { %2609 = vrcp.f32 %v1358_v47  ;;  %v1370_v53 = vand.u32 2147483648, %v1358_v47  ;;  %v1368_v1 = vand.u32 2147483647, %v1358_v47  ;;  %vm1364_vm6 = vweird.f32 %v1358_v47 }
 0x31f   :  { %v1391_v48 = vpack.c.bf16 %v1286_v27, %v1286_v27  ;;  %2611 = vtanh.f32 %v1375_v35  ;;  %v3748_v27 = vld [vmem:[#allocation12_spill] sm:$0xff] }
 0x320   :  { %v1371_v6 = vor.u32 1.1754944e-38, %v1370_v53  ;;  %vm1369_vm8 = vcmp.eq.f32.partialorder %v1368_v1, 8.507059e+37  ;;  %v3752_v35 = vld [vmem:[#allocation16_spill] sm:$0xff]  ;;  %v3754_v53 = vld [vmem:[#allocation18_spill] sm:$0xff] }
 0x321   :  { %1400 = vmatmul.bf16.vlgmr.msra.gmra.mxu0 %v1391_v48  ;;  %1413 = vmatmul.bf16.vlgmr.msra.gmra.mxu1 %v1391_v48  ;;  %v3756_v1 = vld [vmem:[#allocation20_spill] sm:$0xff] }
 0x322   :  { %1426 = vmatmul.bf16.vlgmr.msra.gmra.mxu2 %v1391_v48  ;;  %1439 = vmatmul.bf16.vlgmr.msra.gmra.mxu3 %v1391_v48  ;;  %v3749_v48 = vld [vmem:[#allocation13_spill] sm:$0xff] }
 0x323   :  { %1594 = vmatpush.bf16.msra.mxu0 %v2780_v20  ;;  %1607 = vmatpush.bf16.msra.mxu1 %v2782_v24 }
 0x324   :  { %v2610_v49 = vpop.eup %2609  ;;  %1620 = vmatpush.bf16.msra.mxu2 %v2784_v25  ;;  %1633 = vmatpush.bf16.msra.mxu3 %v2787_v29 }
 0x325   :  { %v1360_v0 = vmul.f32 %v2610_v49, %v1358_v47  ;;  %vm1365_vm5 = vweird.f32 %v2610_v49  ;;  %v2612_v19 = vpop.eup %2611  ;;  %v3745_v47 = vld [vmem:[#allocation9_spill] sm:$0xff] }
 0x326   :  { %vm1366_vm7 = vmor %vm1364_vm6, %vm1365_vm5 }
 0x327   :  { %v1361_v18 = vsub.f32 1.0, %v1360_v0  ;;  %1595 = vmatpush.bf16.msra.mxu0 %v2791_v33  ;;  %1608 = vmatpush.bf16.msra.mxu1 %v2793_v34  ;;  %v3751_v0 = vld [vmem:[#allocation15_spill] sm:$0xff] }
 0x328   :  { %1621 = vmatpush.bf16.msra.mxu2 %v2796_v38  ;;  %1634 = vmatpush.bf16.msra.mxu3 %v2798_v42 }
 0x329   :  { %v1362_v36 = vmul.f32 %v2610_v49, %v1361_v18  ;;  %v3753_v18 = vld [vmem:[#allocation17_spill] sm:$0xff] }
 0x32b   :  { %v1363_v2 = vadd.f32 %v2610_v49, %v1362_v36  ;;  %1596 = vmatpush.bf16.msra.mxu0 %v2801_v46  ;;  %1609 = vmatpush.bf16.msra.mxu1 %v2805_v50  ;;  %v3755_v36 = vld [vmem:[#allocation19_spill] sm:$0xff] }
 0x32c   :  { %1622 = vmatpush.bf16.msra.mxu2 %v2807_v51  ;;  %1635 = vmatpush.bf16.msra.mxu3 %v2810_v55 }
 0x32d   :  { %v1367_v41 = vsel %vm1366_vm7, %v2610_v49, %v1363_v2  ;;  %v3750_v49 = vld [vmem:[#allocation14_spill] sm:$0xff]  ;;  %v3757_v2 = vld [vmem:[#allocation21_spill] sm:$0xff] }
 0x32e   :  { %v1372_v32 = vsel %vm1369_vm8, %v1371_v6, %v1367_v41  ;;  %v3758_v6 = vld [vmem:[#allocation22_spill] sm:$0xff]  ;;  %v3759_v41 = vld [vmem:[#allocation23_spill] sm:$0xff] }
 0x32f   :  { %v1379_v59 = vrot.slane %v1372_v32, 2  ;;  %1597 = vmatpush.bf16.msra.mxu0 %v2813_v61  ;;  %1610 = vmatpush.bf16.msra.mxu1 %v2817_v62  ;;  %v1382_v17 = vmul.f32 %v2612_v19, %v1372_v32  ;;  %v3762_v19 = vld [vmem:[#allocation26_spill] sm:$0xff] }
 0x330   :  { %1623 = vmatpush.bf16.msra.mxu2 %v2819_v63  ;;  %1636 = vmatpush.bf16.msra.mxu3 %v2822_v3 }
 0x331   :  { %v1381_v43 = vmul.f32 %v1379_v59, %v3231_v56  ;;  %v1385_v56 = vrot.slane %v1372_v32, 4  ;;  %v3760_v32 = vld [vmem:[#allocation24_spill] sm:$0xff]  ;;  %v3761_v59 = vld [vmem:[#allocation25_spill] sm:$0xff] }
 0x333   :  { %v3311_v8 = vadd.f32 %v1382_v17, %v1381_v43  ;;  %1598 = vmatpush.bf16.msra.mxu0 %v2825_v9  ;;  %1611 = vmatpush.bf16.msra.mxu1 %v2829_v10  ;;  %v3763_v43 = vld [vmem:[#allocation27_spill] sm:$0xff]  ;;  %v3764_v17 = vld [vmem:[#allocation28_spill] sm:$0xff] }
 0x334   :  { %1624 = vmatpush.bf16.msra.mxu2 %v2831_v11  ;;  %1637 = vmatpush.bf16.msra.mxu3 %v2834_v15 }
 0x335   :  { %2613 = vtanh.f32 %v3311_v8 }
 0x337   :  { %1599 = vmatpush.bf16.msra.mxu0 %v2837_v22  ;;  %1612 = vmatpush.bf16.msra.mxu1 %v2841_v23 }
 0x338   :  { %1625 = vmatpush.bf16.msra.mxu2 %v2843_v26  ;;  %1638 = vmatpush.bf16.msra.mxu3 %v2846_v31 }
 0x33b   :  { %v2614_v54 = vpop.eup %2613  ;;  %1600 = vmatpush.bf16.msra.mxu0 %v2849_v40  ;;  %1613 = vmatpush.bf16.msra.mxu1 %v2853_v44 }
 0x33c   :  { %v1387_v57 = vmul.f32 %v2614_v54, %v1385_v56  ;;  %1626 = vmatpush.bf16.msra.mxu2 %v2855_v45  ;;  %1639 = vmatpush.bf16.msra.mxu3 %v2858_v52  ;;  %v3765_v56 = vld [vmem:[#allocation29_spill] sm:$0xff]  ;;  %v3766_v54 = vld [vmem:[#allocation30_spill] sm:$0xff] }
 0x33e   :  { %v1492_v28 = vpack.c.bf16 %v1387_v57, %v1387_v57  ;;  %v3767_v57 = vld [vmem:[#allocation31_spill] sm:$0xff] }
 0x33f   :  { %1601 = vmatpush.bf16.msra.mxu0 %v2861_v60  ;;  %1614 = vmatpush.bf16.msra.mxu1 %v2865_v4 }
 0x340   :  { %1501 = vmatmul.bf16.vlgmr.msrb.gmra.mxu0 %v1492_v28  ;;  %1514 = vmatmul.bf16.vlgmr.msrb.gmra.mxu1 %v1492_v28 }
 0x341   :  { %1527 = vmatmul.bf16.vlgmr.msrb.gmra.mxu2 %v1492_v28  ;;  %1540 = vmatmul.bf16.vlgmr.msrb.gmra.mxu3 %v1492_v28  ;;  %v3768_v28 = vld [vmem:[#allocation32_spill] sm:$0xff] }
 0x342   :  { %1627 = vmatpush.bf16.msra.mxu2 %v2867_v5  ;;  %1640 = vmatpush.bf16.msra.mxu3 %v2870_v12 }
 0x343   :  { %1695 = vmatpush.bf16.msrb.mxu0 %v2872_v13  ;;  %1708 = vmatpush.bf16.msrb.mxu1 %v2874_v14 }
 0x346   :  { %1721 = vmatpush.bf16.msrb.mxu2 %v2876_v16  ;;  %1734 = vmatpush.bf16.msrb.mxu3 %v2879_v21 }
 0x347   :  { %1696 = vmatpush.bf16.msrb.mxu0 %v2885_v37  ;;  %1709 = vmatpush.bf16.msrb.mxu1 %v2889_v39 }
 0x34a   :  { %1722 = vmatpush.bf16.msrb.mxu2 %v3745_v47  ;;  %1735 = vmatpush.bf16.msrb.mxu3 %v3746_v7 }
 0x34b   :  { %1697 = vmatpush.bf16.msrb.mxu0 %v3747_v58  ;;  %1710 = vmatpush.bf16.msrb.mxu1 %v3748_v27 }
 0x34e   :  { %1723 = vmatpush.bf16.msrb.mxu2 %v3749_v48  ;;  %1736 = vmatpush.bf16.msrb.mxu3 %v3750_v49 }
 0x34f   :  { %1698 = vmatpush.bf16.msrb.mxu0 %v3751_v0  ;;  %1711 = vmatpush.bf16.msrb.mxu1 %v3752_v35 }
 0x352   :  { %1724 = vmatpush.bf16.msrb.mxu2 %v3753_v18  ;;  %1737 = vmatpush.bf16.msrb.mxu3 %v3754_v53 }
 0x353   :  { %1699 = vmatpush.bf16.msrb.mxu0 %v3755_v36  ;;  %1712 = vmatpush.bf16.msrb.mxu1 %v3756_v1 }
 0x356   :  { %1725 = vmatpush.bf16.msrb.mxu2 %v3757_v2  ;;  %1738 = vmatpush.bf16.msrb.mxu3 %v3758_v6  ;;  %v3769_v6 = vld [vmem:[#allocation33_spill] sm:$0xff]  ;;  %v3362_v2 = vld [vmem:[#allocation4 + $0x10] sm:$0xff]  }
 0x357   :  { %1700 = vmatpush.bf16.msrb.mxu0 %v3759_v41  ;;  %1713 = vmatpush.bf16.msrb.mxu1 %v3760_v32  ;;  %v3770_v41 = vld [vmem:[#allocation34_spill] sm:$0xff]  ;;  %3771 = vst [vmem:[#allocation35_spill] sm:$0xff] %v3362_v2 }
 0x35a   :  { %1726 = vmatpush.bf16.msrb.mxu2 %v3761_v59  ;;  %1739 = vmatpush.bf16.msrb.mxu3 %v3762_v19 }
 0x35b   :  { %1701 = vmatpush.bf16.msrb.mxu0 %v3763_v43  ;;  %1714 = vmatpush.bf16.msrb.mxu1 %v3764_v17 }
 0x35e   :  { %1727 = vmatpush.bf16.msrb.mxu2 %v3765_v56  ;;  %1740 = vmatpush.bf16.msrb.mxu3 %v3766_v54  ;;  %v1390_v56 = vunpack.c.l.bf16 %v3362_v2 }
 0x35f   :  { %1702 = vmatpush.bf16.msrb.mxu0 %v3767_v57  ;;  %1715 = vmatpush.bf16.msrb.mxu1 %v3768_v28 }
 0x362   :  { %1728 = vmatpush.bf16.msrb.mxu2 %v3769_v6  ;;  %1741 = vmatpush.bf16.msrb.mxu3 %v3770_v41 }
 0x39e   :  { %v1401_v32 = vpop.f32.mrf.mxu0  ;;  %v1414_v59 = vpop.f32.mrf.mxu1 }
 0x39f   :  { %v1448_v19 = vrot.slane %v1414_v59, 6 }
 0x3a1   :  { %v1451_v57 = vsel %vm447_vm0, %v1401_v32, %v1448_v19 }
 0x3a5   :  { %v1427_v43 = vpop.f32.mrf.mxu2  ;;  %v1440_v1 = vpop.f32.mrf.mxu3 }
 0x3a6   :  { %v1449_v17 = vrot.slane %v1427_v43, 4  ;;  %v1450_v36 = vrot.slane %v1440_v1, 2  ;;  %v1403_v54 = vpop.f32.mrf.mxu0  ;;  %v1416_v53 = vpop.f32.mrf.mxu1 }
 0x3a7   :  { %v3368_v54 = vld [vmem:[#allocation5 + $0x8] sm:$0xff]  }
 0x3a8   :  { %v1452_v28 = vsel %vm449_vm1, %v1449_v17, %v1450_v36  ;;  %3772 = vst [vmem:[#allocation36_spill] sm:$0xff] %v3368_v54 }
 0x3a9   :  { %v1453_v6 = vsel %vm451_vm2, %v1451_v57, %v1452_v28 }
 0x3aa   :  { %v1455_v41 = vadd.f32 %v1453_v6, %v1390_v56  ;;  %v1491_v6 = vunpack.c.h.bf16 %v3368_v54 }
 0x3ac   :  { %v1456_v18 = vsub.f32 0.0, %v1455_v41  ;;  %v1476_v32 = vrot.slane %v1455_v41, 6 }
 0x3ad   :  { %v1429_v35 = vpop.f32.mrf.mxu2  ;;  %v1442_v0 = vpop.f32.mrf.mxu3 }
 0x3ae   :  { %v1457_v49 = vmul.f32 1.442695, %v1456_v18 }
 0x3b0   :  { %2615 = vpow2.f32 %v1457_v49 }
 0x3b6   :  { %v2616_v59 = vpop.eup %2615 }
 0x3b7   :  { %v1459_v48 = vadd.f32 1.0, %v2616_v59 }
 0x3b9   :  { %2617 = vrcp.f32 %v1459_v48  ;;  %v1469_v35 = vand.u32 2147483647, %v1459_v48  ;;  %v1471_v0 = vand.u32 2147483648, %v1459_v48  ;;  %vm1465_vm10 = vweird.f32 %v1459_v48 }
 0x3ba   :  { %2619 = vtanh.f32 %v1476_v32 }
 0x3bb   :  { %vm1470_vm12 = vcmp.eq.f32.partialorder %v1469_v35, 8.507059e+37 }
 0x3bd   :  { %v1502_v43 = vpop.f32.mrf.mxu0  ;;  %v1515_v2 = vpop.f32.mrf.mxu1 }
 0x3be   :  { %v1549_v19 = vrot.slane %v1515_v2, 6 }
 0x3bf   :  { %v2618_v1 = vpop.eup %2617 }
 0x3c0   :  { %v1461_v53 = vmul.f32 %v2618_v1, %v1459_v48  ;;  %vm1466_vm9 = vweird.f32 %v2618_v1  ;;  %v1552_v27 = vsel %vm447_vm0, %v1502_v43, %v1549_v19 }
 0x3c1   :  { %vm1467_vm11 = vmor %vm1465_vm10, %vm1466_vm9 }
 0x3c2   :  { %v1462_v36 = vsub.f32 1.0, %v1461_v53  ;;  %v1472_v53 = vor.u32 1.1754944e-38, %v1471_v0 }
 0x3c4   :  { %v1528_v17 = vpop.f32.mrf.mxu2  ;;  %v1541_v56 = vpop.f32.mrf.mxu3  ;;  %v1463_v59 = vmul.f32 %v2618_v1, %v1462_v36 }
 0x3c5   :  { %v1550_v18 = vrot.slane %v1528_v17, 4  ;;  %v1551_v49 = vrot.slane %v1541_v56, 2  ;;  %v1504_v57 = vpop.f32.mrf.mxu0  ;;  %v1517_v28 = vpop.f32.mrf.mxu1 }
 0x3c6   :  { %v1464_v41 = vadd.f32 %v2618_v1, %v1463_v59  ;;  %v2620_v28 = vpop.eup %2619 }
 0x3c7   :  { %v1553_v58 = vsel %vm449_vm1, %v1550_v18, %v1551_v49 }
 0x3c8   :  { %v1554_v2 = vsel %vm451_vm2, %v1552_v27, %v1553_v58  ;;  %v1468_v7 = vsel %vm1467_vm11, %v2618_v1, %v1464_v41 }
 0x3c9   :  { %v1556_v54 = vadd.f32 %v1554_v2, %v1491_v6  ;;  %v1473_v17 = vsel %vm1470_vm12, %v1472_v53, %v1468_v7 }
 0x3ca   :  { %v1480_v57 = vrot.slane %v1473_v17, 2  ;;  %v1483_v19 = vmul.f32 %v2620_v28, %v1473_v17  ;;  %v1486_v48 = vrot.slane %v1473_v17, 4 }
 0x3cb   :  { %v1557_v56 = vsub.f32 0.0, %v1556_v54  ;;  %v1577_v35 = vrot.slane %v1556_v54, 6 }
 0x3cc   :  { %v1530_v36 = vpop.f32.mrf.mxu2  ;;  %v1543_v47 = vpop.f32.mrf.mxu3  ;;  %v1482_v43 = vmul.f32 %v1480_v57, %v3291_v30 }
 0x3cd   :  { %v1558_v32 = vmul.f32 1.442695, %v1557_v56 }
 0x3ce   :  { %v3375_v18 = vadd.f32 %v1483_v19, %v1482_v43 }
 0x3cf   :  { %2621 = vpow2.f32 %v1558_v32 }
 0x3d0   :  { %2623 = vtanh.f32 %v3375_v18 }
 0x3d5   :  { %v2622_v58 = vpop.eup %2621 }
 0x3d6   :  { %v1560_v27 = vadd.f32 1.0, %v2622_v58  ;;  %v2624_v1 = vpop.eup %2623 }
 0x3d7   :  { %v1488_v7 = vmul.f32 %v2624_v1, %v1486_v48  ;;  %v3774_v48 = vld [vmem:[#allocation10_spill] sm:$0xff]  ;;  %v3775_v1 = vld [vmem:[#allocation11_spill] sm:$0xff] }
 0x3d8   :  { %2625 = vrcp.f32 %v1560_v27  ;;  %v1572_v49 = vand.u32 2147483648, %v1560_v27  ;;  %v1570_v41 = vand.u32 2147483647, %v1560_v27  ;;  %vm1566_vm14 = vweird.f32 %v1560_v27 }
 0x3d9   :  { %v1593_v6 = vpack.c.bf16 %v1488_v7, %v1488_v7  ;;  %2627 = vtanh.f32 %v1577_v35  ;;  %v3776_v7 = vld [vmem:[#allocation12_spill] sm:$0xff] }
 0x3da   :  { %v1573_v53 = vor.u32 1.1754944e-38, %v1572_v49  ;;  %vm1571_vm3 = vcmp.eq.f32.partialorder %v1570_v41, 8.507059e+37  ;;  %v3780_v35 = vld [vmem:[#allocation16_spill] sm:$0xff]  ;;  %v3782_v49 = vld [vmem:[#allocation18_spill] sm:$0xff] }
 0x3db   :  { %1602 = vmatmul.bf16.vlgmr.msra.gmra.mxu0 %v1593_v6  ;;  %1615 = vmatmul.bf16.vlgmr.msra.gmra.mxu1 %v1593_v6  ;;  %v3784_v41 = vld [vmem:[#allocation20_spill] sm:$0xff] }
 0x3dc   :  { %1628 = vmatmul.bf16.vlgmr.msra.gmra.mxu2 %v1593_v6  ;;  %1641 = vmatmul.bf16.vlgmr.msra.gmra.mxu3 %v1593_v6  ;;  %v3777_v6 = vld [vmem:[#allocation13_spill] sm:$0xff] }
 0x3dd   :  { %1796 = vmatpush.bf16.msra.mxu0 %v2780_v20  ;;  %1809 = vmatpush.bf16.msra.mxu1 %v2782_v24 }
 0x3de   :  { %v2626_v47 = vpop.eup %2625  ;;  %1822 = vmatpush.bf16.msra.mxu2 %v2784_v25  ;;  %1835 = vmatpush.bf16.msra.mxu3 %v2787_v29 }
 0x3df   :  { %v1562_v30 = vmul.f32 %v2626_v47, %v1560_v27  ;;  %vm1567_vm13 = vweird.f32 %v2626_v47  ;;  %v2628_v57 = vpop.eup %2627  ;;  %v3773_v27 = vld [vmem:[#allocation9_spill] sm:$0xff] }
 0x3e0   :  { %vm1568_vm15 = vmor %vm1566_vm14, %vm1567_vm13 }
 0x3e1   :  { %v1563_v0 = vsub.f32 1.0, %v1562_v30  ;;  %1797 = vmatpush.bf16.msra.mxu0 %v2791_v33  ;;  %1810 = vmatpush.bf16.msra.mxu1 %v2793_v34  ;;  %v3779_v30 = vld [vmem:[#allocation15_spill] sm:$0xff] }
 0x3e2   :  { %1823 = vmatpush.bf16.msra.mxu2 %v2796_v38  ;;  %1836 = vmatpush.bf16.msra.mxu3 %v2798_v42 }
 0x3e3   :  { %v1564_v59 = vmul.f32 %v2626_v47, %v1563_v0  ;;  %v3781_v0 = vld [vmem:[#allocation17_spill] sm:$0xff] }
 0x3e5   :  { %v1565_v2 = vadd.f32 %v2626_v47, %v1564_v59  ;;  %1798 = vmatpush.bf16.msra.mxu0 %v2801_v46  ;;  %1811 = vmatpush.bf16.msra.mxu1 %v2805_v50  ;;  %v3783_v59 = vld [vmem:[#allocation19_spill] sm:$0xff] }
 0x3e6   :  { %1824 = vmatpush.bf16.msra.mxu2 %v2807_v51  ;;  %1837 = vmatpush.bf16.msra.mxu3 %v2810_v55 }
 0x3e7   :  { %v1569_v54 = vsel %vm1568_vm15, %v2626_v47, %v1565_v2  ;;  %v3778_v47 = vld [vmem:[#allocation14_spill] sm:$0xff]  ;;  %v3785_v2 = vld [vmem:[#allocation21_spill] sm:$0xff] }
 0x3e8   :  { %v1574_v17 = vsel %vm1571_vm3, %v1573_v53, %v1569_v54  ;;  %v3786_v53 = vld [vmem:[#allocation22_spill] sm:$0xff]  ;;  %v3787_v54 = vld [vmem:[#allocation23_spill] sm:$0xff] }
 0x3e9   :  { %v1581_v56 = vrot.slane %v1574_v17, 2  ;;  %1799 = vmatpush.bf16.msra.mxu0 %v2813_v61  ;;  %1812 = vmatpush.bf16.msra.mxu1 %v2817_v62  ;;  %v1584_v36 = vmul.f32 %v2628_v57, %v1574_v17  ;;  %v3790_v57 = vld [vmem:[#allocation26_spill] sm:$0xff] }
 0x3ea   :  { %1825 = vmatpush.bf16.msra.mxu2 %v2819_v63  ;;  %1838 = vmatpush.bf16.msra.mxu3 %v2822_v3 }
 0x3eb   :  { %v1583_v28 = vmul.f32 %v1581_v56, %v3311_v8  ;;  %v1587_v8 = vrot.slane %v1574_v17, 4  ;;  %v3788_v17 = vld [vmem:[#allocation24_spill] sm:$0xff]  ;;  %v3789_v56 = vld [vmem:[#allocation25_spill] sm:$0xff] }
 0x3ed   :  { %v3395_v32 = vadd.f32 %v1584_v36, %v1583_v28  ;;  %1800 = vmatpush.bf16.msra.mxu0 %v2825_v9  ;;  %1813 = vmatpush.bf16.msra.mxu1 %v2829_v10  ;;  %v3791_v28 = vld [vmem:[#allocation27_spill] sm:$0xff]  ;;  %v3792_v36 = vld [vmem:[#allocation28_spill] sm:$0xff] }
 0x3ee   :  { %1826 = vmatpush.bf16.msra.mxu2 %v2831_v11  ;;  %1839 = vmatpush.bf16.msra.mxu3 %v2834_v15 }
 0x3ef   :  { %2629 = vtanh.f32 %v3395_v32 }
 0x3f1   :  { %1801 = vmatpush.bf16.msra.mxu0 %v2837_v22  ;;  %1814 = vmatpush.bf16.msra.mxu1 %v2841_v23 }
 0x3f2   :  { %1827 = vmatpush.bf16.msra.mxu2 %v2843_v26  ;;  %1840 = vmatpush.bf16.msra.mxu3 %v2846_v31 }
 0x3f5   :  { %v2630_v43 = vpop.eup %2629  ;;  %1802 = vmatpush.bf16.msra.mxu0 %v2849_v40  ;;  %1815 = vmatpush.bf16.msra.mxu1 %v2853_v44 }
 0x3f6   :  { %v1589_v19 = vmul.f32 %v2630_v43, %v1587_v8  ;;  %1828 = vmatpush.bf16.msra.mxu2 %v2855_v45  ;;  %1841 = vmatpush.bf16.msra.mxu3 %v2858_v52  ;;  %v3793_v8 = vld [vmem:[#allocation29_spill] sm:$0xff]  ;;  %v3794_v43 = vld [vmem:[#allocation30_spill] sm:$0xff] }
 0x3f8   :  { %v1694_v58 = vpack.c.bf16 %v1589_v19, %v1589_v19  ;;  %v3795_v19 = vld [vmem:[#allocation31_spill] sm:$0xff] }
 0x3f9   :  { %1803 = vmatpush.bf16.msra.mxu0 %v2861_v60  ;;  %1816 = vmatpush.bf16.msra.mxu1 %v2865_v4 }
 0x3fa   :  { %1703 = vmatmul.bf16.vlgmr.msrb.gmra.mxu0 %v1694_v58  ;;  %1716 = vmatmul.bf16.vlgmr.msrb.gmra.mxu1 %v1694_v58 }
 0x3fb   :  { %1729 = vmatmul.bf16.vlgmr.msrb.gmra.mxu2 %v1694_v58  ;;  %1742 = vmatmul.bf16.vlgmr.msrb.gmra.mxu3 %v1694_v58  ;;  %v3796_v58 = vld [vmem:[#allocation32_spill] sm:$0xff] }
 0x3fc   :  { %1829 = vmatpush.bf16.msra.mxu2 %v2867_v5  ;;  %1842 = vmatpush.bf16.msra.mxu3 %v2870_v12 }
 0x3fd   :  { %1897 = vmatpush.bf16.msrb.mxu0 %v2872_v13  ;;  %1910 = vmatpush.bf16.msrb.mxu1 %v2874_v14 }
 0x400   :  { %1923 = vmatpush.bf16.msrb.mxu2 %v2876_v16  ;;  %1936 = vmatpush.bf16.msrb.mxu3 %v2879_v21 }
 0x401   :  { %1898 = vmatpush.bf16.msrb.mxu0 %v2885_v37  ;;  %1911 = vmatpush.bf16.msrb.mxu1 %v2889_v39 }
 0x404   :  { %1924 = vmatpush.bf16.msrb.mxu2 %v3773_v27  ;;  %1937 = vmatpush.bf16.msrb.mxu3 %v3774_v48 }
 0x405   :  { %1899 = vmatpush.bf16.msrb.mxu0 %v3775_v1  ;;  %1912 = vmatpush.bf16.msrb.mxu1 %v3776_v7 }
 0x408   :  { %1925 = vmatpush.bf16.msrb.mxu2 %v3777_v6  ;;  %1938 = vmatpush.bf16.msrb.mxu3 %v3778_v47 }
 0x409   :  { %1900 = vmatpush.bf16.msrb.mxu0 %v3779_v30  ;;  %1913 = vmatpush.bf16.msrb.mxu1 %v3780_v35 }
 0x40c   :  { %1926 = vmatpush.bf16.msrb.mxu2 %v3781_v0  ;;  %1939 = vmatpush.bf16.msrb.mxu3 %v3782_v49 }
 0x40d   :  { %1901 = vmatpush.bf16.msrb.mxu0 %v3783_v59  ;;  %1914 = vmatpush.bf16.msrb.mxu1 %v3784_v41  ;;  %v3799_v59 = vld [vmem:[#allocation35_spill] sm:$0xff] }
 0x410   :  { %1927 = vmatpush.bf16.msrb.mxu2 %v3785_v2  ;;  %1940 = vmatpush.bf16.msrb.mxu3 %v3786_v53  ;;  %v3797_v53 = vld [vmem:[#allocation33_spill] sm:$0xff] }
 0x411   :  { %1902 = vmatpush.bf16.msrb.mxu0 %v3787_v54  ;;  %1915 = vmatpush.bf16.msrb.mxu1 %v3788_v17  ;;  %v3798_v54 = vld [vmem:[#allocation34_spill] sm:$0xff] }
 0x414   :  { %1928 = vmatpush.bf16.msrb.mxu2 %v3789_v56  ;;  %1941 = vmatpush.bf16.msrb.mxu3 %v3790_v57 }
 0x415   :  { %1903 = vmatpush.bf16.msrb.mxu0 %v3791_v28  ;;  %1916 = vmatpush.bf16.msrb.mxu1 %v3792_v36  ;;  %v1592_v36 = vunpack.c.h.bf16 %v3799_v59 }
 0x418   :  { %1929 = vmatpush.bf16.msrb.mxu2 %v3793_v8  ;;  %1942 = vmatpush.bf16.msrb.mxu3 %v3794_v43 }
 0x419   :  { %1904 = vmatpush.bf16.msrb.mxu0 %v3795_v19  ;;  %1917 = vmatpush.bf16.msrb.mxu1 %v3796_v58 }
 0x41c   :  { %1930 = vmatpush.bf16.msrb.mxu2 %v3797_v53  ;;  %1943 = vmatpush.bf16.msrb.mxu3 %v3798_v54 }
 0x458   :  { %v1603_v17 = vpop.f32.mrf.mxu0  ;;  %v1616_v56 = vpop.f32.mrf.mxu1 }
 0x459   :  { %v1650_v2 = vrot.slane %v1616_v56, 6 }
 0x45b   :  { %v1653_v43 = vsel %vm447_vm0, %v1603_v17, %v1650_v2 }
 0x45f   :  { %v1629_v57 = vpop.f32.mrf.mxu2  ;;  %v1642_v41 = vpop.f32.mrf.mxu3 }
 0x460   :  { %v1651_v28 = vrot.slane %v1629_v57, 4  ;;  %v1652_v49 = vrot.slane %v1642_v41, 2  ;;  %v1605_v8 = vpop.f32.mrf.mxu0  ;;  %v1618_v0 = vpop.f32.mrf.mxu1 }
 0x462   :  { %v1654_v19 = vsel %vm449_vm1, %v1651_v28, %v1652_v49  ;;  %v3800_v49 = vld [vmem:[#allocation36_spill] sm:$0xff] }
 0x463   :  { %v1655_v58 = vsel %vm451_vm2, %v1653_v43, %v1654_v19  ;;  %v1693_v28 = vunpack.c.l.bf16 %v3800_v49 }
 0x464   :  { %v1657_v53 = vadd.f32 %v1655_v58, %v1592_v36 }
 0x466   :  { %v1658_v35 = vsub.f32 0.0, %v1657_v53  ;;  %v1678_v0 = vrot.slane %v1657_v53, 6 }
 0x467   :  { %v1631_v54 = vpop.f32.mrf.mxu2  ;;  %v1644_v30 = vpop.f32.mrf.mxu3 }
 0x468   :  { %v1659_v47 = vmul.f32 1.442695, %v1658_v35 }
 0x46a   :  { %2631 = vpow2.f32 %v1659_v47 }
 0x470   :  { %v2632_v56 = vpop.eup %2631 }
 0x471   :  { %v1661_v6 = vadd.f32 1.0, %v2632_v56 }
 0x473   :  { %2633 = vrcp.f32 %v1661_v6  ;;  %v1671_v36 = vand.u32 2147483647, %v1661_v6  ;;  %v1673_v19 = vand.u32 2147483648, %v1661_v6  ;;  %vm1667_vm5 = vweird.f32 %v1661_v6 }
 0x474   :  { %2635 = vtanh.f32 %v1678_v0 }
 0x475   :  { %vm1672_vm7 = vcmp.eq.f32.partialorder %v1671_v36, 8.507059e+37 }
 0x477   :  { %v1704_v57 = vpop.f32.mrf.mxu0  ;;  %v1717_v59 = vpop.f32.mrf.mxu1 }
 0x478   :  { %v1751_v2 = vrot.slane %v1717_v59, 6 }
 0x479   :  { %v2634_v41 = vpop.eup %2633 }
 0x47a   :  { %v1663_v8 = vmul.f32 %v2634_v41, %v1661_v6  ;;  %vm1668_vm4 = vweird.f32 %v2634_v41  ;;  %v1754_v56 = vsel %vm447_vm0, %v1704_v57, %v1751_v2 }
 0x47b   :  { %vm1669_vm6 = vmor %vm1667_vm5, %vm1668_vm4 }
 0x47c   :  { %v1664_v7 = vsub.f32 1.0, %v1663_v8  ;;  %v1674_v8 = vor.u32 1.1754944e-38, %v1673_v19 }
 0x47e   :  { %v1730_v17 = vpop.f32.mrf.mxu2  ;;  %v1743_v43 = vpop.f32.mrf.mxu3  ;;  %v1665_v58 = vmul.f32 %v2634_v41, %v1664_v7 }
 0x47f   :  { %v1752_v54 = vrot.slane %v1730_v17, 4  ;;  %v1753_v30 = vrot.slane %v1743_v43, 2  ;;  %v1706_v35 = vpop.f32.mrf.mxu0  ;;  %v1719_v47 = vpop.f32.mrf.mxu1 }
 0x480   :  { %v1666_v53 = vadd.f32 %v2634_v41, %v1665_v58  ;;  %v2636_v47 = vpop.eup %2635 }
 0x481   :  { %v1755_v1 = vsel %vm449_vm1, %v1752_v54, %v1753_v30 }
 0x482   :  { %v1756_v59 = vsel %vm451_vm2, %v1754_v56, %v1755_v1  ;;  %v1670_v48 = vsel %vm1669_vm6, %v2634_v41, %v1666_v53 }
 0x483   :  { %v1758_v49 = vadd.f32 %v1756_v59, %v1693_v28  ;;  %v1675_v17 = vsel %vm1672_vm7, %v1674_v8, %v1670_v48 }
 0x484   :  { %v1682_v35 = vrot.slane %v1675_v17, 2  ;;  %v1685_v2 = vmul.f32 %v2636_v47, %v1675_v17  ;;  %v1688_v28 = vrot.slane %v1675_v17, 4 }
 0x485   :  { %v1759_v43 = vsub.f32 0.0, %v1758_v49  ;;  %v1779_v19 = vrot.slane %v1758_v49, 6  ;;  %v3526_v49 = vld [vmem:[#allocation4 + $0x18] sm:$0xff]  }
 0x486   :  { %v1732_v7 = vpop.f32.mrf.mxu2  ;;  %v1745_v27 = vpop.f32.mrf.mxu3  ;;  %v1684_v57 = vmul.f32 %v1682_v35, %v3375_v18 }
 0x487   :  { %v1760_v0 = vmul.f32 1.442695, %v1759_v43  ;;  %v1794_v7 = vunpack.c.l.bf16 %v3526_v49 }
 0x488   :  { %v3455_v54 = vadd.f32 %v1685_v2, %v1684_v57 }
 0x489   :  { %2637 = vpow2.f32 %v1760_v0 }
 0x48a   :  { %2639 = vtanh.f32 %v3455_v54 }
 0x48f   :  { %v2638_v1 = vpop.eup %2637 }
 0x490   :  { %v1762_v6 = vadd.f32 1.0, %v2638_v1  ;;  %v2640_v41 = vpop.eup %2639 }
 0x491   :  { %v1690_v48 = vmul.f32 %v2640_v41, %v1688_v28 }
 0x492   :  { %2641 = vrcp.f32 %v1762_v6  ;;  %v1774_v58 = vand.u32 2147483648, %v1762_v6  ;;  %v1772_v53 = vand.u32 2147483647, %v1762_v6  ;;  %vm1768_vm9 = vweird.f32 %v1762_v6 }
 0x493   :  { %v1795_v36 = vpack.c.bf16 %v1690_v48, %v1690_v48  ;;  %2643 = vtanh.f32 %v1779_v19 }
 0x494   :  { %vm1773_vm11 = vcmp.eq.f32.partialorder %v1772_v53, 8.507059e+37 }
 0x495   :  { %1804 = vmatmul.bf16.vlgmr.msra.gmra.mxu0 %v1795_v36  ;;  %1817 = vmatmul.bf16.vlgmr.msra.gmra.mxu1 %v1795_v36 }
 0x496   :  { %1830 = vmatmul.bf16.vlgmr.msra.gmra.mxu2 %v1795_v36  ;;  %1843 = vmatmul.bf16.vlgmr.msra.gmra.mxu3 %v1795_v36 }
 0x497   :  { %1998 = vmatpush.bf16.msra.mxu0 %v2780_v20  ;;  %2011 = vmatpush.bf16.msra.mxu1 %v2782_v24  ;;  %v1775_v24 = vor.u32 1.1754944e-38, %v1774_v58 }
 0x498   :  { %v2642_v27 = vpop.eup %2641  ;;  %2024 = vmatpush.bf16.msra.mxu2 %v2784_v25  ;;  %2037 = vmatpush.bf16.msra.mxu3 %v2787_v29 }
 0x499   :  { %v1764_v18 = vmul.f32 %v2642_v27, %v1762_v6  ;;  %vm1769_vm8 = vweird.f32 %v2642_v27 }
 0x49a   :  { %vm1770_vm10 = vmor %vm1768_vm9, %vm1769_vm8 }
 0x49b   :  { %v1765_v30 = vsub.f32 1.0, %v1764_v18  ;;  %1999 = vmatpush.bf16.msra.mxu0 %v2791_v33  ;;  %2012 = vmatpush.bf16.msra.mxu1 %v2793_v34  ;;  %v2644_v34 = vpop.eup %2643 }
 0x49c   :  { %2025 = vmatpush.bf16.msra.mxu2 %v2796_v38  ;;  %2038 = vmatpush.bf16.msra.mxu3 %v2798_v42 }
 0x49d   :  { %v1766_v56 = vmul.f32 %v2642_v27, %v1765_v30 }
 0x49f   :  { %v1767_v20 = vadd.f32 %v2642_v27, %v1766_v56  ;;  %2000 = vmatpush.bf16.msra.mxu0 %v2801_v46  ;;  %2013 = vmatpush.bf16.msra.mxu1 %v2805_v50 }
 0x4a0   :  { %2026 = vmatpush.bf16.msra.mxu2 %v2807_v51  ;;  %2039 = vmatpush.bf16.msra.mxu3 %v2810_v55 }
 0x4a1   :  { %v1771_v25 = vsel %vm1770_vm10, %v2642_v27, %v1767_v20 }
 0x4a2   :  { %v1776_v29 = vsel %vm1773_vm11, %v1775_v24, %v1771_v25  ;;  %v3532_v24 = vld [vmem:[#allocation5] sm:$0xff]  }
 0x4a3   :  { %v1783_v33 = vrot.slane %v1776_v29, 2  ;;  %2001 = vmatpush.bf16.msra.mxu0 %v2813_v61  ;;  %2014 = vmatpush.bf16.msra.mxu1 %v2817_v62  ;;  %v1786_v42 = vmul.f32 %v2644_v34, %v1776_v29  ;;  %v1789_v50 = vrot.slane %v1776_v29, 4  ;;  %v3801_v62 = vld [vmem:[#allocation9_spill] sm:$0xff] }
 0x4a4   :  { %2027 = vmatpush.bf16.msra.mxu2 %v2819_v63  ;;  %2040 = vmatpush.bf16.msra.mxu3 %v2822_v3  ;;  %v3802_v63 = vld [vmem:[#allocation10_spill] sm:$0xff]  ;;  %v3803_v3 = vld [vmem:[#allocation11_spill] sm:$0xff] }
 0x4a5   :  { %v1785_v38 = vmul.f32 %v1783_v33, %v3395_v32  ;;  %v3826_v32 = vld [vmem:[#allocation34_spill] sm:$0xff] }
 0x4a7   :  { %v3475_v46 = vadd.f32 %v1786_v42, %v1785_v38  ;;  %2002 = vmatpush.bf16.msra.mxu0 %v2825_v9  ;;  %2015 = vmatpush.bf16.msra.mxu1 %v2829_v10  ;;  %v3804_v9 = vld [vmem:[#allocation12_spill] sm:$0xff]  ;;  %v3805_v10 = vld [vmem:[#allocation13_spill] sm:$0xff]  ;;  %v1895_v38 = vunpack.c.h.bf16 %v3532_v24 }
 0x4a8   :  { %2028 = vmatpush.bf16.msra.mxu2 %v2831_v11  ;;  %2041 = vmatpush.bf16.msra.mxu3 %v2834_v15  ;;  %v3806_v11 = vld [vmem:[#allocation14_spill] sm:$0xff]  ;;  %v3807_v15 = vld [vmem:[#allocation15_spill] sm:$0xff] }
 0x4a9   :  { %2645 = vtanh.f32 %v3475_v46 }
 0x4ab   :  { %2003 = vmatpush.bf16.msra.mxu0 %v2837_v22  ;;  %2016 = vmatpush.bf16.msra.mxu1 %v2841_v23  ;;  %v3808_v22 = vld [vmem:[#allocation16_spill] sm:$0xff]  ;;  %v3809_v23 = vld [vmem:[#allocation17_spill] sm:$0xff] }
 0x4ac   :  { %2029 = vmatpush.bf16.msra.mxu2 %v2843_v26  ;;  %2042 = vmatpush.bf16.msra.mxu3 %v2846_v31  ;;  %v3810_v26 = vld [vmem:[#allocation18_spill] sm:$0xff]  ;;  %v3811_v31 = vld [vmem:[#allocation19_spill] sm:$0xff] }
 0x4af   :  { %v2646_v51 = vpop.eup %2645  ;;  %2004 = vmatpush.bf16.msra.mxu0 %v2849_v40  ;;  %2017 = vmatpush.bf16.msra.mxu1 %v2853_v44  ;;  %v3812_v40 = vld [vmem:[#allocation20_spill] sm:$0xff]  ;;  %v3813_v44 = vld [vmem:[#allocation21_spill] sm:$0xff] }
 0x4b0   :  { %v1791_v55 = vmul.f32 %v2646_v51, %v1789_v50  ;;  %2030 = vmatpush.bf16.msra.mxu2 %v2855_v45  ;;  %2043 = vmatpush.bf16.msra.mxu3 %v2858_v52  ;;  %v3814_v45 = vld [vmem:[#allocation22_spill] sm:$0xff]  ;;  %v3815_v52 = vld [vmem:[#allocation23_spill] sm:$0xff] }
 0x4b2   :  { %v1896_v61 = vpack.c.bf16 %v1791_v55, %v1791_v55 }
 0x4b3   :  { %2005 = vmatpush.bf16.msra.mxu0 %v2861_v60  ;;  %2018 = vmatpush.bf16.msra.mxu1 %v2865_v4  ;;  %v3816_v60 = vld [vmem:[#allocation24_spill] sm:$0xff]  ;;  %v3817_v4 = vld [vmem:[#allocation25_spill] sm:$0xff] }
 0x4b4   :  { %1905 = vmatmul.bf16.vlgmr.msrb.gmra.mxu0 %v1896_v61  ;;  %1918 = vmatmul.bf16.vlgmr.msrb.gmra.mxu1 %v1896_v61 }
 0x4b5   :  { %1931 = vmatmul.bf16.vlgmr.msrb.gmra.mxu2 %v1896_v61  ;;  %1944 = vmatmul.bf16.vlgmr.msrb.gmra.mxu3 %v1896_v61 }
 0x4b6   :  { %2031 = vmatpush.bf16.msra.mxu2 %v2867_v5  ;;  %2044 = vmatpush.bf16.msra.mxu3 %v2870_v12  ;;  %v3818_v5 = vld [vmem:[#allocation26_spill] sm:$0xff]  ;;  %v3819_v12 = vld [vmem:[#allocation27_spill] sm:$0xff] }
 0x4b7   :  { %2098 = vmatpush.bf16.msrb.mxu0 %v2872_v13  ;;  %2111 = vmatpush.bf16.msrb.mxu1 %v2874_v14  ;;  %v3820_v13 = vld [vmem:[#allocation28_spill] sm:$0xff]  ;;  %v3821_v14 = vld [vmem:[#allocation29_spill] sm:$0xff] }
 0x4ba   :  { %2124 = vmatpush.bf16.msrb.mxu2 %v2876_v16  ;;  %2137 = vmatpush.bf16.msrb.mxu3 %v2879_v21  ;;  %v3822_v16 = vld [vmem:[#allocation30_spill] sm:$0xff]  ;;  %v3823_v21 = vld [vmem:[#allocation31_spill] sm:$0xff] }
 0x4bb   :  { %2099 = vmatpush.bf16.msrb.mxu0 %v2885_v37  ;;  %2112 = vmatpush.bf16.msrb.mxu1 %v2889_v39  ;;  %v3824_v37 = vld [vmem:[#allocation32_spill] sm:$0xff]  ;;  %v3825_v39 = vld [vmem:[#allocation33_spill] sm:$0xff] }
 0x4be   :  { %2125 = vmatpush.bf16.msrb.mxu2 %v3801_v62  ;;  %2138 = vmatpush.bf16.msrb.mxu3 %v3802_v63 }
 0x4bf   :  { %2100 = vmatpush.bf16.msrb.mxu0 %v3803_v3  ;;  %2113 = vmatpush.bf16.msrb.mxu1 %v3804_v9 }
 0x4c2   :  { %2126 = vmatpush.bf16.msrb.mxu2 %v3805_v10  ;;  %2139 = vmatpush.bf16.msrb.mxu3 %v3806_v11 }
 0x4c3   :  { %2101 = vmatpush.bf16.msrb.mxu0 %v3807_v15  ;;  %2114 = vmatpush.bf16.msrb.mxu1 %v3808_v22 }
 0x4c6   :  { %2127 = vmatpush.bf16.msrb.mxu2 %v3809_v23  ;;  %2140 = vmatpush.bf16.msrb.mxu3 %v3810_v26 }
 0x4c7   :  { %2102 = vmatpush.bf16.msrb.mxu0 %v3811_v31  ;;  %2115 = vmatpush.bf16.msrb.mxu1 %v3812_v40 }
 0x4ca   :  { %2128 = vmatpush.bf16.msrb.mxu2 %v3813_v44  ;;  %2141 = vmatpush.bf16.msrb.mxu3 %v3814_v45 }
 0x4cb   :  { %2103 = vmatpush.bf16.msrb.mxu0 %v3815_v52  ;;  %2116 = vmatpush.bf16.msrb.mxu1 %v3816_v60 }
 0x4ce   :  { %2129 = vmatpush.bf16.msrb.mxu2 %v3817_v4  ;;  %2142 = vmatpush.bf16.msrb.mxu3 %v3818_v5 }
 0x4cf   :  { %2104 = vmatpush.bf16.msrb.mxu0 %v3819_v12  ;;  %2117 = vmatpush.bf16.msrb.mxu1 %v3820_v13 }
 0x4d2   :  { %2130 = vmatpush.bf16.msrb.mxu2 %v3821_v14  ;;  %2143 = vmatpush.bf16.msrb.mxu3 %v3822_v16 }
 0x4d3   :  { %2105 = vmatpush.bf16.msrb.mxu0 %v3823_v21  ;;  %2118 = vmatpush.bf16.msrb.mxu1 %v3824_v37 }
 0x4d6   :  { %2131 = vmatpush.bf16.msrb.mxu2 %v3825_v39  ;;  %2144 = vmatpush.bf16.msrb.mxu3 %v3826_v32 }
 0x512   :  { %v1805_v59 = vpop.f32.mrf.mxu0  ;;  %v1818_v8 = vpop.f32.mrf.mxu1 }
 0x513   :  { %v1852_v17 = vrot.slane %v1818_v8, 6 }
 0x515   :  { %v1855_v1 = vsel %vm447_vm0, %v1805_v59, %v1852_v17 }
 0x519   :  { %v1831_v43 = vpop.f32.mrf.mxu2  ;;  %v1844_v35 = vpop.f32.mrf.mxu3 }
 0x51a   :  { %v1853_v47 = vrot.slane %v1831_v43, 4  ;;  %v1854_v0 = vrot.slane %v1844_v35, 2  ;;  %v1807_v57 = vpop.f32.mrf.mxu0  ;;  %v1820_v2 = vpop.f32.mrf.mxu1 }
 0x51c   :  { %v1856_v6 = vsel %vm449_vm1, %v1853_v47, %v1854_v0 }
 0x51d   :  { %v1857_v28 = vsel %vm451_vm2, %v1855_v1, %v1856_v6 }
 0x51e   :  { %v1859_v41 = vadd.f32 %v1857_v28, %v1794_v7 }
 0x520   :  { %v1860_v48 = vsub.f32 0.0, %v1859_v41  ;;  %v1880_v25 = vrot.slane %v1859_v41, 6 }
 0x521   :  { %v1833_v36 = vpop.f32.mrf.mxu2  ;;  %v1846_v27 = vpop.f32.mrf.mxu3 }
 0x522   :  { %v1861_v18 = vmul.f32 1.442695, %v1860_v48 }
 0x524   :  { %2647 = vpow2.f32 %v1861_v18 }
 0x52a   :  { %v2648_v19 = vpop.eup %2647 }
 0x52b   :  { %v1863_v30 = vadd.f32 1.0, %v2648_v19 }
 0x52d   :  { %2649 = vrcp.f32 %v1863_v30  ;;  %v1873_v50 = vand.u32 2147483647, %v1863_v30  ;;  %v1875_v51 = vand.u32 2147483648, %v1863_v30  ;;  %vm1869_vm13 = vweird.f32 %v1863_v30 }
 0x52e   :  { %2651 = vtanh.f32 %v1880_v25 }
 0x52f   :  { %v1876_v22 = vor.u32 1.1754944e-38, %v1875_v51  ;;  %vm1874_vm15 = vcmp.eq.f32.partialorder %v1873_v50, 8.507059e+37 }
 0x531   :  { %v1906_v58 = vpop.f32.mrf.mxu0  ;;  %v1919_v56 = vpop.f32.mrf.mxu1 }
 0x532   :  { %v1953_v33 = vrot.slane %v1919_v56, 6 }
 0x533   :  { %v2650_v53 = vpop.eup %2649 }
 0x534   :  { %v1865_v20 = vmul.f32 %v2650_v53, %v1863_v30  ;;  %vm1870_vm12 = vweird.f32 %v2650_v53  ;;  %v1956_v9 = vsel %vm447_vm0, %v1906_v58, %v1953_v33  ;;  %v2652_v45 = vpop.eup %2651 }
 0x535   :  { %vm1871_vm14 = vmor %vm1869_vm13, %vm1870_vm12 }
 0x536   :  { %v1866_v29 = vsub.f32 1.0, %v1865_v20 }
 0x538   :  { %v1932_v34 = vpop.f32.mrf.mxu2  ;;  %v1945_v42 = vpop.f32.mrf.mxu3  ;;  %v1867_v3 = vmul.f32 %v2650_v53, %v1866_v29 }
 0x539   :  { %v1954_v55 = vrot.slane %v1932_v34, 4  ;;  %v1955_v61 = vrot.slane %v1945_v42, 2  ;;  %v1908_v62 = vpop.f32.mrf.mxu0  ;;  %v1921_v63 = vpop.f32.mrf.mxu1 }
 0x53a   :  { %v1868_v11 = vadd.f32 %v2650_v53, %v1867_v3 }
 0x53b   :  { %v1957_v10 = vsel %vm449_vm1, %v1954_v55, %v1955_v61 }
 0x53c   :  { %v1958_v15 = vsel %vm451_vm2, %v1956_v9, %v1957_v10  ;;  %v1872_v26 = vsel %vm1871_vm14, %v2650_v53, %v1868_v11 }
 0x53d   :  { %v1960_v23 = vadd.f32 %v1958_v15, %v1895_v38  ;;  %v1877_v31 = vsel %vm1874_vm15, %v1876_v22, %v1872_v26 }
 0x53e   :  { %v1884_v44 = vrot.slane %v1877_v31, 2  ;;  %v1887_v12 = vmul.f32 %v2652_v45, %v1877_v31  ;;  %v1890_v21 = vrot.slane %v1877_v31, 4  ;;  %v2096_v45 = vunpack.c.l.bf16 %v3532_v24 }
 0x53f   :  { %v1961_v40 = vsub.f32 0.0, %v1960_v23 }
 0x540   :  { %v1934_v52 = vpop.f32.mrf.mxu2  ;;  %v1947_v60 = vpop.f32.mrf.mxu3  ;;  %v1886_v5 = vmul.f32 %v1884_v44, %v3455_v54  ;;  %v1981_v54 = vrot.slane %v1960_v23, 6 }
 0x541   :  { %v1962_v4 = vmul.f32 1.442695, %v1961_v40 }
 0x542   :  { %v3539_v13 = vadd.f32 %v1887_v12, %v1886_v5 }
 0x543   :  { %2653 = vpow2.f32 %v1962_v4 }
 0x544   :  { %2655 = vtanh.f32 %v3539_v13 }
 0x549   :  { %v2654_v14 = vpop.eup %2653 }
 0x54a   :  { %v1964_v16 = vadd.f32 1.0, %v2654_v14  ;;  %v2656_v37 = vpop.eup %2655 }
 0x54b   :  { %v1892_v39 = vmul.f32 %v2656_v37, %v1890_v21 }
 0x54c   :  { %2657 = vrcp.f32 %v1964_v16  ;;  %v1976_v43 = vand.u32 2147483648, %v1964_v16  ;;  %v1974_v47 = vand.u32 2147483647, %v1964_v16  ;;  %vm1970_vm4 = vweird.f32 %v1964_v16 }
 0x54d   :  { %v1997_v32 = vpack.c.bf16 %v1892_v39, %v1892_v39  ;;  %2659 = vtanh.f32 %v1981_v54 }
 0x54e   :  { %v1977_v0 = vor.u32 1.1754944e-38, %v1976_v43  ;;  %vm1975_vm6 = vcmp.eq.f32.partialorder %v1974_v47, 8.507059e+37 }
 0x54f   :  { %2006 = vmatmul.bf16.vlgmr.msra.gmra.mxu0 %v1997_v32  ;;  %2019 = vmatmul.bf16.vlgmr.msra.gmra.mxu1 %v1997_v32 }
 0x550   :  { %2032 = vmatmul.bf16.vlgmr.msra.gmra.mxu2 %v1997_v32  ;;  %2045 = vmatmul.bf16.vlgmr.msra.gmra.mxu3 %v1997_v32 }
 0x552   :  { %v2658_v59 = vpop.eup %2657 }
 0x553   :  { %v1966_v8 = vmul.f32 %v2658_v59, %v1964_v16  ;;  %vm1971_vm3 = vweird.f32 %v2658_v59  ;;  %v2660_v6 = vpop.eup %2659 }
 0x554   :  { %vm1972_vm5 = vmor %vm1970_vm4, %vm1971_vm3 }
 0x555   :  { %v1967_v17 = vsub.f32 1.0, %v1966_v8 }
 0x557   :  { %v1968_v35 = vmul.f32 %v2658_v59, %v1967_v17 }
 0x559   :  { %v1969_v7 = vadd.f32 %v2658_v59, %v1968_v35 }
 0x55b   :  { %v1973_v57 = vsel %vm1972_vm5, %v2658_v59, %v1969_v7 }
 0x55c   :  { %v1978_v2 = vsel %vm1975_vm6, %v1977_v0, %v1973_v57 }
 0x55d   :  { %v1985_v1 = vrot.slane %v1978_v2, 2  ;;  %v1988_v41 = vmul.f32 %v2660_v6, %v1978_v2  ;;  %v1991_v36 = vrot.slane %v1978_v2, 4 }
 0x55f   :  { %v1987_v28 = vmul.f32 %v1985_v1, %v3475_v46  ;;  %v1996_v46 = vunpack.c.h.bf16 %v3526_v49 }
 0x561   :  { %v3543_v48 = vadd.f32 %v1988_v41, %v1987_v28 }
 0x563   :  { %2661 = vtanh.f32 %v3543_v48 }
 0x569   :  { %v2662_v27 = vpop.eup %2661 }
 0x56a   :  { %v1993_v18 = vmul.f32 %v2662_v27, %v1991_v36 }
 0x56c   :  { %v2097_v19 = vpack.c.bf16 %v1993_v18, %v1993_v18 }
 0x56e   :  { %2106 = vmatmul.bf16.vlgmr.msrb.gmra.mxu0 %v2097_v19  ;;  %2119 = vmatmul.bf16.vlgmr.msrb.gmra.mxu1 %v2097_v19 }
 0x56f   :  { %2132 = vmatmul.bf16.vlgmr.msrb.gmra.mxu2 %v2097_v19  ;;  %2145 = vmatmul.bf16.vlgmr.msrb.gmra.mxu3 %v2097_v19 }
 0x5cc   :  { %v2007_v30 = vpop.f32.mrf.mxu0  ;;  %v2020_v58 = vpop.f32.mrf.mxu1 }
 0x5cd   :  { %v2054_v56 = vrot.slane %v2020_v58, 6 }
 0x5cf   :  { %v2057_v38 = vsel %vm447_vm0, %v2007_v30, %v2054_v56 }
 0x5d3   :  { %v2033_v53 = vpop.f32.mrf.mxu2  ;;  %v2046_v20 = vpop.f32.mrf.mxu3 }
 0x5d4   :  { %v2055_v25 = vrot.slane %v2033_v53, 4  ;;  %v2056_v29 = vrot.slane %v2046_v20, 2  ;;  %v2009_v33 = vpop.f32.mrf.mxu0  ;;  %v2022_v34 = vpop.f32.mrf.mxu1 }
 0x5d6   :  { %v2058_v42 = vsel %vm449_vm1, %v2055_v25, %v2056_v29 }
 0x5d7   :  { %v2059_v50 = vsel %vm451_vm2, %v2057_v38, %v2058_v42 }
 0x5d8   :  { %v2061_v51 = vadd.f32 %v2059_v50, %v1996_v46 }
 0x5da   :  { %v2062_v55 = vsub.f32 0.0, %v2061_v51  ;;  %v2082_v22 = vrot.slane %v2061_v51, 6 }
 0x5db   :  { %v2035_v61 = vpop.f32.mrf.mxu2  ;;  %v2048_v62 = vpop.f32.mrf.mxu3 }
 0x5dc   :  { %v2063_v63 = vmul.f32 1.442695, %v2062_v55 }
 0x5de   :  { %2663 = vpow2.f32 %v2063_v63 }
 0x5e4   :  { %v2664_v3 = vpop.eup %2663 }
 0x5e5   :  { %v2065_v9 = vadd.f32 1.0, %v2664_v3 }
 0x5e7   :  { %2665 = vrcp.f32 %v2065_v9  ;;  %v2075_v31 = vand.u32 2147483647, %v2065_v9  ;;  %v2077_v40 = vand.u32 2147483648, %v2065_v9  ;;  %vm2071_vm8 = vweird.f32 %v2065_v9 }
 0x5e8   :  { %2667 = vtanh.f32 %v2082_v22 }
 0x5e9   :  { %v2078_v39 = vor.u32 1.1754944e-38, %v2077_v40  ;;  %vm2076_vm10 = vcmp.eq.f32.partialorder %v2075_v31, 8.507059e+37 }
 0x5eb   :  { %v2107_v10 = vpop.f32.mrf.mxu0  ;;  %v2120_v49 = vpop.f32.mrf.mxu1 }
 0x5ec   :  { %v2154_v26 = vrot.slane %v2120_v49, 6 }
 0x5ed   :  { %v2666_v11 = vpop.eup %2665 }
 0x5ee   :  { %v2067_v15 = vmul.f32 %v2666_v11, %v2065_v9  ;;  %vm2072_vm7 = vweird.f32 %v2666_v11  ;;  %v2157_v21 = vsel %vm447_vm0, %v2107_v10, %v2154_v26  ;;  %v2668_v43 = vpop.eup %2667 }
 0x5ef   :  { %vm2073_vm9 = vmor %vm2071_vm8, %vm2072_vm7 }
 0x5f0   :  { %v2068_v23 = vsub.f32 1.0, %v2067_v15 }
 0x5f2   :  { %v2133_v44 = vpop.f32.mrf.mxu2  ;;  %v2146_v52 = vpop.f32.mrf.mxu3  ;;  %v2069_v60 = vmul.f32 %v2666_v11, %v2068_v23 }
 0x5f3   :  { %v2155_v4 = vrot.slane %v2133_v44, 4  ;;  %v2156_v5 = vrot.slane %v2146_v52, 2  ;;  %v2109_v12 = vpop.f32.mrf.mxu0  ;;  %v2122_v14 = vpop.f32.mrf.mxu1 }
 0x5f4   :  { %v2070_v16 = vadd.f32 %v2666_v11, %v2069_v60 }
 0x5f5   :  { %v2158_v37 = vsel %vm449_vm1, %v2155_v4, %v2156_v5 }
 0x5f6   :  { %v2159_v32 = vsel %vm451_vm2, %v2157_v21, %v2158_v37  ;;  %v2074_v59 = vsel %vm2073_vm9, %v2666_v11, %v2070_v16 }
 0x5f7   :  { %v2161_v24 = vadd.f32 %v2159_v32, %v2096_v45  ;;  %v2079_v8 = vsel %vm2076_vm10, %v2078_v39, %v2074_v59 }
 0x5f8   :  { %v2086_v54 = vrot.slane %v2079_v8, 2  ;;  %v2089_v0 = vmul.f32 %v2668_v43, %v2079_v8  ;;  %v2092_v6 = vrot.slane %v2079_v8, 4 }
 0x5f9   :  { %v2162_v17 = vsub.f32 0.0, %v2161_v24 }
 0x5fa   :  { %v2135_v35 = vpop.f32.mrf.mxu2  ;;  %v2148_v47 = vpop.f32.mrf.mxu3  ;;  %v2088_v7 = vmul.f32 %v2086_v54, %v3539_v13  ;;  %v2182_v13 = vrot.slane %v2161_v24, 6 }
 0x5fb   :  { %v2163_v57 = vmul.f32 1.442695, %v2162_v17 }
 0x5fc   :  { %v2090_v2 = vadd.f32 %v2089_v0, %v2088_v7 }
 0x5fd   :  { %2669 = vpow2.f32 %v2163_v57 }
 0x5fe   :  { %2671 = vtanh.f32 %v2090_v2  ;;  %2196 = vst [vmem:[#allocation3] sm:$0x3] %v2090_v2 }
 0x603   :  { %v2670_v1 = vpop.eup %2669 }
 0x604   :  { %v2165_v28 = vadd.f32 1.0, %v2670_v1  ;;  %v2672_v41 = vpop.eup %2671 }
 0x605   :  { %v2094_v36 = vmul.f32 %v2672_v41, %v2092_v6 }
 0x606   :  { %2673 = vrcp.f32 %v2165_v28  ;;  %v2177_v30 = vand.u32 2147483648, %v2165_v28  ;;  %v2175_v56 = vand.u32 2147483647, %v2165_v28  ;;  %vm2171_vm1 = vweird.f32 %v2165_v28 }
 0x607   :  { %2195 = vst [vmem:[#allocation2] sm:$0x3] %v2094_v36  ;;  %2675 = vtanh.f32 %v2182_v13 }
 0x608   :  { %2199 = vst [vmem:[%s3565_s3] sm:$0x3] %v2094_v36  ;;  %v2178_v20 = vor.u32 1.1754944e-38, %v2177_v30  ;;  %vm2176_vm11 = vcmp.eq.f32.partialorder %v2175_v56, 8.507059e+37 }
 0x60c   :  { %v2674_v27 = vpop.eup %2673 }
 0x60d   :  { %v2167_v18 = vmul.f32 %v2674_v27, %v2165_v28  ;;  %vm2172_vm0 = vweird.f32 %v2674_v27  ;;  %v2676_v33 = vpop.eup %2675 }
 0x60e   :  { %vm2173_vm2 = vmor %vm2171_vm1, %vm2172_vm0 }
 0x60f   :  { %v2168_v19 = vsub.f32 1.0, %v2167_v18 }
 0x611   :  { %v2169_v58 = vmul.f32 %v2674_v27, %v2168_v19 }
 0x613   :  { %v2170_v53 = vadd.f32 %v2674_v27, %v2169_v58 }
 0x615   :  { %v2174_v25 = vsel %vm2173_vm2, %v2674_v27, %v2170_v53 }
 0x616   :  { %v2179_v46 = vsel %vm2176_vm11, %v2178_v20, %v2174_v25 }
 0x617   :  { %v2186_v29 = vrot.slane %v2179_v46, 2  ;;  %v2189_v38 = vmul.f32 %v2676_v33, %v2179_v46  ;;  %v2192_v50 = vrot.slane %v2179_v46, 4 }
 0x619   :  { %v2188_v34 = vmul.f32 %v2186_v29, %v3543_v48 }
 0x61b   :  { %v2190_v42 = vadd.f32 %v2189_v38, %v2188_v34 }
 0x61d   :  { %2677 = vtanh.f32 %v2190_v42  ;;  %2198 = vst [vmem:[#allocation3 + $0x2] sm:$0x3] %v2190_v42 }
 0x623   :  { %v2678_v51 = vpop.eup %2677 }
 0x624   :  { %v2194_v55 = vmul.f32 %v2678_v51, %v2192_v50 }
 0x626   :  { %2197 = vst [vmem:[#allocation2 + $0x2] sm:$0x3] %v2194_v55 }
 0x627   :  { %2482 = vst [vmem:[%s3565_s3 + $0x2] sm:$0x3] %v2194_v55 }
 0x628   :  { %2206 = vsyncpa [#allocation7], 1 }

// kernel: _lstm_forward.5
= control target key start
LH: loop header
LB: loop body
LE: loop exit
PB: predicated region body
PF: predicated region fallthrough
CT: control target
= control target key end

     0   :  { %11 = vsyncpa [#allocation7], 0  ;;  %s8349_s0 = inlined_call_operand.vmem [shape: bf16[8,2,1024], index: 0, kind: input, shape index: {}, may-alias: {0,1}]   ;;  %s8350_s1 = inlined_call_operand.vmem [shape: bf16[8,2,1024], index: 1, kind: input, shape index: {}, may-alias: {0,1}]   ;;  %s8351_s2 = inlined_call_operand.hbm [shape: bf16[2,128,512], index: 2, kind: input, shape index: {}]   ;;  %s8352_s3 = inlined_call_operand.vmem [shape: bf16[8,2,128], index: 3, kind: output, shape index: {0}]   ;;  %s8353_s4 = inlined_call_operand.vmem [shape: bf16[8,2,128], index: 4, kind: output, shape index: {1}]   ;;  %s8354_s5 = inlined_call_operand.hbm [shape: f32[2,2,128], index: 5, kind: output, shape index: {2}]  }
   0x1   :  { %12 = vsyncpa [#allocation8], 0  ;;  %v31_v0 = vld [vmem:[%s8349_s0] sm:$0xf]  ;;  %v33_v1 = vld [vmem:[%s8349_s0 + $0x8] sm:$0xf] }
   0x2   :  { %32 = vst [vmem:[#allocation4] sm:$0xf] %v31_v0  ;;  %v35_v2 = vld [vmem:[%s8349_s0 + $0x10] sm:$0xf]  ;;  %v37_v3 = vld [vmem:[%s8349_s0 + $0x18] sm:$0xf] }
   0x3   :  { %34 = vst [vmem:[#allocation4 + $0x4] sm:$0xf] %v33_v1  ;;  %v39_v4 = vld [vmem:[%s8349_s0 + $0x20] sm:$0xf]  ;;  %v41_v5 = vld [vmem:[%s8349_s0 + $0x28] sm:$0xf] }
   0x4   :  { %36 = vst [vmem:[#allocation4 + $0x8] sm:$0xf] %v35_v2  ;;  %v43_v6 = vld [vmem:[%s8349_s0 + $0x30] sm:$0xf]  ;;  %v45_v7 = vld [vmem:[%s8349_s0 + $0x38] sm:$0xf] }
   0x5   :  { %38 = vst [vmem:[#allocation4 + $0xc] sm:$0xf] %v37_v3  ;;  %v4992_v8 = vld [vmem:[%s8350_s1 + $0x4] sm:$0xf]  ;;  %v4993_v9 = vld [vmem:[%s8350_s1 + $0xc] sm:$0xf] }
   0x6   :  { %40 = vst [vmem:[#allocation4 + $0x10] sm:$0xf] %v39_v4  ;;  %v4994_v10 = vld [vmem:[%s8350_s1 + $0x14] sm:$0xf]  ;;  %v4995_v11 = vld [vmem:[%s8350_s1 + $0x1c] sm:$0xf] }
   0x7   :  { %42 = vst [vmem:[#allocation4 + $0x14] sm:$0xf] %v41_v5  ;;  %s164_s18 = sshll.u32 %s8351_s2, 4  ;;  %v4996_v12 = vld [vmem:[%s8350_s1 + $0x24] sm:$0xf]  ;;  %s7761_s21 = smov [#allocation6]   ;;  %s165_s18 = int_to_ptr.hbm [resolvable:$true] %s164_s18 }
   0x8   :  { %44 = vst [vmem:[#allocation4 + $0x18] sm:$0xf] %v43_v6  ;;  %s166_s22 = sshll.u32 %s7761_s21, 4  ;;  %v4997_v13 = vld [vmem:[%s8350_s1 + $0x2c] sm:$0xf]  ;;  %s7762_s2 = smov 256   ;;  %s167_s22 = int_to_ptr.vmem [resolvable:$true] %s166_s22 }
   0x9   :  { %46 = vst [vmem:[#allocation4 + $0x1c] sm:$0xf] %v45_v7  ;;  %v4998_v14 = vld [vmem:[%s8350_s1 + $0x34] sm:$0xf]  ;;  %s7763_s27 = smov 16  }
   0xa   :  { %108 = vst [vmem:[#allocation5] sm:$0xf] %v4992_v8  ;;  %172 = dma.hbm_to_vmem [thread:$0]  %s165_s18, 8192, %s167_s22, [#allocation7], %s7762_s2, %s7762_s2, %s7763_s27  }
   0xb   :  { %110 = vst [vmem:[#allocation5 + $0x4] sm:$0xf] %v4993_v9  ;;  %v4999_v15 = vld [vmem:[%s8350_s1 + $0x3c] sm:$0xf] }
   0xc   :  { %112 = vst [vmem:[#allocation5 + $0x8] sm:$0xf] %v4994_v10 }
   0xd   :  { %114 = vst [vmem:[#allocation5 + $0xc] sm:$0xf] %v4995_v11 }
   0xe   :  { %116 = vst [vmem:[#allocation5 + $0x10] sm:$0xf] %v4996_v12 }
   0xf   :  { %118 = vst [vmem:[#allocation5 + $0x14] sm:$0xf] %v4997_v13 }
  0x10   :  { %120 = vst [vmem:[#allocation5 + $0x18] sm:$0xf] %v4998_v14 }
  0x11   :  { %122 = vst [vmem:[#allocation5 + $0x1c] sm:$0xf] %v4999_v15 }
  0x12   :  { %7757 = dma.done.wait [#allocation7], 8192  }
  0x13   :  { %7758 = vsyncadd [#allocation7], 4294959104  ;;  %v7764_v16 = vmov 0.0   ;;  %v5114_v17 = vld [vmem:[#allocation6 + $0xe0] sm:$0xf]  ;;  %vm463_vm0 = vcmask 1041408  }
  0x14   :  { %199 = vst [vmem:[#allocation2] sm:$0x3] %v7764_v16  ;;  %v7092_v18 = vld [vmem:[#allocation6 + $0xec] sm:$0xf0]  ;;  %v7090_v19 = vld [vmem:[#allocation6 + $0xe4] sm:$0xf] }
  0x15   :  { %201 = vst [vmem:[#allocation3] sm:$0x3] %v7764_v16  ;;  %v5115_v20 = vor.u32 %v7092_v18, %v5114_v17  ;;  %v5116_v21 = vld [vmem:[#allocation6 + $0xf0] sm:$0xf0]  ;;  %v5122_v22 = vld [vmem:[#allocation6 + $0xe8] sm:$0xf] }
  0x16   :  { %202 = vst [vmem:[#allocation3 + $0x2] sm:$0x3] %v7764_v16  ;;  %v7093_v23 = vld [vmem:[#allocation6 + $0xf4] sm:$0xf0]  ;;  %v5119_v24 = vor.u32 %v7090_v19, %v5116_v21  ;;  %v7091_v26 = vld [vmem:[#allocation6 + $0xec] sm:$0xf] }
  0x17   :  { %200 = vst [vmem:[#allocation2 + $0x2] sm:$0x3] %v7764_v16  ;;  %v5123_v25 = vor.u32 %v7093_v23, %v5122_v22  ;;  %v5124_v27 = vld [vmem:[#allocation6 + $0xf8] sm:$0xf0]  ;;  %v5098_v28 = vld [vmem:[#allocation6 + $0xc0] sm:$0xf]  ;;  %404 = vmatpush.bf16.msra.mxu0 %v5115_v20 }
  0x18   :  { %v5127_v29 = vor.u32 %v7091_v26, %v5124_v27  ;;  %v7088_v30 = vld [vmem:[#allocation6 + $0xcc] sm:$0xf0]  ;;  %v7086_v31 = vld [vmem:[#allocation6 + $0xc4] sm:$0xf]  ;;  %v5100_v32 = vld [vmem:[#allocation6 + $0xd0] sm:$0xf0]  ;;  %417 = vmatpush.bf16.msra.mxu1 %v5119_v24 }
  0x19   :  { %430 = vmatpush.bf16.msra.mxu2 %v5123_v25  ;;  %v5099_v33 = vor.u32 %v7088_v30, %v5098_v28  ;;  %v5103_v34 = vor.u32 %v7086_v31, %v5100_v32  ;;  %v5106_v35 = vld [vmem:[#allocation6 + $0xc8] sm:$0xf]  ;;  %v7089_v36 = vld [vmem:[#allocation6 + $0xd4] sm:$0xf0]  ;;  %v7087_v37 = vld [vmem:[#allocation6 + $0xcc] sm:$0xf] }
  0x1a   :  { %443 = vmatpush.bf16.msra.mxu3 %v5127_v29  ;;  %v5107_v38 = vor.u32 %v7089_v36, %v5106_v35  ;;  %v5108_v39 = vld [vmem:[#allocation6 + $0xd8] sm:$0xf0]  ;;  %v5082_v40 = vld [vmem:[#allocation6 + $0xa0] sm:$0xf]  ;;  %v7084_v41 = vld [vmem:[#allocation6 + $0xac] sm:$0xf0] }
  0x1b   :  { %v5111_v42 = vor.u32 %v7087_v37, %v5108_v39  ;;  %v7082_v43 = vld [vmem:[#allocation6 + $0xa4] sm:$0xf]  ;;  %v5084_v44 = vld [vmem:[#allocation6 + $0xb0] sm:$0xf0]  ;;  %v5090_v45 = vld [vmem:[#allocation6 + $0xa8] sm:$0xf]  ;;  %405 = vmatpush.bf16.msra.mxu0 %v5099_v33  ;;  %v5083_v46 = vor.u32 %v7084_v41, %v5082_v40 }
  0x1c   :  { %v7085_v47 = vld [vmem:[#allocation6 + $0xb4] sm:$0xf0]  ;;  %v7083_v48 = vld [vmem:[#allocation6 + $0xac] sm:$0xf]  ;;  %v5092_v49 = vld [vmem:[#allocation6 + $0xb8] sm:$0xf0]  ;;  %418 = vmatpush.bf16.msra.mxu1 %v5103_v34  ;;  %v5087_v50 = vor.u32 %v7082_v43, %v5084_v44 }
  0x1d   :  { %431 = vmatpush.bf16.msra.mxu2 %v5107_v38  ;;  %v5091_v51 = vor.u32 %v7085_v47, %v5090_v45  ;;  %v5066_v52 = vld [vmem:[#allocation6 + $0x80] sm:$0xf]  ;;  %v7080_v53 = vld [vmem:[#allocation6 + $0x8c] sm:$0xf0]  ;;  %v7078_v54 = vld [vmem:[#allocation6 + $0x84] sm:$0xf]  ;;  %v5095_v55 = vor.u32 %v7083_v48, %v5092_v49 }
  0x1e   :  { %444 = vmatpush.bf16.msra.mxu3 %v5111_v42  ;;  %v5068_v56 = vld [vmem:[#allocation6 + $0x90] sm:$0xf0]  ;;  %v5074_v57 = vld [vmem:[#allocation6 + $0x88] sm:$0xf]  ;;  %v7081_v58 = vld [vmem:[#allocation6 + $0x94] sm:$0xf0]  ;;  %v5067_v61 = vor.u32 %v7080_v53, %v5066_v52 }
  0x1f   :  { %v7079_v59 = vld [vmem:[#allocation6 + $0x8c] sm:$0xf]  ;;  %v5076_v60 = vld [vmem:[#allocation6 + $0x98] sm:$0xf0]  ;;  %406 = vmatpush.bf16.msra.mxu0 %v5083_v46  ;;  %v5071_v62 = vor.u32 %v7078_v54, %v5068_v56  ;;  %v5075_v63 = vor.u32 %v7081_v58, %v5074_v57  ;;  %v5050_v0 = vld [vmem:[#allocation6 + $0x60] sm:$0xf] }
  0x20   :  { %419 = vmatpush.bf16.msra.mxu1 %v5087_v50  ;;  %v7076_v1 = vld [vmem:[#allocation6 + $0x6c] sm:$0xf0]  ;;  %v7074_v2 = vld [vmem:[#allocation6 + $0x64] sm:$0xf]  ;;  %v5079_v3 = vor.u32 %v7079_v59, %v5076_v60  ;;  %v5052_v4 = vld [vmem:[#allocation6 + $0x70] sm:$0xf0] }
  0x21   :  { %432 = vmatpush.bf16.msra.mxu2 %v5091_v51  ;;  %v5058_v5 = vld [vmem:[#allocation6 + $0x68] sm:$0xf]  ;;  %v7077_v6 = vld [vmem:[#allocation6 + $0x74] sm:$0xf0]  ;;  %v7075_v7 = vld [vmem:[#allocation6 + $0x6c] sm:$0xf]  ;;  %v5051_v9 = vor.u32 %v7076_v1, %v5050_v0  ;;  %v5055_v10 = vor.u32 %v7074_v2, %v5052_v4 }
  0x22   :  { %445 = vmatpush.bf16.msra.mxu3 %v5095_v55  ;;  %v5060_v8 = vld [vmem:[#allocation6 + $0x78] sm:$0xf0]  ;;  %v5059_v11 = vor.u32 %v7077_v6, %v5058_v5  ;;  %v5034_v12 = vld [vmem:[#allocation6 + $0x40] sm:$0xf]  ;;  %v7072_v13 = vld [vmem:[#allocation6 + $0x4c] sm:$0xf0] }
  0x23   :  { %407 = vmatpush.bf16.msra.mxu0 %v5067_v61  ;;  %v7070_v14 = vld [vmem:[#allocation6 + $0x44] sm:$0xf]  ;;  %v5063_v15 = vor.u32 %v7075_v7, %v5060_v8  ;;  %v5036_v16 = vld [vmem:[#allocation6 + $0x50] sm:$0xf0]  ;;  %v5042_v17 = vld [vmem:[#allocation6 + $0x48] sm:$0xf]  ;;  %v5035_v21 = vor.u32 %v7072_v13, %v5034_v12 }
  0x24   :  { %420 = vmatpush.bf16.msra.mxu1 %v5071_v62  ;;  %v7073_v18 = vld [vmem:[#allocation6 + $0x54] sm:$0xf0]  ;;  %v7071_v19 = vld [vmem:[#allocation6 + $0x4c] sm:$0xf]  ;;  %v5044_v20 = vld [vmem:[#allocation6 + $0x58] sm:$0xf0]  ;;  %v5039_v22 = vor.u32 %v7070_v14, %v5036_v16 }
  0x25   :  { %433 = vmatpush.bf16.msra.mxu2 %v5075_v63  ;;  %v5043_v23 = vor.u32 %v7073_v18, %v5042_v17  ;;  %v5018_v24 = vld [vmem:[#allocation6 + $0x20] sm:$0xf]  ;;  %v7068_v25 = vld [vmem:[#allocation6 + $0x2c] sm:$0xf0]  ;;  %v7066_v26 = vld [vmem:[#allocation6 + $0x24] sm:$0xf]  ;;  %v5047_v27 = vor.u32 %v7071_v19, %v5044_v20 }
  0x26   :  { %446 = vmatpush.bf16.msra.mxu3 %v5079_v3  ;;  %v5020_v28 = vld [vmem:[#allocation6 + $0x30] sm:$0xf0]  ;;  %v5026_v29 = vld [vmem:[#allocation6 + $0x28] sm:$0xf]  ;;  %v7069_v30 = vld [vmem:[#allocation6 + $0x34] sm:$0xf0]  ;;  %v5019_v33 = vor.u32 %v7068_v25, %v5018_v24 }
  0x27   :  { %408 = vmatpush.bf16.msra.mxu0 %v5051_v9  ;;  %v7067_v31 = vld [vmem:[#allocation6 + $0x2c] sm:$0xf]  ;;  %v5028_v32 = vld [vmem:[#allocation6 + $0x38] sm:$0xf0]  ;;  %v5002_v34 = vld [vmem:[#allocation6] sm:$0xf]  ;;  %v5023_v36 = vor.u32 %v7066_v26, %v5020_v28  ;;  %v5027_v37 = vor.u32 %v7069_v30, %v5026_v29 }
  0x28   :  { %421 = vmatpush.bf16.msra.mxu1 %v5055_v10  ;;  %v7064_v35 = vld [vmem:[#allocation6 + $0xc] sm:$0xf0]  ;;  %v7062_v38 = vld [vmem:[#allocation6 + $0x4] sm:$0xf]  ;;  %v5004_v39 = vld [vmem:[#allocation6 + $0x10] sm:$0xf0]  ;;  %v5031_v41 = vor.u32 %v7067_v31, %v5028_v32 }
  0x29   :  { %434 = vmatpush.bf16.msra.mxu2 %v5059_v11  ;;  %v5010_v40 = vld [vmem:[#allocation6 + $0x8] sm:$0xf]  ;;  %v7065_v42 = vld [vmem:[#allocation6 + $0x14] sm:$0xf0]  ;;  %v7063_v43 = vld [vmem:[#allocation6 + $0xc] sm:$0xf]  ;;  %v5003_v48 = vor.u32 %v7064_v35, %v5002_v34  ;;  %v5007_v52 = vor.u32 %v7062_v38, %v5004_v39 }
  0x2a   :  { %447 = vmatpush.bf16.msra.mxu3 %v5063_v15  ;;  %v5012_v44 = vld [vmem:[#allocation6 + $0x18] sm:$0xf0]  ;;  %v5242_v45 = vld [vmem:[#allocation6 + $0x1e0] sm:$0xf]  ;;  %v7124_v46 = vld [vmem:[#allocation6 + $0x1ec] sm:$0xf0]  ;;  %v5011_v53 = vor.u32 %v7065_v42, %v5010_v40 }
  0x2b   :  { %409 = vmatpush.bf16.msra.mxu0 %v5035_v21  ;;  %v7122_v47 = vld [vmem:[#allocation6 + $0x1e4] sm:$0xf]  ;;  %v5244_v49 = vld [vmem:[#allocation6 + $0x1f0] sm:$0xf0]  ;;  %v5250_v50 = vld [vmem:[#allocation6 + $0x1e8] sm:$0xf]  ;;  %v5015_v57 = vor.u32 %v7063_v43, %v5012_v44  ;;  %v5243_v58 = vor.u32 %v7124_v46, %v5242_v45 }
  0x2c   :  { %422 = vmatpush.bf16.msra.mxu1 %v5039_v22  ;;  %v7125_v51 = vld [vmem:[#allocation6 + $0x1f4] sm:$0xf0]  ;;  %v7123_v54 = vld [vmem:[#allocation6 + $0x1ec] sm:$0xf]  ;;  %v5252_v55 = vld [vmem:[#allocation6 + $0x1f8] sm:$0xf0]  ;;  %v5247_v59 = vor.u32 %v7122_v47, %v5244_v49 }
  0x2d   :  { %435 = vmatpush.bf16.msra.mxu2 %v5043_v23  ;;  %v203_v56 = vld [vmem:[#allocation2] sm:$0x3]  ;;  %v5251_v60 = vor.u32 %v7125_v51, %v5250_v50  ;;  %v5226_v61 = vld [vmem:[#allocation6 + $0x1c0] sm:$0xf]  ;;  %v7120_v62 = vld [vmem:[#allocation6 + $0x1cc] sm:$0xf0]  ;;  %v5255_v0 = vor.u32 %v7123_v54, %v5252_v55 }
  0x2e   :  { %448 = vmatpush.bf16.msra.mxu3 %v5047_v27  ;;  %v7118_v63 = vld [vmem:[#allocation6 + $0x1c4] sm:$0xf]  ;;  %v243_v1 = vpack.c.bf16 %v203_v56, %v203_v56  ;;  %v5228_v2 = vld [vmem:[#allocation6 + $0x1d0] sm:$0xf0]  ;;  %v5234_v3 = vld [vmem:[#allocation6 + $0x1c8] sm:$0xf]  ;;  %v5227_v7 = vor.u32 %v7120_v62, %v5226_v61 }
  0x2f   :  { %410 = vmatpush.bf16.msra.mxu0 %v5019_v33  ;;  %v7121_v4 = vld [vmem:[#allocation6 + $0x1d4] sm:$0xf0]  ;;  %v7119_v5 = vld [vmem:[#allocation6 + $0x1cc] sm:$0xf]  ;;  %v5236_v6 = vld [vmem:[#allocation6 + $0x1d8] sm:$0xf0]  ;;  %v5231_v8 = vor.u32 %v7118_v63, %v5228_v2 }
  0x30   :  { %423 = vmatpush.bf16.msra.mxu1 %v5023_v36  ;;  %v5235_v9 = vor.u32 %v7121_v4, %v5234_v3  ;;  %v5210_v10 = vld [vmem:[#allocation6 + $0x1a0] sm:$0xf]  ;;  %v7116_v11 = vld [vmem:[#allocation6 + $0x1ac] sm:$0xf0]  ;;  %v7114_v12 = vld [vmem:[#allocation6 + $0x1a4] sm:$0xf]  ;;  %v5239_v13 = vor.u32 %v7119_v5, %v5236_v6 }
  0x31   :  { %436 = vmatpush.bf16.msra.mxu2 %v5027_v37  ;;  %v5212_v14 = vld [vmem:[#allocation6 + $0x1b0] sm:$0xf0]  ;;  %v5218_v15 = vld [vmem:[#allocation6 + $0x1a8] sm:$0xf]  ;;  %v7117_v16 = vld [vmem:[#allocation6 + $0x1b4] sm:$0xf0]  ;;  %v5211_v19 = vor.u32 %v7116_v11, %v5210_v10 }
  0x32   :  { %449 = vmatpush.bf16.msra.mxu3 %v5031_v41  ;;  %v7115_v17 = vld [vmem:[#allocation6 + $0x1ac] sm:$0xf]  ;;  %v5220_v18 = vld [vmem:[#allocation6 + $0x1b8] sm:$0xf0]  ;;  %v5215_v20 = vor.u32 %v7114_v12, %v5212_v14  ;;  %v5219_v21 = vor.u32 %v7117_v16, %v5218_v15  ;;  %v5194_v22 = vld [vmem:[#allocation6 + $0x180] sm:$0xf] }
  0x33   :  { %411 = vmatpush.bf16.msra.mxu0 %v5003_v48  ;;  %v7112_v23 = vld [vmem:[#allocation6 + $0x18c] sm:$0xf0]  ;;  %v7110_v24 = vld [vmem:[#allocation6 + $0x184] sm:$0xf]  ;;  %v5223_v25 = vor.u32 %v7115_v17, %v5220_v18  ;;  %v5196_v26 = vld [vmem:[#allocation6 + $0x190] sm:$0xf0] }
  0x34   :  { %424 = vmatpush.bf16.msra.mxu1 %v5007_v52  ;;  %v5202_v27 = vld [vmem:[#allocation6 + $0x188] sm:$0xf]  ;;  %v7113_v28 = vld [vmem:[#allocation6 + $0x194] sm:$0xf0]  ;;  %v7111_v29 = vld [vmem:[#allocation6 + $0x18c] sm:$0xf]  ;;  %v5195_v31 = vor.u32 %v7112_v23, %v5194_v22  ;;  %v5199_v32 = vor.u32 %v7110_v24, %v5196_v26 }
  0x35   :  { %437 = vmatpush.bf16.msra.mxu2 %v5011_v53  ;;  %v5204_v30 = vld [vmem:[#allocation6 + $0x198] sm:$0xf0]  ;;  %v5203_v33 = vor.u32 %v7113_v28, %v5202_v27  ;;  %v5178_v34 = vld [vmem:[#allocation6 + $0x160] sm:$0xf]  ;;  %v7108_v35 = vld [vmem:[#allocation6 + $0x16c] sm:$0xf0] }
  0x36   :  { %450 = vmatpush.bf16.msra.mxu3 %v5015_v57  ;;  %412 = vmatmul.bf16.vlgmr.msra.gmra.mxu0 %v243_v1  ;;  %v7106_v36 = vld [vmem:[#allocation6 + $0x164] sm:$0xf]  ;;  %v5207_v37 = vor.u32 %v7111_v29, %v5204_v30  ;;  %v5180_v38 = vld [vmem:[#allocation6 + $0x170] sm:$0xf0]  ;;  %v5186_v39 = vld [vmem:[#allocation6 + $0x168] sm:$0xf]  ;;  %v5179_v43 = vor.u32 %v7108_v35, %v5178_v34 }
  0x37   :  { %701 = vmatpush.bf16.msrb.mxu0 %v5243_v58  ;;  %425 = vmatmul.bf16.vlgmr.msra.gmra.mxu1 %v243_v1  ;;  %v7109_v40 = vld [vmem:[#allocation6 + $0x174] sm:$0xf0]  ;;  %v7107_v41 = vld [vmem:[#allocation6 + $0x16c] sm:$0xf]  ;;  %v5188_v42 = vld [vmem:[#allocation6 + $0x178] sm:$0xf0]  ;;  %v5183_v44 = vor.u32 %v7106_v36, %v5180_v38 }
  0x38   :  { %714 = vmatpush.bf16.msrb.mxu1 %v5247_v59  ;;  %438 = vmatmul.bf16.vlgmr.msra.gmra.mxu2 %v243_v1  ;;  %v5187_v45 = vor.u32 %v7109_v40, %v5186_v39  ;;  %v5162_v46 = vld [vmem:[#allocation6 + $0x140] sm:$0xf]  ;;  %v7104_v47 = vld [vmem:[#allocation6 + $0x14c] sm:$0xf0]  ;;  %v7102_v48 = vld [vmem:[#allocation6 + $0x144] sm:$0xf]  ;;  %v5191_v49 = vor.u32 %v7107_v41, %v5188_v42 }
  0x39   :  { %727 = vmatpush.bf16.msrb.mxu2 %v5251_v60  ;;  %451 = vmatmul.bf16.vlgmr.msra.gmra.mxu3 %v243_v1  ;;  %v5164_v50 = vld [vmem:[#allocation6 + $0x150] sm:$0xf0]  ;;  %v5170_v51 = vld [vmem:[#allocation6 + $0x148] sm:$0xf]  ;;  %v7105_v52 = vld [vmem:[#allocation6 + $0x154] sm:$0xf0]  ;;  %v5163_v55 = vor.u32 %v7104_v47, %v5162_v46 }
  0x3a   :  { %740 = vmatpush.bf16.msrb.mxu3 %v5255_v0  ;;  %v7103_v53 = vld [vmem:[#allocation6 + $0x14c] sm:$0xf]  ;;  %v5172_v54 = vld [vmem:[#allocation6 + $0x158] sm:$0xf0]  ;;  %v5167_v56 = vor.u32 %v7102_v48, %v5164_v50  ;;  %v5171_v57 = vor.u32 %v7105_v52, %v5170_v51  ;;  %v5146_v58 = vld [vmem:[#allocation6 + $0x120] sm:$0xf] }
  0x3b   :  { %702 = vmatpush.bf16.msrb.mxu0 %v5227_v7  ;;  %v7100_v59 = vld [vmem:[#allocation6 + $0x12c] sm:$0xf0]  ;;  %v7098_v60 = vld [vmem:[#allocation6 + $0x124] sm:$0xf]  ;;  %v5175_v61 = vor.u32 %v7103_v53, %v5172_v54  ;;  %v5148_v62 = vld [vmem:[#allocation6 + $0x130] sm:$0xf0] }
  0x3c   :  { %715 = vmatpush.bf16.msrb.mxu1 %v5231_v8  ;;  %v5154_v63 = vld [vmem:[#allocation6 + $0x128] sm:$0xf]  ;;  %v7101_v0 = vld [vmem:[#allocation6 + $0x134] sm:$0xf0]  ;;  %v7099_v1 = vld [vmem:[#allocation6 + $0x12c] sm:$0xf]  ;;  %v5147_v3 = vor.u32 %v7100_v59, %v5146_v58  ;;  %v5151_v4 = vor.u32 %v7098_v60, %v5148_v62 }
  0x3d   :  { %728 = vmatpush.bf16.msrb.mxu2 %v5235_v9  ;;  %v5156_v2 = vld [vmem:[#allocation6 + $0x138] sm:$0xf0]  ;;  %v5155_v5 = vor.u32 %v7101_v0, %v5154_v63  ;;  %v5130_v6 = vld [vmem:[#allocation6 + $0x100] sm:$0xf]  ;;  %v7096_v7 = vld [vmem:[#allocation6 + $0x10c] sm:$0xf0] }
  0x3e   :  { %741 = vmatpush.bf16.msrb.mxu3 %v5239_v13  ;;  %v7094_v8 = vld [vmem:[#allocation6 + $0x104] sm:$0xf]  ;;  %v5159_v9 = vor.u32 %v7099_v1, %v5156_v2  ;;  %v5132_v10 = vld [vmem:[#allocation6 + $0x110] sm:$0xf0]  ;;  %v5138_v11 = vld [vmem:[#allocation6 + $0x108] sm:$0xf]  ;;  %v5131_v15 = vor.u32 %v7096_v7, %v5130_v6 }
  0x3f   :  { %703 = vmatpush.bf16.msrb.mxu0 %v5211_v19  ;;  %v7097_v12 = vld [vmem:[#allocation6 + $0x114] sm:$0xf0]  ;;  %v7095_v13 = vld [vmem:[#allocation6 + $0x10c] sm:$0xf]  ;;  %v5140_v14 = vld [vmem:[#allocation6 + $0x118] sm:$0xf0]  ;;  %v5135_v17 = vor.u32 %v7094_v8, %v5132_v10 }
  0x40   :  { %716 = vmatpush.bf16.msrb.mxu1 %v5215_v20  ;;  %v206_v16 = vld [vmem:[#allocation2 + $0x2] sm:$0x3]  ;;  %v5139_v18 = vor.u32 %v7097_v12, %v5138_v11  ;;  %v5143_v19 = vor.u32 %v7095_v13, %v5140_v14  ;;  %v7156_v22 = vld [vmem:[#allocation6 + $0xec] sm:$0xf0]  ;;  %v7154_v23 = vld [vmem:[#allocation6 + $0xe4] sm:$0xf] }
  0x41   :  { %729 = vmatpush.bf16.msrb.mxu2 %v5219_v21  ;;  %v540_v20 = vpack.c.bf16 %v206_v16, %v206_v16  ;;  %v5371_v21 = vld [vmem:[#allocation6 + $0xe0] sm:$0xf]  ;;  %v5379_v26 = vld [vmem:[#allocation6 + $0xe8] sm:$0xf]  ;;  %v7157_v27 = vld [vmem:[#allocation6 + $0xf4] sm:$0xf0] }
  0x42   :  { %742 = vmatpush.bf16.msrb.mxu3 %v5223_v25  ;;  %v5372_v24 = vor.u32 %v7156_v22, %v5371_v21  ;;  %v5373_v25 = vld [vmem:[#allocation6 + $0xf0] sm:$0xf0]  ;;  %v5380_v29 = vor.u32 %v7157_v27, %v5379_v26  ;;  %v7155_v30 = vld [vmem:[#allocation6 + $0xec] sm:$0xf]  ;;  %v7152_v34 = vld [vmem:[#allocation6 + $0xcc] sm:$0xf0] }
  0x43   :  { %704 = vmatpush.bf16.msrb.mxu0 %v5195_v31  ;;  %v5376_v28 = vor.u32 %v7154_v23, %v5373_v25  ;;  %v5381_v31 = vld [vmem:[#allocation6 + $0xf8] sm:$0xf0]  ;;  %v7150_v35 = vld [vmem:[#allocation6 + $0xc4] sm:$0xf]  ;;  %v5357_v38 = vld [vmem:[#allocation6 + $0xd0] sm:$0xf0] }
  0x44   :  { %717 = vmatpush.bf16.msrb.mxu1 %v5199_v32  ;;  %v5384_v32 = vor.u32 %v7155_v30, %v5381_v31  ;;  %v5363_v39 = vld [vmem:[#allocation6 + $0xc8] sm:$0xf]  ;;  %v7153_v40 = vld [vmem:[#allocation6 + $0xd4] sm:$0xf0]  ;;  %v5360_v41 = vor.u32 %v7150_v35, %v5357_v38  ;;  %v209_v46 = vld [vmem:[#allocation4] sm:$0xf] }
  0x45   :  { %730 = vmatpush.bf16.msrb.mxu2 %v5203_v33  ;;  %v5355_v33 = vld [vmem:[#allocation6 + $0xc0] sm:$0xf]  ;;  %v5364_v42 = vor.u32 %v7153_v40, %v5363_v39  ;;  %v7148_v50 = vld [vmem:[#allocation6 + $0xac] sm:$0xf0]  ;;  %v7146_v51 = vld [vmem:[#allocation6 + $0xa4] sm:$0xf]  ;;  %v242_v1 = vunpack.c.l.bf16 %v209_v46 }
  0x46   :  { %743 = vmatpush.bf16.msrb.mxu3 %v5207_v37  ;;  %v5356_v37 = vor.u32 %v7152_v34, %v5355_v33  ;;  %v5341_v53 = vld [vmem:[#allocation6 + $0xb0] sm:$0xf0]  ;;  %v5347_v54 = vld [vmem:[#allocation6 + $0xa8] sm:$0xf]  ;;  %v7147_v59 = vld [vmem:[#allocation6 + $0xac] sm:$0xf] }
  0x47   :  { %705 = vmatpush.bf16.msrb.mxu0 %v5179_v43  ;;  %v7151_v43 = vld [vmem:[#allocation6 + $0xcc] sm:$0xf]  ;;  %v5349_v60 = vld [vmem:[#allocation6 + $0xb8] sm:$0xf0]  ;;  %vm465_vm1 = vcmask 1045508   ;;  %vm467_vm2 = vcmask 1043456  }
  0x48   :  { %718 = vmatpush.bf16.msrb.mxu1 %v5183_v44  ;;  %v5365_v44 = vld [vmem:[#allocation6 + $0xd8] sm:$0xf0]  ;;  %v5352_v63 = vor.u32 %v7147_v59, %v5349_v60  ;;  %v7142_v7 = vld [vmem:[#allocation6 + $0x84] sm:$0xf]  ;;  %v5325_v8 = vld [vmem:[#allocation6 + $0x90] sm:$0xf0] }
  0x49   :  { %731 = vmatpush.bf16.msrb.mxu2 %v5187_v45  ;;  %v5368_v47 = vor.u32 %v7151_v43, %v5365_v44  ;;  %v5328_v11 = vor.u32 %v7142_v7, %v5325_v8  ;;  %v7145_v12 = vld [vmem:[#allocation6 + $0x94] sm:$0xf0]  ;;  %v7143_v13 = vld [vmem:[#allocation6 + $0x8c] sm:$0xf]  ;;  %v5333_v14 = vld [vmem:[#allocation6 + $0x98] sm:$0xf0] }
  0x4a   :  { %744 = vmatpush.bf16.msrb.mxu3 %v5191_v49  ;;  %v5339_v49 = vld [vmem:[#allocation6 + $0xa0] sm:$0xf]  ;;  %v7140_v21 = vld [vmem:[#allocation6 + $0x6c] sm:$0xf0]  ;;  %v7138_v22 = vld [vmem:[#allocation6 + $0x64] sm:$0xf] }
  0x4b   :  { %706 = vmatpush.bf16.msrb.mxu0 %v5163_v55  ;;  %v5340_v52 = vor.u32 %v7148_v50, %v5339_v49  ;;  %v7149_v55 = vld [vmem:[#allocation6 + $0xb4] sm:$0xf0]  ;;  %v5315_v25 = vld [vmem:[#allocation6 + $0x68] sm:$0xf]  ;;  %v7139_v31 = vld [vmem:[#allocation6 + $0x6c] sm:$0xf] }
  0x4c   :  { %719 = vmatpush.bf16.msrb.mxu1 %v5167_v56  ;;  %v5348_v58 = vor.u32 %v7149_v55, %v5347_v54  ;;  %v7141_v26 = vld [vmem:[#allocation6 + $0x74] sm:$0xf0]  ;;  %v7134_v39 = vld [vmem:[#allocation6 + $0x44] sm:$0xf]  ;;  %v5293_v40 = vld [vmem:[#allocation6 + $0x50] sm:$0xf0] }
  0x4d   :  { %732 = vmatpush.bf16.msrb.mxu2 %v5171_v57  ;;  %v5344_v57 = vor.u32 %v7146_v51, %v5341_v53  ;;  %v5316_v30 = vor.u32 %v7141_v26, %v5315_v25  ;;  %v7137_v43 = vld [vmem:[#allocation6 + $0x54] sm:$0xf0]  ;;  %v7135_v44 = vld [vmem:[#allocation6 + $0x4c] sm:$0xf]  ;;  %v7132_v49 = vld [vmem:[#allocation6 + $0x2c] sm:$0xf0] }
  0x4e   :  { %745 = vmatpush.bf16.msrb.mxu3 %v5175_v61  ;;  %v7130_v50 = vld [vmem:[#allocation6 + $0x24] sm:$0xf]  ;;  %v5283_v53 = vld [vmem:[#allocation6 + $0x28] sm:$0xf]  ;;  %v7133_v54 = vld [vmem:[#allocation6 + $0x34] sm:$0xf0] }
  0x4f   :  { %707 = vmatpush.bf16.msrb.mxu0 %v5147_v3  ;;  %v5323_v3 = vld [vmem:[#allocation6 + $0x80] sm:$0xf]  ;;  %v5269_v7 = vld [vmem:[#allocation6 + $0x18] sm:$0xf0]  ;;  %s4955_s9 = sshll.u32 %s8354_s5, 4  ;;  %s7766_s12 = smov 32   ;;  %s4956_s9 = int_to_ptr.hbm [resolvable:$true] %s4955_s9 }
  0x50   :  { %720 = vmatpush.bf16.msrb.mxu1 %v5151_v4  ;;  %v7144_v4 = vld [vmem:[#allocation6 + $0x8c] sm:$0xf0]  ;;  %v5509_v25 = vld [vmem:[#allocation6 + $0x1f8] sm:$0xf0]  ;;  %v5483_v26 = vld [vmem:[#allocation6 + $0x1c0] sm:$0xf] }
  0x51   :  { %733 = vmatpush.bf16.msrb.mxu2 %v5155_v5  ;;  %v5324_v6 = vor.u32 %v7144_v4, %v5323_v3  ;;  %v5267_v3 = vld [vmem:[#allocation6 + $0x8] sm:$0xf]  ;;  %s7767_s13 = smov 2  }
  0x52   :  { %746 = vmatpush.bf16.msrb.mxu3 %v5159_v9  ;;  %v5331_v9 = vld [vmem:[#allocation6 + $0x88] sm:$0xf] }
  0x53   :  { %708 = vmatpush.bf16.msrb.mxu0 %v5131_v15  ;;  %v5332_v16 = vor.u32 %v7145_v12, %v5331_v9  ;;  %v5499_v9 = vld [vmem:[#allocation6 + $0x1e0] sm:$0xf]  ;;  %v7188_v12 = vld [vmem:[#allocation6 + $0x1ec] sm:$0xf0] }
  0x54   :  { %721 = vmatpush.bf16.msrb.mxu1 %v5135_v17  ;;  %v5336_v17 = vor.u32 %v7143_v13, %v5333_v14  ;;  %v7186_v13 = vld [vmem:[#allocation6 + $0x1e4] sm:$0xf]  ;;  %v5501_v14 = vld [vmem:[#allocation6 + $0x1f0] sm:$0xf0] }
  0x55   :  { %734 = vmatpush.bf16.msrb.mxu2 %v5139_v18 }
  0x56   :  { %747 = vmatpush.bf16.msrb.mxu3 %v5143_v19  ;;  %709 = vmatmul.bf16.vlgmr.msrb.gmra.mxu0 %v540_v20 }
  0x57   :  { %722 = vmatmul.bf16.vlgmr.msrb.gmra.mxu1 %v540_v20  ;;  %998 = vmatpush.bf16.msra.mxu0 %v5372_v24  ;;  %v5309_v24 = vld [vmem:[#allocation6 + $0x70] sm:$0xf0] }
  0x58   :  { %735 = vmatmul.bf16.vlgmr.msrb.gmra.mxu2 %v540_v20  ;;  %1011 = vmatpush.bf16.msra.mxu1 %v5376_v28 }
  0x59   :  { %748 = vmatmul.bf16.vlgmr.msrb.gmra.mxu3 %v540_v20  ;;  %1024 = vmatpush.bf16.msra.mxu2 %v5380_v29  ;;  %v5307_v20 = vld [vmem:[#allocation6 + $0x60] sm:$0xf]  ;;  %v5312_v29 = vor.u32 %v7138_v22, %v5309_v24  ;;  %v7187_v24 = vld [vmem:[#allocation6 + $0x1ec] sm:$0xf] }
  0x5a   :  { %1037 = vmatpush.bf16.msra.mxu3 %v5384_v32  ;;  %v5308_v23 = vor.u32 %v7140_v21, %v5307_v20  ;;  %v5317_v32 = vld [vmem:[#allocation6 + $0x78] sm:$0xf0]  ;;  %v5507_v20 = vld [vmem:[#allocation6 + $0x1e8] sm:$0xf]  ;;  %v7189_v21 = vld [vmem:[#allocation6 + $0x1f4] sm:$0xf0] }
  0x5b   :  { %999 = vmatpush.bf16.msra.mxu0 %v5356_v37  ;;  %v5320_v34 = vor.u32 %v7139_v31, %v5317_v32  ;;  %v7136_v37 = vld [vmem:[#allocation6 + $0x4c] sm:$0xf0]  ;;  %v7182_v31 = vld [vmem:[#allocation6 + $0x1c4] sm:$0xf]  ;;  %v7863_v32 = vld [vmem:[#allocation5 + $0x1c] sm:$0xf] }
  0x5c   :  { %1012 = vmatpush.bf16.msra.mxu1 %v5360_v41  ;;  %v5299_v41 = vld [vmem:[#allocation6 + $0x48] sm:$0xf] }
  0x5d   :  { %1025 = vmatpush.bf16.msra.mxu2 %v5364_v42  ;;  %v5296_v42 = vor.u32 %v7134_v39, %v5293_v40  ;;  %v5300_v46 = vor.u32 %v7137_v43, %v5299_v41  ;;  %v7183_v40 = vld [vmem:[#allocation6 + $0x1cc] sm:$0xf]  ;;  %v5493_v41 = vld [vmem:[#allocation6 + $0x1d8] sm:$0xf0] }
  0x5e   :  { %1038 = vmatpush.bf16.msra.mxu3 %v5368_v47 }
  0x5f   :  { %1000 = vmatpush.bf16.msra.mxu0 %v5340_v52  ;;  %v5277_v52 = vld [vmem:[#allocation6 + $0x30] sm:$0xf0] }
  0x60   :  { %1013 = vmatpush.bf16.msra.mxu1 %v5344_v57  ;;  %v5280_v55 = vor.u32 %v7130_v50, %v5277_v52  ;;  %v7131_v57 = vld [vmem:[#allocation6 + $0x2c] sm:$0xf]  ;;  %v5475_v50 = vld [vmem:[#allocation6 + $0x1a8] sm:$0xf] }
  0x61   :  { %1026 = vmatpush.bf16.msra.mxu2 %v5348_v58  ;;  %v5285_v58 = vld [vmem:[#allocation6 + $0x38] sm:$0xf0] }
  0x62   :  { %1039 = vmatpush.bf16.msra.mxu3 %v5352_v63  ;;  %v5288_v59 = vor.u32 %v7131_v57, %v5285_v58  ;;  %v7126_v63 = vld [vmem:[#allocation6 + $0x4] sm:$0xf]  ;;  %v7164_v57 = vld [vmem:[#allocation6 + $0x12c] sm:$0xf0] }
  0x63   :  { %1001 = vmatpush.bf16.msra.mxu0 %v5324_v6  ;;  %v7127_v6 = vld [vmem:[#allocation6 + $0xc] sm:$0xf] }
  0x64   :  { %1014 = vmatpush.bf16.msra.mxu1 %v5328_v11  ;;  %v5272_v11 = vor.u32 %v7127_v6, %v5269_v7 }
  0x65   :  { %1027 = vmatpush.bf16.msra.mxu2 %v5332_v16 }
  0x66   :  { %1040 = vmatpush.bf16.msra.mxu3 %v5336_v17  ;;  %v5500_v17 = vor.u32 %v7188_v12, %v5499_v9  ;;  %v7174_v9 = vld [vmem:[#allocation6 + $0x184] sm:$0xf] }
  0x67   :  { %1002 = vmatpush.bf16.msra.mxu0 %v5308_v23  ;;  %v5508_v23 = vor.u32 %v7189_v21, %v5507_v20  ;;  %v5435_v20 = vld [vmem:[#allocation6 + $0x160] sm:$0xf]  ;;  %v7172_v21 = vld [vmem:[#allocation6 + $0x16c] sm:$0xf0] }
  0x68   :  { %1015 = vmatpush.bf16.msra.mxu1 %v5312_v29  ;;  %v5512_v29 = vor.u32 %v7187_v24, %v5509_v25  ;;  %v5443_v24 = vld [vmem:[#allocation6 + $0x168] sm:$0xf] }
  0x69   :  { %1028 = vmatpush.bf16.msra.mxu2 %v5316_v30  ;;  %v7184_v30 = vld [vmem:[#allocation6 + $0x1cc] sm:$0xf0] }
  0x6a   :  { %1041 = vmatpush.bf16.msra.mxu3 %v5320_v34  ;;  %v5485_v34 = vld [vmem:[#allocation6 + $0x1d0] sm:$0xf0] }
  0x6c   :  { %1016 = vmatpush.bf16.msra.mxu1 %v5296_v42  ;;  %v5467_v42 = vld [vmem:[#allocation6 + $0x1a0] sm:$0xf] }
  0x6d   :  { %1029 = vmatpush.bf16.msra.mxu2 %v5300_v46  ;;  %v7178_v46 = vld [vmem:[#allocation6 + $0x1a4] sm:$0xf] }
  0x70   :  { %1017 = vmatpush.bf16.msra.mxu1 %v5280_v55  ;;  %v7179_v55 = vld [vmem:[#allocation6 + $0x1ac] sm:$0xf] }
  0xb3   :  { %v413_v48 = vpop.f32.mrf.mxu0 }
  0xb4   :  { %v426_v36 = vpop.f32.mrf.mxu1 }
  0xb5   :  { %v460_v45 = vrot.slane %v426_v36, 6  ;;  %v5291_v36 = vld [vmem:[#allocation6 + $0x40] sm:$0xf] }
  0xb6   :  { %v5292_v38 = vor.u32 %v7136_v37, %v5291_v36  ;;  %v7185_v36 = vld [vmem:[#allocation6 + $0x1d4] sm:$0xf0] }
  0xb7   :  { %v464_v2 = vsel %vm463_vm0, %v413_v48, %v460_v45  ;;  %v5301_v45 = vld [vmem:[#allocation6 + $0x58] sm:$0xf0]  ;;  %v5275_v48 = vld [vmem:[#allocation6 + $0x20] sm:$0xf] }
  0xb8   :  { %1003 = vmatpush.bf16.msra.mxu0 %v5292_v38  ;;  %v5304_v47 = vor.u32 %v7135_v44, %v5301_v45  ;;  %v5276_v51 = vor.u32 %v7132_v49, %v5275_v48  ;;  %v5488_v38 = vor.u32 %v7182_v31, %v5485_v34  ;;  %v5496_v44 = vor.u32 %v7183_v40, %v5493_v41  ;;  %v7180_v45 = vld [vmem:[#allocation6 + $0x1ac] sm:$0xf0]  ;;  %v5419_v34 = vld [vmem:[#allocation6 + $0x140] sm:$0xf]  ;;  %v7166_v40 = vld [vmem:[#allocation6 + $0x144] sm:$0xf] }
  0xb9   :  { %v5468_v48 = vor.u32 %v7180_v45, %v5467_v42  ;;  %v5421_v41 = vld [vmem:[#allocation6 + $0x150] sm:$0xf0]  ;;  %v5427_v45 = vld [vmem:[#allocation6 + $0x148] sm:$0xf] }
  0xba   :  { %1042 = vmatpush.bf16.msra.mxu3 %v5304_v47  ;;  %v5469_v47 = vld [vmem:[#allocation6 + $0x1b0] sm:$0xf0] }
  0xbb   :  { %v439_v56 = vpop.f32.mrf.mxu2  ;;  %v415_v19 = vpop.f32.mrf.mxu0  ;;  %v5472_v49 = vor.u32 %v7178_v46, %v5469_v47  ;;  %v7169_v46 = vld [vmem:[#allocation6 + $0x154] sm:$0xf0] }
  0xbc   :  { %v461_v61 = vrot.slane %v439_v56, 4  ;;  %v452_v62 = vpop.f32.mrf.mxu3  ;;  %v428_v5 = vpop.f32.mrf.mxu1  ;;  %v5284_v56 = vor.u32 %v7133_v54, %v5283_v53  ;;  %1004 = vmatpush.bf16.msra.mxu0 %v5276_v51  ;;  %v5504_v19 = vor.u32 %v7186_v13, %v5501_v14  ;;  %v7181_v51 = vld [vmem:[#allocation6 + $0x1b4] sm:$0xf0]  ;;  %v7175_v14 = vld [vmem:[#allocation6 + $0x18c] sm:$0xf] }
  0xbd   :  { %v462_v0 = vrot.slane %v452_v62, 2  ;;  %v7128_v62 = vld [vmem:[#allocation6 + $0xc] sm:$0xf0]  ;;  %v7129_v5 = vld [vmem:[#allocation6 + $0x14] sm:$0xf0]  ;;  %v5476_v54 = vor.u32 %v7181_v51, %v5475_v50 }
  0xbe   :  { %1030 = vmatpush.bf16.msra.mxu2 %v5284_v56  ;;  %1043 = vmatpush.bf16.msra.mxu3 %v5288_v59  ;;  %v5477_v56 = vld [vmem:[#allocation6 + $0x1b8] sm:$0xf0]  ;;  %v539_v59 = vunpack.c.l.bf16 %v7863_v32  ;;  %v7177_v13 = vld [vmem:[#allocation6 + $0x194] sm:$0xf0]  ;;  %v5436_v32 = vor.u32 %v7172_v21, %v5435_v20  ;;  %v7167_v50 = vld [vmem:[#allocation6 + $0x14c] sm:$0xf] }
  0xbf   :  { %v466_v10 = vsel %vm465_vm1, %v461_v61, %v462_v0  ;;  %v5259_v61 = vld [vmem:[#allocation6] sm:$0xf]  ;;  %v5429_v51 = vld [vmem:[#allocation6 + $0x158] sm:$0xf0]  ;;  %v7159_v20 = vld [vmem:[#allocation6 + $0x10c] sm:$0xf] }
  0xc0   :  { %v468_v15 = vsel %vm467_vm2, %v464_v2, %v466_v10  ;;  %v5261_v2 = vld [vmem:[#allocation6 + $0x10] sm:$0xf0]  ;;  %v5268_v10 = vor.u32 %v7129_v5, %v5267_v3  ;;  %v5397_v21 = vld [vmem:[#allocation6 + $0x118] sm:$0xf0] }
  0xc1   :  { %v7852_v18 = vadd.f32 %v468_v15, %v242_v1  ;;  %v5260_v1 = vor.u32 %v7128_v62, %v5259_v61  ;;  %v5264_v4 = vor.u32 %v7126_v63, %v5261_v2  ;;  %v5480_v62 = vor.u32 %v7179_v55, %v5477_v56  ;;  %v5451_v63 = vld [vmem:[#allocation6 + $0x180] sm:$0xf] }
  0xc2   :  { %1031 = vmatpush.bf16.msra.mxu2 %v5268_v10  ;;  %1044 = vmatpush.bf16.msra.mxu3 %v5272_v11  ;;  %v5453_v10 = vld [vmem:[#allocation6 + $0x190] sm:$0xf0]  ;;  %v5428_v56 = vor.u32 %v7169_v46, %v5427_v45  ;;  %v7220_v45 = vld [vmem:[#allocation6 + $0xec] sm:$0xf0]  ;;  %v7218_v46 = vld [vmem:[#allocation6 + $0xe4] sm:$0xf] }
  0xc3   :  { %v471_v27 = vsub.f32 0.0, %v7852_v18  ;;  %v441_v28 = vpop.f32.mrf.mxu2  ;;  %v491_v8 = vrot.slane %v7852_v18, 6  ;;  %1005 = vmatpush.bf16.msra.mxu0 %v5260_v1  ;;  %1018 = vmatpush.bf16.msra.mxu1 %v5264_v4  ;;  %v7176_v1 = vld [vmem:[#allocation6 + $0x18c] sm:$0xf0]  ;;  %v5456_v12 = vor.u32 %v7174_v9, %v5453_v10  ;;  %v5389_v9 = vld [vmem:[#allocation6 + $0x110] sm:$0xf0] }
  0xc4   :  { %v454_v33 = vpop.f32.mrf.mxu3  ;;  %v5452_v11 = vor.u32 %v7176_v1, %v5451_v63  ;;  %v7163_v63 = vld [vmem:[#allocation6 + $0x12c] sm:$0xf]  ;;  %v5413_v1 = vld [vmem:[#allocation6 + $0x138] sm:$0xf0] }
  0xc5   :  { %v472_v35 = vmul.f32 1.442695, %v471_v27  ;;  %v5484_v33 = vor.u32 %v7184_v30, %v5483_v26  ;;  %v204_v30 = vld [vmem:[#allocation3] sm:$0x3]  ;;  %v5416_v10 = vor.u32 %v7163_v63, %v5413_v1  ;;  %v5615_v63 = vld [vmem:[#allocation6 + $0xd0] sm:$0xf0] }
  0xc6   :  { %1316 = vmatpush.bf16.msrb.mxu2 %v5508_v23  ;;  %1329 = vmatpush.bf16.msrb.mxu3 %v5512_v29  ;;  %v5437_v23 = vld [vmem:[#allocation6 + $0x170] sm:$0xf0]  ;;  %v5445_v29 = vld [vmem:[#allocation6 + $0x178] sm:$0xf0]  ;;  %v5621_v1 = vld [vmem:[#allocation6 + $0xc8] sm:$0xf] }
  0xc7   :  { %7581 = vpow2.f32 %v472_v35  ;;  %1290 = vmatpush.bf16.msrb.mxu0 %v5500_v17  ;;  %1303 = vmatpush.bf16.msrb.mxu1 %v5504_v19  ;;  %v5491_v35 = vld [vmem:[#allocation6 + $0x1c8] sm:$0xf]  ;;  %v5461_v19 = vld [vmem:[#allocation6 + $0x198] sm:$0xf0] }
  0xc8   :  { %v5492_v39 = vor.u32 %v7185_v36, %v5491_v35  ;;  %v5464_v18 = vor.u32 %v7175_v14, %v5461_v19  ;;  %v7168_v35 = vld [vmem:[#allocation6 + $0x14c] sm:$0xf0] }
  0xca   :  { %1317 = vmatpush.bf16.msrb.mxu2 %v5492_v39  ;;  %1330 = vmatpush.bf16.msrb.mxu3 %v5496_v44 }
  0xcb   :  { %1291 = vmatpush.bf16.msrb.mxu0 %v5484_v33  ;;  %1304 = vmatpush.bf16.msrb.mxu1 %v5488_v38 }
  0xcd   :  { %v7582_v60 = vpop.eup %7581 }
  0xce   :  { %v7855_v0 = vadd.f32 1.0, %v7582_v60  ;;  %1318 = vmatpush.bf16.msrb.mxu2 %v5476_v54  ;;  %1331 = vmatpush.bf16.msrb.mxu3 %v5480_v62  ;;  %v5403_v54 = vld [vmem:[#allocation6 + $0x120] sm:$0xf]  ;;  %v7165_v62 = vld [vmem:[#allocation6 + $0x134] sm:$0xf0] }
  0xcf   :  { %1292 = vmatpush.bf16.msrb.mxu0 %v5468_v48  ;;  %1305 = vmatpush.bf16.msrb.mxu1 %v5472_v49 }
  0xd0   :  { %7583 = vrcp.f32 %v7855_v0  ;;  %v484_v15 = vand.u32 2147483647, %v7855_v0  ;;  %v486_v27 = vand.u32 2147483648, %v7855_v0  ;;  %vm480_vm3 = vweird.f32 %v7855_v0 }
  0xd1   :  { %7585 = vtanh.f32 %v491_v8  ;;  %v7170_v8 = vld [vmem:[#allocation6 + $0x164] sm:$0xf] }
  0xd2   :  { %vm7871_vm5 = vcmp.eq.f32.partialorder %v484_v15, 8.507059e+37  ;;  %v487_v4 = vor.u32 1.1754944e-38, %v486_v27  ;;  %v7173_v27 = vld [vmem:[#allocation6 + $0x174] sm:$0xf0]  ;;  %v5440_v33 = vor.u32 %v7170_v8, %v5437_v23  ;;  %1332 = vmatpush.bf16.msrb.mxu3 %v5464_v18  ;;  %v5400_v8 = vor.u32 %v7159_v20, %v5397_v21  ;;  %v7211_v20 = vld [vmem:[#allocation6 + $0xac] sm:$0xf] }
  0xd3   :  { %v7860_v16 = vpop.f32.mrf.mxu0  ;;  %1293 = vmatpush.bf16.msrb.mxu0 %v5452_v11  ;;  %1306 = vmatpush.bf16.msrb.mxu1 %v5456_v12  ;;  %v5444_v39 = vor.u32 %v7173_v27, %v5443_v24  ;;  %v5395_v11 = vld [vmem:[#allocation6 + $0x108] sm:$0xf]  ;;  %v7161_v12 = vld [vmem:[#allocation6 + $0x114] sm:$0xf0]  ;;  %v5607_v21 = vld [vmem:[#allocation6 + $0xb8] sm:$0xf0] }
  0xd4   :  { %v723_v22 = vpop.f32.mrf.mxu1  ;;  %v5396_v19 = vor.u32 %v7161_v12, %v5395_v11  ;;  %v7212_v11 = vld [vmem:[#allocation6 + $0xac] sm:$0xf0]  ;;  %v7210_v12 = vld [vmem:[#allocation6 + $0xa4] sm:$0xf] }
  0xd5   :  { %v757_v28 = vrot.slane %v723_v22, 6 }
  0xd6   :  { %v7865_v37 = vpop.eup %7583 }
  0xd7   :  { %v476_v43 = vmul.f32 %v7865_v37, %v7855_v0  ;;  %vm481_vm4 = vweird.f32 %v7865_v37  ;;  %v760_v5 = vsel %vm463_vm0, %v7860_v16, %v757_v28  ;;  %v5459_v0 = vld [vmem:[#allocation6 + $0x188] sm:$0xf]  ;;  %v7171_v28 = vld [vmem:[#allocation6 + $0x16c] sm:$0xf]  ;;  %v7586_v42 = vpop.eup %7585  ;;  %1294 = vmatpush.bf16.msrb.mxu0 %v5436_v32  ;;  %1307 = vmatpush.bf16.msrb.mxu1 %v5440_v33 }
  0xd8   :  { %vm7881_vm6 = vmor %vm480_vm3, %vm481_vm4  ;;  %v5460_v16 = vor.u32 %v7177_v13, %v5459_v0  ;;  %v5448_v44 = vor.u32 %v7171_v28, %v5445_v29 }
  0xd9   :  { %v477_v52 = vsub.f32 1.0, %v476_v43 }
  0xda   :  { %1319 = vmatpush.bf16.msrb.mxu2 %v5460_v16  ;;  %1333 = vmatpush.bf16.msrb.mxu3 %v5448_v44  ;;  %v5629_v44 = vld [vmem:[#allocation6 + $0xe0] sm:$0xf] }
  0xdb   :  { %v736_v53 = vpop.f32.mrf.mxu2  ;;  %v712_v61 = vpop.f32.mrf.mxu0  ;;  %v478_v2 = vmul.f32 %v7865_v37, %v477_v52  ;;  %v5420_v52 = vor.u32 %v7168_v35, %v5419_v34  ;;  %v208_v34 = vld [vmem:[#allocation3 + $0x2] sm:$0x3] }
  0xdc   :  { %v758_v58 = vrot.slane %v736_v53, 4  ;;  %v749_v60 = vpop.f32.mrf.mxu3  ;;  %v725_v7 = vpop.f32.mrf.mxu1  ;;  %v5424_v53 = vor.u32 %v7166_v40, %v5421_v41  ;;  %v5411_v61 = vld [vmem:[#allocation6 + $0x128] sm:$0xf] }
  0xdd   :  { %v759_v6 = vrot.slane %v749_v60, 2  ;;  %v479_v15 = vadd.f32 %v7865_v37, %v478_v2  ;;  %v5432_v60 = vor.u32 %v7167_v50, %v5429_v51  ;;  %1295 = vmatpush.bf16.msrb.mxu0 %v5420_v52  ;;  %v5404_v2 = vor.u32 %v7164_v57, %v5403_v54  ;;  %v7158_v7 = vld [vmem:[#allocation6 + $0x104] sm:$0xf]  ;;  %v7221_v50 = vld [vmem:[#allocation6 + $0xf4] sm:$0xf0] }
  0xde   :  { %1320 = vmatpush.bf16.msrb.mxu2 %v5444_v39  ;;  %1308 = vmatpush.bf16.msrb.mxu1 %v5424_v53  ;;  %v7219_v53 = vld [vmem:[#allocation6 + $0xec] sm:$0xf]  ;;  %v5639_v54 = vld [vmem:[#allocation6 + $0xf8] sm:$0xf0] }
  0xdf   :  { %v761_v17 = vsel %vm465_vm1, %v758_v58, %v759_v6  ;;  %v483_v25 = vsel %vm7881_vm6, %v7865_v37, %v479_v15  ;;  %v7162_v58 = vld [vmem:[#allocation6 + $0x124] sm:$0xf]  ;;  %v7160_v6 = vld [vmem:[#allocation6 + $0x10c] sm:$0xf0]  ;;  %1334 = vmatpush.bf16.msrb.mxu3 %v5432_v60 }
  0xe0   :  { %v762_v22 = vsel %vm467_vm2, %v760_v5, %v761_v17  ;;  %v7899_v31 = vsel %vm7871_vm5, %v487_v4, %v483_v25  ;;  %v5387_v4 = vld [vmem:[#allocation6 + $0x100] sm:$0xf]  ;;  %v5412_v5 = vor.u32 %v7165_v62, %v5411_v61  ;;  %v5392_v17 = vor.u32 %v7158_v7, %v5389_v9  ;;  %v7216_v60 = vld [vmem:[#allocation6 + $0xcc] sm:$0xf0]  ;;  %v7214_v61 = vld [vmem:[#allocation6 + $0xc4] sm:$0xf] }
  0xe1   :  { %v7895_v26 = vadd.f32 %v762_v22, %v539_v59  ;;  %v495_v36 = vrot.slane %v7899_v31, 2  ;;  %v498_v48 = vmul.f32 %v7586_v42, %v7899_v31  ;;  %v5405_v59 = vld [vmem:[#allocation6 + $0x130] sm:$0xf0]  ;;  %v501_v14 = vrot.slane %v7899_v31, 4  ;;  %1296 = vmatpush.bf16.msrb.mxu0 %v5404_v2 }
  0xe2   :  { %v5408_v3 = vor.u32 %v7162_v58, %v5405_v59  ;;  %1321 = vmatpush.bf16.msrb.mxu2 %v5428_v56  ;;  %v5388_v15 = vor.u32 %v7160_v6, %v5387_v4  ;;  %v5642_v56 = vor.u32 %v7219_v53, %v5639_v54  ;;  %v5613_v59 = vld [vmem:[#allocation6 + $0xc0] sm:$0xf]  ;;  %v5618_v2 = vor.u32 %v7214_v61, %v5615_v63  ;;  %v7215_v4 = vld [vmem:[#allocation6 + $0xcc] sm:$0xf]  ;;  %v804_v6 = vld [vmem:[#allocation4 + $0x4] sm:$0xf] }
  0xe3   :  { %v765_v37 = vsub.f32 0.0, %v7895_v26  ;;  %v738_v38 = vpop.f32.mrf.mxu2  ;;  %v497_v47 = vmul.f32 %v495_v36, %v204_v30  ;;  %1335 = vmatpush.bf16.msrb.mxu3 %v5416_v10  ;;  %v785_v25 = vrot.slane %v7895_v26, 6  ;;  %v5614_v62 = vor.u32 %v7216_v60, %v5613_v59  ;;  %v5597_v10 = vld [vmem:[#allocation6 + $0xa0] sm:$0xf]  ;;  %v7200_v63 = vld [vmem:[#allocation6 + $0x4c] sm:$0xf0] }
  0xe4   :  { %v751_v43 = vpop.f32.mrf.mxu3  ;;  %1309 = vmatpush.bf16.msrb.mxu1 %v5408_v3  ;;  %v7217_v3 = vld [vmem:[#allocation6 + $0xd4] sm:$0xf0] }
  0xe5   :  { %v766_v49 = vmul.f32 1.442695, %v765_v37  ;;  %v7904_v55 = vadd.f32 %v498_v48, %v497_v47  ;;  %1297 = vmatpush.bf16.msrb.mxu0 %v5388_v15  ;;  %v5630_v47 = vor.u32 %v7220_v45, %v5629_v44  ;;  %v5631_v48 = vld [vmem:[#allocation6 + $0xf0] sm:$0xf0]  ;;  %v5622_v7 = vor.u32 %v7217_v3, %v5621_v1  ;;  %v7213_v15 = vld [vmem:[#allocation6 + $0xb4] sm:$0xf0] }
  0xe6   :  { %1322 = vmatpush.bf16.msrb.mxu2 %v5412_v5  ;;  %v5634_v51 = vor.u32 %v7218_v46, %v5631_v48  ;;  %v5623_v5 = vld [vmem:[#allocation6 + $0xd8] sm:$0xf0]  ;;  %v5565_v45 = vld [vmem:[#allocation6 + $0x60] sm:$0xf]  ;;  %v7204_v46 = vld [vmem:[#allocation6 + $0x6c] sm:$0xf0] }
  0xe7   :  { %7587 = vpow2.f32 %v766_v49  ;;  %1336 = vmatpush.bf16.msrb.mxu3 %v5400_v8  ;;  %v5637_v49 = vld [vmem:[#allocation6 + $0xe8] sm:$0xf]  ;;  %v5626_v9 = vor.u32 %v7215_v4, %v5623_v5  ;;  %v5610_v8 = vor.u32 %v7211_v20, %v5607_v21  ;;  %v5566_v48 = vor.u32 %v7204_v46, %v5565_v45  ;;  %v5551_v3 = vld [vmem:[#allocation6 + $0x50] sm:$0xf0]  ;;  %v7195_v21 = vld [vmem:[#allocation6 + $0x2c] sm:$0xf] }
  0xe8   :  { %7589 = vtanh.f32 %v7904_v55  ;;  %1310 = vmatpush.bf16.msrb.mxu1 %v5392_v17  ;;  %v5638_v52 = vor.u32 %v7221_v50, %v5637_v49  ;;  %v5567_v49 = vld [vmem:[#allocation6 + $0x70] sm:$0xf0]  ;;  %v5573_v50 = vld [vmem:[#allocation6 + $0x68] sm:$0xf] }
  0xe9   :  { %v5557_v4 = vld [vmem:[#allocation6 + $0x48] sm:$0xf] }
  0xea   :  { %1323 = vmatpush.bf16.msrb.mxu2 %v5396_v19 }
  0xed   :  { %v7588_v0 = vpop.eup %7587 }
  0xee   :  { %v768_v13 = vadd.f32 1.0, %v7588_v0  ;;  %v7590_v16 = vpop.eup %7589  ;;  %v5598_v0 = vor.u32 %v7212_v11, %v5597_v10 }
  0xef   :  { %v503_v22 = vmul.f32 %v7590_v16, %v501_v14  ;;  %v5605_v14 = vld [vmem:[#allocation6 + $0xa8] sm:$0xf] }
  0xf0   :  { %7591 = vrcp.f32 %v768_v13  ;;  %v780_v28 = vand.u32 2147483648, %v768_v13  ;;  %v778_v30 = vand.u32 2147483647, %v768_v13  ;;  %vm774_vm8 = vweird.f32 %v768_v13 }
  0xf1   :  { %v798_v18 = vpack.c.bf16 %v503_v22, %v503_v22  ;;  %7593 = vtanh.f32 %v785_v25  ;;  %v5606_v19 = vor.u32 %v7213_v15, %v5605_v14  ;;  %v5535_v15 = vld [vmem:[#allocation6 + $0x30] sm:$0xf0] }
  0xf2   :  { %v781_v32 = vor.u32 1.1754944e-38, %v780_v28  ;;  %vm779_vm10 = vcmp.eq.f32.partialorder %v778_v30, 8.507059e+37  ;;  %v7208_v30 = vld [vmem:[#allocation6 + $0x8c] sm:$0xf0] }
  0xf3   :  { %799 = vst [vmem:[%s8352_s3] sm:$0x1] %v798_v18  ;;  %1006 = vmatmul.bf16.vlgmr.msra.gmra.mxu0 %v798_v18  ;;  %1019 = vmatmul.bf16.vlgmr.msra.gmra.mxu1 %v798_v18 }
  0xf4   :  { %1032 = vmatmul.bf16.vlgmr.msra.gmra.mxu2 %v798_v18  ;;  %1045 = vmatmul.bf16.vlgmr.msra.gmra.mxu3 %v798_v18 }
  0xf5   :  { %1588 = vmatpush.bf16.msra.mxu0 %v5630_v47  ;;  %1601 = vmatpush.bf16.msra.mxu1 %v5634_v51  ;;  %v7202_v47 = vld [vmem:[#allocation6 + $0x64] sm:$0xf]  ;;  %v7205_v51 = vld [vmem:[#allocation6 + $0x74] sm:$0xf0] }
  0xf6   :  { %v7592_v23 = vpop.eup %7591  ;;  %1614 = vmatpush.bf16.msra.mxu2 %v5638_v52  ;;  %1627 = vmatpush.bf16.msra.mxu3 %v5642_v56  ;;  %v5570_v53 = vor.u32 %v7202_v47, %v5567_v49  ;;  %v5574_v54 = vor.u32 %v7205_v51, %v5573_v50  ;;  %v7203_v56 = vld [vmem:[#allocation6 + $0x6c] sm:$0xf] }
  0xf7   :  { %v770_v24 = vmul.f32 %v7592_v23, %v768_v13  ;;  %vm775_vm7 = vweird.f32 %v7592_v23  ;;  %v7594_v37 = vpop.eup %7593  ;;  %v5599_v13 = vld [vmem:[#allocation6 + $0xb0] sm:$0xf0]  ;;  %v7251_v47 = vld [vmem:[#allocation6 + $0x1ec] sm:$0xf] }
  0xf8   :  { %vm776_vm9 = vmor %vm774_vm8, %vm775_vm7  ;;  %v5602_v16 = vor.u32 %v7210_v12, %v5599_v13  ;;  %v5533_v12 = vld [vmem:[#allocation6 + $0x20] sm:$0xf]  ;;  %v7194_v13 = vld [vmem:[#allocation6 + $0x24] sm:$0xf] }
  0xf9   :  { %v771_v27 = vsub.f32 1.0, %v770_v24  ;;  %1589 = vmatpush.bf16.msra.mxu0 %v5614_v62  ;;  %1602 = vmatpush.bf16.msra.mxu1 %v5618_v2  ;;  %v837_v24 = vunpack.c.l.bf16 %v804_v6  ;;  %v5549_v62 = vld [vmem:[#allocation6 + $0x40] sm:$0xf]  ;;  %v7198_v2 = vld [vmem:[#allocation6 + $0x44] sm:$0xf] }
  0xfa   :  { %1615 = vmatpush.bf16.msra.mxu2 %v5622_v7  ;;  %1628 = vmatpush.bf16.msra.mxu3 %v5626_v9  ;;  %v5550_v1 = vor.u32 %v7200_v63, %v5549_v62  ;;  %v5554_v5 = vor.u32 %v7198_v2, %v5551_v3  ;;  %v7201_v6 = vld [vmem:[#allocation6 + $0x54] sm:$0xf0]  ;;  %v7199_v7 = vld [vmem:[#allocation6 + $0x4c] sm:$0xf]  ;;  %v5559_v9 = vld [vmem:[#allocation6 + $0x58] sm:$0xf0] }
  0xfb   :  { %v772_v29 = vmul.f32 %v7592_v23, %v771_v27  ;;  %v5558_v10 = vor.u32 %v7201_v6, %v5557_v4  ;;  %v5562_v11 = vor.u32 %v7199_v7, %v5559_v9  ;;  %v5743_v62 = vld [vmem:[#allocation6 + $0x1d0] sm:$0xf0]  ;;  %v7249_v2 = vld [vmem:[#allocation6 + $0x1d4] sm:$0xf0]  ;;  %v7247_v3 = vld [vmem:[#allocation6 + $0x1cc] sm:$0xf] }
  0xfc   :  { %v5751_v6 = vld [vmem:[#allocation6 + $0x1d8] sm:$0xf0]  ;;  %v5725_v7 = vld [vmem:[#allocation6 + $0x1a0] sm:$0xf]  ;;  %v7244_v9 = vld [vmem:[#allocation6 + $0x1ac] sm:$0xf0] }
  0xfd   :  { %v773_v31 = vadd.f32 %v7592_v23, %v772_v29  ;;  %1590 = vmatpush.bf16.msra.mxu0 %v5598_v0  ;;  %1603 = vmatpush.bf16.msra.mxu1 %v5602_v16  ;;  %v5581_v29 = vld [vmem:[#allocation6 + $0x80] sm:$0xf]  ;;  %v7196_v0 = vld [vmem:[#allocation6 + $0x2c] sm:$0xf0]  ;;  %v7197_v16 = vld [vmem:[#allocation6 + $0x34] sm:$0xf0] }
  0xfe   :  { %1616 = vmatpush.bf16.msra.mxu2 %v5606_v19  ;;  %1629 = vmatpush.bf16.msra.mxu3 %v5610_v8  ;;  %v5534_v14 = vor.u32 %v7196_v0, %v5533_v12  ;;  %v5538_v19 = vor.u32 %v7194_v13, %v5535_v15  ;;  %v5726_v12 = vor.u32 %v7244_v9, %v5725_v7  ;;  %v7242_v0 = vld [vmem:[#allocation6 + $0x1a4] sm:$0xf]  ;;  %v5727_v13 = vld [vmem:[#allocation6 + $0x1b0] sm:$0xf0] }
  0xff   :  { %v777_v33 = vsel %vm776_vm9, %v7592_v23, %v773_v31  ;;  %v5582_v31 = vor.u32 %v7208_v30, %v5581_v29  ;;  %v5519_v29 = vld [vmem:[#allocation6 + $0x10] sm:$0xf0]  ;;  %v5525_v30 = vld [vmem:[#allocation6 + $0x8] sm:$0xf] }
 0x100   :  { %v782_v35 = vsel %vm779_vm10, %v781_v32, %v777_v33  ;;  %v7206_v32 = vld [vmem:[#allocation6 + $0x84] sm:$0xf]  ;;  %v5583_v33 = vld [vmem:[#allocation6 + $0x90] sm:$0xf0] }
 0x101   :  { %v789_v36 = vrot.slane %v782_v35, 2  ;;  %v792_v39 = vmul.f32 %v7594_v37, %v782_v35  ;;  %v795_v26 = vrot.slane %v782_v35, 4  ;;  %v5586_v37 = vor.u32 %v7206_v32, %v5583_v33  ;;  %1591 = vmatpush.bf16.msra.mxu0 %v5582_v31  ;;  %v7193_v32 = vld [vmem:[#allocation6 + $0x14] sm:$0xf0]  ;;  %v7191_v33 = vld [vmem:[#allocation6 + $0xc] sm:$0xf] }
 0x103   :  { %v791_v38 = vmul.f32 %v789_v36, %v208_v34  ;;  %v5589_v34 = vld [vmem:[#allocation6 + $0x88] sm:$0xf]  ;;  %1604 = vmatpush.bf16.msra.mxu1 %v5586_v37  ;;  %v5757_v37 = vld [vmem:[#allocation6 + $0x1e0] sm:$0xf] }
 0x105   :  { %v7912_v40 = vadd.f32 %v792_v39, %v791_v38  ;;  %v7209_v38 = vld [vmem:[#allocation6 + $0x94] sm:$0xf0]  ;;  %v7207_v39 = vld [vmem:[#allocation6 + $0x8c] sm:$0xf]  ;;  %1592 = vmatpush.bf16.msra.mxu0 %v5566_v48  ;;  %v5767_v48 = vld [vmem:[#allocation6 + $0x1f8] sm:$0xf0] }
 0x107   :  { %7595 = vtanh.f32 %v7912_v40  ;;  %1605 = vmatpush.bf16.msra.mxu1 %v5570_v53 }
 0x109   :  { %1593 = vmatpush.bf16.msra.mxu0 %v5550_v1  ;;  %v5749_v1 = vld [vmem:[#allocation6 + $0x1c8] sm:$0xf] }
 0x10b   :  { %1606 = vmatpush.bf16.msra.mxu1 %v5554_v5  ;;  %v5750_v5 = vor.u32 %v7249_v2, %v5749_v1  ;;  %v7232_v1 = vld [vmem:[#allocation6 + $0x14c] sm:$0xf0] }
 0x10d   :  { %v7596_v41 = vpop.eup %7595  ;;  %1594 = vmatpush.bf16.msra.mxu0 %v5534_v14 }
 0x10e   :  { %v797_v42 = vmul.f32 %v7596_v41, %v795_v26  ;;  %v5591_v26 = vld [vmem:[#allocation6 + $0x98] sm:$0xf0] }
 0x10f   :  { %1607 = vmatpush.bf16.msra.mxu1 %v5538_v19  ;;  %v7245_v19 = vld [vmem:[#allocation6 + $0x1b4] sm:$0xf0] }
 0x110   :  { %v800_v43 = vpack.c.bf16 %v797_v42, %v797_v42  ;;  %v5590_v42 = vor.u32 %v7209_v38, %v5589_v34  ;;  %v5527_v34 = vld [vmem:[#allocation6 + $0x18] sm:$0xf0]  ;;  %v7252_v38 = vld [vmem:[#allocation6 + $0x1ec] sm:$0xf0] }
 0x112   :  { %5256 = vst [vmem:[%s8353_s4 + $0x7] sm:$0x1] %v800_v43  ;;  %1298 = vmatmul.bf16.vlgmr.msrb.gmra.mxu0 %v800_v43  ;;  %1311 = vmatmul.bf16.vlgmr.msrb.gmra.mxu1 %v800_v43 }
 0x113   :  { %1324 = vmatmul.bf16.vlgmr.msrb.gmra.mxu2 %v800_v43  ;;  %1337 = vmatmul.bf16.vlgmr.msrb.gmra.mxu3 %v800_v43  ;;  %v5594_v43 = vor.u32 %v7207_v39, %v5591_v26  ;;  %v7250_v39 = vld [vmem:[#allocation6 + $0x1e4] sm:$0xf]  ;;  %v5758_v26 = vor.u32 %v7252_v38, %v5757_v37  ;;  %v5711_v37 = vld [vmem:[#allocation6 + $0x190] sm:$0xf0]  ;;  %v5717_v38 = vld [vmem:[#allocation6 + $0x188] sm:$0xf] }
 0x114   :  { %1617 = vmatpush.bf16.msra.mxu2 %v5590_v42  ;;  %v5765_v42 = vld [vmem:[#allocation6 + $0x1e8] sm:$0xf] }
 0x115   :  { %1630 = vmatpush.bf16.msra.mxu3 %v5594_v43  ;;  %v7253_v43 = vld [vmem:[#allocation6 + $0x1f4] sm:$0xf0] }
 0x116   :  { %v5766_v46 = vor.u32 %v7253_v43, %v5765_v42 }
 0x118   :  { %1618 = vmatpush.bf16.msra.mxu2 %v5574_v54  ;;  %v5741_v54 = vld [vmem:[#allocation6 + $0x1c0] sm:$0xf] }
 0x11c   :  { %1619 = vmatpush.bf16.msra.mxu2 %v5558_v10  ;;  %v5679_v10 = vld [vmem:[#allocation6 + $0x150] sm:$0xf0] }
 0x170   :  { %v1007_v57 = vpop.f32.mrf.mxu0  ;;  %v1020_v58 = vpop.f32.mrf.mxu1 }
 0x171   :  { %v1054_v17 = vrot.slane %v1020_v58, 6 }
 0x173   :  { %v1057_v35 = vsel %vm463_vm0, %v1007_v57, %v1054_v17  ;;  %v5575_v57 = vld [vmem:[#allocation6 + $0x78] sm:$0xf0]  ;;  %v5541_v17 = vld [vmem:[#allocation6 + $0x28] sm:$0xf] }
 0x174   :  { %v5578_v60 = vor.u32 %v7203_v56, %v5575_v57  ;;  %v5542_v20 = vor.u32 %v7197_v16, %v5541_v17  ;;  %v7248_v56 = vld [vmem:[#allocation6 + $0x1cc] sm:$0xf0]  ;;  %v5730_v17 = vor.u32 %v7242_v0, %v5727_v13  ;;  %v5733_v16 = vld [vmem:[#allocation6 + $0x1a8] sm:$0xf] }
 0x176   :  { %1631 = vmatpush.bf16.msra.mxu3 %v5578_v60  ;;  %1620 = vmatpush.bf16.msra.mxu2 %v5542_v20  ;;  %v5742_v60 = vor.u32 %v7248_v56, %v5741_v54 }
 0x177   :  { %v1033_v22 = vpop.f32.mrf.mxu2  ;;  %v1046_v18 = vpop.f32.mrf.mxu3 }
 0x178   :  { %v1055_v23 = vrot.slane %v1033_v22, 4  ;;  %v1056_v25 = vrot.slane %v1046_v18, 2  ;;  %v1009_v27 = vpop.f32.mrf.mxu0  ;;  %v1022_v28 = vpop.f32.mrf.mxu1  ;;  %v5543_v22 = vld [vmem:[#allocation6 + $0x38] sm:$0xf0] }
 0x179   :  { %v5546_v18 = vor.u32 %v7195_v21, %v5543_v22 }
 0x17a   :  { %v1058_v36 = vsel %vm465_vm1, %v1055_v23, %v1056_v25  ;;  %1632 = vmatpush.bf16.msra.mxu3 %v5562_v11  ;;  %v5517_v23 = vld [vmem:[#allocation6] sm:$0xf]  ;;  %v7190_v25 = vld [vmem:[#allocation6 + $0x4] sm:$0xf]  ;;  %v5754_v11 = vor.u32 %v7247_v3, %v5751_v6 }
 0x17b   :  { %v1059_v41 = vsel %vm467_vm2, %v1057_v35, %v1058_v36  ;;  %v5522_v31 = vor.u32 %v7190_v25, %v5519_v29  ;;  %v5526_v35 = vor.u32 %v7193_v32, %v5525_v30  ;;  %v5530_v36 = vor.u32 %v7191_v33, %v5527_v34  ;;  %v7238_v34 = vld [vmem:[#allocation6 + $0x184] sm:$0xf]  ;;  %v5645_v32 = vld [vmem:[#allocation6 + $0x100] sm:$0xf] }
 0x17c   :  { %v7921_v44 = vadd.f32 %v1059_v41, %v837_v24  ;;  %v7192_v24 = vld [vmem:[#allocation6 + $0xc] sm:$0xf0]  ;;  %v5759_v41 = vld [vmem:[#allocation6 + $0x1f0] sm:$0xf0]  ;;  %v5714_v42 = vor.u32 %v7238_v34, %v5711_v37  ;;  %v7222_v34 = vld [vmem:[#allocation6 + $0x104] sm:$0xf] }
 0x17d   :  { %v5518_v28 = vor.u32 %v7192_v24, %v5517_v23  ;;  %1608 = vmatpush.bf16.msra.mxu1 %v5522_v31  ;;  %1621 = vmatpush.bf16.msra.mxu2 %v5526_v35  ;;  %v5762_v45 = vor.u32 %v7250_v39, %v5759_v41  ;;  %v5735_v23 = vld [vmem:[#allocation6 + $0x1b8] sm:$0xf0]  ;;  %v5709_v24 = vld [vmem:[#allocation6 + $0x180] sm:$0xf]  ;;  %v7241_v39 = vld [vmem:[#allocation6 + $0x194] sm:$0xf0] }
 0x17e   :  { %v1062_v52 = vsub.f32 0.0, %v7921_v44  ;;  %1633 = vmatpush.bf16.msra.mxu3 %v5546_v18  ;;  %v1082_v49 = vrot.slane %v7921_v44, 6  ;;  %v5734_v18 = vor.u32 %v7245_v19, %v5733_v16  ;;  %v5718_v43 = vor.u32 %v7241_v39, %v5717_v38  ;;  %v5687_v19 = vld [vmem:[#allocation6 + $0x158] sm:$0xf0]  ;;  %v5653_v37 = vld [vmem:[#allocation6 + $0x108] sm:$0xf] }
 0x17f   :  { %v1035_v58 = vpop.f32.mrf.mxu2  ;;  %v1048_v59 = vpop.f32.mrf.mxu3  ;;  %1595 = vmatpush.bf16.msra.mxu0 %v5518_v28  ;;  %v7225_v38 = vld [vmem:[#allocation6 + $0x114] sm:$0xf0] }
 0x180   :  { %v1063_v61 = vmul.f32 1.442695, %v1062_v52  ;;  %v5770_v52 = vor.u32 %v7251_v47, %v5767_v48  ;;  %v7929_v58 = vld [vmem:[#allocation5 + $0x18] sm:$0xf]  ;;  %v5693_v47 = vld [vmem:[#allocation6 + $0x160] sm:$0xf] }
 0x181   :  { %1893 = vmatpush.bf16.msrb.mxu1 %v5762_v45  ;;  %1906 = vmatpush.bf16.msrb.mxu2 %v5766_v46  ;;  %v1129_v21 = vunpack.c.l.bf16 %v7929_v58  ;;  %v7239_v45 = vld [vmem:[#allocation6 + $0x18c] sm:$0xf]  ;;  %v5719_v46 = vld [vmem:[#allocation6 + $0x198] sm:$0xf0]  ;;  %v7237_v58 = vld [vmem:[#allocation6 + $0x174] sm:$0xf0] }
 0x182   :  { %7597 = vpow2.f32 %v1063_v61  ;;  %1634 = vmatpush.bf16.msra.mxu3 %v5530_v36  ;;  %v7246_v61 = vld [vmem:[#allocation6 + $0x1c4] sm:$0xf] }
 0x183   :  { %1880 = vmatpush.bf16.msrb.mxu0 %v5758_v26  ;;  %v5746_v63 = vor.u32 %v7246_v61, %v5743_v62  ;;  %v5703_v62 = vld [vmem:[#allocation6 + $0x178] sm:$0xf0] }
 0x185   :  { %1894 = vmatpush.bf16.msrb.mxu1 %v5746_v63  ;;  %1907 = vmatpush.bf16.msrb.mxu2 %v5750_v5  ;;  %v5677_v63 = vld [vmem:[#allocation6 + $0x140] sm:$0xf] }
 0x186   :  { %1919 = vmatpush.bf16.msrb.mxu3 %v5770_v52  ;;  %v5695_v52 = vld [vmem:[#allocation6 + $0x170] sm:$0xf0] }
 0x187   :  { %1881 = vmatpush.bf16.msrb.mxu0 %v5742_v60 }
 0x188   :  { %v7598_v8 = vpop.eup %7597 }
 0x189   :  { %v7924_v27 = vadd.f32 1.0, %v7598_v8  ;;  %v7243_v8 = vld [vmem:[#allocation6 + $0x1ac] sm:$0xf]  ;;  %1895 = vmatpush.bf16.msrb.mxu1 %v5730_v17  ;;  %1908 = vmatpush.bf16.msrb.mxu2 %v5734_v18 }
 0x18a   :  { %1920 = vmatpush.bf16.msrb.mxu3 %v5754_v11  ;;  %v5738_v33 = vor.u32 %v7243_v8, %v5735_v23  ;;  %v5685_v11 = vld [vmem:[#allocation6 + $0x148] sm:$0xf]  ;;  %v7231_v17 = vld [vmem:[#allocation6 + $0x14c] sm:$0xf]  ;;  %v7226_v8 = vld [vmem:[#allocation6 + $0x124] sm:$0xf] }
 0x18b   :  { %7599 = vrcp.f32 %v7924_v27  ;;  %v1075_v53 = vand.u32 2147483647, %v7924_v27  ;;  %v1077_v59 = vand.u32 2147483648, %v7924_v27  ;;  %vm1071_vm13 = vweird.f32 %v7924_v27  ;;  %1882 = vmatpush.bf16.msrb.mxu0 %v5726_v12  ;;  %v5663_v23 = vld [vmem:[#allocation6 + $0x130] sm:$0xf0] }
 0x18c   :  { %7601 = vtanh.f32 %v1082_v49  ;;  %v5722_v49 = vor.u32 %v7239_v45, %v5719_v46  ;;  %v5654_v46 = vor.u32 %v7225_v38, %v5653_v37  ;;  %v7274_v37 = vld [vmem:[#allocation6 + $0xa4] sm:$0xf] }
 0x18d   :  { %vm7937_vm12 = vcmp.eq.f32.partialorder %v1075_v53, 8.507059e+37  ;;  %v1078_v15 = vor.u32 1.1754944e-38, %v1077_v59  ;;  %v7235_v59 = vld [vmem:[#allocation6 + $0x16c] sm:$0xf]  ;;  %1896 = vmatpush.bf16.msrb.mxu1 %v5714_v42  ;;  %1909 = vmatpush.bf16.msrb.mxu2 %v5718_v43 }
 0x18e   :  { %1921 = vmatpush.bf16.msrb.mxu3 %v5738_v33  ;;  %v5706_v9 = vor.u32 %v7235_v59, %v5703_v62  ;;  %v7224_v33 = vld [vmem:[#allocation6 + $0x10c] sm:$0xf0] }
 0x18f   :  { %v1299_v50 = vpop.f32.mrf.mxu0  ;;  %v1312_v51 = vpop.f32.mrf.mxu1 }
 0x190   :  { %v1346_v57 = vrot.slane %v1312_v51, 6  ;;  %v7234_v51 = vld [vmem:[#allocation6 + $0x164] sm:$0xf] }
 0x191   :  { %v7932_v44 = vpop.eup %7599  ;;  %v5698_v61 = vor.u32 %v7234_v51, %v5695_v52 }
 0x192   :  { %v1067_v4 = vmul.f32 %v7932_v44, %v7924_v27  ;;  %vm1072_vm11 = vweird.f32 %v7932_v44  ;;  %v7240_v27 = vld [vmem:[#allocation6 + $0x18c] sm:$0xf0]  ;;  %v1349_v35 = vsel %vm463_vm0, %v1299_v50, %v1346_v57  ;;  %v5701_v57 = vld [vmem:[#allocation6 + $0x168] sm:$0xf]  ;;  %v7602_v5 = vpop.eup %7601  ;;  %1922 = vmatpush.bf16.msrb.mxu3 %v5722_v49 }
 0x193   :  { %vm7946_vm14 = vmor %vm1071_vm13, %vm1072_vm11  ;;  %v5710_v36 = vor.u32 %v7240_v27, %v5709_v24  ;;  %v7236_v50 = vld [vmem:[#allocation6 + $0x16c] sm:$0xf0]  ;;  %1897 = vmatpush.bf16.msrb.mxu1 %v5698_v61  ;;  %v5669_v24 = vld [vmem:[#allocation6 + $0x128] sm:$0xf] }
 0x194   :  { %v1068_v14 = vsub.f32 1.0, %v1067_v4  ;;  %v5694_v56 = vor.u32 %v7236_v50, %v5693_v47  ;;  %v7230_v4 = vld [vmem:[#allocation6 + $0x144] sm:$0xf]  ;;  %v7223_v47 = vld [vmem:[#allocation6 + $0x10c] sm:$0xf] }
 0x195   :  { %1883 = vmatpush.bf16.msrb.mxu0 %v5710_v36  ;;  %v5682_v16 = vor.u32 %v7230_v4, %v5679_v10  ;;  %v5887_v10 = vld [vmem:[#allocation6 + $0xe0] sm:$0xf] }
 0x196   :  { %v1325_v20 = vpop.f32.mrf.mxu2  ;;  %v1338_v22 = vpop.f32.mrf.mxu3  ;;  %v1069_v31 = vmul.f32 %v7932_v44, %v1068_v14  ;;  %v5678_v14 = vor.u32 %v7232_v1, %v5677_v63  ;;  %1923 = vmatpush.bf16.msrb.mxu3 %v5706_v9 }
 0x197   :  { %v1347_v25 = vrot.slane %v1325_v20, 4  ;;  %v1348_v28 = vrot.slane %v1338_v22, 2  ;;  %v1301_v29 = vpop.f32.mrf.mxu0  ;;  %v1314_v30 = vpop.f32.mrf.mxu1  ;;  %v5661_v20 = vld [vmem:[#allocation6 + $0x120] sm:$0xf]  ;;  %1898 = vmatpush.bf16.msrb.mxu1 %v5682_v16  ;;  %v7283_v16 = vld [vmem:[#allocation6 + $0xec] sm:$0xf] }
 0x198   :  { %v1070_v41 = vadd.f32 %v7932_v44, %v1069_v31  ;;  %v7227_v29 = vld [vmem:[#allocation6 + $0x12c] sm:$0xf]  ;;  %v5671_v30 = vld [vmem:[#allocation6 + $0x138] sm:$0xf0]  ;;  %v5666_v31 = vor.u32 %v7226_v8, %v5663_v23  ;;  %v5871_v8 = vld [vmem:[#allocation6 + $0xc0] sm:$0xf] }
 0x199   :  { %v1350_v26 = vsel %vm465_vm1, %v1347_v25, %v1348_v28  ;;  %1884 = vmatpush.bf16.msrb.mxu0 %v5694_v56  ;;  %v7229_v25 = vld [vmem:[#allocation6 + $0x134] sm:$0xf0]  ;;  %v5674_v36 = vor.u32 %v7227_v29, %v5671_v30  ;;  %v7280_v23 = vld [vmem:[#allocation6 + $0xcc] sm:$0xf0] }
 0x19a   :  { %v1351_v48 = vsel %vm467_vm2, %v1349_v35, %v1350_v26  ;;  %v1074_v54 = vsel %vm7946_vm14, %v7932_v44, %v1070_v41  ;;  %v5702_v44 = vor.u32 %v7237_v58, %v5701_v57  ;;  %v5670_v27 = vor.u32 %v7229_v25, %v5669_v24  ;;  %v5647_v35 = vld [vmem:[#allocation6 + $0x110] sm:$0xf0]  ;;  %v7278_v24 = vld [vmem:[#allocation6 + $0xc4] sm:$0xf]  ;;  %v7281_v30 = vld [vmem:[#allocation6 + $0xd4] sm:$0xf0] }
 0x19b   :  { %v7954_v53 = vadd.f32 %v1351_v48, %v1129_v21  ;;  %v7961_v60 = vsel %vm7937_vm12, %v1078_v15, %v1074_v54  ;;  %v7233_v15 = vld [vmem:[#allocation6 + $0x154] sm:$0xf0]  ;;  %v7228_v21 = vld [vmem:[#allocation6 + $0x12c] sm:$0xf0]  ;;  %v5646_v26 = vor.u32 %v7224_v33, %v5645_v32  ;;  %1899 = vmatpush.bf16.msrb.mxu1 %v5666_v31  ;;  %v5650_v43 = vor.u32 %v7222_v34, %v5647_v35  ;;  %v5655_v48 = vld [vmem:[#allocation6 + $0x118] sm:$0xf0] }
 0x19c   :  { %v1086_v3 = vrot.slane %v7961_v60, 2  ;;  %v1089_v13 = vmul.f32 %v7602_v5, %v7961_v60  ;;  %1910 = vmatpush.bf16.msrb.mxu2 %v5702_v44  ;;  %v5686_v18 = vor.u32 %v7233_v15, %v5685_v11  ;;  %v5662_v28 = vor.u32 %v7228_v21, %v5661_v20  ;;  %v7284_v11 = vld [vmem:[#allocation6 + $0xec] sm:$0xf0]  ;;  %v5873_v25 = vld [vmem:[#allocation6 + $0xd0] sm:$0xf0] }
 0x19d   :  { %v1354_v2 = vsub.f32 0.0, %v7954_v53  ;;  %1885 = vmatpush.bf16.msrb.mxu0 %v5678_v14  ;;  %v1092_v42 = vrot.slane %v7961_v60, 4  ;;  %v5658_v51 = vor.u32 %v7223_v47, %v5655_v48  ;;  %v1374_v56 = vrot.slane %v7954_v53, 6  ;;  %v7285_v14 = vld [vmem:[#allocation6 + $0xf4] sm:$0xf0] }
 0x19e   :  { %v1327_v6 = vpop.f32.mrf.mxu2  ;;  %v1340_v7 = vpop.f32.mrf.mxu3  ;;  %v1088_v0 = vmul.f32 %v1086_v3, %v7904_v55  ;;  %v5690_v55 = vor.u32 %v7231_v17, %v5687_v19  ;;  %v5897_v19 = vld [vmem:[#allocation6 + $0xf8] sm:$0xf0]  ;;  %v5876_v29 = vor.u32 %v7278_v24, %v5873_v25  ;;  %v7279_v31 = vld [vmem:[#allocation6 + $0xcc] sm:$0xf]  ;;  %v1394_v33 = vld [vmem:[#allocation4 + $0x8] sm:$0xf] }
 0x19f   :  { %v1355_v12 = vmul.f32 1.442695, %v1354_v2  ;;  %1900 = vmatpush.bf16.msrb.mxu1 %v5650_v43  ;;  %v5881_v32 = vld [vmem:[#allocation6 + $0xd8] sm:$0xf0]  ;;  %v5855_v35 = vld [vmem:[#allocation6 + $0xa0] sm:$0xf]  ;;  %v1427_v43 = vunpack.c.l.bf16 %v1394_v33 }
 0x1a0   :  { %v7967_v22 = vadd.f32 %v1089_v13, %v1088_v0  ;;  %1911 = vmatpush.bf16.msrb.mxu2 %v5686_v18  ;;  %1924 = vmatpush.bf16.msrb.mxu3 %v5690_v55  ;;  %v5889_v0 = vld [vmem:[#allocation6 + $0xf0] sm:$0xf0]  ;;  %v5895_v13 = vld [vmem:[#allocation6 + $0xe8] sm:$0xf]  ;;  %v5900_v18 = vor.u32 %v7283_v16, %v5897_v19  ;;  %v5872_v55 = vor.u32 %v7280_v23, %v5871_v8  ;;  %v7277_v47 = vld [vmem:[#allocation6 + $0xb4] sm:$0xf0] }
 0x1a1   :  { %7603 = vpow2.f32 %v1355_v12  ;;  %1886 = vmatpush.bf16.msrb.mxu0 %v5662_v28  ;;  %v5888_v12 = vor.u32 %v7284_v11, %v5887_v10  ;;  %v5896_v17 = vor.u32 %v7285_v14, %v5895_v13  ;;  %v5879_v28 = vld [vmem:[#allocation6 + $0xc8] sm:$0xf]  ;;  %v5884_v34 = vor.u32 %v7279_v31, %v5881_v32  ;;  %v7275_v48 = vld [vmem:[#allocation6 + $0xac] sm:$0xf]  ;;  %v5823_v11 = vld [vmem:[#allocation6 + $0x60] sm:$0xf] }
 0x1a2   :  { %7605 = vtanh.f32 %v7967_v22  ;;  %v5825_v14 = vld [vmem:[#allocation6 + $0x70] sm:$0xf0]  ;;  %v5807_v24 = vld [vmem:[#allocation6 + $0x40] sm:$0xf]  ;;  %v7264_v25 = vld [vmem:[#allocation6 + $0x4c] sm:$0xf0] }
 0x1a3   :  { %v5815_v31 = vld [vmem:[#allocation6 + $0x48] sm:$0xf]  ;;  %v7265_v32 = vld [vmem:[#allocation6 + $0x54] sm:$0xf0] }
 0x1a4   :  { %1912 = vmatpush.bf16.msrb.mxu2 %v5670_v27  ;;  %1925 = vmatpush.bf16.msrb.mxu3 %v5674_v36  ;;  %v5880_v27 = vor.u32 %v7281_v30, %v5879_v28  ;;  %v7276_v36 = vld [vmem:[#allocation6 + $0xac] sm:$0xf0]  ;;  %v7262_v28 = vld [vmem:[#allocation6 + $0x44] sm:$0xf]  ;;  %v5809_v30 = vld [vmem:[#allocation6 + $0x50] sm:$0xf0] }
 0x1a5   :  { %1887 = vmatpush.bf16.msrb.mxu0 %v5646_v26  ;;  %v5857_v26 = vld [vmem:[#allocation6 + $0xb0] sm:$0xf0]  ;;  %v5812_v33 = vor.u32 %v7262_v28, %v5809_v30  ;;  %v7313_v30 = vld [vmem:[#allocation6 + $0x1d4] sm:$0xf0] }
 0x1a7   :  { %v7604_v39 = vpop.eup %7603 }
 0x1a8   :  { %v1357_v41 = vadd.f32 1.0, %v7604_v39  ;;  %v7606_v45 = vpop.eup %7605  ;;  %1913 = vmatpush.bf16.msrb.mxu2 %v5654_v46  ;;  %1926 = vmatpush.bf16.msrb.mxu3 %v5658_v51  ;;  %v5856_v39 = vor.u32 %v7276_v36, %v5855_v35  ;;  %v5860_v46 = vor.u32 %v7274_v37, %v5857_v26  ;;  %v5817_v35 = vld [vmem:[#allocation6 + $0x58] sm:$0xf0]  ;;  %v5791_v37 = vld [vmem:[#allocation6 + $0x20] sm:$0xf] }
 0x1a9   :  { %v1094_v49 = vmul.f32 %v7606_v45, %v1092_v42 }
 0x1aa   :  { %7607 = vrcp.f32 %v1357_v41  ;;  %v1369_v58 = vand.u32 2147483648, %v1357_v41  ;;  %v1367_v60 = vand.u32 2147483647, %v1357_v41  ;;  %vm1363_vm3 = vweird.f32 %v1357_v41 }
 0x1ab   :  { %v1387_v50 = vpack.c.bf16 %v1094_v49, %v1094_v49  ;;  %7609 = vtanh.f32 %v1374_v56  ;;  %v5865_v49 = vld [vmem:[#allocation6 + $0xb8] sm:$0xf0] }
 0x1ac   :  { %v1370_v62 = vor.u32 1.1754944e-38, %v1369_v58  ;;  %vm1368_vm5 = vcmp.eq.f32.partialorder %v1367_v60, 8.507059e+37  ;;  %v5839_v58 = vld [vmem:[#allocation6 + $0x80] sm:$0xf]  ;;  %v7270_v60 = vld [vmem:[#allocation6 + $0x84] sm:$0xf] }
 0x1ad   :  { %5513 = vst [vmem:[%s8352_s3 + $0x1] sm:$0x1] %v1387_v50  ;;  %1596 = vmatmul.bf16.vlgmr.msra.gmra.mxu0 %v1387_v50  ;;  %1609 = vmatmul.bf16.vlgmr.msra.gmra.mxu1 %v1387_v50 }
 0x1ae   :  { %1622 = vmatmul.bf16.vlgmr.msra.gmra.mxu2 %v1387_v50  ;;  %1635 = vmatmul.bf16.vlgmr.msra.gmra.mxu3 %v1387_v50 }
 0x1af   :  { %2178 = vmatpush.bf16.msra.mxu0 %v5888_v12  ;;  %2204 = vmatpush.bf16.msra.mxu2 %v5896_v17  ;;  %v7266_v12 = vld [vmem:[#allocation6 + $0x64] sm:$0xf] }
 0x1b0   :  { %v7608_v52 = vpop.eup %7607  ;;  %2217 = vmatpush.bf16.msra.mxu3 %v5900_v18  ;;  %v5828_v19 = vor.u32 %v7266_v12, %v5825_v14  ;;  %v5833_v18 = vld [vmem:[#allocation6 + $0x78] sm:$0xf0] }
 0x1b1   :  { %v1359_v54 = vmul.f32 %v7608_v52, %v1357_v41  ;;  %vm1364_vm15 = vweird.f32 %v7608_v52  ;;  %v7610_v3 = vpop.eup %7609  ;;  %v5863_v41 = vld [vmem:[#allocation6 + $0xa8] sm:$0xf]  ;;  %v6025_v14 = vld [vmem:[#allocation6 + $0x1f8] sm:$0xf0] }
 0x1b2   :  { %vm1365_vm4 = vmor %vm1363_vm3, %vm1364_vm15  ;;  %v5864_v56 = vor.u32 %v7277_v47, %v5863_v41  ;;  %v5793_v41 = vld [vmem:[#allocation6 + $0x30] sm:$0xf0]  ;;  %v7259_v47 = vld [vmem:[#allocation6 + $0x2c] sm:$0xf] }
 0x1b3   :  { %v1360_v57 = vsub.f32 1.0, %v1359_v54  ;;  %2179 = vmatpush.bf16.msra.mxu0 %v5872_v55  ;;  %2205 = vmatpush.bf16.msra.mxu2 %v5880_v27  ;;  %v5816_v27 = vor.u32 %v7265_v32, %v5815_v31  ;;  %v7311_v31 = vld [vmem:[#allocation6 + $0x1cc] sm:$0xf] }
 0x1b4   :  { %2218 = vmatpush.bf16.msra.mxu3 %v5884_v34  ;;  %v7263_v34 = vld [vmem:[#allocation6 + $0x4c] sm:$0xf] }
 0x1b5   :  { %v1361_v59 = vmul.f32 %v7608_v52, %v1360_v57  ;;  %v5868_v57 = vor.u32 %v7275_v48, %v5865_v49  ;;  %v5820_v36 = vor.u32 %v7263_v34, %v5817_v35  ;;  %v5801_v48 = vld [vmem:[#allocation6 + $0x38] sm:$0xf0]  ;;  %v5983_v34 = vld [vmem:[#allocation6 + $0x1a0] sm:$0xf] }
 0x1b7   :  { %v1362_v61 = vadd.f32 %v7608_v52, %v1361_v59  ;;  %2180 = vmatpush.bf16.msra.mxu0 %v5856_v39  ;;  %v7272_v59 = vld [vmem:[#allocation6 + $0x8c] sm:$0xf0]  ;;  %2206 = vmatpush.bf16.msra.mxu2 %v5864_v56  ;;  %v7258_v39 = vld [vmem:[#allocation6 + $0x24] sm:$0xf] }
 0x1b8   :  { %2219 = vmatpush.bf16.msra.mxu3 %v5868_v57  ;;  %v7254_v57 = vld [vmem:[#allocation6 + $0x4] sm:$0xf] }
 0x1b9   :  { %v1366_v63 = vsel %vm1365_vm4, %v7608_v52, %v1362_v61 }
 0x1ba   :  { %v1371_v1 = vsel %vm1368_vm5, %v1370_v62, %v1366_v63  ;;  %v5840_v63 = vor.u32 %v7272_v59, %v5839_v58  ;;  %v5777_v58 = vld [vmem:[#allocation6 + $0x10] sm:$0xf0]  ;;  %v5783_v59 = vld [vmem:[#allocation6 + $0x8] sm:$0xf] }
 0x1bb   :  { %v1378_v2 = vrot.slane %v1371_v1, 2  ;;  %v1381_v4 = vmul.f32 %v7610_v3, %v1371_v1  ;;  %v1384_v53 = vrot.slane %v1371_v1, 4  ;;  %v5841_v1 = vld [vmem:[#allocation6 + $0x90] sm:$0xf0]  ;;  %v7273_v3 = vld [vmem:[#allocation6 + $0x94] sm:$0xf0] }
 0x1bc   :  { %2181 = vmatpush.bf16.msra.mxu0 %v5840_v63  ;;  %v5785_v63 = vld [vmem:[#allocation6 + $0x18] sm:$0xf0] }
 0x1bd   :  { %v1380_v44 = vmul.f32 %v1378_v2, %v7912_v40  ;;  %v7282_v40 = vld [vmem:[#allocation6 + $0xe4] sm:$0xf]  ;;  %v5847_v2 = vld [vmem:[#allocation6 + $0x88] sm:$0xf] }
 0x1be   :  { %v5892_v15 = vor.u32 %v7282_v40, %v5889_v0  ;;  %v7268_v40 = vld [vmem:[#allocation6 + $0x6c] sm:$0xf0] }
 0x1bf   :  { %v7976_v5 = vadd.f32 %v1381_v4, %v1380_v44  ;;  %v5844_v4 = vor.u32 %v7270_v60, %v5841_v1  ;;  %v5824_v13 = vor.u32 %v7268_v40, %v5823_v11  ;;  %v5780_v60 = vor.u32 %v7254_v57, %v5777_v58  ;;  %v5993_v58 = vld [vmem:[#allocation6 + $0x1b8] sm:$0xf0] }
 0x1c0   :  { %2191 = vmatpush.bf16.msra.mxu1 %v5892_v15  ;;  %v5831_v15 = vld [vmem:[#allocation6 + $0x68] sm:$0xf] }
 0x1c1   :  { %7611 = vtanh.f32 %v7976_v5  ;;  %2182 = vmatpush.bf16.msra.mxu0 %v5824_v13  ;;  %v7315_v13 = vld [vmem:[#allocation6 + $0x1ec] sm:$0xf] }
 0x1c4   :  { %2192 = vmatpush.bf16.msra.mxu1 %v5876_v29  ;;  %v5808_v29 = vor.u32 %v7264_v25, %v5807_v24  ;;  %v6001_v24 = vld [vmem:[#allocation6 + $0x1d0] sm:$0xf0] }
 0x1c6   :  { %2183 = vmatpush.bf16.msra.mxu0 %v5808_v29  ;;  %v6007_v29 = vld [vmem:[#allocation6 + $0x1c8] sm:$0xf] }
 0x1c7   :  { %v7612_v6 = vpop.eup %7611 }
 0x1c8   :  { %v1386_v7 = vmul.f32 %v7612_v6, %v1384_v53  ;;  %2193 = vmatpush.bf16.msra.mxu1 %v5860_v46  ;;  %v5848_v53 = vor.u32 %v7273_v3, %v5847_v2  ;;  %v7271_v6 = vld [vmem:[#allocation6 + $0x8c] sm:$0xf]  ;;  %v6015_v3 = vld [vmem:[#allocation6 + $0x1e0] sm:$0xf] }
 0x1ca   :  { %v1390_v9 = vpack.c.bf16 %v1386_v7, %v1386_v7  ;;  %v5849_v7 = vld [vmem:[#allocation6 + $0x98] sm:$0xf0]  ;;  %2207 = vmatpush.bf16.msra.mxu2 %v5848_v53 }
 0x1cb   :  { %v5852_v10 = vor.u32 %v7271_v6, %v5849_v7  ;;  %v6017_v6 = vld [vmem:[#allocation6 + $0x1f0] sm:$0xf0]  ;;  %v6023_v7 = vld [vmem:[#allocation6 + $0x1e8] sm:$0xf] }
 0x1cc   :  { %5514 = vst [vmem:[%s8353_s4 + $0x6] sm:$0x1] %v1390_v9  ;;  %1888 = vmatmul.bf16.vlgmr.msrb.gmra.mxu0 %v1390_v9  ;;  %1901 = vmatmul.bf16.vlgmr.msrb.gmra.mxu1 %v1390_v9 }
 0x1cd   :  { %1914 = vmatmul.bf16.vlgmr.msrb.gmra.mxu2 %v1390_v9  ;;  %1927 = vmatmul.bf16.vlgmr.msrb.gmra.mxu3 %v1390_v9 }
 0x1ce   :  { %2194 = vmatpush.bf16.msra.mxu1 %v5844_v4  ;;  %2220 = vmatpush.bf16.msra.mxu3 %v5852_v10  ;;  %v7314_v4 = vld [vmem:[#allocation6 + $0x1e4] sm:$0xf]  ;;  %v7317_v10 = vld [vmem:[#allocation6 + $0x1f4] sm:$0xf0] }
 0x1cf   :  { %v6020_v12 = vor.u32 %v7314_v4, %v6017_v6  ;;  %v5969_v4 = vld [vmem:[#allocation6 + $0x190] sm:$0xf0]  ;;  %v7305_v6 = vld [vmem:[#allocation6 + $0x194] sm:$0xf0] }
 0x1d2   :  { %2195 = vmatpush.bf16.msra.mxu1 %v5828_v19 }
 0x1d6   :  { %2196 = vmatpush.bf16.msra.mxu1 %v5812_v33  ;;  %v5935_v33 = vld [vmem:[#allocation6 + $0x140] sm:$0xf] }
 0x22a   :  { %v1597_v20 = vpop.f32.mrf.mxu0  ;;  %v1610_v21 = vpop.f32.mrf.mxu1 }
 0x22b   :  { %v1644_v38 = vrot.slane %v1610_v21, 6  ;;  %v7267_v21 = vld [vmem:[#allocation6 + $0x6c] sm:$0xf] }
 0x22c   :  { %v5836_v55 = vor.u32 %v7267_v21, %v5833_v18  ;;  %v7312_v21 = vld [vmem:[#allocation6 + $0x1cc] sm:$0xf0] }
 0x22d   :  { %v1647_v61 = vsel %vm463_vm0, %v1597_v20, %v1644_v38  ;;  %v7269_v20 = vld [vmem:[#allocation6 + $0x74] sm:$0xf0]  ;;  %v7260_v38 = vld [vmem:[#allocation6 + $0x2c] sm:$0xf0] }
 0x22e   :  { %v5832_v23 = vor.u32 %v7269_v20, %v5831_v15  ;;  %2221 = vmatpush.bf16.msra.mxu3 %v5836_v55  ;;  %v5792_v26 = vor.u32 %v7260_v38, %v5791_v37  ;;  %v6028_v15 = vor.u32 %v7315_v13, %v6025_v14  ;;  %v5999_v20 = vld [vmem:[#allocation6 + $0x1c0] sm:$0xf]  ;;  %v7310_v55 = vld [vmem:[#allocation6 + $0x1c4] sm:$0xf]  ;;  %v7308_v38 = vld [vmem:[#allocation6 + $0x1ac] sm:$0xf0] }
 0x22f   :  { %v6004_v28 = vor.u32 %v7310_v55, %v6001_v24  ;;  %v5951_v13 = vld [vmem:[#allocation6 + $0x160] sm:$0xf]  ;;  %v7299_v55 = vld [vmem:[#allocation6 + $0x16c] sm:$0xf] }
 0x230   :  { %2208 = vmatpush.bf16.msra.mxu2 %v5832_v23  ;;  %2184 = vmatpush.bf16.msra.mxu0 %v5792_v26  ;;  %v6000_v23 = vor.u32 %v7312_v21, %v5999_v20 }
 0x231   :  { %v1623_v42 = vpop.f32.mrf.mxu2  ;;  %v1636_v45 = vpop.f32.mrf.mxu3 }
 0x232   :  { %v1645_v50 = vrot.slane %v1623_v42, 4  ;;  %v1646_v51 = vrot.slane %v1636_v45, 2  ;;  %v1599_v52 = vpop.f32.mrf.mxu0  ;;  %v1612_v54 = vpop.f32.mrf.mxu1  ;;  %2222 = vmatpush.bf16.msra.mxu3 %v5820_v36  ;;  %v5799_v42 = vld [vmem:[#allocation6 + $0x28] sm:$0xf]  ;;  %v5796_v45 = vor.u32 %v7258_v39, %v5793_v41  ;;  %v7306_v39 = vld [vmem:[#allocation6 + $0x1a4] sm:$0xf] }
 0x233   :  { %v5775_v52 = vld [vmem:[#allocation6] sm:$0xf]  ;;  %v7256_v54 = vld [vmem:[#allocation6 + $0xc] sm:$0xf0] }
 0x234   :  { %v1648_v62 = vsel %vm465_vm1, %v1645_v50, %v1646_v51  ;;  %2209 = vmatpush.bf16.msra.mxu2 %v5816_v27  ;;  %v5804_v50 = vor.u32 %v7259_v47, %v5801_v48  ;;  %2197 = vmatpush.bf16.msra.mxu1 %v5796_v45  ;;  %v5776_v56 = vor.u32 %v7256_v54, %v5775_v52  ;;  %v6009_v27 = vld [vmem:[#allocation6 + $0x1d8] sm:$0xf0]  ;;  %v5985_v45 = vld [vmem:[#allocation6 + $0x1b0] sm:$0xf0]  ;;  %v7309_v47 = vld [vmem:[#allocation6 + $0x1b4] sm:$0xf0] }
 0x235   :  { %v1649_v44 = vsel %vm467_vm2, %v1647_v61, %v1648_v62  ;;  %v7257_v61 = vld [vmem:[#allocation6 + $0x14] sm:$0xf0]  ;;  %v7255_v62 = vld [vmem:[#allocation6 + $0xc] sm:$0xf]  ;;  %v6012_v37 = vor.u32 %v7311_v31, %v6009_v27  ;;  %v5988_v57 = vor.u32 %v7306_v39, %v5985_v45 }
 0x236   :  { %v7985_v9 = vadd.f32 %v1649_v44, %v1427_v43  ;;  %v7261_v43 = vld [vmem:[#allocation6 + $0x34] sm:$0xf0]  ;;  %2223 = vmatpush.bf16.msra.mxu3 %v5804_v50  ;;  %2185 = vmatpush.bf16.msra.mxu0 %v5776_v56  ;;  %v5784_v1 = vor.u32 %v7257_v61, %v5783_v59  ;;  %v5788_v2 = vor.u32 %v7255_v62, %v5785_v63  ;;  %v7316_v44 = vld [vmem:[#allocation6 + $0x1ec] sm:$0xf0]  ;;  %v5967_v61 = vld [vmem:[#allocation6 + $0x180] sm:$0xf] }
 0x237   :  { %v5800_v46 = vor.u32 %v7261_v43, %v5799_v42  ;;  %v6016_v53 = vor.u32 %v7316_v44, %v6015_v3  ;;  %v5984_v43 = vor.u32 %v7308_v38, %v5983_v34  ;;  %v7304_v62 = vld [vmem:[#allocation6 + $0x18c] sm:$0xf0]  ;;  %v7302_v63 = vld [vmem:[#allocation6 + $0x184] sm:$0xf]  ;;  %v5937_v38 = vld [vmem:[#allocation6 + $0x150] sm:$0xf0] }
 0x238   :  { %v1652_v0 = vsub.f32 0.0, %v7985_v9  ;;  %2198 = vmatpush.bf16.msra.mxu1 %v5780_v60  ;;  %v5968_v44 = vor.u32 %v7304_v62, %v5967_v61  ;;  %v7293_v56 = vld [vmem:[#allocation6 + $0x134] sm:$0xf0]  ;;  %v7288_v61 = vld [vmem:[#allocation6 + $0x10c] sm:$0xf0] }
 0x239   :  { %v1625_v17 = vpop.f32.mrf.mxu2  ;;  %v1638_v16 = vpop.f32.mrf.mxu3  ;;  %2210 = vmatpush.bf16.msra.mxu2 %v5800_v46  ;;  %v5991_v46 = vld [vmem:[#allocation6 + $0x1a8] sm:$0xf] }
 0x23a   :  { %v1653_v8 = vmul.f32 1.442695, %v1652_v0  ;;  %2224 = vmatpush.bf16.msra.mxu3 %v5788_v2  ;;  %v6024_v0 = vor.u32 %v7317_v10, %v6023_v7  ;;  %2470 = vmatpush.bf16.msrb.mxu0 %v6016_v53  ;;  %v7996_v16 = vld [vmem:[#allocation5 + $0x14] sm:$0xf]  ;;  %v5992_v59 = vor.u32 %v7309_v47, %v5991_v46  ;;  %v5975_v53 = vld [vmem:[#allocation6 + $0x188] sm:$0xf]  ;;  %v5972_v10 = vor.u32 %v7302_v63, %v5969_v4 }
 0x23b   :  { %v1719_v41 = vunpack.c.l.bf16 %v7996_v16  ;;  %v7298_v16 = vld [vmem:[#allocation6 + $0x164] sm:$0xf]  ;;  %v5945_v46 = vld [vmem:[#allocation6 + $0x158] sm:$0xf0]  ;;  %v5919_v47 = vld [vmem:[#allocation6 + $0x120] sm:$0xf] }
 0x23c   :  { %7613 = vpow2.f32 %v1653_v8  ;;  %2483 = vmatpush.bf16.msrb.mxu1 %v6020_v12  ;;  %v1672_v8 = vrot.slane %v7985_v9, 6  ;;  %v6008_v9 = vor.u32 %v7313_v30, %v6007_v29  ;;  %v7303_v12 = vld [vmem:[#allocation6 + $0x18c] sm:$0xf]  ;;  %v7286_v63 = vld [vmem:[#allocation6 + $0x104] sm:$0xf] }
 0x23d   :  { %2211 = vmatpush.bf16.msra.mxu2 %v5784_v1 }
 0x23e   :  { %2509 = vmatpush.bf16.msrb.mxu3 %v6028_v15  ;;  %2471 = vmatpush.bf16.msrb.mxu0 %v6000_v23  ;;  %v7301_v23 = vld [vmem:[#allocation6 + $0x174] sm:$0xf0] }
 0x240   :  { %2484 = vmatpush.bf16.msrb.mxu1 %v6004_v28  ;;  %v5961_v28 = vld [vmem:[#allocation6 + $0x178] sm:$0xf0] }
 0x241   :  { %2496 = vmatpush.bf16.msrb.mxu2 %v6024_v0  ;;  %v5977_v0 = vld [vmem:[#allocation6 + $0x198] sm:$0xf0] }
 0x242   :  { %v7614_v49 = vpop.eup %7613  ;;  %2510 = vmatpush.bf16.msrb.mxu3 %v6012_v37  ;;  %2472 = vmatpush.bf16.msrb.mxu0 %v5984_v43  ;;  %v5980_v15 = vor.u32 %v7303_v12, %v5977_v0  ;;  %v7294_v37 = vld [vmem:[#allocation6 + $0x144] sm:$0xf]  ;;  %v7287_v12 = vld [vmem:[#allocation6 + $0x10c] sm:$0xf]  ;;  %v5913_v0 = vld [vmem:[#allocation6 + $0x118] sm:$0xf0] }
 0x243   :  { %v7988_v51 = vadd.f32 1.0, %v7614_v49  ;;  %v5940_v45 = vor.u32 %v7294_v37, %v5937_v38  ;;  %v6147_v38 = vld [vmem:[#allocation6 + $0xf0] sm:$0xf0] }
 0x244   :  { %2485 = vmatpush.bf16.msrb.mxu1 %v5988_v57 }
 0x245   :  { %7615 = vrcp.f32 %v7988_v51  ;;  %v1665_v17 = vand.u32 2147483647, %v7988_v51  ;;  %v1667_v19 = vand.u32 2147483648, %v7988_v51  ;;  %vm1661_vm8 = vweird.f32 %v7988_v51  ;;  %2497 = vmatpush.bf16.msrb.mxu2 %v6008_v9  ;;  %v7296_v9 = vld [vmem:[#allocation6 + $0x14c] sm:$0xf0] }
 0x246   :  { %7617 = vtanh.f32 %v1672_v8  ;;  %2473 = vmatpush.bf16.msrb.mxu0 %v5968_v44  ;;  %v5959_v8 = vld [vmem:[#allocation6 + $0x168] sm:$0xf]  ;;  %v5936_v39 = vor.u32 %v7296_v9, %v5935_v33 }
 0x247   :  { %vm8006_vm7 = vcmp.eq.f32.partialorder %v1665_v17, 8.507059e+37  ;;  %v1668_v36 = vor.u32 1.1754944e-38, %v1667_v19  ;;  %v7300_v17 = vld [vmem:[#allocation6 + $0x16c] sm:$0xf0]  ;;  %v5953_v19 = vld [vmem:[#allocation6 + $0x170] sm:$0xf0] }
 0x248   :  { %v5952_v21 = vor.u32 %v7300_v17, %v5951_v13  ;;  %2486 = vmatpush.bf16.msrb.mxu1 %v5972_v10  ;;  %v5916_v17 = vor.u32 %v7287_v12, %v5913_v0 }
 0x249   :  { %v7991_v11 = vpop.f32.mrf.mxu0  ;;  %v7993_v40 = vpop.f32.mrf.mxu1  ;;  %2498 = vmatpush.bf16.msrb.mxu2 %v5992_v59 }
 0x24a   :  { %v1936_v32 = vrot.slane %v7993_v40, 6  ;;  %v5976_v40 = vor.u32 %v7305_v6, %v5975_v53  ;;  %2474 = vmatpush.bf16.msrb.mxu0 %v5952_v21  ;;  %v5911_v6 = vld [vmem:[#allocation6 + $0x108] sm:$0xf] }
 0x24b   :  { %v7999_v18 = vpop.eup %7615 }
 0x24c   :  { %v1657_v25 = vmul.f32 %v7999_v18, %v7988_v51  ;;  %vm1662_vm6 = vweird.f32 %v7999_v18  ;;  %v7307_v51 = vld [vmem:[#allocation6 + $0x1ac] sm:$0xf]  ;;  %v1939_v1 = vsel %vm463_vm0, %v7991_v11, %v1936_v32  ;;  %v7618_v29 = vpop.eup %7617  ;;  %v5960_v32 = vor.u32 %v7301_v23, %v5959_v8 }
 0x24d   :  { %vm8015_vm9 = vmor %vm1661_vm8, %vm1662_vm6  ;;  %v5996_v60 = vor.u32 %v7307_v51, %v5993_v58  ;;  %2499 = vmatpush.bf16.msrb.mxu2 %v5976_v40  ;;  %v7291_v51 = vld [vmem:[#allocation6 + $0x12c] sm:$0xf]  ;;  %v5929_v58 = vld [vmem:[#allocation6 + $0x138] sm:$0xf0] }
 0x24e   :  { %v1658_v35 = vsub.f32 1.0, %v1657_v25  ;;  %2475 = vmatpush.bf16.msrb.mxu0 %v5936_v39  ;;  %v7289_v40 = vld [vmem:[#allocation6 + $0x114] sm:$0xf0]  ;;  %v6153_v39 = vld [vmem:[#allocation6 + $0xe8] sm:$0xf] }
 0x24f   :  { %2511 = vmatpush.bf16.msrb.mxu3 %v5996_v60  ;;  %v5903_v60 = vld [vmem:[#allocation6 + $0x100] sm:$0xf] }
 0x250   :  { %v1915_v26 = vpop.f32.mrf.mxu2  ;;  %v1928_v42 = vpop.f32.mrf.mxu3  ;;  %v1659_v54 = vmul.f32 %v7999_v18, %v1658_v35  ;;  %v5904_v53 = vor.u32 %v7288_v61, %v5903_v60  ;;  %v7343_v60 = vld [vmem:[#allocation6 + $0xcc] sm:$0xf]  ;;  %v6139_v61 = vld [vmem:[#allocation6 + $0xd8] sm:$0xf0] }
 0x251   :  { %v1937_v48 = vrot.slane %v1915_v26, 4  ;;  %v1938_v49 = vrot.slane %v1928_v42, 2  ;;  %v1891_v50 = vpop.f32.mrf.mxu0  ;;  %v1904_v52 = vpop.f32.mrf.mxu1  ;;  %v5943_v26 = vld [vmem:[#allocation6 + $0x148] sm:$0xf]  ;;  %v7295_v42 = vld [vmem:[#allocation6 + $0x14c] sm:$0xf]  ;;  %2500 = vmatpush.bf16.msrb.mxu2 %v5960_v32 }
 0x252   :  { %v1660_v3 = vadd.f32 %v7999_v18, %v1659_v54  ;;  %v5921_v50 = vld [vmem:[#allocation6 + $0x130] sm:$0xf0]  ;;  %v5948_v52 = vor.u32 %v7295_v42, %v5945_v46  ;;  %v5927_v54 = vld [vmem:[#allocation6 + $0x128] sm:$0xf] }
 0x253   :  { %v1940_v2 = vsel %vm465_vm1, %v1937_v48, %v1938_v49  ;;  %2512 = vmatpush.bf16.msrb.mxu3 %v5980_v15  ;;  %v7292_v48 = vld [vmem:[#allocation6 + $0x12c] sm:$0xf0]  ;;  %v7290_v49 = vld [vmem:[#allocation6 + $0x124] sm:$0xf]  ;;  %v5928_v62 = vor.u32 %v7293_v56, %v5927_v54  ;;  %v5912_v15 = vor.u32 %v7289_v40, %v5911_v6  ;;  %v6131_v56 = vld [vmem:[#allocation6 + $0xd0] sm:$0xf0] }
 0x254   :  { %v1941_v7 = vsel %vm467_vm2, %v1939_v1, %v1940_v2  ;;  %v1664_v11 = vsel %vm8015_vm9, %v7999_v18, %v1660_v3  ;;  %v5956_v18 = vor.u32 %v7298_v16, %v5953_v19  ;;  %v5920_v57 = vor.u32 %v7292_v48, %v5919_v47  ;;  %v5905_v1 = vld [vmem:[#allocation6 + $0x110] sm:$0xf0]  ;;  %v7347_v47 = vld [vmem:[#allocation6 + $0xec] sm:$0xf]  ;;  %v6155_v48 = vld [vmem:[#allocation6 + $0xf8] sm:$0xf0] }
 0x255   :  { %v8024_v14 = vadd.f32 %v1941_v7, %v1719_v41  ;;  %v8031_v20 = vsel %vm8006_vm7, %v1668_v36, %v1664_v11  ;;  %v5964_v36 = vor.u32 %v7299_v55, %v5961_v28  ;;  %v7297_v41 = vld [vmem:[#allocation6 + $0x154] sm:$0xf0]  ;;  %v5924_v59 = vor.u32 %v7290_v49, %v5921_v50  ;;  %v6129_v49 = vld [vmem:[#allocation6 + $0xc0] sm:$0xf]  ;;  %v7344_v50 = vld [vmem:[#allocation6 + $0xcc] sm:$0xf0] }
 0x256   :  { %v1676_v25 = vrot.slane %v8031_v20, 2  ;;  %v1679_v35 = vmul.f32 %v7618_v29, %v8031_v20  ;;  %2487 = vmatpush.bf16.msrb.mxu1 %v5956_v18  ;;  %v5932_v3 = vor.u32 %v7291_v51, %v5929_v58  ;;  %v1682_v4 = vrot.slane %v8031_v20, 4  ;;  %2476 = vmatpush.bf16.msrb.mxu0 %v5920_v57  ;;  %v6137_v57 = vld [vmem:[#allocation6 + $0xc8] sm:$0xf]  ;;  %v7345_v51 = vld [vmem:[#allocation6 + $0xd4] sm:$0xf0] }
 0x257   :  { %v1944_v24 = vsub.f32 0.0, %v8024_v14  ;;  %2513 = vmatpush.bf16.msrb.mxu3 %v5964_v36  ;;  %v5908_v10 = vor.u32 %v7286_v63, %v5905_v1  ;;  %v1964_v20 = vrot.slane %v8024_v14, 6  ;;  %v7348_v36 = vld [vmem:[#allocation6 + $0xec] sm:$0xf0]  ;;  %v6130_v54 = vor.u32 %v7344_v50, %v6129_v49  ;;  %v7338_v6 = vld [vmem:[#allocation6 + $0xa4] sm:$0xf] }
 0x258   :  { %v1917_v30 = vpop.f32.mrf.mxu2  ;;  %v1930_v31 = vpop.f32.mrf.mxu3  ;;  %v1678_v34 = vmul.f32 %v1676_v25, %v7967_v22  ;;  %v5944_v22 = vor.u32 %v7297_v41, %v5943_v26  ;;  %v7349_v26 = vld [vmem:[#allocation6 + $0xf4] sm:$0xf0]  ;;  %v6142_v63 = vor.u32 %v7343_v60, %v6139_v61  ;;  %v6091_v50 = vld [vmem:[#allocation6 + $0x78] sm:$0xf0] }
 0x259   :  { %v1945_v27 = vmul.f32 1.442695, %v1944_v24  ;;  %v6154_v46 = vor.u32 %v7349_v26, %v6153_v39  ;;  %v7329_v60 = vld [vmem:[#allocation6 + $0x54] sm:$0xf0] }
 0x25a   :  { %v8037_v43 = vadd.f32 %v1679_v35, %v1678_v34  ;;  %2488 = vmatpush.bf16.msrb.mxu1 %v5940_v45  ;;  %2501 = vmatpush.bf16.msrb.mxu2 %v5944_v22  ;;  %v6145_v35 = vld [vmem:[#allocation6 + $0xe0] sm:$0xf]  ;;  %v6158_v22 = vor.u32 %v7347_v47, %v6155_v48  ;;  %v7333_v48 = vld [vmem:[#allocation6 + $0x74] sm:$0xf0] }
 0x25b   :  { %7619 = vpow2.f32 %v1945_v27  ;;  %2514 = vmatpush.bf16.msrb.mxu3 %v5948_v52  ;;  %2477 = vmatpush.bf16.msrb.mxu0 %v5904_v53  ;;  %v6146_v37 = vor.u32 %v7348_v36, %v6145_v35  ;;  %v7342_v52 = vld [vmem:[#allocation6 + $0xc4] sm:$0xf] }
 0x25c   :  { %7621 = vtanh.f32 %v8037_v43  ;;  %v6134_v58 = vor.u32 %v7342_v52, %v6131_v56  ;;  %v7328_v56 = vld [vmem:[#allocation6 + $0x4c] sm:$0xf0] }
 0x25e   :  { %2489 = vmatpush.bf16.msrb.mxu1 %v5924_v59  ;;  %2502 = vmatpush.bf16.msrb.mxu2 %v5928_v62  ;;  %v6138_v59 = vor.u32 %v7345_v51, %v6137_v57  ;;  %v1984_v62 = vld [vmem:[#allocation4 + $0xc] sm:$0xf]  ;;  %v7326_v57 = vld [vmem:[#allocation6 + $0x44] sm:$0xf] }
 0x25f   :  { %2515 = vmatpush.bf16.msrb.mxu3 %v5932_v3  ;;  %v7340_v3 = vld [vmem:[#allocation6 + $0xac] sm:$0xf0]  ;;  %v2017_v12 = vunpack.c.l.bf16 %v1984_v62 }
 0x261   :  { %v7620_v2 = vpop.eup %7619 }
 0x262   :  { %v1947_v44 = vadd.f32 1.0, %v7620_v2  ;;  %v7622_v7 = vpop.eup %7621  ;;  %2490 = vmatpush.bf16.msrb.mxu1 %v5908_v10  ;;  %2503 = vmatpush.bf16.msrb.mxu2 %v5912_v15  ;;  %v6113_v2 = vld [vmem:[#allocation6 + $0xa0] sm:$0xf]  ;;  %v6121_v10 = vld [vmem:[#allocation6 + $0xa8] sm:$0xf] }
 0x263   :  { %v1684_v13 = vmul.f32 %v7622_v7, %v1682_v4  ;;  %2516 = vmatpush.bf16.msrb.mxu3 %v5916_v17  ;;  %v6114_v53 = vor.u32 %v7340_v3, %v6113_v2  ;;  %v6115_v7 = vld [vmem:[#allocation6 + $0xb0] sm:$0xf0]  ;;  %v7341_v17 = vld [vmem:[#allocation6 + $0xb4] sm:$0xf0]  ;;  %v6049_v3 = vld [vmem:[#allocation6 + $0x20] sm:$0xf] }
 0x264   :  { %7623 = vrcp.f32 %v1947_v44  ;;  %v1959_v8 = vand.u32 2147483648, %v1947_v44  ;;  %v1957_v55 = vand.u32 2147483647, %v1947_v44  ;;  %vm1953_vm11 = vweird.f32 %v1947_v44 }
 0x265   :  { %v1977_v11 = vpack.c.bf16 %v1684_v13, %v1684_v13  ;;  %7625 = vtanh.f32 %v1964_v20  ;;  %v6118_v15 = vor.u32 %v7338_v6, %v6115_v7  ;;  %v6123_v20 = vld [vmem:[#allocation6 + $0xb8] sm:$0xf0]  ;;  %v6051_v6 = vld [vmem:[#allocation6 + $0x30] sm:$0xf0]  ;;  %v6057_v7 = vld [vmem:[#allocation6 + $0x28] sm:$0xf] }
 0x266   :  { %v1960_v25 = vor.u32 1.1754944e-38, %v1959_v8  ;;  %vm1958_vm13 = vcmp.eq.f32.partialorder %v1957_v55, 8.507059e+37  ;;  %v6097_v55 = vld [vmem:[#allocation6 + $0x80] sm:$0xf] }
 0x267   :  { %5771 = vst [vmem:[%s8352_s3 + $0x2] sm:$0x1] %v1977_v11  ;;  %2186 = vmatmul.bf16.vlgmr.msra.gmra.mxu0 %v1977_v11  ;;  %2199 = vmatmul.bf16.vlgmr.msra.gmra.mxu1 %v1977_v11 }
 0x268   :  { %2212 = vmatmul.bf16.vlgmr.msra.gmra.mxu2 %v1977_v11  ;;  %2225 = vmatmul.bf16.vlgmr.msra.gmra.mxu3 %v1977_v11 }
 0x269   :  { %2768 = vmatpush.bf16.msra.mxu0 %v6146_v37  ;;  %2794 = vmatpush.bf16.msra.mxu2 %v6154_v46  ;;  %v7332_v37 = vld [vmem:[#allocation6 + $0x6c] sm:$0xf0] }
 0x26a   :  { %v7624_v16 = vpop.eup %7623  ;;  %2807 = vmatpush.bf16.msra.mxu3 %v6158_v22  ;;  %v7331_v22 = vld [vmem:[#allocation6 + $0x6c] sm:$0xf] }
 0x26b   :  { %v1949_v19 = vmul.f32 %v7624_v16, %v1947_v44  ;;  %vm1954_vm10 = vweird.f32 %v7624_v16  ;;  %v7626_v30 = vpop.eup %7625  ;;  %v6094_v52 = vor.u32 %v7331_v22, %v6091_v50  ;;  %v7374_v22 = vld [vmem:[#allocation6 + $0x1c4] sm:$0xf] }
 0x26c   :  { %vm1955_vm12 = vmor %vm1953_vm11, %vm1954_vm10 }
 0x26d   :  { %v1950_v21 = vsub.f32 1.0, %v1949_v19  ;;  %2769 = vmatpush.bf16.msra.mxu0 %v6130_v54  ;;  %2795 = vmatpush.bf16.msra.mxu2 %v6138_v59  ;;  %v6122_v19 = vor.u32 %v7341_v17, %v6121_v10  ;;  %v6065_v54 = vld [vmem:[#allocation6 + $0x40] sm:$0xf]  ;;  %v6073_v59 = vld [vmem:[#allocation6 + $0x48] sm:$0xf] }
 0x26e   :  { %2808 = vmatpush.bf16.msra.mxu3 %v6142_v63  ;;  %v6066_v51 = vor.u32 %v7328_v56, %v6065_v54  ;;  %v6074_v62 = vor.u32 %v7329_v60, %v6073_v59  ;;  %v7327_v63 = vld [vmem:[#allocation6 + $0x4c] sm:$0xf]  ;;  %v7325_v10 = vld [vmem:[#allocation6 + $0x34] sm:$0xf0]  ;;  %v6259_v56 = vld [vmem:[#allocation6 + $0x1d0] sm:$0xf0] }
 0x26f   :  { %v1951_v23 = vmul.f32 %v7624_v16, %v1950_v21  ;;  %v7377_v59 = vld [vmem:[#allocation6 + $0x1d4] sm:$0xf0]  ;;  %v7375_v60 = vld [vmem:[#allocation6 + $0x1cc] sm:$0xf] }
 0x271   :  { %v1952_v24 = vadd.f32 %v7624_v16, %v1951_v23  ;;  %2770 = vmatpush.bf16.msra.mxu0 %v6114_v53  ;;  %2796 = vmatpush.bf16.msra.mxu2 %v6122_v19  ;;  %v7320_v19 = vld [vmem:[#allocation6 + $0xc] sm:$0xf0] }
 0x273   :  { %v1956_v18 = vsel %vm1955_vm12, %v7624_v16, %v1952_v24  ;;  %v7339_v16 = vld [vmem:[#allocation6 + $0xac] sm:$0xf]  ;;  %v7336_v24 = vld [vmem:[#allocation6 + $0x8c] sm:$0xf0] }
 0x274   :  { %v1961_v28 = vsel %vm1958_vm13, %v1960_v25, %v1956_v18  ;;  %v6126_v23 = vor.u32 %v7339_v16, %v6123_v20  ;;  %v7334_v25 = vld [vmem:[#allocation6 + $0x84] sm:$0xf]  ;;  %v6033_v16 = vld [vmem:[#allocation6] sm:$0xf] }
 0x275   :  { %v1968_v29 = vrot.slane %v1961_v28, 2  ;;  %v1971_v32 = vmul.f32 %v7626_v30, %v1961_v28  ;;  %v1974_v14 = vrot.slane %v1961_v28, 4  ;;  %v6098_v28 = vor.u32 %v7336_v24, %v6097_v55  ;;  %v6105_v30 = vld [vmem:[#allocation6 + $0x88] sm:$0xf]  ;;  %v7318_v20 = vld [vmem:[#allocation6 + $0x4] sm:$0xf] }
 0x276   :  { %2809 = vmatpush.bf16.msra.mxu3 %v6126_v23  ;;  %v6041_v23 = vld [vmem:[#allocation6 + $0x8] sm:$0xf]  ;;  %v7321_v55 = vld [vmem:[#allocation6 + $0x14] sm:$0xf0] }
 0x277   :  { %v1970_v31 = vmul.f32 %v1968_v29, %v7976_v5  ;;  %v7346_v5 = vld [vmem:[#allocation6 + $0xe4] sm:$0xf]  ;;  %v6099_v29 = vld [vmem:[#allocation6 + $0x90] sm:$0xf0]  ;;  %2771 = vmatpush.bf16.msra.mxu0 %v6098_v28  ;;  %v6043_v28 = vld [vmem:[#allocation6 + $0x18] sm:$0xf0] }
 0x278   :  { %v6150_v45 = vor.u32 %v7346_v5, %v6147_v38  ;;  %v6081_v5 = vld [vmem:[#allocation6 + $0x60] sm:$0xf] }
 0x279   :  { %v8046_v33 = vadd.f32 %v1971_v32, %v1970_v31  ;;  %v7337_v31 = vld [vmem:[#allocation6 + $0x94] sm:$0xf0]  ;;  %v6082_v26 = vor.u32 %v7332_v37, %v6081_v5  ;;  %v6281_v5 = vld [vmem:[#allocation6 + $0x1e8] sm:$0xf] }
 0x27a   :  { %2781 = vmatpush.bf16.msra.mxu1 %v6150_v45  ;;  %v6089_v45 = vld [vmem:[#allocation6 + $0x68] sm:$0xf]  ;;  %v7381_v37 = vld [vmem:[#allocation6 + $0x1f4] sm:$0xf0] }
 0x27b   :  { %7627 = vtanh.f32 %v8046_v33  ;;  %2772 = vmatpush.bf16.msra.mxu0 %v6082_v26  ;;  %v6090_v49 = vor.u32 %v7333_v48, %v6089_v45  ;;  %v6283_v26 = vld [vmem:[#allocation6 + $0x1f8] sm:$0xf0]  ;;  %v8067_v45 = vld [vmem:[#allocation5 + $0x10] sm:$0xf] }
 0x27c   :  { %v7376_v48 = vld [vmem:[#allocation6 + $0x1cc] sm:$0xf0] }
 0x27e   :  { %2782 = vmatpush.bf16.msra.mxu1 %v6134_v58  ;;  %v6067_v58 = vld [vmem:[#allocation6 + $0x50] sm:$0xf0] }
 0x27f   :  { %v6070_v61 = vor.u32 %v7326_v57, %v6067_v58  ;;  %2773 = vmatpush.bf16.msra.mxu0 %v6066_v51  ;;  %v6265_v57 = vld [vmem:[#allocation6 + $0x1c8] sm:$0xf]  ;;  %v6262_v58 = vor.u32 %v7374_v22, %v6259_v56  ;;  %v7365_v22 = vld [vmem:[#allocation6 + $0x174] sm:$0xf0] }
 0x281   :  { %v7628_v9 = vpop.eup %7627 }
 0x282   :  { %v1976_v27 = vmul.f32 %v7628_v9, %v1974_v14  ;;  %2783 = vmatpush.bf16.msra.mxu1 %v6118_v15  ;;  %v6102_v14 = vor.u32 %v7334_v25, %v6099_v29  ;;  %v6106_v9 = vor.u32 %v7337_v31, %v6105_v30  ;;  %v6042_v25 = vor.u32 %v7321_v55, %v6041_v23  ;;  %v6273_v29 = vld [vmem:[#allocation6 + $0x1e0] sm:$0xf]  ;;  %v7380_v31 = vld [vmem:[#allocation6 + $0x1ec] sm:$0xf0]  ;;  %v6251_v23 = vld [vmem:[#allocation6 + $0x1b8] sm:$0xf0] }
 0x283   :  { %v6225_v55 = vld [vmem:[#allocation6 + $0x180] sm:$0xf] }
 0x284   :  { %v1980_v34 = vpack.c.bf16 %v1976_v27, %v1976_v27  ;;  %v7335_v27 = vld [vmem:[#allocation6 + $0x8c] sm:$0xf]  ;;  %2797 = vmatpush.bf16.msra.mxu2 %v6106_v9  ;;  %v6275_v9 = vld [vmem:[#allocation6 + $0x1f0] sm:$0xf0] }
 0x286   :  { %5772 = vst [vmem:[%s8353_s4 + $0x5] sm:$0x1] %v1980_v34  ;;  %2478 = vmatmul.bf16.vlgmr.msrb.gmra.mxu0 %v1980_v34  ;;  %2491 = vmatmul.bf16.vlgmr.msrb.gmra.mxu1 %v1980_v34 }
 0x287   :  { %2504 = vmatmul.bf16.vlgmr.msrb.gmra.mxu2 %v1980_v34  ;;  %2517 = vmatmul.bf16.vlgmr.msrb.gmra.mxu3 %v1980_v34  ;;  %v6107_v34 = vld [vmem:[#allocation6 + $0x98] sm:$0xf0] }
 0x288   :  { %v6110_v35 = vor.u32 %v7335_v27, %v6107_v34  ;;  %2784 = vmatpush.bf16.msra.mxu1 %v6102_v14  ;;  %2798 = vmatpush.bf16.msra.mxu2 %v6090_v49  ;;  %v7378_v14 = vld [vmem:[#allocation6 + $0x1e4] sm:$0xf] }
 0x28a   :  { %2810 = vmatpush.bf16.msra.mxu3 %v6110_v35  ;;  %v6274_v35 = vor.u32 %v7380_v31, %v6273_v29 }
 0x28c   :  { %2799 = vmatpush.bf16.msra.mxu2 %v6074_v62  ;;  %v7360_v62 = vld [vmem:[#allocation6 + $0x14c] sm:$0xf0] }
 0x28e   :  { %2811 = vmatpush.bf16.msra.mxu3 %v6094_v52 }
 0x2e4   :  { %v2187_v41 = vpop.f32.mrf.mxu0  ;;  %v2200_v42 = vpop.f32.mrf.mxu1 }
 0x2e5   :  { %v2234_v1 = vrot.slane %v2200_v42, 6  ;;  %v6083_v42 = vld [vmem:[#allocation6 + $0x70] sm:$0xf0] }
 0x2e7   :  { %v2237_v21 = vsel %vm463_vm0, %v2187_v41, %v2234_v1  ;;  %v7330_v41 = vld [vmem:[#allocation6 + $0x64] sm:$0xf]  ;;  %v6075_v1 = vld [vmem:[#allocation6 + $0x58] sm:$0xf0] }
 0x2e8   :  { %v6086_v47 = vor.u32 %v7330_v41, %v6083_v42  ;;  %v6078_v2 = vor.u32 %v7327_v63, %v6075_v1  ;;  %v6241_v1 = vld [vmem:[#allocation6 + $0x1a0] sm:$0xf] }
 0x2ea   :  { %2785 = vmatpush.bf16.msra.mxu1 %v6086_v47  ;;  %2812 = vmatpush.bf16.msra.mxu3 %v6078_v2  ;;  %v6257_v47 = vld [vmem:[#allocation6 + $0x1c0] sm:$0xf]  ;;  %v7372_v2 = vld [vmem:[#allocation6 + $0x1ac] sm:$0xf0] }
 0x2eb   :  { %v2213_v44 = vpop.f32.mrf.mxu2  ;;  %v2226_v4 = vpop.f32.mrf.mxu3  ;;  %v6258_v54 = vor.u32 %v7376_v48, %v6257_v47  ;;  %v6217_v47 = vld [vmem:[#allocation6 + $0x168] sm:$0xf] }
 0x2ec   :  { %v2235_v40 = vrot.slane %v2213_v44, 4  ;;  %v2236_v0 = vrot.slane %v2226_v4, 2  ;;  %v2189_v13 = vpop.f32.mrf.mxu0  ;;  %v2202_v11 = vpop.f32.mrf.mxu1  ;;  %v7324_v44 = vld [vmem:[#allocation6 + $0x2c] sm:$0xf0]  ;;  %v7322_v4 = vld [vmem:[#allocation6 + $0x24] sm:$0xf] }
 0x2ed   :  { %v6050_v53 = vor.u32 %v7324_v44, %v6049_v3  ;;  %v7323_v13 = vld [vmem:[#allocation6 + $0x2c] sm:$0xf]  ;;  %v6059_v11 = vld [vmem:[#allocation6 + $0x38] sm:$0xf0] }
 0x2ee   :  { %v2238_v8 = vsel %vm465_vm1, %v2235_v40, %v2236_v0  ;;  %2786 = vmatpush.bf16.msra.mxu1 %v6070_v61  ;;  %v6058_v0 = vor.u32 %v7325_v10, %v6057_v7  ;;  %v6062_v17 = vor.u32 %v7323_v13, %v6059_v11  ;;  %v6267_v61 = vld [vmem:[#allocation6 + $0x1d8] sm:$0xf0]  ;;  %v2309_v10 = vunpack.c.l.bf16 %v8067_v45  ;;  %v7373_v13 = vld [vmem:[#allocation6 + $0x1b4] sm:$0xf0]  ;;  %v7371_v11 = vld [vmem:[#allocation6 + $0x1ac] sm:$0xf] }
 0x2ef   :  { %v2239_v18 = vsel %vm467_vm2, %v2237_v21, %v2238_v8  ;;  %2774 = vmatpush.bf16.msra.mxu0 %v6050_v53  ;;  %v6034_v21 = vor.u32 %v7320_v19, %v6033_v16  ;;  %v6035_v8 = vld [vmem:[#allocation6 + $0x10] sm:$0xf0]  ;;  %v6270_v63 = vor.u32 %v7375_v60, %v6267_v61  ;;  %v7370_v53 = vld [vmem:[#allocation6 + $0x1a4] sm:$0xf]  ;;  %v6218_v60 = vor.u32 %v7365_v22, %v6217_v47  ;;  %v6193_v61 = vld [vmem:[#allocation6 + $0x140] sm:$0xf] }
 0x2f0   :  { %v8055_v32 = vadd.f32 %v2239_v18, %v2017_v12  ;;  %v6054_v12 = vor.u32 %v7322_v4, %v6051_v6  ;;  %2800 = vmatpush.bf16.msra.mxu2 %v6058_v0  ;;  %2813 = vmatpush.bf16.msra.mxu3 %v6062_v17  ;;  %v6038_v24 = vor.u32 %v7318_v20, %v6035_v8  ;;  %v7319_v18 = vld [vmem:[#allocation6 + $0xc] sm:$0xf]  ;;  %v6243_v6 = vld [vmem:[#allocation6 + $0x1b0] sm:$0xf0]  ;;  %v6249_v0 = vld [vmem:[#allocation6 + $0x1a8] sm:$0xf] }
 0x2f1   :  { %v6046_v30 = vor.u32 %v7319_v18, %v6043_v28  ;;  %v6242_v4 = vor.u32 %v7372_v2, %v6241_v1  ;;  %v7366_v18 = vld [vmem:[#allocation6 + $0x184] sm:$0xf]  ;;  %v6227_v28 = vld [vmem:[#allocation6 + $0x190] sm:$0xf0]  ;;  %v6187_v8 = vld [vmem:[#allocation6 + $0x138] sm:$0xf0] }
 0x2f2   :  { %v2242_v36 = vsub.f32 0.0, %v8055_v32  ;;  %2787 = vmatpush.bf16.msra.mxu1 %v6054_v12  ;;  %v2262_v50 = vrot.slane %v8055_v32, 6  ;;  %v6266_v32 = vor.u32 %v7377_v59, %v6265_v57  ;;  %v6246_v12 = vor.u32 %v7370_v53, %v6243_v6  ;;  %v7362_v45 = vld [vmem:[#allocation6 + $0x164] sm:$0xf]  ;;  %v7361_v53 = vld [vmem:[#allocation6 + $0x154] sm:$0xf0] }
 0x2f3   :  { %v2215_v38 = vpop.f32.mrf.mxu2  ;;  %v2228_v39 = vpop.f32.mrf.mxu3  ;;  %2775 = vmatpush.bf16.msra.mxu0 %v6034_v21  ;;  %v7359_v6 = vld [vmem:[#allocation6 + $0x14c] sm:$0xf] }
 0x2f4   :  { %v2243_v46 = vmul.f32 1.442695, %v2242_v36  ;;  %v6278_v36 = vor.u32 %v7378_v14, %v6275_v9  ;;  %v7379_v38 = vld [vmem:[#allocation6 + $0x1ec] sm:$0xf]  ;;  %2801 = vmatpush.bf16.msra.mxu2 %v6042_v25  ;;  %v6282_v39 = vor.u32 %v7381_v37, %v6281_v5  ;;  %2814 = vmatpush.bf16.msra.mxu3 %v6046_v30  ;;  %v7368_v25 = vld [vmem:[#allocation6 + $0x18c] sm:$0xf0]  ;;  %v6230_v5 = vor.u32 %v7366_v18, %v6227_v28 }
 0x2f5   :  { %v6226_v14 = vor.u32 %v7368_v25, %v6225_v55  ;;  %v6233_v9 = vld [vmem:[#allocation6 + $0x188] sm:$0xf]  ;;  %v7352_v25 = vld [vmem:[#allocation6 + $0x10c] sm:$0xf0] }
 0x2f6   :  { %7629 = vpow2.f32 %v2243_v46  ;;  %2788 = vmatpush.bf16.msra.mxu1 %v6038_v24  ;;  %v6286_v46 = vor.u32 %v7379_v38, %v6283_v26  ;;  %v6254_v24 = vor.u32 %v7371_v11, %v6251_v23  ;;  %v6235_v38 = vld [vmem:[#allocation6 + $0x198] sm:$0xf0]  ;;  %v7364_v26 = vld [vmem:[#allocation6 + $0x16c] sm:$0xf0]  ;;  %v7354_v11 = vld [vmem:[#allocation6 + $0x124] sm:$0xf] }
 0x2f7   :  { %3060 = vmatpush.bf16.msrb.mxu0 %v6274_v35  ;;  %v7367_v35 = vld [vmem:[#allocation6 + $0x18c] sm:$0xf] }
 0x2f8   :  { %3086 = vmatpush.bf16.msrb.mxu2 %v6282_v39  ;;  %3099 = vmatpush.bf16.msrb.mxu3 %v6286_v46  ;;  %v6209_v39 = vld [vmem:[#allocation6 + $0x160] sm:$0xf]  ;;  %v6211_v46 = vld [vmem:[#allocation6 + $0x170] sm:$0xf0] }
 0x2f9   :  { %v6210_v57 = vor.u32 %v7364_v26, %v6209_v39  ;;  %v6214_v59 = vor.u32 %v7362_v45, %v6211_v46 }
 0x2fa   :  { %3073 = vmatpush.bf16.msrb.mxu1 %v6278_v36 }
 0x2fb   :  { %3061 = vmatpush.bf16.msrb.mxu0 %v6258_v54 }
 0x2fc   :  { %v7630_v40 = vpop.eup %7629  ;;  %3087 = vmatpush.bf16.msrb.mxu2 %v6266_v32  ;;  %3100 = vmatpush.bf16.msrb.mxu3 %v6270_v63  ;;  %v7358_v32 = vld [vmem:[#allocation6 + $0x144] sm:$0xf] }
 0x2fd   :  { %v8058_v15 = vadd.f32 1.0, %v7630_v40 }
 0x2fe   :  { %3074 = vmatpush.bf16.msrb.mxu1 %v6262_v58 }
 0x2ff   :  { %7631 = vrcp.f32 %v8058_v15  ;;  %v2255_v41 = vand.u32 2147483647, %v8058_v15  ;;  %v2257_v42 = vand.u32 2147483648, %v8058_v15  ;;  %vm2251_vm3 = vweird.f32 %v8058_v15  ;;  %3062 = vmatpush.bf16.msrb.mxu0 %v6242_v4  ;;  %v6201_v4 = vld [vmem:[#allocation6 + $0x148] sm:$0xf] }
 0x300   :  { %7633 = vtanh.f32 %v2262_v50  ;;  %3101 = vmatpush.bf16.msrb.mxu3 %v6254_v24  ;;  %v7363_v50 = vld [vmem:[#allocation6 + $0x16c] sm:$0xf]  ;;  %v6161_v24 = vld [vmem:[#allocation6 + $0x100] sm:$0xf] }
 0x301   :  { %vm8076_vm15 = vcmp.eq.f32.partialorder %v2255_v41, 8.507059e+37  ;;  %v2258_v44 = vor.u32 1.1754944e-38, %v2257_v42  ;;  %v6238_v42 = vor.u32 %v7367_v35, %v6235_v38  ;;  %v6169_v35 = vld [vmem:[#allocation6 + $0x108] sm:$0xf]  ;;  %v6171_v38 = vld [vmem:[#allocation6 + $0x118] sm:$0xf0] }
 0x302   :  { %3075 = vmatpush.bf16.msrb.mxu1 %v6246_v12 }
 0x303   :  { %v8061_v27 = vpop.f32.mrf.mxu0  ;;  %v8063_v34 = vpop.f32.mrf.mxu1  ;;  %3063 = vmatpush.bf16.msrb.mxu0 %v6226_v14 }
 0x304   :  { %v2526_v52 = vrot.slane %v8063_v34, 6  ;;  %v7369_v34 = vld [vmem:[#allocation6 + $0x194] sm:$0xf0]  ;;  %3102 = vmatpush.bf16.msrb.mxu3 %v6238_v42 }
 0x305   :  { %v8069_v49 = vpop.eup %7631  ;;  %v6234_v37 = vor.u32 %v7369_v34, %v6233_v9  ;;  %v6162_v9 = vor.u32 %v7352_v25, %v6161_v24  ;;  %v6163_v34 = vld [vmem:[#allocation6 + $0x110] sm:$0xf0]  ;;  %v6397_v24 = vld [vmem:[#allocation6 + $0xd8] sm:$0xf0]  ;;  %v2574_v25 = vld [vmem:[#allocation4 + $0x10] sm:$0xf] }
 0x306   :  { %v2247_v51 = vmul.f32 %v8069_v49, %v8058_v15  ;;  %vm2252_vm14 = vweird.f32 %v8069_v49  ;;  %v6250_v15 = vor.u32 %v7373_v13, %v6249_v0  ;;  %v2529_v29 = vsel %vm463_vm0, %v8061_v27, %v2526_v52  ;;  %v6219_v52 = vld [vmem:[#allocation6 + $0x178] sm:$0xf0]  ;;  %3076 = vmatpush.bf16.msrb.mxu1 %v6230_v5  ;;  %v6177_v13 = vld [vmem:[#allocation6 + $0x120] sm:$0xf] }
 0x307   :  { %vm8085_vm4 = vmor %vm2251_vm3, %vm2252_vm14  ;;  %3064 = vmatpush.bf16.msrb.mxu0 %v6210_v57  ;;  %v6202_v0 = vor.u32 %v7361_v53, %v6201_v4  ;;  %v6411_v4 = vld [vmem:[#allocation6 + $0xe8] sm:$0xf]  ;;  %v7413_v53 = vld [vmem:[#allocation6 + $0xf4] sm:$0xf0] }
 0x308   :  { %v2248_v3 = vsub.f32 1.0, %v2247_v51  ;;  %3088 = vmatpush.bf16.msrb.mxu2 %v6250_v15  ;;  %v7634_v51 = vpop.eup %7633 }
 0x30a   :  { %v2505_v7 = vpop.f32.mrf.mxu2  ;;  %v2518_v40 = vpop.f32.mrf.mxu3  ;;  %v2249_v21 = vmul.f32 %v8069_v49, %v2248_v3  ;;  %v6222_v3 = vor.u32 %v7363_v50, %v6219_v52  ;;  %3077 = vmatpush.bf16.msrb.mxu1 %v6214_v59 }
 0x30b   :  { %v2527_v17 = vrot.slane %v2505_v7, 4  ;;  %v2528_v16 = vrot.slane %v2518_v40, 2  ;;  %v2481_v19 = vpop.f32.mrf.mxu0  ;;  %v2494_v20 = vpop.f32.mrf.mxu1  ;;  %v6203_v7 = vld [vmem:[#allocation6 + $0x158] sm:$0xf0]  ;;  %v6194_v40 = vor.u32 %v7360_v62, %v6193_v61 }
 0x30c   :  { %v2250_v31 = vadd.f32 %v8069_v49, %v2249_v21  ;;  %3089 = vmatpush.bf16.msrb.mxu2 %v6234_v37  ;;  %3103 = vmatpush.bf16.msrb.mxu3 %v6222_v3  ;;  %v6185_v19 = vld [vmem:[#allocation6 + $0x128] sm:$0xf]  ;;  %v7357_v20 = vld [vmem:[#allocation6 + $0x134] sm:$0xf0]  ;;  %v7355_v21 = vld [vmem:[#allocation6 + $0x12c] sm:$0xf] }
 0x30d   :  { %v2530_v30 = vsel %vm465_vm1, %v2527_v17, %v2528_v16  ;;  %v6206_v17 = vor.u32 %v7359_v6, %v6203_v7  ;;  %v6179_v16 = vld [vmem:[#allocation6 + $0x130] sm:$0xf0]  ;;  %3065 = vmatpush.bf16.msrb.mxu0 %v6194_v40  ;;  %v6186_v55 = vor.u32 %v7357_v20, %v6185_v19  ;;  %v6190_v28 = vor.u32 %v7355_v21, %v6187_v8  ;;  %v7351_v37 = vld [vmem:[#allocation6 + $0x10c] sm:$0xf]  ;;  %v6395_v21 = vld [vmem:[#allocation6 + $0xc8] sm:$0xf] }
 0x30e   :  { %v2531_v36 = vsel %vm467_vm2, %v2529_v29, %v2530_v30  ;;  %v2254_v27 = vsel %vm8085_vm4, %v8069_v49, %v2250_v31  ;;  %v6182_v23 = vor.u32 %v7354_v11, %v6179_v16  ;;  %v7350_v31 = vld [vmem:[#allocation6 + $0x104] sm:$0xf]  ;;  %v6174_v42 = vor.u32 %v7351_v37, %v6171_v38  ;;  %v6387_v11 = vld [vmem:[#allocation6 + $0xc0] sm:$0xf]  ;;  %v6389_v20 = vld [vmem:[#allocation6 + $0xd0] sm:$0xf0] }
 0x30f   :  { %v8094_v41 = vadd.f32 %v2531_v36, %v2309_v10  ;;  %v8101_v48 = vsel %vm8076_vm15, %v2258_v44, %v2254_v27  ;;  %v6195_v44 = vld [vmem:[#allocation6 + $0x150] sm:$0xf0]  ;;  %v7353_v36 = vld [vmem:[#allocation6 + $0x114] sm:$0xf0]  ;;  %v6166_v26 = vor.u32 %v7350_v31, %v6163_v34  ;;  %v7406_v16 = vld [vmem:[#allocation6 + $0xc4] sm:$0xf]  ;;  %v2607_v37 = vunpack.c.l.bf16 %v2574_v25 }
 0x310   :  { %v2266_v56 = vrot.slane %v8101_v48, 2  ;;  %v2269_v2 = vmul.f32 %v7634_v51, %v8101_v48  ;;  %3090 = vmatpush.bf16.msrb.mxu2 %v6218_v60  ;;  %v6198_v12 = vor.u32 %v7358_v32, %v6195_v44  ;;  %3104 = vmatpush.bf16.msrb.mxu3 %v6206_v17  ;;  %v2272_v30 = vrot.slane %v8101_v48, 4  ;;  %v6405_v44 = vld [vmem:[#allocation6 + $0xf0] sm:$0xf0]  ;;  %v7408_v17 = vld [vmem:[#allocation6 + $0xcc] sm:$0xf0] }
 0x311   :  { %v2534_v54 = vsub.f32 0.0, %v8094_v41  ;;  %v6170_v27 = vor.u32 %v7353_v36, %v6169_v35  ;;  %v2554_v47 = vrot.slane %v8094_v41, 6  ;;  %v6388_v19 = vor.u32 %v7408_v17, %v6387_v11  ;;  %v7409_v8 = vld [vmem:[#allocation6 + $0xd4] sm:$0xf0]  ;;  %v7402_v34 = vld [vmem:[#allocation6 + $0xa4] sm:$0xf] }
 0x312   :  { %v2507_v49 = vpop.f32.mrf.mxu2  ;;  %v2520_v58 = vpop.f32.mrf.mxu3  ;;  %v2268_v1 = vmul.f32 %v2266_v56, %v8037_v43  ;;  %v7356_v43 = vld [vmem:[#allocation6 + $0x12c] sm:$0xf0]  ;;  %3078 = vmatpush.bf16.msrb.mxu1 %v6198_v12  ;;  %v6412_v12 = vor.u32 %v7413_v53, %v6411_v4  ;;  %v6373_v35 = vld [vmem:[#allocation6 + $0xb0] sm:$0xf0]  ;;  %v6379_v36 = vld [vmem:[#allocation6 + $0xa8] sm:$0xf] }
 0x313   :  { %v2535_v63 = vmul.f32 1.442695, %v2534_v54  ;;  %v6178_v15 = vor.u32 %v7356_v43, %v6177_v13  ;;  %v6413_v13 = vld [vmem:[#allocation6 + $0xf8] sm:$0xf0] }
 0x314   :  { %v8107_v10 = vadd.f32 %v2269_v2, %v2268_v1  ;;  %3091 = vmatpush.bf16.msrb.mxu2 %v6202_v0  ;;  %3105 = vmatpush.bf16.msrb.mxu3 %v6190_v28  ;;  %v6403_v1 = vld [vmem:[#allocation6 + $0xe0] sm:$0xf]  ;;  %v7412_v2 = vld [vmem:[#allocation6 + $0xec] sm:$0xf0]  ;;  %v7411_v0 = vld [vmem:[#allocation6 + $0xec] sm:$0xf] }
 0x315   :  { %7635 = vpow2.f32 %v2535_v63  ;;  %3066 = vmatpush.bf16.msrb.mxu0 %v6178_v15  ;;  %v6404_v3 = vor.u32 %v7412_v2, %v6403_v1  ;;  %v6416_v43 = vor.u32 %v7411_v0, %v6413_v13  ;;  %v6392_v15 = vor.u32 %v7406_v16, %v6389_v20  ;;  %v7397_v13 = vld [vmem:[#allocation6 + $0x74] sm:$0xf0]  ;;  %v6349_v17 = vld [vmem:[#allocation6 + $0x78] sm:$0xf0]  ;;  %v7392_v20 = vld [vmem:[#allocation6 + $0x4c] sm:$0xf0] }
 0x316   :  { %7637 = vtanh.f32 %v8107_v10  ;;  %3079 = vmatpush.bf16.msrb.mxu1 %v6182_v23  ;;  %v6396_v23 = vor.u32 %v7409_v8, %v6395_v21  ;;  %v7390_v21 = vld [vmem:[#allocation6 + $0x44] sm:$0xf] }
 0x318   :  { %3092 = vmatpush.bf16.msrb.mxu2 %v6186_v55  ;;  %3106 = vmatpush.bf16.msrb.mxu3 %v6174_v42  ;;  %v7407_v55 = vld [vmem:[#allocation6 + $0xcc] sm:$0xf]  ;;  %v7405_v42 = vld [vmem:[#allocation6 + $0xb4] sm:$0xf0] }
 0x319   :  { %3067 = vmatpush.bf16.msrb.mxu0 %v6162_v9 }
 0x31a   :  { %3080 = vmatpush.bf16.msrb.mxu1 %v6166_v26 }
 0x31b   :  { %v7636_v18 = vpop.eup %7635 }
 0x31c   :  { %v2537_v29 = vadd.f32 1.0, %v7636_v18  ;;  %v7638_v14 = vpop.eup %7637  ;;  %3093 = vmatpush.bf16.msrb.mxu2 %v6170_v27  ;;  %v6400_v18 = vor.u32 %v7407_v55, %v6397_v24  ;;  %v6376_v27 = vor.u32 %v7402_v34, %v6373_v35  ;;  %v7393_v55 = vld [vmem:[#allocation6 + $0x54] sm:$0xf0]  ;;  %v6309_v34 = vld [vmem:[#allocation6 + $0x30] sm:$0xf0] }
 0x31d   :  { %v2274_v5 = vmul.f32 %v7638_v14, %v2272_v30  ;;  %v7404_v30 = vld [vmem:[#allocation6 + $0xac] sm:$0xf0]  ;;  %v6315_v35 = vld [vmem:[#allocation6 + $0x28] sm:$0xf] }
 0x31e   :  { %7639 = vrcp.f32 %v2537_v29  ;;  %v2549_v22 = vand.u32 2147483648, %v2537_v29  ;;  %v2547_v52 = vand.u32 2147483647, %v2537_v29  ;;  %vm2543_vm6 = vweird.f32 %v2537_v29 }
 0x31f   :  { %v2567_v39 = vpack.c.bf16 %v2274_v5, %v2274_v5  ;;  %7641 = vtanh.f32 %v2554_v47  ;;  %v6381_v47 = vld [vmem:[#allocation6 + $0xb8] sm:$0xf0] }
 0x320   :  { %v2550_v56 = vor.u32 1.1754944e-38, %v2549_v22  ;;  %vm2548_vm8 = vcmp.eq.f32.partialorder %v2547_v52, 8.507059e+37  ;;  %v6355_v52 = vld [vmem:[#allocation6 + $0x80] sm:$0xf] }
 0x321   :  { %6029 = vst [vmem:[%s8352_s3 + $0x3] sm:$0x1] %v2567_v39  ;;  %2776 = vmatmul.bf16.vlgmr.msra.gmra.mxu0 %v2567_v39  ;;  %2789 = vmatmul.bf16.vlgmr.msra.gmra.mxu1 %v2567_v39 }
 0x322   :  { %2802 = vmatmul.bf16.vlgmr.msra.gmra.mxu2 %v2567_v39  ;;  %2815 = vmatmul.bf16.vlgmr.msra.gmra.mxu3 %v2567_v39 }
 0x323   :  { %3358 = vmatpush.bf16.msra.mxu0 %v6404_v3  ;;  %3384 = vmatpush.bf16.msra.mxu2 %v6412_v12  ;;  %v7396_v3 = vld [vmem:[#allocation6 + $0x6c] sm:$0xf0] }
 0x324   :  { %v7640_v45 = vpop.eup %7639  ;;  %3397 = vmatpush.bf16.msra.mxu3 %v6416_v43  ;;  %v7395_v43 = vld [vmem:[#allocation6 + $0x6c] sm:$0xf] }
 0x325   :  { %v2539_v46 = vmul.f32 %v7640_v45, %v2537_v29  ;;  %vm2544_vm5 = vweird.f32 %v7640_v45  ;;  %v7642_v58 = vpop.eup %7641  ;;  %v6371_v29 = vld [vmem:[#allocation6 + $0xa0] sm:$0xf]  ;;  %v6352_v16 = vor.u32 %v7395_v43, %v6349_v17  ;;  %v7438_v43 = vld [vmem:[#allocation6 + $0x1c4] sm:$0xf] }
 0x326   :  { %vm2545_vm7 = vmor %vm2543_vm6, %vm2544_vm5  ;;  %v6372_v9 = vor.u32 %v7404_v30, %v6371_v29  ;;  %v6307_v30 = vld [vmem:[#allocation6 + $0x20] sm:$0xf] }
 0x327   :  { %v2540_v48 = vsub.f32 1.0, %v2539_v46  ;;  %3359 = vmatpush.bf16.msra.mxu0 %v6388_v19  ;;  %3385 = vmatpush.bf16.msra.mxu2 %v6396_v23  ;;  %v6380_v46 = vor.u32 %v7405_v42, %v6379_v36  ;;  %v6323_v19 = vld [vmem:[#allocation6 + $0x40] sm:$0xf]  ;;  %v6331_v23 = vld [vmem:[#allocation6 + $0x48] sm:$0xf] }
 0x328   :  { %3398 = vmatpush.bf16.msra.mxu3 %v6400_v18  ;;  %v6324_v8 = vor.u32 %v7392_v20, %v6323_v19  ;;  %v6332_v25 = vor.u32 %v7393_v55, %v6331_v23  ;;  %v7391_v18 = vld [vmem:[#allocation6 + $0x4c] sm:$0xf]  ;;  %v7389_v36 = vld [vmem:[#allocation6 + $0x34] sm:$0xf0]  ;;  %v6517_v20 = vld [vmem:[#allocation6 + $0x1d0] sm:$0xf0] }
 0x329   :  { %v2541_v50 = vmul.f32 %v7640_v45, %v2540_v48  ;;  %v7441_v23 = vld [vmem:[#allocation6 + $0x1d4] sm:$0xf0]  ;;  %v7439_v55 = vld [vmem:[#allocation6 + $0x1cc] sm:$0xf] }
 0x32b   :  { %v2542_v54 = vadd.f32 %v7640_v45, %v2541_v50  ;;  %3360 = vmatpush.bf16.msra.mxu0 %v6372_v9  ;;  %3386 = vmatpush.bf16.msra.mxu2 %v6380_v46  ;;  %v7384_v46 = vld [vmem:[#allocation6 + $0xc] sm:$0xf0] }
 0x32d   :  { %v2546_v57 = vsel %vm2545_vm7, %v7640_v45, %v2542_v54  ;;  %v7403_v45 = vld [vmem:[#allocation6 + $0xac] sm:$0xf]  ;;  %v7400_v54 = vld [vmem:[#allocation6 + $0x8c] sm:$0xf0] }
 0x32e   :  { %v2551_v51 = vsel %vm2548_vm8, %v2550_v56, %v2546_v57  ;;  %v6384_v50 = vor.u32 %v7403_v45, %v6381_v47  ;;  %v7398_v56 = vld [vmem:[#allocation6 + $0x84] sm:$0xf]  ;;  %v6291_v45 = vld [vmem:[#allocation6] sm:$0xf] }
 0x32f   :  { %v2558_v49 = vrot.slane %v2551_v51, 2  ;;  %v2561_v60 = vmul.f32 %v7642_v58, %v2551_v51  ;;  %v2564_v41 = vrot.slane %v2551_v51, 4  ;;  %v6356_v51 = vor.u32 %v7400_v54, %v6355_v52  ;;  %v6363_v58 = vld [vmem:[#allocation6 + $0x88] sm:$0xf]  ;;  %v7382_v47 = vld [vmem:[#allocation6 + $0x4] sm:$0xf] }
 0x330   :  { %3399 = vmatpush.bf16.msra.mxu3 %v6384_v50  ;;  %v6299_v50 = vld [vmem:[#allocation6 + $0x8] sm:$0xf]  ;;  %v7385_v52 = vld [vmem:[#allocation6 + $0x14] sm:$0xf0] }
 0x331   :  { %v2560_v59 = vmul.f32 %v2558_v49, %v8046_v33  ;;  %v7410_v33 = vld [vmem:[#allocation6 + $0xe4] sm:$0xf]  ;;  %v6357_v49 = vld [vmem:[#allocation6 + $0x90] sm:$0xf0]  ;;  %3361 = vmatpush.bf16.msra.mxu0 %v6356_v51  ;;  %v6301_v51 = vld [vmem:[#allocation6 + $0x18] sm:$0xf0] }
 0x332   :  { %v6408_v40 = vor.u32 %v7410_v33, %v6405_v44  ;;  %v6339_v33 = vld [vmem:[#allocation6 + $0x60] sm:$0xf] }
 0x333   :  { %v8116_v61 = vadd.f32 %v2561_v60, %v2560_v59  ;;  %v7401_v59 = vld [vmem:[#allocation6 + $0x94] sm:$0xf0]  ;;  %v6340_v53 = vor.u32 %v7396_v3, %v6339_v33  ;;  %v6539_v33 = vld [vmem:[#allocation6 + $0x1e8] sm:$0xf] }
 0x334   :  { %3371 = vmatpush.bf16.msra.mxu1 %v6408_v40  ;;  %v6347_v40 = vld [vmem:[#allocation6 + $0x68] sm:$0xf]  ;;  %v7445_v3 = vld [vmem:[#allocation6 + $0x1f4] sm:$0xf0] }
 0x335   :  { %7643 = vtanh.f32 %v8116_v61  ;;  %3362 = vmatpush.bf16.msra.mxu0 %v6340_v53  ;;  %v6348_v11 = vor.u32 %v7397_v13, %v6347_v40  ;;  %v6541_v53 = vld [vmem:[#allocation6 + $0x1f8] sm:$0xf0]  ;;  %v8137_v40 = vld [vmem:[#allocation5 + $0xc] sm:$0xf]  ;;  %v7440_v13 = vld [vmem:[#allocation6 + $0x1cc] sm:$0xf0] }
 0x338   :  { %3372 = vmatpush.bf16.msra.mxu1 %v6392_v15  ;;  %v6325_v15 = vld [vmem:[#allocation6 + $0x50] sm:$0xf0] }
 0x339   :  { %v6328_v24 = vor.u32 %v7390_v21, %v6325_v15  ;;  %3363 = vmatpush.bf16.msra.mxu0 %v6324_v8  ;;  %v6523_v21 = vld [vmem:[#allocation6 + $0x1c8] sm:$0xf]  ;;  %v6520_v15 = vor.u32 %v7438_v43, %v6517_v20  ;;  %v7429_v43 = vld [vmem:[#allocation6 + $0x174] sm:$0xf0] }
 0x33b   :  { %v7644_v62 = vpop.eup %7643 }
 0x33c   :  { %v2566_v32 = vmul.f32 %v7644_v62, %v2564_v41  ;;  %3373 = vmatpush.bf16.msra.mxu1 %v6376_v27  ;;  %v6360_v41 = vor.u32 %v7398_v56, %v6357_v49  ;;  %v6364_v62 = vor.u32 %v7401_v59, %v6363_v58  ;;  %v6300_v56 = vor.u32 %v7385_v52, %v6299_v50  ;;  %v6531_v49 = vld [vmem:[#allocation6 + $0x1e0] sm:$0xf]  ;;  %v7444_v59 = vld [vmem:[#allocation6 + $0x1ec] sm:$0xf0]  ;;  %v6509_v50 = vld [vmem:[#allocation6 + $0x1b8] sm:$0xf0] }
 0x33d   :  { %v6483_v52 = vld [vmem:[#allocation6 + $0x180] sm:$0xf] }
 0x33e   :  { %v2570_v63 = vpack.c.bf16 %v2566_v32, %v2566_v32  ;;  %v7399_v32 = vld [vmem:[#allocation6 + $0x8c] sm:$0xf]  ;;  %3387 = vmatpush.bf16.msra.mxu2 %v6364_v62  ;;  %v6533_v62 = vld [vmem:[#allocation6 + $0x1f0] sm:$0xf0] }
 0x340   :  { %6030 = vst [vmem:[%s8353_s4 + $0x4] sm:$0x1] %v2570_v63  ;;  %3068 = vmatmul.bf16.vlgmr.msrb.gmra.mxu0 %v2570_v63  ;;  %3081 = vmatmul.bf16.vlgmr.msrb.gmra.mxu1 %v2570_v63 }
 0x341   :  { %3094 = vmatmul.bf16.vlgmr.msrb.gmra.mxu2 %v2570_v63  ;;  %3107 = vmatmul.bf16.vlgmr.msrb.gmra.mxu3 %v2570_v63  ;;  %v6365_v63 = vld [vmem:[#allocation6 + $0x98] sm:$0xf0] }
 0x342   :  { %v6368_v1 = vor.u32 %v7399_v32, %v6365_v63  ;;  %3374 = vmatpush.bf16.msra.mxu1 %v6360_v41  ;;  %3388 = vmatpush.bf16.msra.mxu2 %v6348_v11  ;;  %v7442_v41 = vld [vmem:[#allocation6 + $0x1e4] sm:$0xf] }
 0x344   :  { %3400 = vmatpush.bf16.msra.mxu3 %v6368_v1  ;;  %v6532_v1 = vor.u32 %v7444_v59, %v6531_v49 }
 0x346   :  { %3389 = vmatpush.bf16.msra.mxu2 %v6332_v25  ;;  %v7424_v25 = vld [vmem:[#allocation6 + $0x14c] sm:$0xf0] }
 0x348   :  { %3401 = vmatpush.bf16.msra.mxu3 %v6352_v16 }
 0x39e   :  { %v2777_v6 = vpop.f32.mrf.mxu0  ;;  %v2790_v7 = vpop.f32.mrf.mxu1 }
 0x39f   :  { %v2824_v28 = vrot.slane %v2790_v7, 6  ;;  %v6341_v7 = vld [vmem:[#allocation6 + $0x70] sm:$0xf0] }
 0x3a1   :  { %v2827_v48 = vsel %vm463_vm0, %v2777_v6, %v2824_v28  ;;  %v7394_v6 = vld [vmem:[#allocation6 + $0x64] sm:$0xf]  ;;  %v6333_v28 = vld [vmem:[#allocation6 + $0x58] sm:$0xf0] }
 0x3a2   :  { %v6344_v0 = vor.u32 %v7394_v6, %v6341_v7  ;;  %v6336_v29 = vor.u32 %v7391_v18, %v6333_v28  ;;  %v6499_v28 = vld [vmem:[#allocation6 + $0x1a0] sm:$0xf] }
 0x3a4   :  { %3375 = vmatpush.bf16.msra.mxu1 %v6344_v0  ;;  %3402 = vmatpush.bf16.msra.mxu3 %v6336_v29  ;;  %v6515_v0 = vld [vmem:[#allocation6 + $0x1c0] sm:$0xf]  ;;  %v7436_v29 = vld [vmem:[#allocation6 + $0x1ac] sm:$0xf0] }
 0x3a5   :  { %v2803_v31 = vpop.f32.mrf.mxu2  ;;  %v2816_v14 = vpop.f32.mrf.mxu3  ;;  %v6516_v19 = vor.u32 %v7440_v13, %v6515_v0  ;;  %v6475_v0 = vld [vmem:[#allocation6 + $0x168] sm:$0xf] }
 0x3a6   :  { %v2825_v5 = vrot.slane %v2803_v31, 4  ;;  %v2826_v38 = vrot.slane %v2816_v14, 2  ;;  %v2779_v39 = vpop.f32.mrf.mxu0  ;;  %v2792_v26 = vpop.f32.mrf.mxu1  ;;  %v7388_v31 = vld [vmem:[#allocation6 + $0x2c] sm:$0xf0]  ;;  %v7386_v14 = vld [vmem:[#allocation6 + $0x24] sm:$0xf] }
 0x3a7   :  { %v6308_v9 = vor.u32 %v7388_v31, %v6307_v30  ;;  %v7387_v39 = vld [vmem:[#allocation6 + $0x2c] sm:$0xf]  ;;  %v6317_v26 = vld [vmem:[#allocation6 + $0x38] sm:$0xf0] }
 0x3a8   :  { %v2828_v22 = vsel %vm465_vm1, %v2825_v5, %v2826_v38  ;;  %3376 = vmatpush.bf16.msra.mxu1 %v6328_v24  ;;  %v6316_v38 = vor.u32 %v7389_v36, %v6315_v35  ;;  %v6320_v42 = vor.u32 %v7387_v39, %v6317_v26  ;;  %v6525_v24 = vld [vmem:[#allocation6 + $0x1d8] sm:$0xf0]  ;;  %v2899_v36 = vunpack.c.l.bf16 %v8137_v40  ;;  %v7437_v39 = vld [vmem:[#allocation6 + $0x1b4] sm:$0xf0]  ;;  %v7435_v26 = vld [vmem:[#allocation6 + $0x1ac] sm:$0xf] }
 0x3a9   :  { %v2829_v57 = vsel %vm467_vm2, %v2827_v48, %v2828_v22  ;;  %3364 = vmatpush.bf16.msra.mxu0 %v6308_v9  ;;  %v6292_v48 = vor.u32 %v7384_v46, %v6291_v45  ;;  %v6293_v22 = vld [vmem:[#allocation6 + $0x10] sm:$0xf0]  ;;  %v6528_v18 = vor.u32 %v7439_v55, %v6525_v24  ;;  %v7434_v9 = vld [vmem:[#allocation6 + $0x1a4] sm:$0xf]  ;;  %v6476_v55 = vor.u32 %v7429_v43, %v6475_v0  ;;  %v6451_v24 = vld [vmem:[#allocation6 + $0x140] sm:$0xf] }
 0x3aa   :  { %v8125_v60 = vadd.f32 %v2829_v57, %v2607_v37  ;;  %v6312_v37 = vor.u32 %v7386_v14, %v6309_v34  ;;  %3390 = vmatpush.bf16.msra.mxu2 %v6316_v38  ;;  %3403 = vmatpush.bf16.msra.mxu3 %v6320_v42  ;;  %v6296_v54 = vor.u32 %v7382_v47, %v6293_v22  ;;  %v7383_v57 = vld [vmem:[#allocation6 + $0xc] sm:$0xf]  ;;  %v6501_v34 = vld [vmem:[#allocation6 + $0x1b0] sm:$0xf0]  ;;  %v6507_v38 = vld [vmem:[#allocation6 + $0x1a8] sm:$0xf] }
 0x3ab   :  { %v6304_v58 = vor.u32 %v7383_v57, %v6301_v51  ;;  %v6500_v14 = vor.u32 %v7436_v29, %v6499_v28  ;;  %v7430_v57 = vld [vmem:[#allocation6 + $0x184] sm:$0xf]  ;;  %v6485_v51 = vld [vmem:[#allocation6 + $0x190] sm:$0xf0]  ;;  %v6445_v22 = vld [vmem:[#allocation6 + $0x138] sm:$0xf0] }
 0x3ac   :  { %v2832_v2 = vsub.f32 0.0, %v8125_v60  ;;  %3377 = vmatpush.bf16.msra.mxu1 %v6312_v37  ;;  %v2852_v17 = vrot.slane %v8125_v60, 6  ;;  %v6524_v60 = vor.u32 %v7441_v23, %v6523_v21  ;;  %v6504_v37 = vor.u32 %v7434_v9, %v6501_v34  ;;  %v7426_v40 = vld [vmem:[#allocation6 + $0x164] sm:$0xf]  ;;  %v7425_v9 = vld [vmem:[#allocation6 + $0x154] sm:$0xf0] }
 0x3ad   :  { %v2805_v44 = vpop.f32.mrf.mxu2  ;;  %v2818_v4 = vpop.f32.mrf.mxu3  ;;  %3365 = vmatpush.bf16.msra.mxu0 %v6292_v48  ;;  %v7423_v34 = vld [vmem:[#allocation6 + $0x14c] sm:$0xf] }
 0x3ae   :  { %v2833_v12 = vmul.f32 1.442695, %v2832_v2  ;;  %v6536_v2 = vor.u32 %v7442_v41, %v6533_v62  ;;  %v7443_v44 = vld [vmem:[#allocation6 + $0x1ec] sm:$0xf]  ;;  %3391 = vmatpush.bf16.msra.mxu2 %v6300_v56  ;;  %v6540_v4 = vor.u32 %v7445_v3, %v6539_v33  ;;  %3404 = vmatpush.bf16.msra.mxu3 %v6304_v58  ;;  %v7432_v56 = vld [vmem:[#allocation6 + $0x18c] sm:$0xf0]  ;;  %v6488_v33 = vor.u32 %v7430_v57, %v6485_v51 }
 0x3af   :  { %v6484_v41 = vor.u32 %v7432_v56, %v6483_v52  ;;  %v6491_v62 = vld [vmem:[#allocation6 + $0x188] sm:$0xf]  ;;  %v7416_v56 = vld [vmem:[#allocation6 + $0x10c] sm:$0xf0] }
 0x3b0   :  { %7645 = vpow2.f32 %v2833_v12  ;;  %3378 = vmatpush.bf16.msra.mxu1 %v6296_v54  ;;  %v6544_v12 = vor.u32 %v7443_v44, %v6541_v53  ;;  %v6512_v54 = vor.u32 %v7435_v26, %v6509_v50  ;;  %v6493_v44 = vld [vmem:[#allocation6 + $0x198] sm:$0xf0]  ;;  %v7428_v53 = vld [vmem:[#allocation6 + $0x16c] sm:$0xf0]  ;;  %v7418_v26 = vld [vmem:[#allocation6 + $0x124] sm:$0xf] }
 0x3b1   :  { %3650 = vmatpush.bf16.msrb.mxu0 %v6532_v1  ;;  %v7431_v1 = vld [vmem:[#allocation6 + $0x18c] sm:$0xf] }
 0x3b2   :  { %3676 = vmatpush.bf16.msrb.mxu2 %v6540_v4  ;;  %3689 = vmatpush.bf16.msrb.mxu3 %v6544_v12  ;;  %v6467_v4 = vld [vmem:[#allocation6 + $0x160] sm:$0xf]  ;;  %v6469_v12 = vld [vmem:[#allocation6 + $0x170] sm:$0xf0] }
 0x3b3   :  { %v6468_v21 = vor.u32 %v7428_v53, %v6467_v4  ;;  %v6472_v23 = vor.u32 %v7426_v40, %v6469_v12 }
 0x3b4   :  { %3663 = vmatpush.bf16.msrb.mxu1 %v6536_v2 }
 0x3b5   :  { %3651 = vmatpush.bf16.msrb.mxu0 %v6516_v19 }
 0x3b6   :  { %v7646_v5 = vpop.eup %7645  ;;  %3677 = vmatpush.bf16.msrb.mxu2 %v6524_v60  ;;  %3690 = vmatpush.bf16.msrb.mxu3 %v6528_v18  ;;  %v7422_v60 = vld [vmem:[#allocation6 + $0x144] sm:$0xf] }
 0x3b7   :  { %v8128_v27 = vadd.f32 1.0, %v7646_v5 }
 0x3b8   :  { %3664 = vmatpush.bf16.msrb.mxu1 %v6520_v15 }
 0x3b9   :  { %7647 = vrcp.f32 %v8128_v27  ;;  %v2845_v6 = vand.u32 2147483647, %v8128_v27  ;;  %v2847_v7 = vand.u32 2147483648, %v8128_v27  ;;  %vm2841_vm11 = vweird.f32 %v8128_v27  ;;  %3652 = vmatpush.bf16.msrb.mxu0 %v6500_v14  ;;  %v6459_v14 = vld [vmem:[#allocation6 + $0x148] sm:$0xf] }
 0x3ba   :  { %7649 = vtanh.f32 %v2852_v17  ;;  %3691 = vmatpush.bf16.msrb.mxu3 %v6512_v54  ;;  %v7427_v17 = vld [vmem:[#allocation6 + $0x16c] sm:$0xf]  ;;  %v6419_v54 = vld [vmem:[#allocation6 + $0x100] sm:$0xf] }
 0x3bb   :  { %vm8146_vm10 = vcmp.eq.f32.partialorder %v2845_v6, 8.507059e+37  ;;  %v2848_v31 = vor.u32 1.1754944e-38, %v2847_v7  ;;  %v6496_v7 = vor.u32 %v7431_v1, %v6493_v44  ;;  %v6427_v1 = vld [vmem:[#allocation6 + $0x108] sm:$0xf]  ;;  %v6429_v44 = vld [vmem:[#allocation6 + $0x118] sm:$0xf0] }
 0x3bc   :  { %3665 = vmatpush.bf16.msrb.mxu1 %v6504_v37 }
 0x3bd   :  { %v8131_v32 = vpop.f32.mrf.mxu0  ;;  %v8133_v63 = vpop.f32.mrf.mxu1  ;;  %3653 = vmatpush.bf16.msrb.mxu0 %v6484_v41 }
 0x3be   :  { %v3116_v16 = vrot.slane %v8133_v63, 6  ;;  %v7433_v63 = vld [vmem:[#allocation6 + $0x194] sm:$0xf0]  ;;  %3692 = vmatpush.bf16.msrb.mxu3 %v6496_v7 }
 0x3bf   :  { %v8139_v11 = vpop.eup %7647  ;;  %v6492_v3 = vor.u32 %v7433_v63, %v6491_v62  ;;  %v6420_v62 = vor.u32 %v7416_v56, %v6419_v54  ;;  %v6421_v63 = vld [vmem:[#allocation6 + $0x110] sm:$0xf0]  ;;  %v6655_v54 = vld [vmem:[#allocation6 + $0xd8] sm:$0xf0] }
 0x3c0   :  { %v2837_v8 = vmul.f32 %v8139_v11, %v8128_v27  ;;  %vm2842_vm9 = vweird.f32 %v8139_v11  ;;  %v6508_v27 = vor.u32 %v7437_v39, %v6507_v38  ;;  %v3119_v49 = vsel %vm463_vm0, %v8131_v32, %v3116_v16  ;;  %v6477_v16 = vld [vmem:[#allocation6 + $0x178] sm:$0xf0]  ;;  %3666 = vmatpush.bf16.msrb.mxu1 %v6488_v33  ;;  %v6435_v39 = vld [vmem:[#allocation6 + $0x120] sm:$0xf]  ;;  %v3164_v56 = vld [vmem:[#allocation4 + $0x14] sm:$0xf] }
 0x3c1   :  { %vm8155_vm12 = vmor %vm2841_vm11, %vm2842_vm9  ;;  %3654 = vmatpush.bf16.msrb.mxu0 %v6468_v21  ;;  %v6460_v38 = vor.u32 %v7425_v9, %v6459_v14  ;;  %v6669_v14 = vld [vmem:[#allocation6 + $0xe8] sm:$0xf]  ;;  %v7477_v9 = vld [vmem:[#allocation6 + $0xf4] sm:$0xf0] }
 0x3c2   :  { %v2838_v30 = vsub.f32 1.0, %v2837_v8  ;;  %3678 = vmatpush.bf16.msrb.mxu2 %v6508_v27  ;;  %v7650_v8 = vpop.eup %7649 }
 0x3c4   :  { %v3095_v35 = vpop.f32.mrf.mxu2  ;;  %v3108_v5 = vpop.f32.mrf.mxu3  ;;  %v2839_v48 = vmul.f32 %v8139_v11, %v2838_v30  ;;  %v6480_v30 = vor.u32 %v7427_v17, %v6477_v16  ;;  %3667 = vmatpush.bf16.msrb.mxu1 %v6472_v23 }
 0x3c5   :  { %v3117_v42 = vrot.slane %v3095_v35, 4  ;;  %v3118_v45 = vrot.slane %v3108_v5, 2  ;;  %v3071_v46 = vpop.f32.mrf.mxu0  ;;  %v3084_v47 = vpop.f32.mrf.mxu1  ;;  %v6461_v35 = vld [vmem:[#allocation6 + $0x158] sm:$0xf0]  ;;  %v6452_v5 = vor.u32 %v7424_v25, %v6451_v24 }
 0x3c6   :  { %v2840_v59 = vadd.f32 %v8139_v11, %v2839_v48  ;;  %3679 = vmatpush.bf16.msrb.mxu2 %v6492_v3  ;;  %3693 = vmatpush.bf16.msrb.mxu3 %v6480_v30  ;;  %v6443_v46 = vld [vmem:[#allocation6 + $0x128] sm:$0xf]  ;;  %v7421_v47 = vld [vmem:[#allocation6 + $0x134] sm:$0xf0]  ;;  %v7419_v48 = vld [vmem:[#allocation6 + $0x12c] sm:$0xf] }
 0x3c7   :  { %v3120_v58 = vsel %vm465_vm1, %v3117_v42, %v3118_v45  ;;  %v6464_v42 = vor.u32 %v7423_v34, %v6461_v35  ;;  %v6437_v45 = vld [vmem:[#allocation6 + $0x130] sm:$0xf0]  ;;  %3655 = vmatpush.bf16.msrb.mxu0 %v6452_v5  ;;  %v6444_v52 = vor.u32 %v7421_v47, %v6443_v46  ;;  %v6448_v51 = vor.u32 %v7419_v48, %v6445_v22  ;;  %v7415_v3 = vld [vmem:[#allocation6 + $0x10c] sm:$0xf]  ;;  %v6653_v48 = vld [vmem:[#allocation6 + $0xc8] sm:$0xf] }
 0x3c8   :  { %v3121_v2 = vsel %vm467_vm2, %v3119_v49, %v3120_v58  ;;  %v2844_v32 = vsel %vm8155_vm12, %v8139_v11, %v2840_v59  ;;  %v6440_v50 = vor.u32 %v7418_v26, %v6437_v45  ;;  %v7414_v59 = vld [vmem:[#allocation6 + $0x104] sm:$0xf]  ;;  %v6432_v7 = vor.u32 %v7415_v3, %v6429_v44  ;;  %v6645_v26 = vld [vmem:[#allocation6 + $0xc0] sm:$0xf]  ;;  %v6647_v47 = vld [vmem:[#allocation6 + $0xd0] sm:$0xf0] }
 0x3c9   :  { %v8164_v6 = vadd.f32 %v3121_v2, %v2899_v36  ;;  %v8171_v13 = vsel %vm8146_vm10, %v2848_v31, %v2844_v32  ;;  %v6453_v31 = vld [vmem:[#allocation6 + $0x150] sm:$0xf0]  ;;  %v7417_v2 = vld [vmem:[#allocation6 + $0x114] sm:$0xf0]  ;;  %v6424_v53 = vor.u32 %v7414_v59, %v6421_v63  ;;  %v7470_v45 = vld [vmem:[#allocation6 + $0xc4] sm:$0xf]  ;;  %v3197_v3 = vunpack.c.l.bf16 %v3164_v56 }
 0x3ca   :  { %v2856_v20 = vrot.slane %v8171_v13, 2  ;;  %v2859_v29 = vmul.f32 %v7650_v8, %v8171_v13  ;;  %3680 = vmatpush.bf16.msrb.mxu2 %v6476_v55  ;;  %v6456_v37 = vor.u32 %v7422_v60, %v6453_v31  ;;  %3694 = vmatpush.bf16.msrb.mxu3 %v6464_v42  ;;  %v2862_v58 = vrot.slane %v8171_v13, 4  ;;  %v6663_v31 = vld [vmem:[#allocation6 + $0xf0] sm:$0xf0]  ;;  %v7472_v42 = vld [vmem:[#allocation6 + $0xcc] sm:$0xf0] }
 0x3cb   :  { %v3124_v19 = vsub.f32 0.0, %v8164_v6  ;;  %v6428_v32 = vor.u32 %v7417_v2, %v6427_v1  ;;  %v3144_v0 = vrot.slane %v8164_v6, 6  ;;  %v6646_v46 = vor.u32 %v7472_v42, %v6645_v26  ;;  %v7473_v22 = vld [vmem:[#allocation6 + $0xd4] sm:$0xf0]  ;;  %v7466_v63 = vld [vmem:[#allocation6 + $0xa4] sm:$0xf] }
 0x3cc   :  { %v3097_v11 = vpop.f32.mrf.mxu2  ;;  %v3110_v15 = vpop.f32.mrf.mxu3  ;;  %v2858_v28 = vmul.f32 %v2856_v20, %v8107_v10  ;;  %v7420_v10 = vld [vmem:[#allocation6 + $0x12c] sm:$0xf0]  ;;  %3668 = vmatpush.bf16.msrb.mxu1 %v6456_v37  ;;  %v6670_v37 = vor.u32 %v7477_v9, %v6669_v14  ;;  %v6631_v1 = vld [vmem:[#allocation6 + $0xb0] sm:$0xf0]  ;;  %v6637_v2 = vld [vmem:[#allocation6 + $0xa8] sm:$0xf] }
 0x3cd   :  { %v3125_v18 = vmul.f32 1.442695, %v3124_v19  ;;  %v6436_v27 = vor.u32 %v7420_v10, %v6435_v39  ;;  %v6671_v39 = vld [vmem:[#allocation6 + $0xf8] sm:$0xf0] }
 0x3ce   :  { %v8177_v36 = vadd.f32 %v2859_v29, %v2858_v28  ;;  %3681 = vmatpush.bf16.msrb.mxu2 %v6460_v38  ;;  %3695 = vmatpush.bf16.msrb.mxu3 %v6448_v51  ;;  %v6661_v28 = vld [vmem:[#allocation6 + $0xe0] sm:$0xf]  ;;  %v7476_v29 = vld [vmem:[#allocation6 + $0xec] sm:$0xf0]  ;;  %v7475_v38 = vld [vmem:[#allocation6 + $0xec] sm:$0xf] }
 0x3cf   :  { %7651 = vpow2.f32 %v3125_v18  ;;  %3656 = vmatpush.bf16.msrb.mxu0 %v6436_v27  ;;  %v6662_v30 = vor.u32 %v7476_v29, %v6661_v28  ;;  %v6674_v10 = vor.u32 %v7475_v38, %v6671_v39  ;;  %v6650_v27 = vor.u32 %v7470_v45, %v6647_v47  ;;  %v7461_v39 = vld [vmem:[#allocation6 + $0x74] sm:$0xf0]  ;;  %v6607_v42 = vld [vmem:[#allocation6 + $0x78] sm:$0xf0]  ;;  %v7456_v47 = vld [vmem:[#allocation6 + $0x4c] sm:$0xf0] }
 0x3d0   :  { %7653 = vtanh.f32 %v8177_v36  ;;  %3669 = vmatpush.bf16.msrb.mxu1 %v6440_v50  ;;  %v6654_v50 = vor.u32 %v7473_v22, %v6653_v48  ;;  %v7454_v48 = vld [vmem:[#allocation6 + $0x44] sm:$0xf] }
 0x3d2   :  { %3682 = vmatpush.bf16.msrb.mxu2 %v6444_v52  ;;  %3696 = vmatpush.bf16.msrb.mxu3 %v6432_v7  ;;  %v7471_v52 = vld [vmem:[#allocation6 + $0xcc] sm:$0xf]  ;;  %v7469_v7 = vld [vmem:[#allocation6 + $0xb4] sm:$0xf0] }
 0x3d3   :  { %3657 = vmatpush.bf16.msrb.mxu0 %v6420_v62 }
 0x3d4   :  { %3670 = vmatpush.bf16.msrb.mxu1 %v6424_v53 }
 0x3d5   :  { %v7652_v57 = vpop.eup %7651 }
 0x3d6   :  { %v3127_v49 = vadd.f32 1.0, %v7652_v57  ;;  %v7654_v41 = vpop.eup %7653  ;;  %3683 = vmatpush.bf16.msrb.mxu2 %v6428_v32  ;;  %v6658_v57 = vor.u32 %v7471_v52, %v6655_v54  ;;  %v6634_v32 = vor.u32 %v7466_v63, %v6631_v1  ;;  %v7457_v52 = vld [vmem:[#allocation6 + $0x54] sm:$0xf0]  ;;  %v6567_v63 = vld [vmem:[#allocation6 + $0x30] sm:$0xf0] }
 0x3d7   :  { %v2864_v33 = vmul.f32 %v7654_v41, %v2862_v58  ;;  %v7468_v58 = vld [vmem:[#allocation6 + $0xac] sm:$0xf0]  ;;  %v6573_v1 = vld [vmem:[#allocation6 + $0x28] sm:$0xf] }
 0x3d8   :  { %7655 = vrcp.f32 %v3127_v49  ;;  %v3139_v43 = vand.u32 2147483648, %v3127_v49  ;;  %v3137_v16 = vand.u32 2147483647, %v3127_v49  ;;  %vm3133_vm14 = vweird.f32 %v3127_v49 }
 0x3d9   :  { %v3157_v4 = vpack.c.bf16 %v2864_v33, %v2864_v33  ;;  %7657 = vtanh.f32 %v3144_v0  ;;  %v6639_v0 = vld [vmem:[#allocation6 + $0xb8] sm:$0xf0] }
 0x3da   :  { %v3140_v20 = vor.u32 1.1754944e-38, %v3139_v43  ;;  %vm3138_vm3 = vcmp.eq.f32.partialorder %v3137_v16, 8.507059e+37  ;;  %v6613_v16 = vld [vmem:[#allocation6 + $0x80] sm:$0xf] }
 0x3db   :  { %6287 = vst [vmem:[%s8352_s3 + $0x4] sm:$0x1] %v3157_v4  ;;  %3366 = vmatmul.bf16.vlgmr.msra.gmra.mxu0 %v3157_v4  ;;  %3379 = vmatmul.bf16.vlgmr.msra.gmra.mxu1 %v3157_v4 }
 0x3dc   :  { %3392 = vmatmul.bf16.vlgmr.msra.gmra.mxu2 %v3157_v4  ;;  %3405 = vmatmul.bf16.vlgmr.msra.gmra.mxu3 %v3157_v4 }
 0x3dd   :  { %3948 = vmatpush.bf16.msra.mxu0 %v6662_v30  ;;  %3974 = vmatpush.bf16.msra.mxu2 %v6670_v37  ;;  %v7460_v30 = vld [vmem:[#allocation6 + $0x6c] sm:$0xf0] }
 0x3de   :  { %v7656_v40 = vpop.eup %7655  ;;  %3987 = vmatpush.bf16.msra.mxu3 %v6674_v10  ;;  %v7459_v10 = vld [vmem:[#allocation6 + $0x6c] sm:$0xf] }
 0x3df   :  { %v3129_v12 = vmul.f32 %v7656_v40, %v3127_v49  ;;  %vm3134_vm13 = vweird.f32 %v7656_v40  ;;  %v7658_v15 = vpop.eup %7657  ;;  %v6629_v49 = vld [vmem:[#allocation6 + $0xa0] sm:$0xf]  ;;  %v6610_v45 = vor.u32 %v7459_v10, %v6607_v42  ;;  %v7502_v10 = vld [vmem:[#allocation6 + $0x1c4] sm:$0xf] }
 0x3e0   :  { %vm3135_vm15 = vmor %vm3133_vm14, %vm3134_vm13  ;;  %v6630_v62 = vor.u32 %v7468_v58, %v6629_v49  ;;  %v6565_v58 = vld [vmem:[#allocation6 + $0x20] sm:$0xf] }
 0x3e1   :  { %v3130_v13 = vsub.f32 1.0, %v3129_v12  ;;  %3949 = vmatpush.bf16.msra.mxu0 %v6646_v46  ;;  %3975 = vmatpush.bf16.msra.mxu2 %v6654_v50  ;;  %v6638_v12 = vor.u32 %v7469_v7, %v6637_v2  ;;  %v6581_v46 = vld [vmem:[#allocation6 + $0x40] sm:$0xf]  ;;  %v6589_v50 = vld [vmem:[#allocation6 + $0x48] sm:$0xf] }
 0x3e2   :  { %3988 = vmatpush.bf16.msra.mxu3 %v6658_v57  ;;  %v6582_v22 = vor.u32 %v7456_v47, %v6581_v46  ;;  %v6590_v56 = vor.u32 %v7457_v52, %v6589_v50  ;;  %v7455_v57 = vld [vmem:[#allocation6 + $0x4c] sm:$0xf]  ;;  %v7453_v2 = vld [vmem:[#allocation6 + $0x34] sm:$0xf0]  ;;  %v6775_v47 = vld [vmem:[#allocation6 + $0x1d0] sm:$0xf0] }
 0x3e3   :  { %v3131_v17 = vmul.f32 %v7656_v40, %v3130_v13  ;;  %v7505_v50 = vld [vmem:[#allocation6 + $0x1d4] sm:$0xf0]  ;;  %v7503_v52 = vld [vmem:[#allocation6 + $0x1cc] sm:$0xf] }
 0x3e5   :  { %v3132_v19 = vadd.f32 %v7656_v40, %v3131_v17  ;;  %3950 = vmatpush.bf16.msra.mxu0 %v6630_v62  ;;  %3976 = vmatpush.bf16.msra.mxu2 %v6638_v12  ;;  %v7448_v12 = vld [vmem:[#allocation6 + $0xc] sm:$0xf0] }
 0x3e7   :  { %v3136_v21 = vsel %vm3135_vm15, %v7656_v40, %v3132_v19  ;;  %v7467_v40 = vld [vmem:[#allocation6 + $0xac] sm:$0xf]  ;;  %v7464_v19 = vld [vmem:[#allocation6 + $0x8c] sm:$0xf0] }
 0x3e8   :  { %v3141_v8 = vsel %vm3138_vm3, %v3140_v20, %v3136_v21  ;;  %v6642_v17 = vor.u32 %v7467_v40, %v6639_v0  ;;  %v7462_v20 = vld [vmem:[#allocation6 + $0x84] sm:$0xf]  ;;  %v6549_v40 = vld [vmem:[#allocation6] sm:$0xf] }
 0x3e9   :  { %v3148_v11 = vrot.slane %v3141_v8, 2  ;;  %v3151_v55 = vmul.f32 %v7658_v15, %v3141_v8  ;;  %v3154_v6 = vrot.slane %v3141_v8, 4  ;;  %v6614_v8 = vor.u32 %v7464_v19, %v6613_v16  ;;  %v6621_v15 = vld [vmem:[#allocation6 + $0x88] sm:$0xf]  ;;  %v7446_v0 = vld [vmem:[#allocation6 + $0x4] sm:$0xf] }
 0x3ea   :  { %3989 = vmatpush.bf16.msra.mxu3 %v6642_v17  ;;  %v6557_v17 = vld [vmem:[#allocation6 + $0x8] sm:$0xf]  ;;  %v7449_v16 = vld [vmem:[#allocation6 + $0x14] sm:$0xf0] }
 0x3eb   :  { %v3150_v23 = vmul.f32 %v3148_v11, %v8116_v61  ;;  %v7474_v61 = vld [vmem:[#allocation6 + $0xe4] sm:$0xf]  ;;  %v6615_v11 = vld [vmem:[#allocation6 + $0x90] sm:$0xf0]  ;;  %3951 = vmatpush.bf16.msra.mxu0 %v6614_v8  ;;  %v6559_v8 = vld [vmem:[#allocation6 + $0x18] sm:$0xf0] }
 0x3ec   :  { %v6666_v5 = vor.u32 %v7474_v61, %v6663_v31  ;;  %v6597_v61 = vld [vmem:[#allocation6 + $0x60] sm:$0xf] }
 0x3ed   :  { %v8186_v24 = vadd.f32 %v3151_v55, %v3150_v23  ;;  %v7465_v23 = vld [vmem:[#allocation6 + $0x94] sm:$0xf0]  ;;  %v6598_v9 = vor.u32 %v7460_v30, %v6597_v61  ;;  %v6797_v61 = vld [vmem:[#allocation6 + $0x1e8] sm:$0xf] }
 0x3ee   :  { %3961 = vmatpush.bf16.msra.mxu1 %v6666_v5  ;;  %v6605_v5 = vld [vmem:[#allocation6 + $0x68] sm:$0xf]  ;;  %v7509_v30 = vld [vmem:[#allocation6 + $0x1f4] sm:$0xf0] }
 0x3ef   :  { %7659 = vtanh.f32 %v8186_v24  ;;  %3952 = vmatpush.bf16.msra.mxu0 %v6598_v9  ;;  %v6606_v26 = vor.u32 %v7461_v39, %v6605_v5  ;;  %v6799_v9 = vld [vmem:[#allocation6 + $0x1f8] sm:$0xf0]  ;;  %v8207_v5 = vld [vmem:[#allocation5 + $0x8] sm:$0xf]  ;;  %v7504_v39 = vld [vmem:[#allocation6 + $0x1cc] sm:$0xf0] }
 0x3f2   :  { %3962 = vmatpush.bf16.msra.mxu1 %v6650_v27  ;;  %v6583_v27 = vld [vmem:[#allocation6 + $0x50] sm:$0xf0] }
 0x3f3   :  { %v6586_v54 = vor.u32 %v7454_v48, %v6583_v27  ;;  %3953 = vmatpush.bf16.msra.mxu0 %v6582_v22  ;;  %v6781_v48 = vld [vmem:[#allocation6 + $0x1c8] sm:$0xf]  ;;  %v6778_v27 = vor.u32 %v7502_v10, %v6775_v47  ;;  %v7493_v10 = vld [vmem:[#allocation6 + $0x174] sm:$0xf0] }
 0x3f5   :  { %v7660_v25 = vpop.eup %7659 }
 0x3f6   :  { %v3156_v60 = vmul.f32 %v7660_v25, %v3154_v6  ;;  %3963 = vmatpush.bf16.msra.mxu1 %v6634_v32  ;;  %v6618_v6 = vor.u32 %v7462_v20, %v6615_v11  ;;  %v6622_v25 = vor.u32 %v7465_v23, %v6621_v15  ;;  %v6558_v20 = vor.u32 %v7449_v16, %v6557_v17  ;;  %v6789_v11 = vld [vmem:[#allocation6 + $0x1e0] sm:$0xf]  ;;  %v7508_v23 = vld [vmem:[#allocation6 + $0x1ec] sm:$0xf0]  ;;  %v6767_v17 = vld [vmem:[#allocation6 + $0x1b8] sm:$0xf0] }
 0x3f7   :  { %v6741_v16 = vld [vmem:[#allocation6 + $0x180] sm:$0xf] }
 0x3f8   :  { %v3160_v18 = vpack.c.bf16 %v3156_v60, %v3156_v60  ;;  %v7463_v60 = vld [vmem:[#allocation6 + $0x8c] sm:$0xf]  ;;  %3977 = vmatpush.bf16.msra.mxu2 %v6622_v25  ;;  %v6791_v25 = vld [vmem:[#allocation6 + $0x1f0] sm:$0xf0] }
 0x3fa   :  { %6288 = vst [vmem:[%s8353_s4 + $0x3] sm:$0x1] %v3160_v18  ;;  %3658 = vmatmul.bf16.vlgmr.msrb.gmra.mxu0 %v3160_v18  ;;  %3671 = vmatmul.bf16.vlgmr.msrb.gmra.mxu1 %v3160_v18 }
 0x3fb   :  { %3684 = vmatmul.bf16.vlgmr.msrb.gmra.mxu2 %v3160_v18  ;;  %3697 = vmatmul.bf16.vlgmr.msrb.gmra.mxu3 %v3160_v18  ;;  %v6623_v18 = vld [vmem:[#allocation6 + $0x98] sm:$0xf0] }
 0x3fc   :  { %v6626_v28 = vor.u32 %v7463_v60, %v6623_v18  ;;  %3964 = vmatpush.bf16.msra.mxu1 %v6618_v6  ;;  %3978 = vmatpush.bf16.msra.mxu2 %v6606_v26  ;;  %v7506_v6 = vld [vmem:[#allocation6 + $0x1e4] sm:$0xf] }
 0x3fe   :  { %3990 = vmatpush.bf16.msra.mxu3 %v6626_v28  ;;  %v6790_v28 = vor.u32 %v7508_v23, %v6789_v11 }
 0x400   :  { %3979 = vmatpush.bf16.msra.mxu2 %v6590_v56  ;;  %v7488_v56 = vld [vmem:[#allocation6 + $0x14c] sm:$0xf0] }
 0x402   :  { %3991 = vmatpush.bf16.msra.mxu3 %v6610_v45 }
 0x458   :  { %v3367_v34 = vpop.f32.mrf.mxu0  ;;  %v3380_v35 = vpop.f32.mrf.mxu1 }
 0x459   :  { %v3414_v51 = vrot.slane %v3380_v35, 6  ;;  %v6599_v35 = vld [vmem:[#allocation6 + $0x70] sm:$0xf0] }
 0x45b   :  { %v3417_v13 = vsel %vm463_vm0, %v3367_v34, %v3414_v51  ;;  %v7458_v34 = vld [vmem:[#allocation6 + $0x64] sm:$0xf]  ;;  %v6591_v51 = vld [vmem:[#allocation6 + $0x58] sm:$0xf0] }
 0x45c   :  { %v6602_v38 = vor.u32 %v7458_v34, %v6599_v35  ;;  %v6594_v49 = vor.u32 %v7455_v57, %v6591_v51  ;;  %v6757_v51 = vld [vmem:[#allocation6 + $0x1a0] sm:$0xf] }
 0x45e   :  { %3965 = vmatpush.bf16.msra.mxu1 %v6602_v38  ;;  %3992 = vmatpush.bf16.msra.mxu3 %v6594_v49  ;;  %v6773_v38 = vld [vmem:[#allocation6 + $0x1c0] sm:$0xf]  ;;  %v7500_v49 = vld [vmem:[#allocation6 + $0x1ac] sm:$0xf0] }
 0x45f   :  { %v3393_v59 = vpop.f32.mrf.mxu2  ;;  %v3406_v41 = vpop.f32.mrf.mxu3  ;;  %v6774_v46 = vor.u32 %v7504_v39, %v6773_v38  ;;  %v6733_v38 = vld [vmem:[#allocation6 + $0x168] sm:$0xf] }
 0x460   :  { %v3415_v33 = vrot.slane %v3393_v59, 4  ;;  %v3416_v44 = vrot.slane %v3406_v41, 2  ;;  %v3369_v4 = vpop.f32.mrf.mxu0  ;;  %v3382_v53 = vpop.f32.mrf.mxu1  ;;  %v7452_v59 = vld [vmem:[#allocation6 + $0x2c] sm:$0xf0]  ;;  %v7450_v41 = vld [vmem:[#allocation6 + $0x24] sm:$0xf] }
 0x461   :  { %v6566_v62 = vor.u32 %v7452_v59, %v6565_v58  ;;  %v7451_v4 = vld [vmem:[#allocation6 + $0x2c] sm:$0xf]  ;;  %v6575_v53 = vld [vmem:[#allocation6 + $0x38] sm:$0xf0] }
 0x462   :  { %v3418_v43 = vsel %vm465_vm1, %v3415_v33, %v3416_v44  ;;  %3966 = vmatpush.bf16.msra.mxu1 %v6586_v54  ;;  %v6574_v44 = vor.u32 %v7453_v2, %v6573_v1  ;;  %v6578_v7 = vor.u32 %v7451_v4, %v6575_v53  ;;  %v6783_v54 = vld [vmem:[#allocation6 + $0x1d8] sm:$0xf0]  ;;  %v3489_v2 = vunpack.c.l.bf16 %v8207_v5  ;;  %v7501_v4 = vld [vmem:[#allocation6 + $0x1b4] sm:$0xf0]  ;;  %v7499_v53 = vld [vmem:[#allocation6 + $0x1ac] sm:$0xf] }
 0x463   :  { %v3419_v21 = vsel %vm467_vm2, %v3417_v13, %v3418_v43  ;;  %3954 = vmatpush.bf16.msra.mxu0 %v6566_v62  ;;  %v6550_v13 = vor.u32 %v7448_v12, %v6549_v40  ;;  %v6551_v43 = vld [vmem:[#allocation6 + $0x10] sm:$0xf0]  ;;  %v6786_v57 = vor.u32 %v7503_v52, %v6783_v54  ;;  %v7498_v62 = vld [vmem:[#allocation6 + $0x1a4] sm:$0xf]  ;;  %v6734_v52 = vor.u32 %v7493_v10, %v6733_v38  ;;  %v6709_v54 = vld [vmem:[#allocation6 + $0x140] sm:$0xf] }
 0x464   :  { %v8195_v55 = vadd.f32 %v3419_v21, %v3197_v3  ;;  %v6570_v3 = vor.u32 %v7450_v41, %v6567_v63  ;;  %3980 = vmatpush.bf16.msra.mxu2 %v6574_v44  ;;  %3993 = vmatpush.bf16.msra.mxu3 %v6578_v7  ;;  %v6554_v19 = vor.u32 %v7446_v0, %v6551_v43  ;;  %v7447_v21 = vld [vmem:[#allocation6 + $0xc] sm:$0xf]  ;;  %v6759_v63 = vld [vmem:[#allocation6 + $0x1b0] sm:$0xf0]  ;;  %v6765_v44 = vld [vmem:[#allocation6 + $0x1a8] sm:$0xf] }
 0x465   :  { %v6562_v15 = vor.u32 %v7447_v21, %v6559_v8  ;;  %v6758_v41 = vor.u32 %v7500_v49, %v6757_v51  ;;  %v7494_v21 = vld [vmem:[#allocation6 + $0x184] sm:$0xf]  ;;  %v6743_v8 = vld [vmem:[#allocation6 + $0x190] sm:$0xf0]  ;;  %v6703_v43 = vld [vmem:[#allocation6 + $0x138] sm:$0xf0] }
 0x466   :  { %v3422_v29 = vsub.f32 0.0, %v8195_v55  ;;  %3967 = vmatpush.bf16.msra.mxu1 %v6570_v3  ;;  %v3442_v42 = vrot.slane %v8195_v55, 6  ;;  %v6782_v55 = vor.u32 %v7505_v50, %v6781_v48  ;;  %v6762_v3 = vor.u32 %v7498_v62, %v6759_v63  ;;  %v7490_v5 = vld [vmem:[#allocation6 + $0x164] sm:$0xf]  ;;  %v7489_v62 = vld [vmem:[#allocation6 + $0x154] sm:$0xf0] }
 0x467   :  { %v3395_v31 = vpop.f32.mrf.mxu2  ;;  %v3408_v14 = vpop.f32.mrf.mxu3  ;;  %3955 = vmatpush.bf16.msra.mxu0 %v6550_v13  ;;  %v7487_v63 = vld [vmem:[#allocation6 + $0x14c] sm:$0xf] }
 0x468   :  { %v3423_v37 = vmul.f32 1.442695, %v3422_v29  ;;  %v6794_v29 = vor.u32 %v7506_v6, %v6791_v25  ;;  %v7507_v31 = vld [vmem:[#allocation6 + $0x1ec] sm:$0xf]  ;;  %3981 = vmatpush.bf16.msra.mxu2 %v6558_v20  ;;  %v6798_v14 = vor.u32 %v7509_v30, %v6797_v61  ;;  %3994 = vmatpush.bf16.msra.mxu3 %v6562_v15  ;;  %v7496_v20 = vld [vmem:[#allocation6 + $0x18c] sm:$0xf0]  ;;  %v6746_v61 = vor.u32 %v7494_v21, %v6743_v8 }
 0x469   :  { %v6742_v6 = vor.u32 %v7496_v20, %v6741_v16  ;;  %v6749_v25 = vld [vmem:[#allocation6 + $0x188] sm:$0xf]  ;;  %v7480_v20 = vld [vmem:[#allocation6 + $0x10c] sm:$0xf0] }
 0x46a   :  { %7661 = vpow2.f32 %v3423_v37  ;;  %3968 = vmatpush.bf16.msra.mxu1 %v6554_v19  ;;  %v6802_v37 = vor.u32 %v7507_v31, %v6799_v9  ;;  %v6770_v19 = vor.u32 %v7499_v53, %v6767_v17  ;;  %v6751_v31 = vld [vmem:[#allocation6 + $0x198] sm:$0xf0]  ;;  %v7492_v9 = vld [vmem:[#allocation6 + $0x16c] sm:$0xf0]  ;;  %v7482_v53 = vld [vmem:[#allocation6 + $0x124] sm:$0xf] }
 0x46b   :  { %4240 = vmatpush.bf16.msrb.mxu0 %v6790_v28  ;;  %v7495_v28 = vld [vmem:[#allocation6 + $0x18c] sm:$0xf] }
 0x46c   :  { %4266 = vmatpush.bf16.msrb.mxu2 %v6798_v14  ;;  %4279 = vmatpush.bf16.msrb.mxu3 %v6802_v37  ;;  %v6725_v14 = vld [vmem:[#allocation6 + $0x160] sm:$0xf]  ;;  %v6727_v37 = vld [vmem:[#allocation6 + $0x170] sm:$0xf0] }
 0x46d   :  { %v6726_v48 = vor.u32 %v7492_v9, %v6725_v14  ;;  %v6730_v50 = vor.u32 %v7490_v5, %v6727_v37 }
 0x46e   :  { %4253 = vmatpush.bf16.msrb.mxu1 %v6794_v29 }
 0x46f   :  { %4241 = vmatpush.bf16.msrb.mxu0 %v6774_v46 }
 0x470   :  { %v7662_v33 = vpop.eup %7661  ;;  %4267 = vmatpush.bf16.msrb.mxu2 %v6782_v55  ;;  %4280 = vmatpush.bf16.msrb.mxu3 %v6786_v57  ;;  %v7486_v55 = vld [vmem:[#allocation6 + $0x144] sm:$0xf] }
 0x471   :  { %v8198_v32 = vadd.f32 1.0, %v7662_v33 }
 0x472   :  { %4254 = vmatpush.bf16.msrb.mxu1 %v6778_v27 }
 0x473   :  { %7663 = vrcp.f32 %v8198_v32  ;;  %v3435_v34 = vand.u32 2147483647, %v8198_v32  ;;  %v3437_v35 = vand.u32 2147483648, %v8198_v32  ;;  %vm3431_vm6 = vweird.f32 %v8198_v32  ;;  %4242 = vmatpush.bf16.msrb.mxu0 %v6758_v41  ;;  %v6717_v41 = vld [vmem:[#allocation6 + $0x148] sm:$0xf] }
 0x474   :  { %7665 = vtanh.f32 %v3442_v42  ;;  %4281 = vmatpush.bf16.msrb.mxu3 %v6770_v19  ;;  %v7491_v42 = vld [vmem:[#allocation6 + $0x16c] sm:$0xf]  ;;  %v6677_v19 = vld [vmem:[#allocation6 + $0x100] sm:$0xf] }
 0x475   :  { %vm8216_vm5 = vcmp.eq.f32.partialorder %v3435_v34, 8.507059e+37  ;;  %v3438_v59 = vor.u32 1.1754944e-38, %v3437_v35  ;;  %v6754_v35 = vor.u32 %v7495_v28, %v6751_v31  ;;  %v6685_v28 = vld [vmem:[#allocation6 + $0x108] sm:$0xf]  ;;  %v6687_v31 = vld [vmem:[#allocation6 + $0x118] sm:$0xf0] }
 0x476   :  { %4255 = vmatpush.bf16.msrb.mxu1 %v6762_v3 }
 0x477   :  { %v8201_v60 = vpop.f32.mrf.mxu0  ;;  %v8203_v18 = vpop.f32.mrf.mxu1  ;;  %4243 = vmatpush.bf16.msrb.mxu0 %v6742_v6 }
 0x478   :  { %v3706_v45 = vrot.slane %v8203_v18, 6  ;;  %v7497_v18 = vld [vmem:[#allocation6 + $0x194] sm:$0xf0]  ;;  %4282 = vmatpush.bf16.msrb.mxu3 %v6754_v35 }
 0x479   :  { %v8209_v26 = vpop.eup %7663  ;;  %v6750_v30 = vor.u32 %v7497_v18, %v6749_v25  ;;  %v6678_v25 = vor.u32 %v7480_v20, %v6677_v19  ;;  %v6679_v18 = vld [vmem:[#allocation6 + $0x110] sm:$0xf0]  ;;  %v6913_v19 = vld [vmem:[#allocation6 + $0xd8] sm:$0xf0]  ;;  %v3754_v20 = vld [vmem:[#allocation4 + $0x18] sm:$0xf] }
 0x47a   :  { %v3427_v22 = vmul.f32 %v8209_v26, %v8198_v32  ;;  %vm3432_vm4 = vweird.f32 %v8209_v26  ;;  %v6766_v32 = vor.u32 %v7501_v4, %v6765_v44  ;;  %v3709_v11 = vsel %vm463_vm0, %v8201_v60, %v3706_v45  ;;  %v6735_v45 = vld [vmem:[#allocation6 + $0x178] sm:$0xf0]  ;;  %4256 = vmatpush.bf16.msrb.mxu1 %v6746_v61  ;;  %v6693_v4 = vld [vmem:[#allocation6 + $0x120] sm:$0xf] }
 0x47b   :  { %vm8225_vm7 = vmor %vm3431_vm6, %vm3432_vm4  ;;  %4244 = vmatpush.bf16.msrb.mxu0 %v6726_v48  ;;  %v6718_v44 = vor.u32 %v7489_v62, %v6717_v41  ;;  %v6927_v41 = vld [vmem:[#allocation6 + $0xe8] sm:$0xf]  ;;  %v7541_v62 = vld [vmem:[#allocation6 + $0xf4] sm:$0xf0] }
 0x47c   :  { %v3428_v58 = vsub.f32 1.0, %v3427_v22  ;;  %4268 = vmatpush.bf16.msrb.mxu2 %v6766_v32  ;;  %v7666_v22 = vpop.eup %7665 }
 0x47e   :  { %v3685_v1 = vpop.f32.mrf.mxu2  ;;  %v3698_v33 = vpop.f32.mrf.mxu3  ;;  %v3429_v13 = vmul.f32 %v8209_v26, %v3428_v58  ;;  %v6738_v58 = vor.u32 %v7491_v42, %v6735_v45  ;;  %4257 = vmatpush.bf16.msrb.mxu1 %v6730_v50 }
 0x47f   :  { %v3707_v7 = vrot.slane %v3685_v1, 4  ;;  %v3708_v40 = vrot.slane %v3698_v33, 2  ;;  %v3661_v12 = vpop.f32.mrf.mxu0  ;;  %v3674_v0 = vpop.f32.mrf.mxu1  ;;  %v6719_v1 = vld [vmem:[#allocation6 + $0x158] sm:$0xf0]  ;;  %v6710_v33 = vor.u32 %v7488_v56, %v6709_v54 }
 0x480   :  { %v3430_v23 = vadd.f32 %v8209_v26, %v3429_v13  ;;  %4269 = vmatpush.bf16.msrb.mxu2 %v6750_v30  ;;  %4283 = vmatpush.bf16.msrb.mxu3 %v6738_v58  ;;  %v6701_v12 = vld [vmem:[#allocation6 + $0x128] sm:$0xf]  ;;  %v7485_v0 = vld [vmem:[#allocation6 + $0x134] sm:$0xf0]  ;;  %v7483_v13 = vld [vmem:[#allocation6 + $0x12c] sm:$0xf] }
 0x481   :  { %v3710_v15 = vsel %vm465_vm1, %v3707_v7, %v3708_v40  ;;  %v6722_v7 = vor.u32 %v7487_v63, %v6719_v1  ;;  %v6695_v40 = vld [vmem:[#allocation6 + $0x130] sm:$0xf0]  ;;  %4245 = vmatpush.bf16.msrb.mxu0 %v6710_v33  ;;  %v6702_v16 = vor.u32 %v7485_v0, %v6701_v12  ;;  %v6706_v8 = vor.u32 %v7483_v13, %v6703_v43  ;;  %v7479_v30 = vld [vmem:[#allocation6 + $0x10c] sm:$0xf]  ;;  %v6911_v13 = vld [vmem:[#allocation6 + $0xc8] sm:$0xf] }
 0x482   :  { %v3711_v29 = vsel %vm467_vm2, %v3709_v11, %v3710_v15  ;;  %v3434_v60 = vsel %vm8225_vm7, %v8209_v26, %v3430_v23  ;;  %v6698_v17 = vor.u32 %v7482_v53, %v6695_v40  ;;  %v7478_v23 = vld [vmem:[#allocation6 + $0x104] sm:$0xf]  ;;  %v6690_v35 = vor.u32 %v7479_v30, %v6687_v31  ;;  %v6903_v53 = vld [vmem:[#allocation6 + $0xc0] sm:$0xf]  ;;  %v6905_v0 = vld [vmem:[#allocation6 + $0xd0] sm:$0xf0] }
 0x483   :  { %v8234_v34 = vadd.f32 %v3711_v29, %v3489_v2  ;;  %v8241_v39 = vsel %vm8216_vm5, %v3438_v59, %v3434_v60  ;;  %v6711_v59 = vld [vmem:[#allocation6 + $0x150] sm:$0xf0]  ;;  %v7481_v29 = vld [vmem:[#allocation6 + $0x114] sm:$0xf0]  ;;  %v6682_v9 = vor.u32 %v7478_v23, %v6679_v18  ;;  %v7534_v40 = vld [vmem:[#allocation6 + $0xc4] sm:$0xf]  ;;  %v3787_v30 = vunpack.c.l.bf16 %v3754_v20 }
 0x484   :  { %v3446_v47 = vrot.slane %v8241_v39, 2  ;;  %v3449_v49 = vmul.f32 %v7666_v22, %v8241_v39  ;;  %4270 = vmatpush.bf16.msrb.mxu2 %v6734_v52  ;;  %v6714_v3 = vor.u32 %v7486_v55, %v6711_v59  ;;  %4284 = vmatpush.bf16.msrb.mxu3 %v6722_v7  ;;  %v3452_v15 = vrot.slane %v8241_v39, 4  ;;  %v6921_v59 = vld [vmem:[#allocation6 + $0xf0] sm:$0xf0]  ;;  %v7536_v7 = vld [vmem:[#allocation6 + $0xcc] sm:$0xf0] }
 0x485   :  { %v3714_v46 = vsub.f32 0.0, %v8234_v34  ;;  %v6686_v60 = vor.u32 %v7481_v29, %v6685_v28  ;;  %v3734_v38 = vrot.slane %v8234_v34, 6  ;;  %v6904_v12 = vor.u32 %v7536_v7, %v6903_v53  ;;  %v7537_v43 = vld [vmem:[#allocation6 + $0xd4] sm:$0xf0]  ;;  %v7530_v18 = vld [vmem:[#allocation6 + $0xa4] sm:$0xf] }
 0x486   :  { %v3687_v26 = vpop.f32.mrf.mxu2  ;;  %v3700_v27 = vpop.f32.mrf.mxu3  ;;  %v3448_v51 = vmul.f32 %v3446_v47, %v8177_v36  ;;  %v7484_v36 = vld [vmem:[#allocation6 + $0x12c] sm:$0xf0]  ;;  %4258 = vmatpush.bf16.msrb.mxu1 %v6714_v3  ;;  %v6928_v3 = vor.u32 %v7541_v62, %v6927_v41  ;;  %v6889_v28 = vld [vmem:[#allocation6 + $0xb0] sm:$0xf0]  ;;  %v6895_v29 = vld [vmem:[#allocation6 + $0xa8] sm:$0xf] }
 0x487   :  { %v3715_v57 = vmul.f32 1.442695, %v3714_v46  ;;  %v6694_v32 = vor.u32 %v7484_v36, %v6693_v4  ;;  %v6929_v4 = vld [vmem:[#allocation6 + $0xf8] sm:$0xf0] }
 0x488   :  { %v8247_v2 = vadd.f32 %v3449_v49, %v3448_v51  ;;  %4271 = vmatpush.bf16.msrb.mxu2 %v6718_v44  ;;  %4285 = vmatpush.bf16.msrb.mxu3 %v6706_v8  ;;  %v6919_v51 = vld [vmem:[#allocation6 + $0xe0] sm:$0xf]  ;;  %v7540_v49 = vld [vmem:[#allocation6 + $0xec] sm:$0xf0]  ;;  %v7539_v44 = vld [vmem:[#allocation6 + $0xec] sm:$0xf] }
 0x489   :  { %7667 = vpow2.f32 %v3715_v57  ;;  %4246 = vmatpush.bf16.msrb.mxu0 %v6694_v32  ;;  %v6920_v58 = vor.u32 %v7540_v49, %v6919_v51  ;;  %v6932_v36 = vor.u32 %v7539_v44, %v6929_v4  ;;  %v6908_v32 = vor.u32 %v7534_v40, %v6905_v0  ;;  %v7525_v4 = vld [vmem:[#allocation6 + $0x74] sm:$0xf0]  ;;  %v6865_v7 = vld [vmem:[#allocation6 + $0x78] sm:$0xf0]  ;;  %v7520_v0 = vld [vmem:[#allocation6 + $0x4c] sm:$0xf0] }
 0x48a   :  { %7669 = vtanh.f32 %v8247_v2  ;;  %4259 = vmatpush.bf16.msrb.mxu1 %v6698_v17  ;;  %v6912_v17 = vor.u32 %v7537_v43, %v6911_v13  ;;  %v7518_v13 = vld [vmem:[#allocation6 + $0x44] sm:$0xf] }
 0x48c   :  { %4272 = vmatpush.bf16.msrb.mxu2 %v6702_v16  ;;  %4286 = vmatpush.bf16.msrb.mxu3 %v6690_v35  ;;  %v7535_v16 = vld [vmem:[#allocation6 + $0xcc] sm:$0xf]  ;;  %v7533_v35 = vld [vmem:[#allocation6 + $0xb4] sm:$0xf0] }
 0x48d   :  { %4247 = vmatpush.bf16.msrb.mxu0 %v6678_v25 }
 0x48e   :  { %4260 = vmatpush.bf16.msrb.mxu1 %v6682_v9 }
 0x48f   :  { %v7668_v21 = vpop.eup %7667 }
 0x490   :  { %v3717_v11 = vadd.f32 1.0, %v7668_v21  ;;  %v7670_v6 = vpop.eup %7669  ;;  %4273 = vmatpush.bf16.msrb.mxu2 %v6686_v60  ;;  %v6916_v21 = vor.u32 %v7535_v16, %v6913_v19  ;;  %v6892_v60 = vor.u32 %v7530_v18, %v6889_v28  ;;  %v7521_v16 = vld [vmem:[#allocation6 + $0x54] sm:$0xf0]  ;;  %v6825_v18 = vld [vmem:[#allocation6 + $0x30] sm:$0xf0] }
 0x491   :  { %v3454_v61 = vmul.f32 %v7670_v6, %v3452_v15  ;;  %v7532_v15 = vld [vmem:[#allocation6 + $0xac] sm:$0xf0]  ;;  %v6831_v28 = vld [vmem:[#allocation6 + $0x28] sm:$0xf] }
 0x492   :  { %7671 = vrcp.f32 %v3717_v11  ;;  %v3729_v10 = vand.u32 2147483648, %v3717_v11  ;;  %v3727_v45 = vand.u32 2147483647, %v3717_v11  ;;  %vm3723_vm9 = vweird.f32 %v3717_v11 }
 0x493   :  { %v3747_v14 = vpack.c.bf16 %v3454_v61, %v3454_v61  ;;  %7673 = vtanh.f32 %v3734_v38  ;;  %v6897_v38 = vld [vmem:[#allocation6 + $0xb8] sm:$0xf0] }
 0x494   :  { %v3730_v47 = vor.u32 1.1754944e-38, %v3729_v10  ;;  %vm3728_vm11 = vcmp.eq.f32.partialorder %v3727_v45, 8.507059e+37  ;;  %v6871_v45 = vld [vmem:[#allocation6 + $0x80] sm:$0xf] }
 0x495   :  { %6545 = vst [vmem:[%s8352_s3 + $0x5] sm:$0x1] %v3747_v14  ;;  %3956 = vmatmul.bf16.vlgmr.msra.gmra.mxu0 %v3747_v14  ;;  %3969 = vmatmul.bf16.vlgmr.msra.gmra.mxu1 %v3747_v14 }
 0x496   :  { %3982 = vmatmul.bf16.vlgmr.msra.gmra.mxu2 %v3747_v14  ;;  %3995 = vmatmul.bf16.vlgmr.msra.gmra.mxu3 %v3747_v14 }
 0x497   :  { %4538 = vmatpush.bf16.msra.mxu0 %v6920_v58  ;;  %4564 = vmatpush.bf16.msra.mxu2 %v6928_v3  ;;  %v7524_v58 = vld [vmem:[#allocation6 + $0x6c] sm:$0xf0] }
 0x498   :  { %v7672_v5 = vpop.eup %7671  ;;  %4577 = vmatpush.bf16.msra.mxu3 %v6932_v36  ;;  %v7523_v36 = vld [vmem:[#allocation6 + $0x6c] sm:$0xf] }
 0x499   :  { %v3719_v37 = vmul.f32 %v7672_v5, %v3717_v11  ;;  %vm3724_vm8 = vweird.f32 %v7672_v5  ;;  %v7674_v27 = vpop.eup %7673  ;;  %v6887_v11 = vld [vmem:[#allocation6 + $0xa0] sm:$0xf]  ;;  %v6868_v40 = vor.u32 %v7523_v36, %v6865_v7  ;;  %v7566_v36 = vld [vmem:[#allocation6 + $0x1c4] sm:$0xf] }
 0x49a   :  { %vm3725_vm10 = vmor %vm3723_vm9, %vm3724_vm8  ;;  %v6888_v25 = vor.u32 %v7532_v15, %v6887_v11  ;;  %v6823_v15 = vld [vmem:[#allocation6 + $0x20] sm:$0xf] }
 0x49b   :  { %v3720_v39 = vsub.f32 1.0, %v3719_v37  ;;  %4539 = vmatpush.bf16.msra.mxu0 %v6904_v12  ;;  %4565 = vmatpush.bf16.msra.mxu2 %v6912_v17  ;;  %v6896_v37 = vor.u32 %v7533_v35, %v6895_v29  ;;  %v6839_v12 = vld [vmem:[#allocation6 + $0x40] sm:$0xf]  ;;  %v6847_v17 = vld [vmem:[#allocation6 + $0x48] sm:$0xf] }
 0x49c   :  { %4578 = vmatpush.bf16.msra.mxu3 %v6916_v21  ;;  %v6840_v43 = vor.u32 %v7520_v0, %v6839_v12  ;;  %v6848_v20 = vor.u32 %v7521_v16, %v6847_v17  ;;  %v7519_v21 = vld [vmem:[#allocation6 + $0x4c] sm:$0xf]  ;;  %v7517_v29 = vld [vmem:[#allocation6 + $0x34] sm:$0xf0]  ;;  %v7033_v0 = vld [vmem:[#allocation6 + $0x1d0] sm:$0xf0] }
 0x49d   :  { %v3721_v42 = vmul.f32 %v7672_v5, %v3720_v39  ;;  %v7569_v17 = vld [vmem:[#allocation6 + $0x1d4] sm:$0xf0]  ;;  %v7567_v16 = vld [vmem:[#allocation6 + $0x1cc] sm:$0xf] }
 0x49f   :  { %v3722_v46 = vadd.f32 %v7672_v5, %v3721_v42  ;;  %4540 = vmatpush.bf16.msra.mxu0 %v6888_v25  ;;  %4566 = vmatpush.bf16.msra.mxu2 %v6896_v37  ;;  %v7512_v37 = vld [vmem:[#allocation6 + $0xc] sm:$0xf0] }
 0x4a1   :  { %v3726_v48 = vsel %vm3725_vm10, %v7672_v5, %v3722_v46  ;;  %v7531_v5 = vld [vmem:[#allocation6 + $0xac] sm:$0xf]  ;;  %v7528_v46 = vld [vmem:[#allocation6 + $0x8c] sm:$0xf0] }
 0x4a2   :  { %v3731_v22 = vsel %vm3728_vm11, %v3730_v47, %v3726_v48  ;;  %v6900_v42 = vor.u32 %v7531_v5, %v6897_v38  ;;  %v7526_v47 = vld [vmem:[#allocation6 + $0x84] sm:$0xf]  ;;  %v6807_v5 = vld [vmem:[#allocation6] sm:$0xf] }
 0x4a3   :  { %v3738_v26 = vrot.slane %v3731_v22, 2  ;;  %v3741_v52 = vmul.f32 %v7674_v27, %v3731_v22  ;;  %v3744_v34 = vrot.slane %v3731_v22, 4  ;;  %v6872_v22 = vor.u32 %v7528_v46, %v6871_v45  ;;  %v6879_v27 = vld [vmem:[#allocation6 + $0x88] sm:$0xf]  ;;  %v7510_v38 = vld [vmem:[#allocation6 + $0x4] sm:$0xf] }
 0x4a4   :  { %4579 = vmatpush.bf16.msra.mxu3 %v6900_v42  ;;  %v6815_v42 = vld [vmem:[#allocation6 + $0x8] sm:$0xf]  ;;  %v7513_v45 = vld [vmem:[#allocation6 + $0x14] sm:$0xf0] }
 0x4a5   :  { %v3740_v50 = vmul.f32 %v3738_v26, %v8186_v24  ;;  %v7538_v24 = vld [vmem:[#allocation6 + $0xe4] sm:$0xf]  ;;  %v6873_v26 = vld [vmem:[#allocation6 + $0x90] sm:$0xf0]  ;;  %4541 = vmatpush.bf16.msra.mxu0 %v6872_v22  ;;  %v6817_v22 = vld [vmem:[#allocation6 + $0x18] sm:$0xf0] }
 0x4a6   :  { %v6924_v33 = vor.u32 %v7538_v24, %v6921_v59  ;;  %v6855_v24 = vld [vmem:[#allocation6 + $0x60] sm:$0xf] }
 0x4a7   :  { %v8256_v54 = vadd.f32 %v3741_v52, %v3740_v50  ;;  %v7529_v50 = vld [vmem:[#allocation6 + $0x94] sm:$0xf0]  ;;  %v6856_v62 = vor.u32 %v7524_v58, %v6855_v24  ;;  %v7055_v24 = vld [vmem:[#allocation6 + $0x1e8] sm:$0xf] }
 0x4a8   :  { %4551 = vmatpush.bf16.msra.mxu1 %v6924_v33  ;;  %v6863_v33 = vld [vmem:[#allocation6 + $0x68] sm:$0xf]  ;;  %v7573_v58 = vld [vmem:[#allocation6 + $0x1f4] sm:$0xf0] }
 0x4a9   :  { %7675 = vtanh.f32 %v8256_v54  ;;  %4542 = vmatpush.bf16.msra.mxu0 %v6856_v62  ;;  %v6864_v53 = vor.u32 %v7525_v4, %v6863_v33  ;;  %v7057_v62 = vld [vmem:[#allocation6 + $0x1f8] sm:$0xf0]  ;;  %v8277_v33 = vld [vmem:[#allocation5 + $0x4] sm:$0xf]  ;;  %v7568_v4 = vld [vmem:[#allocation6 + $0x1cc] sm:$0xf0] }
 0x4ac   :  { %4552 = vmatpush.bf16.msra.mxu1 %v6908_v32  ;;  %v6841_v32 = vld [vmem:[#allocation6 + $0x50] sm:$0xf0] }
 0x4ad   :  { %v6844_v19 = vor.u32 %v7518_v13, %v6841_v32  ;;  %4543 = vmatpush.bf16.msra.mxu0 %v6840_v43  ;;  %v7039_v13 = vld [vmem:[#allocation6 + $0x1c8] sm:$0xf]  ;;  %v7036_v32 = vor.u32 %v7566_v36, %v7033_v0  ;;  %v7557_v36 = vld [vmem:[#allocation6 + $0x174] sm:$0xf0] }
 0x4af   :  { %v7676_v56 = vpop.eup %7675 }
 0x4b0   :  { %v3746_v55 = vmul.f32 %v7676_v56, %v3744_v34  ;;  %4553 = vmatpush.bf16.msra.mxu1 %v6892_v60  ;;  %v6876_v34 = vor.u32 %v7526_v47, %v6873_v26  ;;  %v6880_v56 = vor.u32 %v7529_v50, %v6879_v27  ;;  %v6816_v47 = vor.u32 %v7513_v45, %v6815_v42  ;;  %v7047_v26 = vld [vmem:[#allocation6 + $0x1e0] sm:$0xf]  ;;  %v7572_v50 = vld [vmem:[#allocation6 + $0x1ec] sm:$0xf0]  ;;  %v7025_v42 = vld [vmem:[#allocation6 + $0x1b8] sm:$0xf0] }
 0x4b1   :  { %v6999_v45 = vld [vmem:[#allocation6 + $0x180] sm:$0xf] }
 0x4b2   :  { %v3750_v57 = vpack.c.bf16 %v3746_v55, %v3746_v55  ;;  %v7527_v55 = vld [vmem:[#allocation6 + $0x8c] sm:$0xf]  ;;  %4567 = vmatpush.bf16.msra.mxu2 %v6880_v56  ;;  %v7049_v56 = vld [vmem:[#allocation6 + $0x1f0] sm:$0xf0] }
 0x4b4   :  { %6546 = vst [vmem:[%s8353_s4 + $0x2] sm:$0x1] %v3750_v57  ;;  %4248 = vmatmul.bf16.vlgmr.msrb.gmra.mxu0 %v3750_v57  ;;  %4261 = vmatmul.bf16.vlgmr.msrb.gmra.mxu1 %v3750_v57 }
 0x4b5   :  { %4274 = vmatmul.bf16.vlgmr.msrb.gmra.mxu2 %v3750_v57  ;;  %4287 = vmatmul.bf16.vlgmr.msrb.gmra.mxu3 %v3750_v57  ;;  %v6881_v57 = vld [vmem:[#allocation6 + $0x98] sm:$0xf0] }
 0x4b6   :  { %v6884_v51 = vor.u32 %v7527_v55, %v6881_v57  ;;  %4554 = vmatpush.bf16.msra.mxu1 %v6876_v34  ;;  %4568 = vmatpush.bf16.msra.mxu2 %v6864_v53  ;;  %v7570_v34 = vld [vmem:[#allocation6 + $0x1e4] sm:$0xf] }
 0x4b8   :  { %4580 = vmatpush.bf16.msra.mxu3 %v6884_v51  ;;  %v7048_v51 = vor.u32 %v7572_v50, %v7047_v26 }
 0x4ba   :  { %4569 = vmatpush.bf16.msra.mxu2 %v6848_v20  ;;  %v7552_v20 = vld [vmem:[#allocation6 + $0x14c] sm:$0xf0] }
 0x4bc   :  { %4581 = vmatpush.bf16.msra.mxu3 %v6868_v40 }
 0x512   :  { %v3957_v63 = vpop.f32.mrf.mxu0  ;;  %v3970_v1 = vpop.f32.mrf.mxu1 }
 0x513   :  { %v4004_v8 = vrot.slane %v3970_v1, 6  ;;  %v6857_v1 = vld [vmem:[#allocation6 + $0x70] sm:$0xf0] }
 0x515   :  { %v4007_v39 = vsel %vm463_vm0, %v3957_v63, %v4004_v8  ;;  %v7522_v63 = vld [vmem:[#allocation6 + $0x64] sm:$0xf]  ;;  %v6849_v8 = vld [vmem:[#allocation6 + $0x58] sm:$0xf0] }
 0x516   :  { %v6860_v44 = vor.u32 %v7522_v63, %v6857_v1  ;;  %v6852_v11 = vor.u32 %v7519_v21, %v6849_v8  ;;  %v7015_v8 = vld [vmem:[#allocation6 + $0x1a0] sm:$0xf] }
 0x518   :  { %4555 = vmatpush.bf16.msra.mxu1 %v6860_v44  ;;  %4582 = vmatpush.bf16.msra.mxu3 %v6852_v11  ;;  %v7031_v44 = vld [vmem:[#allocation6 + $0x1c0] sm:$0xf]  ;;  %v7564_v11 = vld [vmem:[#allocation6 + $0x1ac] sm:$0xf0] }
 0x519   :  { %v3983_v23 = vpop.f32.mrf.mxu2  ;;  %v3996_v6 = vpop.f32.mrf.mxu3  ;;  %v7032_v12 = vor.u32 %v7568_v4, %v7031_v44  ;;  %v6991_v44 = vld [vmem:[#allocation6 + $0x168] sm:$0xf] }
 0x51a   :  { %v4005_v61 = vrot.slane %v3983_v23, 4  ;;  %v4006_v31 = vrot.slane %v3996_v6, 2  ;;  %v3959_v14 = vpop.f32.mrf.mxu0  ;;  %v3972_v9 = vpop.f32.mrf.mxu1  ;;  %v7516_v23 = vld [vmem:[#allocation6 + $0x2c] sm:$0xf0]  ;;  %v7514_v6 = vld [vmem:[#allocation6 + $0x24] sm:$0xf] }
 0x51b   :  { %v6824_v25 = vor.u32 %v7516_v23, %v6823_v15  ;;  %v7515_v14 = vld [vmem:[#allocation6 + $0x2c] sm:$0xf]  ;;  %v6833_v9 = vld [vmem:[#allocation6 + $0x38] sm:$0xf0] }
 0x51c   :  { %v4008_v10 = vsel %vm465_vm1, %v4005_v61, %v4006_v31  ;;  %4556 = vmatpush.bf16.msra.mxu1 %v6844_v19  ;;  %v6832_v31 = vor.u32 %v7517_v29, %v6831_v28  ;;  %v6836_v35 = vor.u32 %v7515_v14, %v6833_v9  ;;  %v7041_v19 = vld [vmem:[#allocation6 + $0x1d8] sm:$0xf0]  ;;  %v4079_v29 = vunpack.c.l.bf16 %v8277_v33  ;;  %v7565_v14 = vld [vmem:[#allocation6 + $0x1b4] sm:$0xf0]  ;;  %v7563_v9 = vld [vmem:[#allocation6 + $0x1ac] sm:$0xf] }
 0x51d   :  { %v4009_v48 = vsel %vm467_vm2, %v4007_v39, %v4008_v10  ;;  %4544 = vmatpush.bf16.msra.mxu0 %v6824_v25  ;;  %v6808_v39 = vor.u32 %v7512_v37, %v6807_v5  ;;  %v6809_v10 = vld [vmem:[#allocation6 + $0x10] sm:$0xf0]  ;;  %v7044_v21 = vor.u32 %v7567_v16, %v7041_v19  ;;  %v7562_v25 = vld [vmem:[#allocation6 + $0x1a4] sm:$0xf]  ;;  %v6992_v16 = vor.u32 %v7557_v36, %v6991_v44  ;;  %v6967_v19 = vld [vmem:[#allocation6 + $0x140] sm:$0xf] }
 0x51e   :  { %v8265_v52 = vadd.f32 %v4009_v48, %v3787_v30  ;;  %v6828_v30 = vor.u32 %v7514_v6, %v6825_v18  ;;  %4570 = vmatpush.bf16.msra.mxu2 %v6832_v31  ;;  %4583 = vmatpush.bf16.msra.mxu3 %v6836_v35  ;;  %v6812_v46 = vor.u32 %v7510_v38, %v6809_v10  ;;  %v7511_v48 = vld [vmem:[#allocation6 + $0xc] sm:$0xf]  ;;  %v7017_v18 = vld [vmem:[#allocation6 + $0x1b0] sm:$0xf0]  ;;  %v7023_v31 = vld [vmem:[#allocation6 + $0x1a8] sm:$0xf] }
 0x51f   :  { %v6820_v27 = vor.u32 %v7511_v48, %v6817_v22  ;;  %v7016_v6 = vor.u32 %v7564_v11, %v7015_v8  ;;  %v7558_v48 = vld [vmem:[#allocation6 + $0x184] sm:$0xf]  ;;  %v7001_v22 = vld [vmem:[#allocation6 + $0x190] sm:$0xf0]  ;;  %v6961_v10 = vld [vmem:[#allocation6 + $0x138] sm:$0xf0] }
 0x520   :  { %v4012_v49 = vsub.f32 0.0, %v8265_v52  ;;  %4557 = vmatpush.bf16.msra.mxu1 %v6828_v30  ;;  %v4032_v7 = vrot.slane %v8265_v52, 6  ;;  %v7040_v52 = vor.u32 %v7569_v17, %v7039_v13  ;;  %v7020_v30 = vor.u32 %v7562_v25, %v7017_v18  ;;  %v7554_v33 = vld [vmem:[#allocation6 + $0x164] sm:$0xf]  ;;  %v7553_v25 = vld [vmem:[#allocation6 + $0x154] sm:$0xf0] }
 0x521   :  { %v3985_v59 = vpop.f32.mrf.mxu2  ;;  %v3998_v41 = vpop.f32.mrf.mxu3  ;;  %4545 = vmatpush.bf16.msra.mxu0 %v6808_v39  ;;  %v7551_v18 = vld [vmem:[#allocation6 + $0x14c] sm:$0xf] }
 0x522   :  { %v4013_v3 = vmul.f32 1.442695, %v4012_v49  ;;  %v7052_v49 = vor.u32 %v7570_v34, %v7049_v56  ;;  %v7571_v59 = vld [vmem:[#allocation6 + $0x1ec] sm:$0xf]  ;;  %4571 = vmatpush.bf16.msra.mxu2 %v6816_v47  ;;  %v7056_v41 = vor.u32 %v7573_v58, %v7055_v24  ;;  %4584 = vmatpush.bf16.msra.mxu3 %v6820_v27  ;;  %v7560_v47 = vld [vmem:[#allocation6 + $0x18c] sm:$0xf0]  ;;  %v7004_v24 = vor.u32 %v7558_v48, %v7001_v22 }
 0x523   :  { %v7000_v34 = vor.u32 %v7560_v47, %v6999_v45  ;;  %v7007_v56 = vld [vmem:[#allocation6 + $0x188] sm:$0xf]  ;;  %v7544_v47 = vld [vmem:[#allocation6 + $0x10c] sm:$0xf0] }
 0x524   :  { %7677 = vpow2.f32 %v4013_v3  ;;  %4558 = vmatpush.bf16.msra.mxu1 %v6812_v46  ;;  %v7060_v3 = vor.u32 %v7571_v59, %v7057_v62  ;;  %v7028_v46 = vor.u32 %v7563_v9, %v7025_v42  ;;  %v7009_v59 = vld [vmem:[#allocation6 + $0x198] sm:$0xf0]  ;;  %v7556_v62 = vld [vmem:[#allocation6 + $0x16c] sm:$0xf0]  ;;  %v7546_v9 = vld [vmem:[#allocation6 + $0x124] sm:$0xf] }
 0x525   :  { %4829 = vmatpush.bf16.msrb.mxu0 %v7048_v51  ;;  %v7559_v51 = vld [vmem:[#allocation6 + $0x18c] sm:$0xf] }
 0x526   :  { %4855 = vmatpush.bf16.msrb.mxu2 %v7056_v41  ;;  %4868 = vmatpush.bf16.msrb.mxu3 %v7060_v3  ;;  %v6983_v41 = vld [vmem:[#allocation6 + $0x160] sm:$0xf]  ;;  %v6985_v3 = vld [vmem:[#allocation6 + $0x170] sm:$0xf0] }
 0x527   :  { %v6984_v13 = vor.u32 %v7556_v62, %v6983_v41  ;;  %v6988_v17 = vor.u32 %v7554_v33, %v6985_v3 }
 0x528   :  { %4842 = vmatpush.bf16.msrb.mxu1 %v7052_v49 }
 0x529   :  { %4830 = vmatpush.bf16.msrb.mxu0 %v7032_v12 }
 0x52a   :  { %v7678_v61 = vpop.eup %7677  ;;  %4856 = vmatpush.bf16.msrb.mxu2 %v7040_v52  ;;  %4869 = vmatpush.bf16.msrb.mxu3 %v7044_v21  ;;  %v7550_v52 = vld [vmem:[#allocation6 + $0x144] sm:$0xf] }
 0x52b   :  { %v8268_v60 = vadd.f32 1.0, %v7678_v61 }
 0x52c   :  { %4843 = vmatpush.bf16.msrb.mxu1 %v7036_v32 }
 0x52d   :  { %7679 = vrcp.f32 %v8268_v60  ;;  %v4025_v63 = vand.u32 2147483647, %v8268_v60  ;;  %v4027_v1 = vand.u32 2147483648, %v8268_v60  ;;  %vm4021_vm14 = vweird.f32 %v8268_v60  ;;  %4831 = vmatpush.bf16.msrb.mxu0 %v7016_v6  ;;  %v6975_v6 = vld [vmem:[#allocation6 + $0x148] sm:$0xf] }
 0x52e   :  { %7681 = vtanh.f32 %v4032_v7  ;;  %4870 = vmatpush.bf16.msrb.mxu3 %v7028_v46  ;;  %v7555_v7 = vld [vmem:[#allocation6 + $0x16c] sm:$0xf]  ;;  %v6935_v46 = vld [vmem:[#allocation6 + $0x100] sm:$0xf] }
 0x52f   :  { %vm8286_vm13 = vcmp.eq.f32.partialorder %v4025_v63, 8.507059e+37  ;;  %v4028_v23 = vor.u32 1.1754944e-38, %v4027_v1  ;;  %v7012_v1 = vor.u32 %v7559_v51, %v7009_v59  ;;  %v6943_v51 = vld [vmem:[#allocation6 + $0x108] sm:$0xf]  ;;  %v6945_v59 = vld [vmem:[#allocation6 + $0x118] sm:$0xf0] }
 0x530   :  { %4844 = vmatpush.bf16.msrb.mxu1 %v7020_v30 }
 0x531   :  { %v8271_v55 = vpop.f32.mrf.mxu0  ;;  %v8273_v57 = vpop.f32.mrf.mxu1  ;;  %4832 = vmatpush.bf16.msrb.mxu0 %v7000_v34 }
 0x532   :  { %v4296_v40 = vrot.slane %v8273_v57, 6  ;;  %v7561_v57 = vld [vmem:[#allocation6 + $0x194] sm:$0xf0]  ;;  %4871 = vmatpush.bf16.msrb.mxu3 %v7012_v1 }
 0x533   :  { %v8279_v53 = vpop.eup %7679  ;;  %v7008_v58 = vor.u32 %v7561_v57, %v7007_v56  ;;  %v6936_v56 = vor.u32 %v7544_v47, %v6935_v46  ;;  %v6937_v57 = vld [vmem:[#allocation6 + $0x110] sm:$0xf0]  ;;  %v4635_v47 = vld [vmem:[#allocation5] sm:$0xf] }
 0x534   :  { %v4017_v43 = vmul.f32 %v8279_v53, %v8268_v60  ;;  %vm4022_vm12 = vweird.f32 %v8279_v53  ;;  %v7024_v60 = vor.u32 %v7565_v14, %v7023_v31  ;;  %v4299_v26 = vsel %vm463_vm0, %v8271_v55, %v4296_v40  ;;  %v6993_v40 = vld [vmem:[#allocation6 + $0x178] sm:$0xf0]  ;;  %4845 = vmatpush.bf16.msrb.mxu1 %v7004_v24  ;;  %v6951_v14 = vld [vmem:[#allocation6 + $0x120] sm:$0xf] }
 0x535   :  { %vm8295_vm15 = vmor %vm4021_vm14, %vm4022_vm12  ;;  %4833 = vmatpush.bf16.msrb.mxu0 %v6984_v13  ;;  %v6976_v31 = vor.u32 %v7553_v25, %v6975_v6 }
 0x536   :  { %v4018_v15 = vsub.f32 1.0, %v4017_v43  ;;  %4857 = vmatpush.bf16.msrb.mxu2 %v7024_v60  ;;  %v7682_v43 = vpop.eup %7681 }
 0x538   :  { %v4275_v28 = vpop.f32.mrf.mxu2  ;;  %v4288_v61 = vpop.f32.mrf.mxu3  ;;  %v4019_v39 = vmul.f32 %v8279_v53, %v4018_v15  ;;  %v6996_v15 = vor.u32 %v7555_v7, %v6993_v40  ;;  %4846 = vmatpush.bf16.msrb.mxu1 %v6988_v17 }
 0x539   :  { %v4297_v35 = vrot.slane %v4275_v28, 4  ;;  %v4298_v5 = vrot.slane %v4288_v61, 2  ;;  %v4251_v37 = vpop.f32.mrf.mxu0  ;;  %v4264_v38 = vpop.f32.mrf.mxu1  ;;  %v6977_v28 = vld [vmem:[#allocation6 + $0x158] sm:$0xf0]  ;;  %v6968_v61 = vor.u32 %v7552_v20, %v6967_v19 }
 0x53a   :  { %v4020_v50 = vadd.f32 %v8279_v53, %v4019_v39  ;;  %4858 = vmatpush.bf16.msrb.mxu2 %v7008_v58  ;;  %4872 = vmatpush.bf16.msrb.mxu3 %v6996_v15  ;;  %v6959_v37 = vld [vmem:[#allocation6 + $0x128] sm:$0xf]  ;;  %v7549_v38 = vld [vmem:[#allocation6 + $0x134] sm:$0xf0]  ;;  %v7547_v39 = vld [vmem:[#allocation6 + $0x12c] sm:$0xf] }
 0x53b   :  { %v4300_v27 = vsel %vm465_vm1, %v4297_v35, %v4298_v5  ;;  %v6980_v35 = vor.u32 %v7551_v18, %v6977_v28  ;;  %v6953_v5 = vld [vmem:[#allocation6 + $0x130] sm:$0xf0]  ;;  %4834 = vmatpush.bf16.msrb.mxu0 %v6968_v61  ;;  %v6960_v45 = vor.u32 %v7549_v38, %v6959_v37  ;;  %v6964_v22 = vor.u32 %v7547_v39, %v6961_v10  ;;  %v7543_v58 = vld [vmem:[#allocation6 + $0x10c] sm:$0xf] }
 0x53c   :  { %v4301_v49 = vsel %vm467_vm2, %v4299_v26, %v4300_v27  ;;  %v4024_v55 = vsel %vm8295_vm15, %v8279_v53, %v4020_v50  ;;  %v6956_v42 = vor.u32 %v7546_v9, %v6953_v5  ;;  %v7542_v50 = vld [vmem:[#allocation6 + $0x104] sm:$0xf]  ;;  %v6948_v1 = vor.u32 %v7543_v58, %v6945_v59 }
 0x53d   :  { %v8304_v63 = vadd.f32 %v4301_v49, %v4079_v29  ;;  %v8311_v4 = vsel %vm8286_vm13, %v4028_v23, %v4024_v55  ;;  %v6969_v23 = vld [vmem:[#allocation6 + $0x150] sm:$0xf0]  ;;  %v7545_v49 = vld [vmem:[#allocation6 + $0x114] sm:$0xf0]  ;;  %v6940_v62 = vor.u32 %v7542_v50, %v6937_v57 }
 0x53e   :  { %v4036_v0 = vrot.slane %v8311_v4, 2  ;;  %v4039_v11 = vmul.f32 %v7682_v43, %v8311_v4  ;;  %4859 = vmatpush.bf16.msrb.mxu2 %v6992_v16  ;;  %v6972_v30 = vor.u32 %v7550_v52, %v6969_v23  ;;  %4873 = vmatpush.bf16.msrb.mxu3 %v6980_v35  ;;  %v4042_v27 = vrot.slane %v8311_v4, 4 }
 0x53f   :  { %v4304_v12 = vsub.f32 0.0, %v8304_v63  ;;  %v6944_v55 = vor.u32 %v7545_v49, %v6943_v51  ;;  %v4324_v44 = vrot.slane %v8304_v63, 6 }
 0x540   :  { %v4277_v53 = vpop.f32.mrf.mxu2  ;;  %v4290_v32 = vpop.f32.mrf.mxu3  ;;  %v4038_v8 = vmul.f32 %v4036_v0, %v8247_v2  ;;  %v7548_v2 = vld [vmem:[#allocation6 + $0x12c] sm:$0xf0]  ;;  %4847 = vmatpush.bf16.msrb.mxu1 %v6972_v30 }
 0x541   :  { %v4305_v21 = vmul.f32 1.442695, %v4304_v12  ;;  %v6952_v60 = vor.u32 %v7548_v2, %v6951_v14 }
 0x542   :  { %v8317_v29 = vadd.f32 %v4039_v11, %v4038_v8  ;;  %4860 = vmatpush.bf16.msrb.mxu2 %v6976_v31  ;;  %4874 = vmatpush.bf16.msrb.mxu3 %v6964_v22 }
 0x543   :  { %7683 = vpow2.f32 %v4305_v21  ;;  %4835 = vmatpush.bf16.msrb.mxu0 %v6952_v60 }
 0x544   :  { %7685 = vtanh.f32 %v8317_v29  ;;  %4848 = vmatpush.bf16.msrb.mxu1 %v6956_v42 }
 0x546   :  { %4861 = vmatpush.bf16.msrb.mxu2 %v6960_v45  ;;  %4875 = vmatpush.bf16.msrb.mxu3 %v6948_v1 }
 0x547   :  { %4836 = vmatpush.bf16.msrb.mxu0 %v6936_v56  ;;  %v4668_v56 = vunpack.c.l.bf16 %v4635_v47 }
 0x548   :  { %4849 = vmatpush.bf16.msrb.mxu1 %v6940_v62 }
 0x549   :  { %v7684_v48 = vpop.eup %7683 }
 0x54a   :  { %v4307_v26 = vadd.f32 1.0, %v7684_v48  ;;  %v7686_v34 = vpop.eup %7685  ;;  %4862 = vmatpush.bf16.msrb.mxu2 %v6944_v55 }
 0x54b   :  { %v4044_v24 = vmul.f32 %v7686_v34, %v4042_v27 }
 0x54c   :  { %7687 = vrcp.f32 %v4307_v26  ;;  %v4319_v36 = vand.u32 2147483648, %v4307_v26  ;;  %v4317_v40 = vand.u32 2147483647, %v4307_v26  ;;  %vm4313_vm4 = vweird.f32 %v4307_v26 }
 0x54d   :  { %v4337_v41 = vpack.c.bf16 %v4044_v24, %v4044_v24  ;;  %7689 = vtanh.f32 %v4324_v44 }
 0x54e   :  { %v4320_v0 = vor.u32 1.1754944e-38, %v4319_v36  ;;  %vm4318_vm6 = vcmp.eq.f32.partialorder %v4317_v40, 8.507059e+37 }
 0x54f   :  { %6803 = vst [vmem:[%s8352_s3 + $0x6] sm:$0x1] %v4337_v41  ;;  %4546 = vmatmul.bf16.vlgmr.msra.gmra.mxu0 %v4337_v41  ;;  %4559 = vmatmul.bf16.vlgmr.msra.gmra.mxu1 %v4337_v41 }
 0x550   :  { %4572 = vmatmul.bf16.vlgmr.msra.gmra.mxu2 %v4337_v41  ;;  %4585 = vmatmul.bf16.vlgmr.msra.gmra.mxu3 %v4337_v41 }
 0x552   :  { %v7688_v33 = vpop.eup %7687 }
 0x553   :  { %v4309_v3 = vmul.f32 %v7688_v33, %v4307_v26  ;;  %vm4314_vm3 = vweird.f32 %v7688_v33  ;;  %v7690_v32 = vpop.eup %7689 }
 0x554   :  { %vm4315_vm5 = vmor %vm4313_vm4, %vm4314_vm3 }
 0x555   :  { %v4310_v4 = vsub.f32 1.0, %v4309_v3 }
 0x557   :  { %v4311_v7 = vmul.f32 %v7688_v33, %v4310_v4 }
 0x559   :  { %v4312_v12 = vadd.f32 %v7688_v33, %v4311_v7 }
 0x55b   :  { %v4316_v13 = vsel %vm4315_vm5, %v7688_v33, %v4312_v12 }
 0x55c   :  { %v4321_v43 = vsel %vm4318_vm6, %v4320_v0, %v4316_v13 }
 0x55d   :  { %v4328_v53 = vrot.slane %v4321_v43, 2  ;;  %v4331_v16 = vmul.f32 %v7690_v32, %v4321_v43  ;;  %v4334_v63 = vrot.slane %v4321_v43, 4 }
 0x55f   :  { %v4330_v17 = vmul.f32 %v4328_v53, %v8256_v54  ;;  %v4344_v54 = vld [vmem:[#allocation4 + $0x1c] sm:$0xf] }
 0x560   :  { %v4377_v18 = vunpack.c.l.bf16 %v4344_v54 }
 0x561   :  { %v8326_v19 = vadd.f32 %v4331_v16, %v4330_v17 }
 0x563   :  { %7691 = vtanh.f32 %v8326_v19 }
 0x569   :  { %v7692_v20 = vpop.eup %7691 }
 0x56a   :  { %v4336_v52 = vmul.f32 %v7692_v20, %v4334_v63 }
 0x56c   :  { %v4340_v21 = vpack.c.bf16 %v4336_v52, %v4336_v52 }
 0x56e   :  { %6804 = vst [vmem:[%s8353_s4 + $0x1] sm:$0x1] %v4340_v21  ;;  %4837 = vmatmul.bf16.vlgmr.msrb.gmra.mxu0 %v4340_v21  ;;  %4850 = vmatmul.bf16.vlgmr.msrb.gmra.mxu1 %v4340_v21 }
 0x56f   :  { %4863 = vmatmul.bf16.vlgmr.msrb.gmra.mxu2 %v4340_v21  ;;  %4876 = vmatmul.bf16.vlgmr.msrb.gmra.mxu3 %v4340_v21 }
 0x5cc   :  { %v4547_v8 = vpop.f32.mrf.mxu0  ;;  %v4560_v11 = vpop.f32.mrf.mxu1 }
 0x5cd   :  { %v4594_v15 = vrot.slane %v4560_v11, 6 }
 0x5cf   :  { %v4597_v31 = vsel %vm463_vm0, %v4547_v8, %v4594_v15 }
 0x5d3   :  { %v4573_v23 = vpop.f32.mrf.mxu2  ;;  %v4586_v6 = vpop.f32.mrf.mxu3 }
 0x5d4   :  { %v4595_v25 = vrot.slane %v4573_v23, 4  ;;  %v4596_v28 = vrot.slane %v4586_v6, 2  ;;  %v4549_v61 = vpop.f32.mrf.mxu0  ;;  %v4562_v30 = vpop.f32.mrf.mxu1 }
 0x5d6   :  { %v4598_v14 = vsel %vm465_vm1, %v4595_v25, %v4596_v28 }
 0x5d7   :  { %v4599_v2 = vsel %vm467_vm2, %v4597_v31, %v4598_v14 }
 0x5d8   :  { %v4601_v9 = vadd.f32 %v4599_v2, %v4377_v18 }
 0x5da   :  { %v4602_v35 = vsub.f32 0.0, %v4601_v9  ;;  %v4622_v48 = vrot.slane %v4601_v9, 6 }
 0x5db   :  { %v4575_v5 = vpop.f32.mrf.mxu2  ;;  %v4588_v37 = vpop.f32.mrf.mxu3 }
 0x5dc   :  { %v4603_v38 = vmul.f32 1.442695, %v4602_v35 }
 0x5de   :  { %7693 = vpow2.f32 %v4603_v38 }
 0x5e4   :  { %v7694_v39 = vpop.eup %7693 }
 0x5e5   :  { %v4605_v10 = vadd.f32 1.0, %v7694_v39 }
 0x5e7   :  { %7695 = vrcp.f32 %v4605_v10  ;;  %v4615_v27 = vand.u32 2147483647, %v4605_v10  ;;  %v4617_v50 = vand.u32 2147483648, %v4605_v10  ;;  %vm4611_vm8 = vweird.f32 %v4605_v10 }
 0x5e8   :  { %7697 = vtanh.f32 %v4622_v48 }
 0x5e9   :  { %v4618_v1 = vor.u32 1.1754944e-38, %v4617_v50  ;;  %vm4616_vm10 = vcmp.eq.f32.partialorder %v4615_v27, 8.507059e+37 }
 0x5eb   :  { %v4838_v60 = vpop.f32.mrf.mxu0  ;;  %v4851_v42 = vpop.f32.mrf.mxu1 }
 0x5ec   :  { %v4885_v26 = vrot.slane %v4851_v42, 6 }
 0x5ed   :  { %v7696_v45 = vpop.eup %7695 }
 0x5ee   :  { %v4607_v46 = vmul.f32 %v7696_v45, %v4605_v10  ;;  %vm4612_vm7 = vweird.f32 %v7696_v45  ;;  %v4888_v62 = vsel %vm463_vm0, %v4838_v60, %v4885_v26  ;;  %v7698_v40 = vpop.eup %7697 }
 0x5ef   :  { %vm4613_vm9 = vmor %vm4611_vm8, %vm4612_vm7 }
 0x5f0   :  { %v4608_v22 = vsub.f32 1.0, %v4607_v46 }
 0x5f2   :  { %v4864_v34 = vpop.f32.mrf.mxu2  ;;  %v4877_v57 = vpop.f32.mrf.mxu3  ;;  %v4609_v51 = vmul.f32 %v7696_v45, %v4608_v22 }
 0x5f3   :  { %v4886_v49 = vrot.slane %v4864_v34, 4  ;;  %v4887_v24 = vrot.slane %v4877_v57, 2  ;;  %v4840_v58 = vpop.f32.mrf.mxu0  ;;  %v4853_v59 = vpop.f32.mrf.mxu1 }
 0x5f4   :  { %v4610_v41 = vadd.f32 %v7696_v45, %v4609_v51 }
 0x5f5   :  { %v4889_v55 = vsel %vm465_vm1, %v4886_v49, %v4887_v24 }
 0x5f6   :  { %v4890_v33 = vsel %vm467_vm2, %v4888_v62, %v4889_v55  ;;  %v4614_v3 = vsel %vm4613_vm9, %v7696_v45, %v4610_v41 }
 0x5f7   :  { %v4892_v44 = vadd.f32 %v4890_v33, %v4668_v56  ;;  %v4619_v4 = vsel %vm4616_vm10, %v4618_v1, %v4614_v3 }
 0x5f8   :  { %v4626_v36 = vrot.slane %v4619_v4, 2  ;;  %v4629_v43 = vmul.f32 %v7698_v40, %v4619_v4  ;;  %v4632_v20 = vrot.slane %v4619_v4, 4 }
 0x5f9   :  { %v4893_v7 = vsub.f32 0.0, %v4892_v44  ;;  %v4913_v11 = vrot.slane %v4892_v44, 6 }
 0x5fa   :  { %v4866_v12 = vpop.f32.mrf.mxu2  ;;  %v4879_v0 = vpop.f32.mrf.mxu3  ;;  %v4628_v13 = vmul.f32 %v4626_v36, %v8317_v29 }
 0x5fb   :  { %v4894_v53 = vmul.f32 1.442695, %v4893_v7 }
 0x5fc   :  { %v4630_v32 = vadd.f32 %v4629_v43, %v4628_v13 }
 0x5fd   :  { %7699 = vpow2.f32 %v4894_v53 }
 0x5fe   :  { %7701 = vtanh.f32 %v4630_v32  ;;  %4932 = vst [vmem:[#allocation3] sm:$0x3] %v4630_v32 }
 0x603   :  { %v7700_v17 = vpop.eup %7699 }
 0x604   :  { %v4896_v16 = vadd.f32 1.0, %v7700_v17  ;;  %v7702_v63 = vpop.eup %7701 }
 0x605   :  { %v4634_v52 = vmul.f32 %v7702_v63, %v4632_v20 }
 0x606   :  { %7703 = vrcp.f32 %v4896_v16  ;;  %v4908_v15 = vand.u32 2147483648, %v4896_v16  ;;  %v4906_v6 = vand.u32 2147483647, %v4896_v16  ;;  %vm4902_vm1 = vweird.f32 %v4896_v16 }
 0x607   :  { %v4926_v21 = vpack.c.bf16 %v4634_v52, %v4634_v52  ;;  %4931 = vst [vmem:[#allocation2] sm:$0x3] %v4634_v52  ;;  %7705 = vtanh.f32 %v4913_v11 }
 0x608   :  { %4935 = vst [vmem:[#allocation9] sm:$0x3] %v4634_v52  ;;  %v4909_v18 = vor.u32 1.1754944e-38, %v4908_v15  ;;  %vm4907_vm11 = vcmp.eq.f32.partialorder %v4906_v6, 8.507059e+37 }
 0x609   :  { %7061 = vst [vmem:[%s8352_s3 + $0x7] sm:$0x1] %v4926_v21  ;;  %s7765_s3 = smov [#allocation9]  }
 0x60a   :  { %s4953_s6 = sshll.u32 %s7765_s3, 4  ;;  %s4954_s6 = int_to_ptr.vmem [resolvable:$true] %s4953_s6 }
 0x60c   :  { %v7704_v29 = vpop.eup %7703 }
 0x60d   :  { %v4898_v8 = vmul.f32 %v7704_v29, %v4896_v16  ;;  %vm4903_vm0 = vweird.f32 %v7704_v29  ;;  %v7706_v31 = vpop.eup %7705 }
 0x60e   :  { %vm4904_vm2 = vmor %vm4902_vm1, %vm4903_vm0 }
 0x60f   :  { %v4899_v54 = vsub.f32 1.0, %v4898_v8 }
 0x611   :  { %v4900_v23 = vmul.f32 %v7704_v29, %v4899_v54 }
 0x613   :  { %v4901_v25 = vadd.f32 %v7704_v29, %v4900_v23 }
 0x615   :  { %v4905_v28 = vsel %vm4904_vm2, %v7704_v29, %v4901_v25 }
 0x616   :  { %v4910_v61 = vsel %vm4907_vm11, %v4909_v18, %v4905_v28 }
 0x617   :  { %v4917_v30 = vrot.slane %v4910_v61, 2  ;;  %v4920_v2 = vmul.f32 %v7706_v31, %v4910_v61  ;;  %v4923_v35 = vrot.slane %v4910_v61, 4 }
 0x619   :  { %v4919_v14 = vmul.f32 %v4917_v30, %v8326_v19 }
 0x61b   :  { %v4921_v9 = vadd.f32 %v4920_v2, %v4919_v14 }
 0x61d   :  { %7707 = vtanh.f32 %v4921_v9  ;;  %4934 = vst [vmem:[#allocation3 + $0x2] sm:$0x3] %v4921_v9 }
 0x623   :  { %v7708_v5 = vpop.eup %7707 }
 0x624   :  { %v4925_v37 = vmul.f32 %v7708_v5, %v4923_v35 }
 0x626   :  { %v4929_v38 = vpack.c.bf16 %v4925_v37, %v4925_v37  ;;  %4933 = vst [vmem:[#allocation2 + $0x2] sm:$0x3] %v4925_v37 }
 0x627   :  { %4937 = vst [vmem:[#allocation9 + $0x2] sm:$0x3] %v4925_v37 }
 0x628   :  { %4930 = vst [vmem:[%s8353_s4] sm:$0x1] %v4929_v38 }
 0x629   :  { %4961 = dma.vmem_to_hbm [thread:$0]  %s4954_s6, 64, %s4956_s9, [#allocation8], %s7766_s12, %s7766_s12, %s7767_s13  }
 0x62a   :  { %7759 = dma.done.wait [#allocation8], 64  }
 0x62b   :  { %7760 = vsyncadd [#allocation8], 4294967232 }
 0x62c   :  { %4975 = vsyncpa [#allocation7], 1 }
 0x62d   :  { %4976 = vsyncpa [#allocation8], 1 }

</bundles_post_ra>
